<compile_context>
chip_gen: v7x
topology: tpu7x:2x2x1
jax: 0.10.0
libtpu: 0.0.40
codegen_flags: <defaults>
</compile_context>

<pallas_src>
import functools

import jax
import jax.numpy as jnp
from jax import lax
from jax.experimental import pallas as pl
from jax.experimental.pallas import tpu as pltpu

# ---------------- small synthetic MT5 / FiD config ----------------
VOCAB = 64
D_MODEL = 32
N_HEADS = 4
D_KV = 8
INNER = N_HEADS * D_KV            # 32
D_FF = 64
N_ENC_LAYERS = 2
N_DEC_LAYERS = 2
NUM_BUCKETS = 8
MAX_DISTANCE = 16
LN_EPS = 1e-6
PAD_ID = 0
DECODER_START_ID = 0
NEG_INF = -1e9


# ---------------- in-kernel helpers ----------------
def _rms(x, w):
    var = jnp.mean(x * x, axis=-1, keepdims=True)
    return x * lax.rsqrt(var + LN_EPS) * w


def _gelu_new(a):
    # gelu_new (tanh approximation), as in MT5's gated-gelu FFN
    return 0.5 * a * (1.0 + jnp.tanh(0.7978845608028654 * (a + 0.044715 * a * a * a)))


def _attn_into(ctx_ref, rows, q, k, v, bias):
    """Head-batched attention. q:(Lq,INNER) k,v:(Lk,INNER), bias broadcastable to
    (H, Lq, Lk). Writes the (Lq, INNER) context into ctx_ref[rows]. T5: no 1/sqrt(d)."""
    qh = jnp.stack([q[:, h * D_KV:(h + 1) * D_KV] for h in range(N_HEADS)], axis=0)
    kh = jnp.stack([k[:, h * D_KV:(h + 1) * D_KV] for h in range(N_HEADS)], axis=0)
    vh = jnp.stack([v[:, h * D_KV:(h + 1) * D_KV] for h in range(N_HEADS)], axis=0)
    # one head-batched score matmul + one head-batched PV matmul
    s = jnp.einsum("hqd,hkd->hqk", qh, kh, preferred_element_type=jnp.float32) + bias
    m = jnp.max(s, axis=-1, keepdims=True)
    e = jnp.exp(s - m)
    p = e / jnp.sum(e, axis=-1, keepdims=True)
    ctx = jnp.einsum("hqk,hkd->hqd", p, vh, preferred_element_type=jnp.float32)
    for h in range(N_HEADS):
        ctx_ref[rows, h * D_KV:(h + 1) * D_KV] = ctx[h]


# ---------------- single fused FiD-T5 forward kernel ----------------
def _fid_kernel(
    enc_emb_ref,      # (BP*Lp, D)      encoder token-embedding slab
    enc_kmask_ref,    # (BP, 1, Lp)     additive key padding mask (per passage)
    enc_bias_ref,     # (H, Lp, Lp)     encoder relative-position bias
    dec_emb_ref,      # (B*Lt, D)       decoder token-embedding slab
    cross_kmask_ref,  # (B, 1, Lenc)    additive cross-attn key padding mask
    self_bias_ref,    # (H, Lt, Lt)     causal mask + decoder rel-pos bias
    labels_ref,       # (B*Lt, 1) int32 (-100 = ignore)
    e_ln0, e_wqkv, e_wo, e_ln1, e_wi, e_woff, e_lnf,
    d_ln0, d_wqkv, d_wos, d_ln1, d_wqc, d_wkvc, d_woc, d_ln2, d_wi, d_woff,
    d_lnf, lmh,
    logits_ref,       # (B, Lt, VOCAB)
    loss_ref,         # (1, 1) SMEM scalar
    ectx_ref,         # (BP*Lp, INNER)  VMEM scratch
    dctx_ref,         # (B*Lt, INNER)   VMEM scratch
):
    BP, _, Lp = enc_kmask_ref.shape
    B, _, Lenc = cross_kmask_ref.shape
    Lt = self_bias_ref.shape[1]

    # ---------------- encoder stack on the (BP*Lp, D) slab ----------------
    x = enc_emb_ref[...]
    enc_km = enc_kmask_ref[...]
    enc_biases = [enc_bias_ref[...] + enc_km[p][None, :, :] for p in range(BP)]
    for l in range(N_ENC_LAYERS):   # TODO(synk): switch to lax.fori_loop at real depths
        # self-attention (block-diagonal per passage)
        n = _rms(x, e_ln0[l])
        qkv = jnp.dot(n, e_wqkv[l], preferred_element_type=jnp.float32)     # (BP*Lp, 3*INNER)
        for p in range(BP):
            r = slice(p * Lp, (p + 1) * Lp)
            _attn_into(ectx_ref, r, qkv[r, :INNER], qkv[r, INNER:2 * INNER],
                       qkv[r, 2 * INNER:], enc_biases[p])
        x = x + jnp.dot(ectx_ref[...], e_wo[l], preferred_element_type=jnp.float32)
        # gated-GELU FFN
        n = _rms(x, e_ln1[l])
        hh = jnp.dot(n, e_wi[l], preferred_element_type=jnp.float32)        # (BP*Lp, 2*D_FF)
        g = _gelu_new(hh[:, :D_FF]) * hh[:, D_FF:]
        x = x + jnp.dot(g, e_woff[l], preferred_element_type=jnp.float32)
    enc = _rms(x, e_lnf[...])       # FiD concat is implicit in the slab row order

    # -------- decoder stack + lm_head + cross-entropy on (B*Lt, D) slab --------
    y = dec_emb_ref[...]
    sbias = self_bias_ref[...]
    cross_km = cross_kmask_ref[...]
    cross_biases = [cross_km[b][None, :, :] for b in range(B)]
    for l in range(N_DEC_LAYERS):
        # causal self-attention (+ decoder rel-pos bias)
        n = _rms(y, d_ln0[l])
        qkv = jnp.dot(n, d_wqkv[l], preferred_element_type=jnp.float32)
        for b in range(B):
            r = slice(b * Lt, (b + 1) * Lt)
            _attn_into(dctx_ref, r, qkv[r, :INNER], qkv[r, INNER:2 * INNER],
                       qkv[r, 2 * INNER:], sbias)
        y = y + jnp.dot(dctx_ref[...], d_wos[l], preferred_element_type=jnp.float32)
        # cross-attention over the VMEM-resident concatenated encoder states
        n = _rms(y, d_ln1[l])
        q = jnp.dot(n, d_wqc[l], preferred_element_type=jnp.float32)        # (B*Lt, INNER)
        kv = jnp.dot(enc, d_wkvc[l], preferred_element_type=jnp.float32)    # (BP*Lp, 2*INNER)
        for b in range(B):
            rq = slice(b * Lt, (b + 1) * Lt)
            rk = slice(b * Lenc, (b + 1) * Lenc)
            _attn_into(dctx_ref, rq, q[rq], kv[rk, :INNER], kv[rk, INNER:],
                       cross_biases[b])
        y = y + jnp.dot(dctx_ref[...], d_woc[l], preferred_element_type=jnp.float32)
        # gated-GELU FFN
        n = _rms(y, d_ln2[l])
        hh = jnp.dot(n, d_wi[l], preferred_element_type=jnp.float32)
        g = _gelu_new(hh[:, :D_FF]) * hh[:, D_FF:]
        y = y + jnp.dot(g, d_woff[l], preferred_element_type=jnp.float32)
    y = _rms(y, d_lnf[...])
    logits = jnp.dot(y, lmh[...], preferred_element_type=jnp.float32)       # (B*Lt, V)
    logits_ref[...] = logits.reshape(B, Lt, VOCAB)

    # fused token cross-entropy (ignore_index = -100) -> single SMEM scalar
    lbl = labels_ref[...]                                    # (B*Lt, 1) int32
    valid = (lbl != -100).astype(jnp.float32)
    tgt_id = jnp.where(lbl < 0, 0, lbl)
    col = lax.broadcasted_iota(jnp.int32, logits.shape, 1)
    tgt = jnp.sum(jnp.where(col == tgt_id, logits, 0.0), axis=-1, keepdims=True)
    m = jnp.max(logits, axis=-1, keepdims=True)
    lse = jnp.log(jnp.sum(jnp.exp(logits - m), axis=-1, keepdims=True)) + m
    ce = valid * (lse - tgt)
    loss_ref[0, 0] = jnp.sum(ce) / jnp.maximum(jnp.sum(valid), 1.0)


def run_fid(params, enc_emb, enc_kmask, enc_bias, dec_emb, cross_kmask,
            self_bias, labels):
    enc = params["encoder"]
    dec = params["decoder"]
    B = cross_kmask.shape[0]
    Lt = self_bias.shape[1]
    args = (enc_emb, enc_kmask, enc_bias, dec_emb, cross_kmask, self_bias, labels,
            enc["ln0"], enc["wqkv"], enc["wo"], enc["ln1"], enc["wi"], enc["wo_ff"],
            params["enc_final_ln"],
            dec["ln0"], dec["wqkv"], dec["wo_s"], dec["ln1"], dec["wq_c"],
            dec["wkv_c"], dec["wo_c"], dec["ln2"], dec["wi"], dec["wo_ff"],
            params["dec_final_ln"], params["lm_head"])
    vmem = lambda: pl.BlockSpec(memory_space=pltpu.MemorySpace.VMEM)
    return pl.pallas_call(
        _fid_kernel,
        out_shape=(jax.ShapeDtypeStruct((B, Lt, VOCAB), jnp.float32),
                   jax.ShapeDtypeStruct((1, 1), jnp.float32)),
        in_specs=[vmem() for _ in args],
        out_specs=(vmem(), pl.BlockSpec(memory_space=pltpu.MemorySpace.SMEM)),
        scratch_shapes=[pltpu.VMEM((enc_emb.shape[0], INNER), jnp.float32),
                        pltpu.VMEM((dec_emb.shape[0], INNER), jnp.float32)],
    )(*args)


# ---------------- tiny host-side (XLA) helpers ----------------
def relative_position_bucket(rel_pos, bidirectional, num_buckets, max_distance):
    ret = jnp.zeros_like(rel_pos)
    if bidirectional:
        num_buckets //= 2
        ret = ret + (rel_pos > 0).astype(jnp.int32) * num_buckets
        n = jnp.abs(rel_pos)
    else:
        n = -jnp.minimum(rel_pos, 0)
    max_exact = num_buckets // 2
    is_small = n < max_exact
    large = max_exact + (
        jnp.log(jnp.maximum(n, 1).astype(jnp.float32) / max_exact)
        / jnp.log(max_distance / max_exact) * (num_buckets - max_exact)
    ).astype(jnp.int32)
    large = jnp.minimum(large, num_buckets - 1)
    return ret + jnp.where(is_small, n, large)


def compute_rel_bias(qlen, klen, emb, bidirectional):
    ctx = jnp.arange(qlen, dtype=jnp.int32)[:, None]
    mem = jnp.arange(klen, dtype=jnp.int32)[None, :]
    buckets = relative_position_bucket(mem - ctx, bidirectional, NUM_BUCKETS, MAX_DISTANCE)
    vals = emb[buckets]                          # (q, k, H)
    return jnp.transpose(vals, (2, 0, 1))        # (H, q, k) — un-broadcast; added in-kernel


def shift_right(labels):
    start = jnp.full((labels.shape[0], 1), DECODER_START_ID, dtype=labels.dtype)
    shifted = jnp.concatenate([start, labels[:, :-1]], axis=1)
    return jnp.where(shifted == -100, PAD_ID, shifted)


# ---------------- LegalGenerator forward (FiD-T5) ----------------
def legal_generator_forward(params, input_ids, attention_mask, labels,
                            decoder_input_ids=None):
    # TODO(synk): use_cache / past_key_values incremental decoding path not implemented.
    bsz, n_passages, Lp = input_ids.shape
    BP = bsz * n_passages
    Lenc = n_passages * Lp

    # FiD: fold passages into the batch dim for the encoder
    enc_ids = input_ids.reshape(BP, Lp)
    enc_mask = attention_mask.reshape(BP, Lp).astype(jnp.float32)
    enc_emb = params["shared"][enc_ids].reshape(BP * Lp, D_MODEL)       # token slab
    enc_kmask = ((1.0 - enc_mask) * NEG_INF)[:, None, :]                # (BP, 1, Lp)
    enc_bias = compute_rel_bias(Lp, Lp, params["enc_rel_bias"], True)   # (H, Lp, Lp)

    # FiD: decoder cross-attends to passage-concatenated encoder states
    enc_mask_flat = attention_mask.reshape(bsz, Lenc).astype(jnp.float32)
    cross_kmask = ((1.0 - enc_mask_flat) * NEG_INF)[:, None, :]         # (B, 1, Lenc)

    dec_ids = shift_right(labels) if decoder_input_ids is None else decoder_input_ids
    Lt = dec_ids.shape[1]
    dec_emb = params["shared"][dec_ids].reshape(bsz * Lt, D_MODEL)
    causal = (1.0 - jnp.tril(jnp.ones((Lt, Lt), jnp.float32))) * NEG_INF
    self_bias = causal[None] + compute_rel_bias(Lt, Lt, params["dec_rel_bias"], False)

    if labels is not None:
        lbl = labels.reshape(bsz * Lt, 1).astype(jnp.int32)
    else:
        lbl = jnp.full((bsz * Lt, 1), -100, jnp.int32)

    logits, loss_out = run_fid(params, enc_emb, enc_kmask, enc_bias,
                               dec_emb, cross_kmask, self_bias, lbl)
    loss = loss_out[0, 0] if labels is not None else None
    return loss, logits


# ---------------- deterministic parameter init (layer-stacked / fused) ----------------
def init_params(key):
    it = iter(jax.random.split(key, 256))

    def w(shape, scale=0.05):
        return jax.random.normal(next(it), shape, jnp.float32) * scale

    def enc_layer():
        return {
            "ln0": jnp.ones((1, D_MODEL), jnp.float32),
            "wqkv": jnp.concatenate([w((D_MODEL, INNER)), w((D_MODEL, INNER)),
                                     w((D_MODEL, INNER))], axis=-1),       # (D, 3*INNER)
            "wo": w((INNER, D_MODEL)),
            "ln1": jnp.ones((1, D_MODEL), jnp.float32),
            "wi": jnp.concatenate([w((D_MODEL, D_FF)), w((D_MODEL, D_FF))], axis=-1),
            "wo_ff": w((D_FF, D_MODEL)),
        }

    def dec_layer():
        return {
            "ln0": jnp.ones((1, D_MODEL), jnp.float32),
            "wqkv": jnp.concatenate([w((D_MODEL, INNER)), w((D_MODEL, INNER)),
                                     w((D_MODEL, INNER))], axis=-1),
            "wo_s": w((INNER, D_MODEL)),
            "ln1": jnp.ones((1, D_MODEL), jnp.float32),
            "wq_c": w((D_MODEL, INNER)),
            "wkv_c": jnp.concatenate([w((D_MODEL, INNER)), w((D_MODEL, INNER))], axis=-1),
            "wo_c": w((INNER, D_MODEL)),
            "ln2": jnp.ones((1, D_MODEL), jnp.float32),
            "wi": jnp.concatenate([w((D_MODEL, D_FF)), w((D_MODEL, D_FF))], axis=-1),
            "wo_ff": w((D_FF, D_MODEL)),
        }

    def stack(layers):
        return {k: jnp.stack([lyr[k] for lyr in layers], axis=0) for k in layers[0]}

    return {
        "shared": w((VOCAB, D_MODEL), 1.0),
        "enc_rel_bias": w((NUM_BUCKETS, N_HEADS), 0.1),
        "dec_rel_bias": w((NUM_BUCKETS, N_HEADS), 0.1),
        "encoder": stack([enc_layer() for _ in range(N_ENC_LAYERS)]),
        "decoder": stack([dec_layer() for _ in range(N_DEC_LAYERS)]),
        "enc_final_ln": jnp.ones((1, D_MODEL), jnp.float32),
        "dec_final_ln": jnp.ones((1, D_MODEL), jnp.float32),
        "lm_head": w((D_MODEL, VOCAB)),
    }


if __name__ == "__main__":
    key = jax.random.PRNGKey(0)
    pk, ik, mk, lk = jax.random.split(key, 4)
    params = init_params(pk)

    bsz, n_passages, Lp, Lt = 2, 2, 8, 6
    input_ids = jax.random.randint(ik, (bsz, n_passages, Lp), 1, VOCAB, dtype=jnp.int32)
    attention_mask = jnp.ones((bsz, n_passages, Lp), jnp.int32)
    attention_mask = attention_mask.at[:, :, -2:].set(
        jax.random.randint(mk, (bsz, n_passages, 2), 0, 2, dtype=jnp.int32))
    labels = jax.random.randint(lk, (bsz, Lt), 1, VOCAB, dtype=jnp.int32)
    labels = labels.at[0, -1].set(-100)  # exercise ignore_index

    fwd = jax.jit(functools.partial(legal_generator_forward, params))
    loss, logits = fwd(input_ids, attention_mask, labels)
    jax.block_until_ready((loss, logits))

    assert logits.shape == (bsz, Lt, VOCAB)
    assert bool(jnp.isfinite(loss))
    print("KERNEL_OK")
</pallas_src>

<mosaic_0001>
module attributes {stable_mosaic.version = 11 : i64} {
  func.func @_fid_kernel(%arg0: memref<32x32xf32, #tpu.memory_space<vmem>>, %arg1: memref<4x1x8xf32, #tpu.memory_space<vmem>>, %arg2: memref<4x8x8xf32, #tpu.memory_space<vmem>>, %arg3: memref<12x32xf32, #tpu.memory_space<vmem>>, %arg4: memref<2x1x16xf32, #tpu.memory_space<vmem>>, %arg5: memref<4x6x6xf32, #tpu.memory_space<vmem>>, %arg6: memref<12x1xi32, #tpu.memory_space<vmem>>, %arg7: memref<2x1x32xf32, #tpu.memory_space<vmem>>, %arg8: memref<2x32x96xf32, #tpu.memory_space<vmem>>, %arg9: memref<2x32x32xf32, #tpu.memory_space<vmem>>, %arg10: memref<2x1x32xf32, #tpu.memory_space<vmem>>, %arg11: memref<2x32x128xf32, #tpu.memory_space<vmem>>, %arg12: memref<2x64x32xf32, #tpu.memory_space<vmem>>, %arg13: memref<1x32xf32, #tpu.memory_space<vmem>>, %arg14: memref<2x1x32xf32, #tpu.memory_space<vmem>>, %arg15: memref<2x32x96xf32, #tpu.memory_space<vmem>>, %arg16: memref<2x32x32xf32, #tpu.memory_space<vmem>>, %arg17: memref<2x1x32xf32, #tpu.memory_space<vmem>>, %arg18: memref<2x32x32xf32, #tpu.memory_space<vmem>>, %arg19: memref<2x32x64xf32, #tpu.memory_space<vmem>>, %arg20: memref<2x32x32xf32, #tpu.memory_space<vmem>>, %arg21: memref<2x1x32xf32, #tpu.memory_space<vmem>>, %arg22: memref<2x32x128xf32, #tpu.memory_space<vmem>>, %arg23: memref<2x64x32xf32, #tpu.memory_space<vmem>>, %arg24: memref<1x32xf32, #tpu.memory_space<vmem>>, %arg25: memref<32x64xf32, #tpu.memory_space<vmem>>, %arg26: memref<2x6x64xf32, #tpu.memory_space<vmem>>, %arg27: memref<1x1xf32, #tpu.memory_space<smem>>, %arg28: memref<32x32xf32, #tpu.memory_space<vmem>>, %arg29: memref<12x32xf32, #tpu.memory_space<vmem>>) attributes {dimension_semantics = [], scalar_prefetch = 0 : i64, scratch_operands = 2 : i64, tpu.core_type = #tpu.core_type<tc>} {
    %c0 = arith.constant 0 : index
    %c0_0 = arith.constant 0 : index
    %0 = vector.load %arg0[%c0, %c0_0] : memref<32x32xf32, #tpu.memory_space<vmem>>, vector<32x32xf32>
    %c0_1 = arith.constant 0 : index
    %c0_2 = arith.constant 0 : index
    %c0_3 = arith.constant 0 : index
    %1 = vector.load %arg1[%c0_1, %c0_2, %c0_3] : memref<4x1x8xf32, #tpu.memory_space<vmem>>, vector<4x1x8xf32>
    %c0_4 = arith.constant 0 : index
    %c0_5 = arith.constant 0 : index
    %c0_6 = arith.constant 0 : index
    %2 = vector.load %arg2[%c0_4, %c0_5, %c0_6] : memref<4x8x8xf32, #tpu.memory_space<vmem>>, vector<4x8x8xf32>
    %3 = vector.extract_strided_slice %1 {offsets = [0, 0, 0], sizes = [1, 1, 8], strides = [1, 1, 1]} : vector<4x1x8xf32> to vector<1x1x8xf32>
    %4 = vector.shape_cast %3 : vector<1x1x8xf32> to vector<1x8xf32>
    %5 = vector.shape_cast %4 : vector<1x8xf32> to vector<1x1x8xf32>
    %6 = vector.broadcast %5 : vector<1x1x8xf32> to vector<4x8x8xf32>
    %7 = arith.addf %2, %6 : vector<4x8x8xf32>
    %c0_7 = arith.constant 0 : index
    %c0_8 = arith.constant 0 : index
    %c0_9 = arith.constant 0 : index
    %8 = vector.load %arg2[%c0_7, %c0_8, %c0_9] : memref<4x8x8xf32, #tpu.memory_space<vmem>>, vector<4x8x8xf32>
    %9 = vector.extract_strided_slice %1 {offsets = [1, 0, 0], sizes = [1, 1, 8], strides = [1, 1, 1]} : vector<4x1x8xf32> to vector<1x1x8xf32>
    %10 = vector.shape_cast %9 : vector<1x1x8xf32> to vector<1x8xf32>
    %11 = vector.shape_cast %10 : vector<1x8xf32> to vector<1x1x8xf32>
    %12 = vector.broadcast %11 : vector<1x1x8xf32> to vector<4x8x8xf32>
    %13 = arith.addf %8, %12 : vector<4x8x8xf32>
    %c0_10 = arith.constant 0 : index
    %c0_11 = arith.constant 0 : index
    %c0_12 = arith.constant 0 : index
    %14 = vector.load %arg2[%c0_10, %c0_11, %c0_12] : memref<4x8x8xf32, #tpu.memory_space<vmem>>, vector<4x8x8xf32>
    %15 = vector.extract_strided_slice %1 {offsets = [2, 0, 0], sizes = [1, 1, 8], strides = [1, 1, 1]} : vector<4x1x8xf32> to vector<1x1x8xf32>
    %16 = vector.shape_cast %15 : vector<1x1x8xf32> to vector<1x8xf32>
    %17 = vector.shape_cast %16 : vector<1x8xf32> to vector<1x1x8xf32>
    %18 = vector.broadcast %17 : vector<1x1x8xf32> to vector<4x8x8xf32>
    %19 = arith.addf %14, %18 : vector<4x8x8xf32>
    %c0_13 = arith.constant 0 : index
    %c0_14 = arith.constant 0 : index
    %c0_15 = arith.constant 0 : index
    %20 = vector.load %arg2[%c0_13, %c0_14, %c0_15] : memref<4x8x8xf32, #tpu.memory_space<vmem>>, vector<4x8x8xf32>
    %21 = vector.extract_strided_slice %1 {offsets = [3, 0, 0], sizes = [1, 1, 8], strides = [1, 1, 1]} : vector<4x1x8xf32> to vector<1x1x8xf32>
    %22 = vector.shape_cast %21 : vector<1x1x8xf32> to vector<1x8xf32>
    %23 = vector.shape_cast %22 : vector<1x8xf32> to vector<1x1x8xf32>
    %24 = vector.broadcast %23 : vector<1x1x8xf32> to vector<4x8x8xf32>
    %25 = arith.addf %20, %24 : vector<4x8x8xf32>
    %c0_16 = arith.constant 0 : index
    %c0_17 = arith.constant 0 : index
    %c0_18 = arith.constant 0 : index
    %26 = vector.load %arg7[%c0_16, %c0_17, %c0_18] : memref<2x1x32xf32, #tpu.memory_space<vmem>>, vector<1x1x32xf32>
    %27 = vector.shape_cast %26 : vector<1x1x32xf32> to vector<1x32xf32>
    %28 = arith.mulf %0, %0 : vector<32x32xf32>
    %cst = arith.constant dense<0.000000e+00> : vector<32xf32>
    %29 = vector.multi_reduction <add>, %28, %cst [1] : vector<32x32xf32> to vector<32xf32>
    %30 = vector.shape_cast %29 : vector<32xf32> to vector<32x1xf32>
    %cst_19 = arith.constant 3.200000e+01 : f32
    %31 = vector.broadcast %cst_19 : f32 to vector<32x1xf32>
    %32 = arith.divf %30, %31 : vector<32x1xf32>
    %cst_20 = arith.constant 9.99999997E-7 : f32
    %33 = vector.broadcast %cst_20 : f32 to vector<32x1xf32>
    %34 = arith.addf %32, %33 : vector<32x1xf32>
    %35 = math.rsqrt %34 : vector<32x1xf32>
    %36 = vector.broadcast %35 : vector<32x1xf32> to vector<32x32xf32>
    %37 = arith.mulf %0, %36 : vector<32x32xf32>
    %38 = vector.broadcast %27 : vector<1x32xf32> to vector<32x32xf32>
    %39 = arith.mulf %37, %38 : vector<32x32xf32>
    %c0_21 = arith.constant 0 : index
    %c0_22 = arith.constant 0 : index
    %c0_23 = arith.constant 0 : index
    %40 = vector.load %arg8[%c0_21, %c0_22, %c0_23] : memref<2x32x96xf32, #tpu.memory_space<vmem>>, vector<1x32x96xf32>
    %41 = vector.shape_cast %40 : vector<1x32x96xf32> to vector<32x96xf32>
    %cst_24 = arith.constant dense<0.000000e+00> : vector<32x96xf32>
    %42 = tpu.matmul %39, %41, %cst_24 {dimension_numbers = #tpu.dot_dimension_numbers<[1], [0], [0], [1], [0, 0, 1, 1], [], []>} : vector<32x32xf32>, vector<32x96xf32>, vector<32x96xf32> -> vector<32x96xf32>
    %43 = vector.extract_strided_slice %42 {offsets = [0, 0], sizes = [8, 32], strides = [1, 1]} : vector<32x96xf32> to vector<8x32xf32>
    %44 = vector.extract_strided_slice %42 {offsets = [0, 32], sizes = [8, 32], strides = [1, 1]} : vector<32x96xf32> to vector<8x32xf32>
    %45 = vector.extract_strided_slice %42 {offsets = [0, 64], sizes = [8, 32], strides = [1, 1]} : vector<32x96xf32> to vector<8x32xf32>
    %46 = vector.extract_strided_slice %43 {offsets = [0, 0], sizes = [8, 8], strides = [1, 1]} : vector<8x32xf32> to vector<8x8xf32>
    %47 = vector.extract_strided_slice %43 {offsets = [0, 8], sizes = [8, 8], strides = [1, 1]} : vector<8x32xf32> to vector<8x8xf32>
    %48 = vector.extract_strided_slice %43 {offsets = [0, 16], sizes = [8, 8], strides = [1, 1]} : vector<8x32xf32> to vector<8x8xf32>
    %49 = vector.extract_strided_slice %43 {offsets = [0, 24], sizes = [8, 8], strides = [1, 1]} : vector<8x32xf32> to vector<8x8xf32>
    %50 = vector.shape_cast %46 : vector<8x8xf32> to vector<1x8x8xf32>
    %51 = vector.shape_cast %47 : vector<8x8xf32> to vector<1x8x8xf32>
    %52 = vector.shape_cast %48 : vector<8x8xf32> to vector<1x8x8xf32>
    %53 = vector.shape_cast %49 : vector<8x8xf32> to vector<1x8x8xf32>
    %54 = tpu.concatenate %50, %51, %52, %53 in 0 : vector<1x8x8xf32>, vector<1x8x8xf32>, vector<1x8x8xf32>, vector<1x8x8xf32> -> vector<4x8x8xf32>
    %55 = vector.extract_strided_slice %44 {offsets = [0, 0], sizes = [8, 8], strides = [1, 1]} : vector<8x32xf32> to vector<8x8xf32>
    %56 = vector.extract_strided_slice %44 {offsets = [0, 8], sizes = [8, 8], strides = [1, 1]} : vector<8x32xf32> to vector<8x8xf32>
    %57 = vector.extract_strided_slice %44 {offsets = [0, 16], sizes = [8, 8], strides = [1, 1]} : vector<8x32xf32> to vector<8x8xf32>
    %58 = vector.extract_strided_slice %44 {offsets = [0, 24], sizes = [8, 8], strides = [1, 1]} : vector<8x32xf32> to vector<8x8xf32>
    %59 = vector.shape_cast %55 : vector<8x8xf32> to vector<1x8x8xf32>
    %60 = vector.shape_cast %56 : vector<8x8xf32> to vector<1x8x8xf32>
    %61 = vector.shape_cast %57 : vector<8x8xf32> to vector<1x8x8xf32>
    %62 = vector.shape_cast %58 : vector<8x8xf32> to vector<1x8x8xf32>
    %63 = tpu.concatenate %59, %60, %61, %62 in 0 : vector<1x8x8xf32>, vector<1x8x8xf32>, vector<1x8x8xf32>, vector<1x8x8xf32> -> vector<4x8x8xf32>
    %64 = vector.extract_strided_slice %45 {offsets = [0, 0], sizes = [8, 8], strides = [1, 1]} : vector<8x32xf32> to vector<8x8xf32>
    %65 = vector.extract_strided_slice %45 {offsets = [0, 8], sizes = [8, 8], strides = [1, 1]} : vector<8x32xf32> to vector<8x8xf32>
    %66 = vector.extract_strided_slice %45 {offsets = [0, 16], sizes = [8, 8], strides = [1, 1]} : vector<8x32xf32> to vector<8x8xf32>
    %67 = vector.extract_strided_slice %45 {offsets = [0, 24], sizes = [8, 8], strides = [1, 1]} : vector<8x32xf32> to vector<8x8xf32>
    %68 = vector.shape_cast %64 : vector<8x8xf32> to vector<1x8x8xf32>
    %69 = vector.shape_cast %65 : vector<8x8xf32> to vector<1x8x8xf32>
    %70 = vector.shape_cast %66 : vector<8x8xf32> to vector<1x8x8xf32>
    %71 = vector.shape_cast %67 : vector<8x8xf32> to vector<1x8x8xf32>
    %72 = tpu.concatenate %68, %69, %70, %71 in 0 : vector<1x8x8xf32>, vector<1x8x8xf32>, vector<1x8x8xf32>, vector<1x8x8xf32> -> vector<4x8x8xf32>
    "tpu.trace_start"() <{level = 10 : i32, message = "hqd,hkd->hqk"}> : () -> ()
    %cst_25 = arith.constant dense<0.000000e+00> : vector<4x8x8xf32>
    %73 = tpu.matmul %54, %63, %cst_25 {dimension_numbers = #tpu.dot_dimension_numbers<[2], [2], [1], [1], [0, 0, 0, 1, 1, 1], [0], [0]>} : vector<4x8x8xf32>, vector<4x8x8xf32>, vector<4x8x8xf32> -> vector<4x8x8xf32>
    "tpu.trace_stop"() : () -> ()
    %74 = arith.addf %73, %7 : vector<4x8x8xf32>
    %cst_26 = arith.constant dense<0xFF800000> : vector<4x8xf32>
    %75 = vector.multi_reduction <maximumf>, %74, %cst_26 [2] : vector<4x8x8xf32> to vector<4x8xf32>
    %76 = vector.shape_cast %75 : vector<4x8xf32> to vector<4x8x1xf32>
    %77 = vector.broadcast %76 : vector<4x8x1xf32> to vector<4x8x8xf32>
    %78 = arith.subf %74, %77 : vector<4x8x8xf32>
    %79 = math.exp %78 : vector<4x8x8xf32>
    %cst_27 = arith.constant dense<0.000000e+00> : vector<4x8xf32>
    %80 = vector.multi_reduction <add>, %79, %cst_27 [2] : vector<4x8x8xf32> to vector<4x8xf32>
    %81 = vector.shape_cast %80 : vector<4x8xf32> to vector<4x8x1xf32>
    %82 = vector.broadcast %81 : vector<4x8x1xf32> to vector<4x8x8xf32>
    %83 = arith.divf %79, %82 : vector<4x8x8xf32>
    "tpu.trace_start"() <{level = 10 : i32, message = "hqk,hkd->hqd"}> : () -> ()
    %cst_28 = arith.constant dense<0.000000e+00> : vector<4x8x8xf32>
    %84 = tpu.matmul %83, %72, %cst_28 {dimension_numbers = #tpu.dot_dimension_numbers<[2], [1], [1], [2], [0, 0, 0, 1, 1, 2], [0], [0]>} : vector<4x8x8xf32>, vector<4x8x8xf32>, vector<4x8x8xf32> -> vector<4x8x8xf32>
    "tpu.trace_stop"() : () -> ()
    %85 = vector.extract_strided_slice %84 {offsets = [0, 0, 0], sizes = [1, 8, 8], strides = [1, 1, 1]} : vector<4x8x8xf32> to vector<1x8x8xf32>
    %86 = vector.shape_cast %85 : vector<1x8x8xf32> to vector<8x8xf32>
    %c0_29 = arith.constant 0 : index
    %c0_30 = arith.constant 0 : index
    %87 = vector.load %arg28[%c0_29, %c0_30] : memref<32x32xf32, #tpu.memory_space<vmem>>, vector<8x8xf32>
    tpu.vector_store %arg28[%c0_29, %c0_30], %86 {strides = array<i32>} : memref<32x32xf32, #tpu.memory_space<vmem>>, vector<8x8xf32>,
    %88 = vector.extract_strided_slice %84 {offsets = [1, 0, 0], sizes = [1, 8, 8], strides = [1, 1, 1]} : vector<4x8x8xf32> to vector<1x8x8xf32>
    %89 = vector.shape_cast %88 : vector<1x8x8xf32> to vector<8x8xf32>
    %c0_31 = arith.constant 0 : index
    %c8 = arith.constant 8 : index
    %90 = vector.load %arg28[%c0_31, %c8] : memref<32x32xf32, #tpu.memory_space<vmem>>, vector<8x8xf32>
    tpu.vector_store %arg28[%c0_31, %c8], %89 {strides = array<i32>} : memref<32x32xf32, #tpu.memory_space<vmem>>, vector<8x8xf32>,
    %91 = vector.extract_strided_slice %84 {offsets = [2, 0, 0], sizes = [1, 8, 8], strides = [1, 1, 1]} : vector<4x8x8xf32> to vector<1x8x8xf32>
    %92 = vector.shape_cast %91 : vector<1x8x8xf32> to vector<8x8xf32>
    %c0_32 = arith.constant 0 : index
    %c16 = arith.constant 16 : index
    %93 = vector.load %arg28[%c0_32, %c16] : memref<32x32xf32, #tpu.memory_space<vmem>>, vector<8x8xf32>
    tpu.vector_store %arg28[%c0_32, %c16], %92 {strides = array<i32>} : memref<32x32xf32, #tpu.memory_space<vmem>>, vector<8x8xf32>,
    %94 = vector.extract_strided_slice %84 {offsets = [3, 0, 0], sizes = [1, 8, 8], strides = [1, 1, 1]} : vector<4x8x8xf32> to vector<1x8x8xf32>
    %95 = vector.shape_cast %94 : vector<1x8x8xf32> to vector<8x8xf32>
    %c0_33 = arith.constant 0 : index
    %c24 = arith.constant 24 : index
    %96 = vector.load %arg28[%c0_33, %c24] : memref<32x32xf32, #tpu.memory_space<vmem>>, vector<8x8xf32>
    tpu.vector_store %arg28[%c0_33, %c24], %95 {strides = array<i32>} : memref<32x32xf32, #tpu.memory_space<vmem>>, vector<8x8xf32>,
    %97 = vector.extract_strided_slice %42 {offsets = [8, 0], sizes = [8, 32], strides = [1, 1]} : vector<32x96xf32> to vector<8x32xf32>
    %98 = vector.extract_strided_slice %42 {offsets = [8, 32], sizes = [8, 32], strides = [1, 1]} : vector<32x96xf32> to vector<8x32xf32>
    %99 = vector.extract_strided_slice %42 {offsets = [8, 64], sizes = [8, 32], strides = [1, 1]} : vector<32x96xf32> to vector<8x32xf32>
    %100 = vector.extract_strided_slice %97 {offsets = [0, 0], sizes = [8, 8], strides = [1, 1]} : vector<8x32xf32> to vector<8x8xf32>
    %101 = vector.extract_strided_slice %97 {offsets = [0, 8], sizes = [8, 8], strides = [1, 1]} : vector<8x32xf32> to vector<8x8xf32>
    %102 = vector.extract_strided_slice %97 {offsets = [0, 16], sizes = [8, 8], strides = [1, 1]} : vector<8x32xf32> to vector<8x8xf32>
    %103 = vector.extract_strided_slice %97 {offsets = [0, 24], sizes = [8, 8], strides = [1, 1]} : vector<8x32xf32> to vector<8x8xf32>
    %104 = vector.shape_cast %100 : vector<8x8xf32> to vector<1x8x8xf32>
    %105 = vector.shape_cast %101 : vector<8x8xf32> to vector<1x8x8xf32>
    %106 = vector.shape_cast %102 : vector<8x8xf32> to vector<1x8x8xf32>
    %107 = vector.shape_cast %103 : vector<8x8xf32> to vector<1x8x8xf32>
    %108 = tpu.concatenate %104, %105, %106, %107 in 0 : vector<1x8x8xf32>, vector<1x8x8xf32>, vector<1x8x8xf32>, vector<1x8x8xf32> -> vector<4x8x8xf32>
    %109 = vector.extract_strided_slice %98 {offsets = [0, 0], sizes = [8, 8], strides = [1, 1]} : vector<8x32xf32> to vector<8x8xf32>
    %110 = vector.extract_strided_slice %98 {offsets = [0, 8], sizes = [8, 8], strides = [1, 1]} : vector<8x32xf32> to vector<8x8xf32>
    %111 = vector.extract_strided_slice %98 {offsets = [0, 16], sizes = [8, 8], strides = [1, 1]} : vector<8x32xf32> to vector<8x8xf32>
    %112 = vector.extract_strided_slice %98 {offsets = [0, 24], sizes = [8, 8], strides = [1, 1]} : vector<8x32xf32> to vector<8x8xf32>
    %113 = vector.shape_cast %109 : vector<8x8xf32> to vector<1x8x8xf32>
    %114 = vector.shape_cast %110 : vector<8x8xf32> to vector<1x8x8xf32>
    %115 = vector.shape_cast %111 : vector<8x8xf32> to vector<1x8x8xf32>
    %116 = vector.shape_cast %112 : vector<8x8xf32> to vector<1x8x8xf32>
    %117 = tpu.concatenate %113, %114, %115, %116 in 0 : vector<1x8x8xf32>, vector<1x8x8xf32>, vector<1x8x8xf32>, vector<1x8x8xf32> -> vector<4x8x8xf32>
    %118 = vector.extract_strided_slice %99 {offsets = [0, 0], sizes = [8, 8], strides = [1, 1]} : vector<8x32xf32> to vector<8x8xf32>
    %119 = vector.extract_strided_slice %99 {offsets = [0, 8], sizes = [8, 8], strides = [1, 1]} : vector<8x32xf32> to vector<8x8xf32>
    %120 = vector.extract_strided_slice %99 {offsets = [0, 16], sizes = [8, 8], strides = [1, 1]} : vector<8x32xf32> to vector<8x8xf32>
    %121 = vector.extract_strided_slice %99 {offsets = [0, 24], sizes = [8, 8], strides = [1, 1]} : vector<8x32xf32> to vector<8x8xf32>
    %122 = vector.shape_cast %118 : vector<8x8xf32> to vector<1x8x8xf32>
    %123 = vector.shape_cast %119 : vector<8x8xf32> to vector<1x8x8xf32>
    %124 = vector.shape_cast %120 : vector<8x8xf32> to vector<1x8x8xf32>
    %125 = vector.shape_cast %121 : vector<8x8xf32> to vector<1x8x8xf32>
    %126 = tpu.concatenate %122, %123, %124, %125 in 0 : vector<1x8x8xf32>, vector<1x8x8xf32>, vector<1x8x8xf32>, vector<1x8x8xf32> -> vector<4x8x8xf32>
    "tpu.trace_start"() <{level = 10 : i32, message = "hqd,hkd->hqk"}> : () -> ()
    %cst_34 = arith.constant dense<0.000000e+00> : vector<4x8x8xf32>
    %127 = tpu.matmul %108, %117, %cst_34 {dimension_numbers = #tpu.dot_dimension_numbers<[2], [2], [1], [1], [0, 0, 0, 1, 1, 1], [0], [0]>} : vector<4x8x8xf32>, vector<4x8x8xf32>, vector<4x8x8xf32> -> vector<4x8x8xf32>
    "tpu.trace_stop"() : () -> ()
    %128 = arith.addf %127, %13 : vector<4x8x8xf32>
    %cst_35 = arith.constant dense<0xFF800000> : vector<4x8xf32>
    %129 = vector.multi_reduction <maximumf>, %128, %cst_35 [2] : vector<4x8x8xf32> to vector<4x8xf32>
    %130 = vector.shape_cast %129 : vector<4x8xf32> to vector<4x8x1xf32>
    %131 = vector.broadcast %130 : vector<4x8x1xf32> to vector<4x8x8xf32>
    %132 = arith.subf %128, %131 : vector<4x8x8xf32>
    %133 = math.exp %132 : vector<4x8x8xf32>
    %cst_36 = arith.constant dense<0.000000e+00> : vector<4x8xf32>
    %134 = vector.multi_reduction <add>, %133, %cst_36 [2] : vector<4x8x8xf32> to vector<4x8xf32>
    %135 = vector.shape_cast %134 : vector<4x8xf32> to vector<4x8x1xf32>
    %136 = vector.broadcast %135 : vector<4x8x1xf32> to vector<4x8x8xf32>
    %137 = arith.divf %133, %136 : vector<4x8x8xf32>
    "tpu.trace_start"() <{level = 10 : i32, message = "hqk,hkd->hqd"}> : () -> ()
    %cst_37 = arith.constant dense<0.000000e+00> : vector<4x8x8xf32>
    %138 = tpu.matmul %137, %126, %cst_37 {dimension_numbers = #tpu.dot_dimension_numbers<[2], [1], [1], [2], [0, 0, 0, 1, 1, 2], [0], [0]>} : vector<4x8x8xf32>, vector<4x8x8xf32>, vector<4x8x8xf32> -> vector<4x8x8xf32>
    "tpu.trace_stop"() : () -> ()
    %139 = vector.extract_strided_slice %138 {offsets = [0, 0, 0], sizes = [1, 8, 8], strides = [1, 1, 1]} : vector<4x8x8xf32> to vector<1x8x8xf32>
    %140 = vector.shape_cast %139 : vector<1x8x8xf32> to vector<8x8xf32>
    %c8_38 = arith.constant 8 : index
    %c0_39 = arith.constant 0 : index
    %141 = vector.load %arg28[%c8_38, %c0_39] : memref<32x32xf32, #tpu.memory_space<vmem>>, vector<8x8xf32>
    tpu.vector_store %arg28[%c8_38, %c0_39], %140 {strides = array<i32>} : memref<32x32xf32, #tpu.memory_space<vmem>>, vector<8x8xf32>,
    %142 = vector.extract_strided_slice %138 {offsets = [1, 0, 0], sizes = [1, 8, 8], strides = [1, 1, 1]} : vector<4x8x8xf32> to vector<1x8x8xf32>
    %143 = vector.shape_cast %142 : vector<1x8x8xf32> to vector<8x8xf32>
    %c8_40 = arith.constant 8 : index
    %c8_41 = arith.constant 8 : index
    %144 = vector.load %arg28[%c8_40, %c8_41] : memref<32x32xf32, #tpu.memory_space<vmem>>, vector<8x8xf32>
    tpu.vector_store %arg28[%c8_40, %c8_41], %143 {strides = array<i32>} : memref<32x32xf32, #tpu.memory_space<vmem>>, vector<8x8xf32>,
    %145 = vector.extract_strided_slice %138 {offsets = [2, 0, 0], sizes = [1, 8, 8], strides = [1, 1, 1]} : vector<4x8x8xf32> to vector<1x8x8xf32>
    %146 = vector.shape_cast %145 : vector<1x8x8xf32> to vector<8x8xf32>
    %c8_42 = arith.constant 8 : index
    %c16_43 = arith.constant 16 : index
    %147 = vector.load %arg28[%c8_42, %c16_43] : memref<32x32xf32, #tpu.memory_space<vmem>>, vector<8x8xf32>
    tpu.vector_store %arg28[%c8_42, %c16_43], %146 {strides = array<i32>} : memref<32x32xf32, #tpu.memory_space<vmem>>, vector<8x8xf32>,
    %148 = vector.extract_strided_slice %138 {offsets = [3, 0, 0], sizes = [1, 8, 8], strides = [1, 1, 1]} : vector<4x8x8xf32> to vector<1x8x8xf32>
    %149 = vector.shape_cast %148 : vector<1x8x8xf32> to vector<8x8xf32>
    %c8_44 = arith.constant 8 : index
    %c24_45 = arith.constant 24 : index
    %150 = vector.load %arg28[%c8_44, %c24_45] : memref<32x32xf32, #tpu.memory_space<vmem>>, vector<8x8xf32>
    tpu.vector_store %arg28[%c8_44, %c24_45], %149 {strides = array<i32>} : memref<32x32xf32, #tpu.memory_space<vmem>>, vector<8x8xf32>,
    %151 = vector.extract_strided_slice %42 {offsets = [16, 0], sizes = [8, 32], strides = [1, 1]} : vector<32x96xf32> to vector<8x32xf32>
    %152 = vector.extract_strided_slice %42 {offsets = [16, 32], sizes = [8, 32], strides = [1, 1]} : vector<32x96xf32> to vector<8x32xf32>
    %153 = vector.extract_strided_slice %42 {offsets = [16, 64], sizes = [8, 32], strides = [1, 1]} : vector<32x96xf32> to vector<8x32xf32>
    %154 = vector.extract_strided_slice %151 {offsets = [0, 0], sizes = [8, 8], strides = [1, 1]} : vector<8x32xf32> to vector<8x8xf32>
    %155 = vector.extract_strided_slice %151 {offsets = [0, 8], sizes = [8, 8], strides = [1, 1]} : vector<8x32xf32> to vector<8x8xf32>
    %156 = vector.extract_strided_slice %151 {offsets = [0, 16], sizes = [8, 8], strides = [1, 1]} : vector<8x32xf32> to vector<8x8xf32>
    %157 = vector.extract_strided_slice %151 {offsets = [0, 24], sizes = [8, 8], strides = [1, 1]} : vector<8x32xf32> to vector<8x8xf32>
    %158 = vector.shape_cast %154 : vector<8x8xf32> to vector<1x8x8xf32>
    %159 = vector.shape_cast %155 : vector<8x8xf32> to vector<1x8x8xf32>
    %160 = vector.shape_cast %156 : vector<8x8xf32> to vector<1x8x8xf32>
    %161 = vector.shape_cast %157 : vector<8x8xf32> to vector<1x8x8xf32>
    %162 = tpu.concatenate %158, %159, %160, %161 in 0 : vector<1x8x8xf32>, vector<1x8x8xf32>, vector<1x8x8xf32>, vector<1x8x8xf32> -> vector<4x8x8xf32>
    %163 = vector.extract_strided_slice %152 {offsets = [0, 0], sizes = [8, 8], strides = [1, 1]} : vector<8x32xf32> to vector<8x8xf32>
    %164 = vector.extract_strided_slice %152 {offsets = [0, 8], sizes = [8, 8], strides = [1, 1]} : vector<8x32xf32> to vector<8x8xf32>
    %165 = vector.extract_strided_slice %152 {offsets = [0, 16], sizes = [8, 8], strides = [1, 1]} : vector<8x32xf32> to vector<8x8xf32>
    %166 = vector.extract_strided_slice %152 {offsets = [0, 24], sizes = [8, 8], strides = [1, 1]} : vector<8x32xf32> to vector<8x8xf32>
    %167 = vector.shape_cast %163 : vector<8x8xf32> to vector<1x8x8xf32>
    %168 = vector.shape_cast %164 : vector<8x8xf32> to vector<1x8x8xf32>
    %169 = vector.shape_cast %165 : vector<8x8xf32> to vector<1x8x8xf32>
    %170 = vector.shape_cast %166 : vector<8x8xf32> to vector<1x8x8xf32>
    %171 = tpu.concatenate %167, %168, %169, %170 in 0 : vector<1x8x8xf32>, vector<1x8x8xf32>, vector<1x8x8xf32>, vector<1x8x8xf32> -> vector<4x8x8xf32>
    %172 = vector.extract_strided_slice %153 {offsets = [0, 0], sizes = [8, 8], strides = [1, 1]} : vector<8x32xf32> to vector<8x8xf32>
    %173 = vector.extract_strided_slice %153 {offsets = [0, 8], sizes = [8, 8], strides = [1, 1]} : vector<8x32xf32> to vector<8x8xf32>
    %174 = vector.extract_strided_slice %153 {offsets = [0, 16], sizes = [8, 8], strides = [1, 1]} : vector<8x32xf32> to vector<8x8xf32>
    %175 = vector.extract_strided_slice %153 {offsets = [0, 24], sizes = [8, 8], strides = [1, 1]} : vector<8x32xf32> to vector<8x8xf32>
    %176 = vector.shape_cast %172 : vector<8x8xf32> to vector<1x8x8xf32>
    %177 = vector.shape_cast %173 : vector<8x8xf32> to vector<1x8x8xf32>
    %178 = vector.shape_cast %174 : vector<8x8xf32> to vector<1x8x8xf32>
    %179 = vector.shape_cast %175 : vector<8x8xf32> to vector<1x8x8xf32>
    %180 = tpu.concatenate %176, %177, %178, %179 in 0 : vector<1x8x8xf32>, vector<1x8x8xf32>, vector<1x8x8xf32>, vector<1x8x8xf32> -> vector<4x8x8xf32>
    "tpu.trace_start"() <{level = 10 : i32, message = "hqd,hkd->hqk"}> : () -> ()
    %cst_46 = arith.constant dense<0.000000e+00> : vector<4x8x8xf32>
    %181 = tpu.matmul %162, %171, %cst_46 {dimension_numbers = #tpu.dot_dimension_numbers<[2], [2], [1], [1], [0, 0, 0, 1, 1, 1], [0], [0]>} : vector<4x8x8xf32>, vector<4x8x8xf32>, vector<4x8x8xf32> -> vector<4x8x8xf32>
    "tpu.trace_stop"() : () -> ()
    %182 = arith.addf %181, %19 : vector<4x8x8xf32>
    %cst_47 = arith.constant dense<0xFF800000> : vector<4x8xf32>
    %183 = vector.multi_reduction <maximumf>, %182, %cst_47 [2] : vector<4x8x8xf32> to vector<4x8xf32>
    %184 = vector.shape_cast %183 : vector<4x8xf32> to vector<4x8x1xf32>
    %185 = vector.broadcast %184 : vector<4x8x1xf32> to vector<4x8x8xf32>
    %186 = arith.subf %182, %185 : vector<4x8x8xf32>
    %187 = math.exp %186 : vector<4x8x8xf32>
    %cst_48 = arith.constant dense<0.000000e+00> : vector<4x8xf32>
    %188 = vector.multi_reduction <add>, %187, %cst_48 [2] : vector<4x8x8xf32> to vector<4x8xf32>
    %189 = vector.shape_cast %188 : vector<4x8xf32> to vector<4x8x1xf32>
    %190 = vector.broadcast %189 : vector<4x8x1xf32> to vector<4x8x8xf32>
    %191 = arith.divf %187, %190 : vector<4x8x8xf32>
    "tpu.trace_start"() <{level = 10 : i32, message = "hqk,hkd->hqd"}> : () -> ()
    %cst_49 = arith.constant dense<0.000000e+00> : vector<4x8x8xf32>
    %192 = tpu.matmul %191, %180, %cst_49 {dimension_numbers = #tpu.dot_dimension_numbers<[2], [1], [1], [2], [0, 0, 0, 1, 1, 2], [0], [0]>} : vector<4x8x8xf32>, vector<4x8x8xf32>, vector<4x8x8xf32> -> vector<4x8x8xf32>
    "tpu.trace_stop"() : () -> ()
    %193 = vector.extract_strided_slice %192 {offsets = [0, 0, 0], sizes = [1, 8, 8], strides = [1, 1, 1]} : vector<4x8x8xf32> to vector<1x8x8xf32>
    %194 = vector.shape_cast %193 : vector<1x8x8xf32> to vector<8x8xf32>
    %c16_50 = arith.constant 16 : index
    %c0_51 = arith.constant 0 : index
    %195 = vector.load %arg28[%c16_50, %c0_51] : memref<32x32xf32, #tpu.memory_space<vmem>>, vector<8x8xf32>
    tpu.vector_store %arg28[%c16_50, %c0_51], %194 {strides = array<i32>} : memref<32x32xf32, #tpu.memory_space<vmem>>, vector<8x8xf32>,
    %196 = vector.extract_strided_slice %192 {offsets = [1, 0, 0], sizes = [1, 8, 8], strides = [1, 1, 1]} : vector<4x8x8xf32> to vector<1x8x8xf32>
    %197 = vector.shape_cast %196 : vector<1x8x8xf32> to vector<8x8xf32>
    %c16_52 = arith.constant 16 : index
    %c8_53 = arith.constant 8 : index
    %198 = vector.load %arg28[%c16_52, %c8_53] : memref<32x32xf32, #tpu.memory_space<vmem>>, vector<8x8xf32>
    tpu.vector_store %arg28[%c16_52, %c8_53], %197 {strides = array<i32>} : memref<32x32xf32, #tpu.memory_space<vmem>>, vector<8x8xf32>,
    %199 = vector.extract_strided_slice %192 {offsets = [2, 0, 0], sizes = [1, 8, 8], strides = [1, 1, 1]} : vector<4x8x8xf32> to vector<1x8x8xf32>
    %200 = vector.shape_cast %199 : vector<1x8x8xf32> to vector<8x8xf32>
    %c16_54 = arith.constant 16 : index
    %c16_55 = arith.constant 16 : index
    %201 = vector.load %arg28[%c16_54, %c16_55] : memref<32x32xf32, #tpu.memory_space<vmem>>, vector<8x8xf32>
    tpu.vector_store %arg28[%c16_54, %c16_55], %200 {strides = array<i32>} : memref<32x32xf32, #tpu.memory_space<vmem>>, vector<8x8xf32>,
    %202 = vector.extract_strided_slice %192 {offsets = [3, 0, 0], sizes = [1, 8, 8], strides = [1, 1, 1]} : vector<4x8x8xf32> to vector<1x8x8xf32>
    %203 = vector.shape_cast %202 : vector<1x8x8xf32> to vector<8x8xf32>
    %c16_56 = arith.constant 16 : index
    %c24_57 = arith.constant 24 : index
    %204 = vector.load %arg28[%c16_56, %c24_57] : memref<32x32xf32, #tpu.memory_space<vmem>>, vector<8x8xf32>
    tpu.vector_store %arg28[%c16_56, %c24_57], %203 {strides = array<i32>} : memref<32x32xf32, #tpu.memory_space<vmem>>, vector<8x8xf32>,
    %205 = vector.extract_strided_slice %42 {offsets = [24, 0], sizes = [8, 32], strides = [1, 1]} : vector<32x96xf32> to vector<8x32xf32>
    %206 = vector.extract_strided_slice %42 {offsets = [24, 32], sizes = [8, 32], strides = [1, 1]} : vector<32x96xf32> to vector<8x32xf32>
    %207 = vector.extract_strided_slice %42 {offsets = [24, 64], sizes = [8, 32], strides = [1, 1]} : vector<32x96xf32> to vector<8x32xf32>
    %208 = vector.extract_strided_slice %205 {offsets = [0, 0], sizes = [8, 8], strides = [1, 1]} : vector<8x32xf32> to vector<8x8xf32>
    %209 = vector.extract_strided_slice %205 {offsets = [0, 8], sizes = [8, 8], strides = [1, 1]} : vector<8x32xf32> to vector<8x8xf32>
    %210 = vector.extract_strided_slice %205 {offsets = [0, 16], sizes = [8, 8], strides = [1, 1]} : vector<8x32xf32> to vector<8x8xf32>
    %211 = vector.extract_strided_slice %205 {offsets = [0, 24], sizes = [8, 8], strides = [1, 1]} : vector<8x32xf32> to vector<8x8xf32>
    %212 = vector.shape_cast %208 : vector<8x8xf32> to vector<1x8x8xf32>
    %213 = vector.shape_cast %209 : vector<8x8xf32> to vector<1x8x8xf32>
    %214 = vector.shape_cast %210 : vector<8x8xf32> to vector<1x8x8xf32>
    %215 = vector.shape_cast %211 : vector<8x8xf32> to vector<1x8x8xf32>
    %216 = tpu.concatenate %212, %213, %214, %215 in 0 : vector<1x8x8xf32>, vector<1x8x8xf32>, vector<1x8x8xf32>, vector<1x8x8xf32> -> vector<4x8x8xf32>
    %217 = vector.extract_strided_slice %206 {offsets = [0, 0], sizes = [8, 8], strides = [1, 1]} : vector<8x32xf32> to vector<8x8xf32>
    %218 = vector.extract_strided_slice %206 {offsets = [0, 8], sizes = [8, 8], strides = [1, 1]} : vector<8x32xf32> to vector<8x8xf32>
    %219 = vector.extract_strided_slice %206 {offsets = [0, 16], sizes = [8, 8], strides = [1, 1]} : vector<8x32xf32> to vector<8x8xf32>
    %220 = vector.extract_strided_slice %206 {offsets = [0, 24], sizes = [8, 8], strides = [1, 1]} : vector<8x32xf32> to vector<8x8xf32>
    %221 = vector.shape_cast %217 : vector<8x8xf32> to vector<1x8x8xf32>
    %222 = vector.shape_cast %218 : vector<8x8xf32> to vector<1x8x8xf32>
    %223 = vector.shape_cast %219 : vector<8x8xf32> to vector<1x8x8xf32>
    %224 = vector.shape_cast %220 : vector<8x8xf32> to vector<1x8x8xf32>
    %225 = tpu.concatenate %221, %222, %223, %224 in 0 : vector<1x8x8xf32>, vector<1x8x8xf32>, vector<1x8x8xf32>, vector<1x8x8xf32> -> vector<4x8x8xf32>
    %226 = vector.extract_strided_slice %207 {offsets = [0, 0], sizes = [8, 8], strides = [1, 1]} : vector<8x32xf32> to vector<8x8xf32>
    %227 = vector.extract_strided_slice %207 {offsets = [0, 8], sizes = [8, 8], strides = [1, 1]} : vector<8x32xf32> to vector<8x8xf32>
    %228 = vector.extract_strided_slice %207 {offsets = [0, 16], sizes = [8, 8], strides = [1, 1]} : vector<8x32xf32> to vector<8x8xf32>
    %229 = vector.extract_strided_slice %207 {offsets = [0, 24], sizes = [8, 8], strides = [1, 1]} : vector<8x32xf32> to vector<8x8xf32>
    %230 = vector.shape_cast %226 : vector<8x8xf32> to vector<1x8x8xf32>
    %231 = vector.shape_cast %227 : vector<8x8xf32> to vector<1x8x8xf32>
    %232 = vector.shape_cast %228 : vector<8x8xf32> to vector<1x8x8xf32>
    %233 = vector.shape_cast %229 : vector<8x8xf32> to vector<1x8x8xf32>
    %234 = tpu.concatenate %230, %231, %232, %233 in 0 : vector<1x8x8xf32>, vector<1x8x8xf32>, vector<1x8x8xf32>, vector<1x8x8xf32> -> vector<4x8x8xf32>
    "tpu.trace_start"() <{level = 10 : i32, message = "hqd,hkd->hqk"}> : () -> ()
    %cst_58 = arith.constant dense<0.000000e+00> : vector<4x8x8xf32>
    %235 = tpu.matmul %216, %225, %cst_58 {dimension_numbers = #tpu.dot_dimension_numbers<[2], [2], [1], [1], [0, 0, 0, 1, 1, 1], [0], [0]>} : vector<4x8x8xf32>, vector<4x8x8xf32>, vector<4x8x8xf32> -> vector<4x8x8xf32>
    "tpu.trace_stop"() : () -> ()
    %236 = arith.addf %235, %25 : vector<4x8x8xf32>
    %cst_59 = arith.constant dense<0xFF800000> : vector<4x8xf32>
    %237 = vector.multi_reduction <maximumf>, %236, %cst_59 [2] : vector<4x8x8xf32> to vector<4x8xf32>
    %238 = vector.shape_cast %237 : vector<4x8xf32> to vector<4x8x1xf32>
    %239 = vector.broadcast %238 : vector<4x8x1xf32> to vector<4x8x8xf32>
    %240 = arith.subf %236, %239 : vector<4x8x8xf32>
    %241 = math.exp %240 : vector<4x8x8xf32>
    %cst_60 = arith.constant dense<0.000000e+00> : vector<4x8xf32>
    %242 = vector.multi_reduction <add>, %241, %cst_60 [2] : vector<4x8x8xf32> to vector<4x8xf32>
    %243 = vector.shape_cast %242 : vector<4x8xf32> to vector<4x8x1xf32>
    %244 = vector.broadcast %243 : vector<4x8x1xf32> to vector<4x8x8xf32>
    %245 = arith.divf %241, %244 : vector<4x8x8xf32>
    "tpu.trace_start"() <{level = 10 : i32, message = "hqk,hkd->hqd"}> : () -> ()
    %cst_61 = arith.constant dense<0.000000e+00> : vector<4x8x8xf32>
    %246 = tpu.matmul %245, %234, %cst_61 {dimension_numbers = #tpu.dot_dimension_numbers<[2], [1], [1], [2], [0, 0, 0, 1, 1, 2], [0], [0]>} : vector<4x8x8xf32>, vector<4x8x8xf32>, vector<4x8x8xf32> -> vector<4x8x8xf32>
    "tpu.trace_stop"() : () -> ()
    %247 = vector.extract_strided_slice %246 {offsets = [0, 0, 0], sizes = [1, 8, 8], strides = [1, 1, 1]} : vector<4x8x8xf32> to vector<1x8x8xf32>
    %248 = vector.shape_cast %247 : vector<1x8x8xf32> to vector<8x8xf32>
    %c24_62 = arith.constant 24 : index
    %c0_63 = arith.constant 0 : index
    %249 = vector.load %arg28[%c24_62, %c0_63] : memref<32x32xf32, #tpu.memory_space<vmem>>, vector<8x8xf32>
    tpu.vector_store %arg28[%c24_62, %c0_63], %248 {strides = array<i32>} : memref<32x32xf32, #tpu.memory_space<vmem>>, vector<8x8xf32>,
    %250 = vector.extract_strided_slice %246 {offsets = [1, 0, 0], sizes = [1, 8, 8], strides = [1, 1, 1]} : vector<4x8x8xf32> to vector<1x8x8xf32>
    %251 = vector.shape_cast %250 : vector<1x8x8xf32> to vector<8x8xf32>
    %c24_64 = arith.constant 24 : index
    %c8_65 = arith.constant 8 : index
    %252 = vector.load %arg28[%c24_64, %c8_65] : memref<32x32xf32, #tpu.memory_space<vmem>>, vector<8x8xf32>
    tpu.vector_store %arg28[%c24_64, %c8_65], %251 {strides = array<i32>} : memref<32x32xf32, #tpu.memory_space<vmem>>, vector<8x8xf32>,
    %253 = vector.extract_strided_slice %246 {offsets = [2, 0, 0], sizes = [1, 8, 8], strides = [1, 1, 1]} : vector<4x8x8xf32> to vector<1x8x8xf32>
    %254 = vector.shape_cast %253 : vector<1x8x8xf32> to vector<8x8xf32>
    %c24_66 = arith.constant 24 : index
    %c16_67 = arith.constant 16 : index
    %255 = vector.load %arg28[%c24_66, %c16_67] : memref<32x32xf32, #tpu.memory_space<vmem>>, vector<8x8xf32>
    tpu.vector_store %arg28[%c24_66, %c16_67], %254 {strides = array<i32>} : memref<32x32xf32, #tpu.memory_space<vmem>>, vector<8x8xf32>,
    %256 = vector.extract_strided_slice %246 {offsets = [3, 0, 0], sizes = [1, 8, 8], strides = [1, 1, 1]} : vector<4x8x8xf32> to vector<1x8x8xf32>
    %257 = vector.shape_cast %256 : vector<1x8x8xf32> to vector<8x8xf32>
    %c24_68 = arith.constant 24 : index
    %c24_69 = arith.constant 24 : index
    %258 = vector.load %arg28[%c24_68, %c24_69] : memref<32x32xf32, #tpu.memory_space<vmem>>, vector<8x8xf32>
    tpu.vector_store %arg28[%c24_68, %c24_69], %257 {strides = array<i32>} : memref<32x32xf32, #tpu.memory_space<vmem>>, vector<8x8xf32>,
    %c0_70 = arith.constant 0 : index
    %c0_71 = arith.constant 0 : index
    %259 = vector.load %arg28[%c0_70, %c0_71] : memref<32x32xf32, #tpu.memory_space<vmem>>, vector<32x32xf32>
    %c0_72 = arith.constant 0 : index
    %c0_73 = arith.constant 0 : index
    %c0_74 = arith.constant 0 : index
    %260 = vector.load %arg9[%c0_72, %c0_73, %c0_74] : memref<2x32x32xf32, #tpu.memory_space<vmem>>, vector<1x32x32xf32>
    %261 = vector.shape_cast %260 : vector<1x32x32xf32> to vector<32x32xf32>
    %cst_75 = arith.constant dense<0.000000e+00> : vector<32x32xf32>
    %262 = tpu.matmul %259, %261, %cst_75 {dimension_numbers = #tpu.dot_dimension_numbers<[1], [0], [0], [1], [0, 0, 1, 1], [], []>} : vector<32x32xf32>, vector<32x32xf32>, vector<32x32xf32> -> vector<32x32xf32>
    %263 = arith.addf %0, %262 : vector<32x32xf32>
    %c0_76 = arith.constant 0 : index
    %c0_77 = arith.constant 0 : index
    %c0_78 = arith.constant 0 : index
    %264 = vector.load %arg10[%c0_76, %c0_77, %c0_78] : memref<2x1x32xf32, #tpu.memory_space<vmem>>, vector<1x1x32xf32>
    %265 = vector.shape_cast %264 : vector<1x1x32xf32> to vector<1x32xf32>
    %266 = arith.mulf %263, %263 : vector<32x32xf32>
    %cst_79 = arith.constant dense<0.000000e+00> : vector<32xf32>
    %267 = vector.multi_reduction <add>, %266, %cst_79 [1] : vector<32x32xf32> to vector<32xf32>
    %268 = vector.shape_cast %267 : vector<32xf32> to vector<32x1xf32>
    %cst_80 = arith.constant 3.200000e+01 : f32
    %269 = vector.broadcast %cst_80 : f32 to vector<32x1xf32>
    %270 = arith.divf %268, %269 : vector<32x1xf32>
    %cst_81 = arith.constant 9.99999997E-7 : f32
    %271 = vector.broadcast %cst_81 : f32 to vector<32x1xf32>
    %272 = arith.addf %270, %271 : vector<32x1xf32>
    %273 = math.rsqrt %272 : vector<32x1xf32>
    %274 = vector.broadcast %273 : vector<32x1xf32> to vector<32x32xf32>
    %275 = arith.mulf %263, %274 : vector<32x32xf32>
    %276 = vector.broadcast %265 : vector<1x32xf32> to vector<32x32xf32>
    %277 = arith.mulf %275, %276 : vector<32x32xf32>
    %c0_82 = arith.constant 0 : index
    %c0_83 = arith.constant 0 : index
    %c0_84 = arith.constant 0 : index
    %278 = vector.load %arg11[%c0_82, %c0_83, %c0_84] : memref<2x32x128xf32, #tpu.memory_space<vmem>>, vector<1x32x128xf32>
    %279 = vector.shape_cast %278 : vector<1x32x128xf32> to vector<32x128xf32>
    %cst_85 = arith.constant dense<0.000000e+00> : vector<32x128xf32>
    %280 = tpu.matmul %277, %279, %cst_85 {dimension_numbers = #tpu.dot_dimension_numbers<[1], [0], [0], [1], [0, 0, 1, 1], [], []>} : vector<32x32xf32>, vector<32x128xf32>, vector<32x128xf32> -> vector<32x128xf32>
    %281 = vector.extract_strided_slice %280 {offsets = [0, 0], sizes = [32, 64], strides = [1, 1]} : vector<32x128xf32> to vector<32x64xf32>
    %cst_86 = arith.constant 5.000000e-01 : f32
    %282 = vector.broadcast %cst_86 : f32 to vector<32x64xf32>
    %283 = arith.mulf %282, %281 : vector<32x64xf32>
    %cst_87 = arith.constant 4.471500e-02 : f32
    %284 = vector.broadcast %cst_87 : f32 to vector<32x64xf32>
    %285 = arith.mulf %284, %281 : vector<32x64xf32>
    %286 = arith.mulf %285, %281 : vector<32x64xf32>
    %287 = arith.mulf %286, %281 : vector<32x64xf32>
    %288 = arith.addf %281, %287 : vector<32x64xf32>
    %cst_88 = arith.constant 0.797884583 : f32
    %289 = vector.broadcast %cst_88 : f32 to vector<32x64xf32>
    %290 = arith.mulf %289, %288 : vector<32x64xf32>
    %291 = math.tanh %290 : vector<32x64xf32>
    %cst_89 = arith.constant 1.000000e+00 : f32
    %292 = vector.broadcast %cst_89 : f32 to vector<32x64xf32>
    %293 = arith.addf %292, %291 : vector<32x64xf32>
    %294 = arith.mulf %283, %293 : vector<32x64xf32>
    %295 = vector.extract_strided_slice %280 {offsets = [0, 64], sizes = [32, 64], strides = [1, 1]} : vector<32x128xf32> to vector<32x64xf32>
    %296 = arith.mulf %294, %295 : vector<32x64xf32>
    %c0_90 = arith.constant 0 : index
    %c0_91 = arith.constant 0 : index
    %c0_92 = arith.constant 0 : index
    %297 = vector.load %arg12[%c0_90, %c0_91, %c0_92] : memref<2x64x32xf32, #tpu.memory_space<vmem>>, vector<1x64x32xf32>
    %298 = vector.shape_cast %297 : vector<1x64x32xf32> to vector<64x32xf32>
    %cst_93 = arith.constant dense<0.000000e+00> : vector<32x32xf32>
    %299 = tpu.matmul %296, %298, %cst_93 {dimension_numbers = #tpu.dot_dimension_numbers<[1], [0], [0], [1], [0, 0, 1, 1], [], []>} : vector<32x64xf32>, vector<64x32xf32>, vector<32x32xf32> -> vector<32x32xf32>
    %300 = arith.addf %263, %299 : vector<32x32xf32>
    %c1 = arith.constant 1 : index
    %c0_94 = arith.constant 0 : index
    %c0_95 = arith.constant 0 : index
    %301 = vector.load %arg7[%c1, %c0_94, %c0_95] : memref<2x1x32xf32, #tpu.memory_space<vmem>>, vector<1x1x32xf32>
    %302 = vector.shape_cast %301 : vector<1x1x32xf32> to vector<1x32xf32>
    %303 = arith.mulf %300, %300 : vector<32x32xf32>
    %cst_96 = arith.constant dense<0.000000e+00> : vector<32xf32>
    %304 = vector.multi_reduction <add>, %303, %cst_96 [1] : vector<32x32xf32> to vector<32xf32>
    %305 = vector.shape_cast %304 : vector<32xf32> to vector<32x1xf32>
    %cst_97 = arith.constant 3.200000e+01 : f32
    %306 = vector.broadcast %cst_97 : f32 to vector<32x1xf32>
    %307 = arith.divf %305, %306 : vector<32x1xf32>
    %cst_98 = arith.constant 9.99999997E-7 : f32
    %308 = vector.broadcast %cst_98 : f32 to vector<32x1xf32>
    %309 = arith.addf %307, %308 : vector<32x1xf32>
    %310 = math.rsqrt %309 : vector<32x1xf32>
    %311 = vector.broadcast %310 : vector<32x1xf32> to vector<32x32xf32>
    %312 = arith.mulf %300, %311 : vector<32x32xf32>
    %313 = vector.broadcast %302 : vector<1x32xf32> to vector<32x32xf32>
    %314 = arith.mulf %312, %313 : vector<32x32xf32>
    %c1_99 = arith.constant 1 : index
    %c0_100 = arith.constant 0 : index
    %c0_101 = arith.constant 0 : index
    %315 = vector.load %arg8[%c1_99, %c0_100, %c0_101] : memref<2x32x96xf32, #tpu.memory_space<vmem>>, vector<1x32x96xf32>
    %316 = vector.shape_cast %315 : vector<1x32x96xf32> to vector<32x96xf32>
    %cst_102 = arith.constant dense<0.000000e+00> : vector<32x96xf32>
    %317 = tpu.matmul %314, %316, %cst_102 {dimension_numbers = #tpu.dot_dimension_numbers<[1], [0], [0], [1], [0, 0, 1, 1], [], []>} : vector<32x32xf32>, vector<32x96xf32>, vector<32x96xf32> -> vector<32x96xf32>
    %318 = vector.extract_strided_slice %317 {offsets = [0, 0], sizes = [8, 32], strides = [1, 1]} : vector<32x96xf32> to vector<8x32xf32>
    %319 = vector.extract_strided_slice %317 {offsets = [0, 32], sizes = [8, 32], strides = [1, 1]} : vector<32x96xf32> to vector<8x32xf32>
    %320 = vector.extract_strided_slice %317 {offsets = [0, 64], sizes = [8, 32], strides = [1, 1]} : vector<32x96xf32> to vector<8x32xf32>
    %321 = vector.extract_strided_slice %318 {offsets = [0, 0], sizes = [8, 8], strides = [1, 1]} : vector<8x32xf32> to vector<8x8xf32>
    %322 = vector.extract_strided_slice %318 {offsets = [0, 8], sizes = [8, 8], strides = [1, 1]} : vector<8x32xf32> to vector<8x8xf32>
    %323 = vector.extract_strided_slice %318 {offsets = [0, 16], sizes = [8, 8], strides = [1, 1]} : vector<8x32xf32> to vector<8x8xf32>
    %324 = vector.extract_strided_slice %318 {offsets = [0, 24], sizes = [8, 8], strides = [1, 1]} : vector<8x32xf32> to vector<8x8xf32>
    %325 = vector.shape_cast %321 : vector<8x8xf32> to vector<1x8x8xf32>
    %326 = vector.shape_cast %322 : vector<8x8xf32> to vector<1x8x8xf32>
    %327 = vector.shape_cast %323 : vector<8x8xf32> to vector<1x8x8xf32>
    %328 = vector.shape_cast %324 : vector<8x8xf32> to vector<1x8x8xf32>
    %329 = tpu.concatenate %325, %326, %327, %328 in 0 : vector<1x8x8xf32>, vector<1x8x8xf32>, vector<1x8x8xf32>, vector<1x8x8xf32> -> vector<4x8x8xf32>
    %330 = vector.extract_strided_slice %319 {offsets = [0, 0], sizes = [8, 8], strides = [1, 1]} : vector<8x32xf32> to vector<8x8xf32>
    %331 = vector.extract_strided_slice %319 {offsets = [0, 8], sizes = [8, 8], strides = [1, 1]} : vector<8x32xf32> to vector<8x8xf32>
    %332 = vector.extract_strided_slice %319 {offsets = [0, 16], sizes = [8, 8], strides = [1, 1]} : vector<8x32xf32> to vector<8x8xf32>
    %333 = vector.extract_strided_slice %319 {offsets = [0, 24], sizes = [8, 8], strides = [1, 1]} : vector<8x32xf32> to vector<8x8xf32>
    %334 = vector.shape_cast %330 : vector<8x8xf32> to vector<1x8x8xf32>
    %335 = vector.shape_cast %331 : vector<8x8xf32> to vector<1x8x8xf32>
    %336 = vector.shape_cast %332 : vector<8x8xf32> to vector<1x8x8xf32>
    %337 = vector.shape_cast %333 : vector<8x8xf32> to vector<1x8x8xf32>
    %338 = tpu.concatenate %334, %335, %336, %337 in 0 : vector<1x8x8xf32>, vector<1x8x8xf32>, vector<1x8x8xf32>, vector<1x8x8xf32> -> vector<4x8x8xf32>
    %339 = vector.extract_strided_slice %320 {offsets = [0, 0], sizes = [8, 8], strides = [1, 1]} : vector<8x32xf32> to vector<8x8xf32>
    %340 = vector.extract_strided_slice %320 {offsets = [0, 8], sizes = [8, 8], strides = [1, 1]} : vector<8x32xf32> to vector<8x8xf32>
    %341 = vector.extract_strided_slice %320 {offsets = [0, 16], sizes = [8, 8], strides = [1, 1]} : vector<8x32xf32> to vector<8x8xf32>
    %342 = vector.extract_strided_slice %320 {offsets = [0, 24], sizes = [8, 8], strides = [1, 1]} : vector<8x32xf32> to vector<8x8xf32>
    %343 = vector.shape_cast %339 : vector<8x8xf32> to vector<1x8x8xf32>
    %344 = vector.shape_cast %340 : vector<8x8xf32> to vector<1x8x8xf32>
    %345 = vector.shape_cast %341 : vector<8x8xf32> to vector<1x8x8xf32>
    %346 = vector.shape_cast %342 : vector<8x8xf32> to vector<1x8x8xf32>
    %347 = tpu.concatenate %343, %344, %345, %346 in 0 : vector<1x8x8xf32>, vector<1x8x8xf32>, vector<1x8x8xf32>, vector<1x8x8xf32> -> vector<4x8x8xf32>
    "tpu.trace_start"() <{level = 10 : i32, message = "hqd,hkd->hqk"}> : () -> ()
    %cst_103 = arith.constant dense<0.000000e+00> : vector<4x8x8xf32>
    %348 = tpu.matmul %329, %338, %cst_103 {dimension_numbers = #tpu.dot_dimension_numbers<[2], [2], [1], [1], [0, 0, 0, 1, 1, 1], [0], [0]>} : vector<4x8x8xf32>, vector<4x8x8xf32>, vector<4x8x8xf32> -> vector<4x8x8xf32>
    "tpu.trace_stop"() : () -> ()
    %349 = arith.addf %348, %7 : vector<4x8x8xf32>
    %cst_104 = arith.constant dense<0xFF800000> : vector<4x8xf32>
    %350 = vector.multi_reduction <maximumf>, %349, %cst_104 [2] : vector<4x8x8xf32> to vector<4x8xf32>
    %351 = vector.shape_cast %350 : vector<4x8xf32> to vector<4x8x1xf32>
    %352 = vector.broadcast %351 : vector<4x8x1xf32> to vector<4x8x8xf32>
    %353 = arith.subf %349, %352 : vector<4x8x8xf32>
    %354 = math.exp %353 : vector<4x8x8xf32>
    %cst_105 = arith.constant dense<0.000000e+00> : vector<4x8xf32>
    %355 = vector.multi_reduction <add>, %354, %cst_105 [2] : vector<4x8x8xf32> to vector<4x8xf32>
    %356 = vector.shape_cast %355 : vector<4x8xf32> to vector<4x8x1xf32>
    %357 = vector.broadcast %356 : vector<4x8x1xf32> to vector<4x8x8xf32>
    %358 = arith.divf %354, %357 : vector<4x8x8xf32>
    "tpu.trace_start"() <{level = 10 : i32, message = "hqk,hkd->hqd"}> : () -> ()
    %cst_106 = arith.constant dense<0.000000e+00> : vector<4x8x8xf32>
    %359 = tpu.matmul %358, %347, %cst_106 {dimension_numbers = #tpu.dot_dimension_numbers<[2], [1], [1], [2], [0, 0, 0, 1, 1, 2], [0], [0]>} : vector<4x8x8xf32>, vector<4x8x8xf32>, vector<4x8x8xf32> -> vector<4x8x8xf32>
    "tpu.trace_stop"() : () -> ()
    %360 = vector.extract_strided_slice %359 {offsets = [0, 0, 0], sizes = [1, 8, 8], strides = [1, 1, 1]} : vector<4x8x8xf32> to vector<1x8x8xf32>
    %361 = vector.shape_cast %360 : vector<1x8x8xf32> to vector<8x8xf32>
    %c0_107 = arith.constant 0 : index
    %c0_108 = arith.constant 0 : index
    %362 = vector.load %arg28[%c0_107, %c0_108] : memref<32x32xf32, #tpu.memory_space<vmem>>, vector<8x8xf32>
    tpu.vector_store %arg28[%c0_107, %c0_108], %361 {strides = array<i32>} : memref<32x32xf32, #tpu.memory_space<vmem>>, vector<8x8xf32>,
    %363 = vector.extract_strided_slice %359 {offsets = [1, 0, 0], sizes = [1, 8, 8], strides = [1, 1, 1]} : vector<4x8x8xf32> to vector<1x8x8xf32>
    %364 = vector.shape_cast %363 : vector<1x8x8xf32> to vector<8x8xf32>
    %c0_109 = arith.constant 0 : index
    %c8_110 = arith.constant 8 : index
    %365 = vector.load %arg28[%c0_109, %c8_110] : memref<32x32xf32, #tpu.memory_space<vmem>>, vector<8x8xf32>
    tpu.vector_store %arg28[%c0_109, %c8_110], %364 {strides = array<i32>} : memref<32x32xf32, #tpu.memory_space<vmem>>, vector<8x8xf32>,
    %366 = vector.extract_strided_slice %359 {offsets = [2, 0, 0], sizes = [1, 8, 8], strides = [1, 1, 1]} : vector<4x8x8xf32> to vector<1x8x8xf32>
    %367 = vector.shape_cast %366 : vector<1x8x8xf32> to vector<8x8xf32>
    %c0_111 = arith.constant 0 : index
    %c16_112 = arith.constant 16 : index
    %368 = vector.load %arg28[%c0_111, %c16_112] : memref<32x32xf32, #tpu.memory_space<vmem>>, vector<8x8xf32>
    tpu.vector_store %arg28[%c0_111, %c16_112], %367 {strides = array<i32>} : memref<32x32xf32, #tpu.memory_space<vmem>>, vector<8x8xf32>,
    %369 = vector.extract_strided_slice %359 {offsets = [3, 0, 0], sizes = [1, 8, 8], strides = [1, 1, 1]} : vector<4x8x8xf32> to vector<1x8x8xf32>
    %370 = vector.shape_cast %369 : vector<1x8x8xf32> to vector<8x8xf32>
    %c0_113 = arith.constant 0 : index
    %c24_114 = arith.constant 24 : index
    %371 = vector.load %arg28[%c0_113, %c24_114] : memref<32x32xf32, #tpu.memory_space<vmem>>, vector<8x8xf32>
    tpu.vector_store %arg28[%c0_113, %c24_114], %370 {strides = array<i32>} : memref<32x32xf32, #tpu.memory_space<vmem>>, vector<8x8xf32>,
    %372 = vector.extract_strided_slice %317 {offsets = [8, 0], sizes = [8, 32], strides = [1, 1]} : vector<32x96xf32> to vector<8x32xf32>
    %373 = vector.extract_strided_slice %317 {offsets = [8, 32], sizes = [8, 32], strides = [1, 1]} : vector<32x96xf32> to vector<8x32xf32>
    %374 = vector.extract_strided_slice %317 {offsets = [8, 64], sizes = [8, 32], strides = [1, 1]} : vector<32x96xf32> to vector<8x32xf32>
    %375 = vector.extract_strided_slice %372 {offsets = [0, 0], sizes = [8, 8], strides = [1, 1]} : vector<8x32xf32> to vector<8x8xf32>
    %376 = vector.extract_strided_slice %372 {offsets = [0, 8], sizes = [8, 8], strides = [1, 1]} : vector<8x32xf32> to vector<8x8xf32>
    %377 = vector.extract_strided_slice %372 {offsets = [0, 16], sizes = [8, 8], strides = [1, 1]} : vector<8x32xf32> to vector<8x8xf32>
    %378 = vector.extract_strided_slice %372 {offsets = [0, 24], sizes = [8, 8], strides = [1, 1]} : vector<8x32xf32> to vector<8x8xf32>
    %379 = vector.shape_cast %375 : vector<8x8xf32> to vector<1x8x8xf32>
    %380 = vector.shape_cast %376 : vector<8x8xf32> to vector<1x8x8xf32>
    %381 = vector.shape_cast %377 : vector<8x8xf32> to vector<1x8x8xf32>
    %382 = vector.shape_cast %378 : vector<8x8xf32> to vector<1x8x8xf32>
    %383 = tpu.concatenate %379, %380, %381, %382 in 0 : vector<1x8x8xf32>, vector<1x8x8xf32>, vector<1x8x8xf32>, vector<1x8x8xf32> -> vector<4x8x8xf32>
    %384 = vector.extract_strided_slice %373 {offsets = [0, 0], sizes = [8, 8], strides = [1, 1]} : vector<8x32xf32> to vector<8x8xf32>
    %385 = vector.extract_strided_slice %373 {offsets = [0, 8], sizes = [8, 8], strides = [1, 1]} : vector<8x32xf32> to vector<8x8xf32>
    %386 = vector.extract_strided_slice %373 {offsets = [0, 16], sizes = [8, 8], strides = [1, 1]} : vector<8x32xf32> to vector<8x8xf32>
    %387 = vector.extract_strided_slice %373 {offsets = [0, 24], sizes = [8, 8], strides = [1, 1]} : vector<8x32xf32> to vector<8x8xf32>
    %388 = vector.shape_cast %384 : vector<8x8xf32> to vector<1x8x8xf32>
    %389 = vector.shape_cast %385 : vector<8x8xf32> to vector<1x8x8xf32>
    %390 = vector.shape_cast %386 : vector<8x8xf32> to vector<1x8x8xf32>
    %391 = vector.shape_cast %387 : vector<8x8xf32> to vector<1x8x8xf32>
    %392 = tpu.concatenate %388, %389, %390, %391 in 0 : vector<1x8x8xf32>, vector<1x8x8xf32>, vector<1x8x8xf32>, vector<1x8x8xf32> -> vector<4x8x8xf32>
    %393 = vector.extract_strided_slice %374 {offsets = [0, 0], sizes = [8, 8], strides = [1, 1]} : vector<8x32xf32> to vector<8x8xf32>
    %394 = vector.extract_strided_slice %374 {offsets = [0, 8], sizes = [8, 8], strides = [1, 1]} : vector<8x32xf32> to vector<8x8xf32>
    %395 = vector.extract_strided_slice %374 {offsets = [0, 16], sizes = [8, 8], strides = [1, 1]} : vector<8x32xf32> to vector<8x8xf32>
    %396 = vector.extract_strided_slice %374 {offsets = [0, 24], sizes = [8, 8], strides = [1, 1]} : vector<8x32xf32> to vector<8x8xf32>
    %397 = vector.shape_cast %393 : vector<8x8xf32> to vector<1x8x8xf32>
    %398 = vector.shape_cast %394 : vector<8x8xf32> to vector<1x8x8xf32>
    %399 = vector.shape_cast %395 : vector<8x8xf32> to vector<1x8x8xf32>
    %400 = vector.shape_cast %396 : vector<8x8xf32> to vector<1x8x8xf32>
    %401 = tpu.concatenate %397, %398, %399, %400 in 0 : vector<1x8x8xf32>, vector<1x8x8xf32>, vector<1x8x8xf32>, vector<1x8x8xf32> -> vector<4x8x8xf32>
    "tpu.trace_start"() <{level = 10 : i32, message = "hqd,hkd->hqk"}> : () -> ()
    %cst_115 = arith.constant dense<0.000000e+00> : vector<4x8x8xf32>
    %402 = tpu.matmul %383, %392, %cst_115 {dimension_numbers = #tpu.dot_dimension_numbers<[2], [2], [1], [1], [0, 0, 0, 1, 1, 1], [0], [0]>} : vector<4x8x8xf32>, vector<4x8x8xf32>, vector<4x8x8xf32> -> vector<4x8x8xf32>
    "tpu.trace_stop"() : () -> ()
    %403 = arith.addf %402, %13 : vector<4x8x8xf32>
    %cst_116 = arith.constant dense<0xFF800000> : vector<4x8xf32>
    %404 = vector.multi_reduction <maximumf>, %403, %cst_116 [2] : vector<4x8x8xf32> to vector<4x8xf32>
    %405 = vector.shape_cast %404 : vector<4x8xf32> to vector<4x8x1xf32>
    %406 = vector.broadcast %405 : vector<4x8x1xf32> to vector<4x8x8xf32>
    %407 = arith.subf %403, %406 : vector<4x8x8xf32>
    %408 = math.exp %407 : vector<4x8x8xf32>
    %cst_117 = arith.constant dense<0.000000e+00> : vector<4x8xf32>
    %409 = vector.multi_reduction <add>, %408, %cst_117 [2] : vector<4x8x8xf32> to vector<4x8xf32>
    %410 = vector.shape_cast %409 : vector<4x8xf32> to vector<4x8x1xf32>
    %411 = vector.broadcast %410 : vector<4x8x1xf32> to vector<4x8x8xf32>
    %412 = arith.divf %408, %411 : vector<4x8x8xf32>
    "tpu.trace_start"() <{level = 10 : i32, message = "hqk,hkd->hqd"}> : () -> ()
    %cst_118 = arith.constant dense<0.000000e+00> : vector<4x8x8xf32>
    %413 = tpu.matmul %412, %401, %cst_118 {dimension_numbers = #tpu.dot_dimension_numbers<[2], [1], [1], [2], [0, 0, 0, 1, 1, 2], [0], [0]>} : vector<4x8x8xf32>, vector<4x8x8xf32>, vector<4x8x8xf32> -> vector<4x8x8xf32>
    "tpu.trace_stop"() : () -> ()
    %414 = vector.extract_strided_slice %413 {offsets = [0, 0, 0], sizes = [1, 8, 8], strides = [1, 1, 1]} : vector<4x8x8xf32> to vector<1x8x8xf32>
    %415 = vector.shape_cast %414 : vector<1x8x8xf32> to vector<8x8xf32>
    %c8_119 = arith.constant 8 : index
    %c0_120 = arith.constant 0 : index
    %416 = vector.load %arg28[%c8_119, %c0_120] : memref<32x32xf32, #tpu.memory_space<vmem>>, vector<8x8xf32>
    tpu.vector_store %arg28[%c8_119, %c0_120], %415 {strides = array<i32>} : memref<32x32xf32, #tpu.memory_space<vmem>>, vector<8x8xf32>,
    %417 = vector.extract_strided_slice %413 {offsets = [1, 0, 0], sizes = [1, 8, 8], strides = [1, 1, 1]} : vector<4x8x8xf32> to vector<1x8x8xf32>
    %418 = vector.shape_cast %417 : vector<1x8x8xf32> to vector<8x8xf32>
    %c8_121 = arith.constant 8 : index
    %c8_122 = arith.constant 8 : index
    %419 = vector.load %arg28[%c8_121, %c8_122] : memref<32x32xf32, #tpu.memory_space<vmem>>, vector<8x8xf32>
    tpu.vector_store %arg28[%c8_121, %c8_122], %418 {strides = array<i32>} : memref<32x32xf32, #tpu.memory_space<vmem>>, vector<8x8xf32>,
    %420 = vector.extract_strided_slice %413 {offsets = [2, 0, 0], sizes = [1, 8, 8], strides = [1, 1, 1]} : vector<4x8x8xf32> to vector<1x8x8xf32>
    %421 = vector.shape_cast %420 : vector<1x8x8xf32> to vector<8x8xf32>
    %c8_123 = arith.constant 8 : index
    %c16_124 = arith.constant 16 : index
    %422 = vector.load %arg28[%c8_123, %c16_124] : memref<32x32xf32, #tpu.memory_space<vmem>>, vector<8x8xf32>
    tpu.vector_store %arg28[%c8_123, %c16_124], %421 {strides = array<i32>} : memref<32x32xf32, #tpu.memory_space<vmem>>, vector<8x8xf32>,
    %423 = vector.extract_strided_slice %413 {offsets = [3, 0, 0], sizes = [1, 8, 8], strides = [1, 1, 1]} : vector<4x8x8xf32> to vector<1x8x8xf32>
    %424 = vector.shape_cast %423 : vector<1x8x8xf32> to vector<8x8xf32>
    %c8_125 = arith.constant 8 : index
    %c24_126 = arith.constant 24 : index
    %425 = vector.load %arg28[%c8_125, %c24_126] : memref<32x32xf32, #tpu.memory_space<vmem>>, vector<8x8xf32>
    tpu.vector_store %arg28[%c8_125, %c24_126], %424 {strides = array<i32>} : memref<32x32xf32, #tpu.memory_space<vmem>>, vector<8x8xf32>,
    %426 = vector.extract_strided_slice %317 {offsets = [16, 0], sizes = [8, 32], strides = [1, 1]} : vector<32x96xf32> to vector<8x32xf32>
    %427 = vector.extract_strided_slice %317 {offsets = [16, 32], sizes = [8, 32], strides = [1, 1]} : vector<32x96xf32> to vector<8x32xf32>
    %428 = vector.extract_strided_slice %317 {offsets = [16, 64], sizes = [8, 32], strides = [1, 1]} : vector<32x96xf32> to vector<8x32xf32>
    %429 = vector.extract_strided_slice %426 {offsets = [0, 0], sizes = [8, 8], strides = [1, 1]} : vector<8x32xf32> to vector<8x8xf32>
    %430 = vector.extract_strided_slice %426 {offsets = [0, 8], sizes = [8, 8], strides = [1, 1]} : vector<8x32xf32> to vector<8x8xf32>
    %431 = vector.extract_strided_slice %426 {offsets = [0, 16], sizes = [8, 8], strides = [1, 1]} : vector<8x32xf32> to vector<8x8xf32>
    %432 = vector.extract_strided_slice %426 {offsets = [0, 24], sizes = [8, 8], strides = [1, 1]} : vector<8x32xf32> to vector<8x8xf32>
    %433 = vector.shape_cast %429 : vector<8x8xf32> to vector<1x8x8xf32>
    %434 = vector.shape_cast %430 : vector<8x8xf32> to vector<1x8x8xf32>
    %435 = vector.shape_cast %431 : vector<8x8xf32> to vector<1x8x8xf32>
    %436 = vector.shape_cast %432 : vector<8x8xf32> to vector<1x8x8xf32>
    %437 = tpu.concatenate %433, %434, %435, %436 in 0 : vector<1x8x8xf32>, vector<1x8x8xf32>, vector<1x8x8xf32>, vector<1x8x8xf32> -> vector<4x8x8xf32>
    %438 = vector.extract_strided_slice %427 {offsets = [0, 0], sizes = [8, 8], strides = [1, 1]} : vector<8x32xf32> to vector<8x8xf32>
    %439 = vector.extract_strided_slice %427 {offsets = [0, 8], sizes = [8, 8], strides = [1, 1]} : vector<8x32xf32> to vector<8x8xf32>
    %440 = vector.extract_strided_slice %427 {offsets = [0, 16], sizes = [8, 8], strides = [1, 1]} : vector<8x32xf32> to vector<8x8xf32>
    %441 = vector.extract_strided_slice %427 {offsets = [0, 24], sizes = [8, 8], strides = [1, 1]} : vector<8x32xf32> to vector<8x8xf32>
    %442 = vector.shape_cast %438 : vector<8x8xf32> to vector<1x8x8xf32>
    %443 = vector.shape_cast %439 : vector<8x8xf32> to vector<1x8x8xf32>
    %444 = vector.shape_cast %440 : vector<8x8xf32> to vector<1x8x8xf32>
    %445 = vector.shape_cast %441 : vector<8x8xf32> to vector<1x8x8xf32>
    %446 = tpu.concatenate %442, %443, %444, %445 in 0 : vector<1x8x8xf32>, vector<1x8x8xf32>, vector<1x8x8xf32>, vector<1x8x8xf32> -> vector<4x8x8xf32>
    %447 = vector.extract_strided_slice %428 {offsets = [0, 0], sizes = [8, 8], strides = [1, 1]} : vector<8x32xf32> to vector<8x8xf32>
    %448 = vector.extract_strided_slice %428 {offsets = [0, 8], sizes = [8, 8], strides = [1, 1]} : vector<8x32xf32> to vector<8x8xf32>
    %449 = vector.extract_strided_slice %428 {offsets = [0, 16], sizes = [8, 8], strides = [1, 1]} : vector<8x32xf32> to vector<8x8xf32>
    %450 = vector.extract_strided_slice %428 {offsets = [0, 24], sizes = [8, 8], strides = [1, 1]} : vector<8x32xf32> to vector<8x8xf32>
    %451 = vector.shape_cast %447 : vector<8x8xf32> to vector<1x8x8xf32>
    %452 = vector.shape_cast %448 : vector<8x8xf32> to vector<1x8x8xf32>
    %453 = vector.shape_cast %449 : vector<8x8xf32> to vector<1x8x8xf32>
    %454 = vector.shape_cast %450 : vector<8x8xf32> to vector<1x8x8xf32>
    %455 = tpu.concatenate %451, %452, %453, %454 in 0 : vector<1x8x8xf32>, vector<1x8x8xf32>, vector<1x8x8xf32>, vector<1x8x8xf32> -> vector<4x8x8xf32>
    "tpu.trace_start"() <{level = 10 : i32, message = "hqd,hkd->hqk"}> : () -> ()
    %cst_127 = arith.constant dense<0.000000e+00> : vector<4x8x8xf32>
    %456 = tpu.matmul %437, %446, %cst_127 {dimension_numbers = #tpu.dot_dimension_numbers<[2], [2], [1], [1], [0, 0, 0, 1, 1, 1], [0], [0]>} : vector<4x8x8xf32>, vector<4x8x8xf32>, vector<4x8x8xf32> -> vector<4x8x8xf32>
    "tpu.trace_stop"() : () -> ()
    %457 = arith.addf %456, %19 : vector<4x8x8xf32>
    %cst_128 = arith.constant dense<0xFF800000> : vector<4x8xf32>
    %458 = vector.multi_reduction <maximumf>, %457, %cst_128 [2] : vector<4x8x8xf32> to vector<4x8xf32>
    %459 = vector.shape_cast %458 : vector<4x8xf32> to vector<4x8x1xf32>
    %460 = vector.broadcast %459 : vector<4x8x1xf32> to vector<4x8x8xf32>
    %461 = arith.subf %457, %460 : vector<4x8x8xf32>
    %462 = math.exp %461 : vector<4x8x8xf32>
    %cst_129 = arith.constant dense<0.000000e+00> : vector<4x8xf32>
    %463 = vector.multi_reduction <add>, %462, %cst_129 [2] : vector<4x8x8xf32> to vector<4x8xf32>
    %464 = vector.shape_cast %463 : vector<4x8xf32> to vector<4x8x1xf32>
    %465 = vector.broadcast %464 : vector<4x8x1xf32> to vector<4x8x8xf32>
    %466 = arith.divf %462, %465 : vector<4x8x8xf32>
    "tpu.trace_start"() <{level = 10 : i32, message = "hqk,hkd->hqd"}> : () -> ()
    %cst_130 = arith.constant dense<0.000000e+00> : vector<4x8x8xf32>
    %467 = tpu.matmul %466, %455, %cst_130 {dimension_numbers = #tpu.dot_dimension_numbers<[2], [1], [1], [2], [0, 0, 0, 1, 1, 2], [0], [0]>} : vector<4x8x8xf32>, vector<4x8x8xf32>, vector<4x8x8xf32> -> vector<4x8x8xf32>
    "tpu.trace_stop"() : () -> ()
    %468 = vector.extract_strided_slice %467 {offsets = [0, 0, 0], sizes = [1, 8, 8], strides = [1, 1, 1]} : vector<4x8x8xf32> to vector<1x8x8xf32>
    %469 = vector.shape_cast %468 : vector<1x8x8xf32> to vector<8x8xf32>
    %c16_131 = arith.constant 16 : index
    %c0_132 = arith.constant 0 : index
    %470 = vector.load %arg28[%c16_131, %c0_132] : memref<32x32xf32, #tpu.memory_space<vmem>>, vector<8x8xf32>
    tpu.vector_store %arg28[%c16_131, %c0_132], %469 {strides = array<i32>} : memref<32x32xf32, #tpu.memory_space<vmem>>, vector<8x8xf32>,
    %471 = vector.extract_strided_slice %467 {offsets = [1, 0, 0], sizes = [1, 8, 8], strides = [1, 1, 1]} : vector<4x8x8xf32> to vector<1x8x8xf32>
    %472 = vector.shape_cast %471 : vector<1x8x8xf32> to vector<8x8xf32>
    %c16_133 = arith.constant 16 : index
    %c8_134 = arith.constant 8 : index
    %473 = vector.load %arg28[%c16_133, %c8_134] : memref<32x32xf32, #tpu.memory_space<vmem>>, vector<8x8xf32>
    tpu.vector_store %arg28[%c16_133, %c8_134], %472 {strides = array<i32>} : memref<32x32xf32, #tpu.memory_space<vmem>>, vector<8x8xf32>,
    %474 = vector.extract_strided_slice %467 {offsets = [2, 0, 0], sizes = [1, 8, 8], strides = [1, 1, 1]} : vector<4x8x8xf32> to vector<1x8x8xf32>
    %475 = vector.shape_cast %474 : vector<1x8x8xf32> to vector<8x8xf32>
    %c16_135 = arith.constant 16 : index
    %c16_136 = arith.constant 16 : index
    %476 = vector.load %arg28[%c16_135, %c16_136] : memref<32x32xf32, #tpu.memory_space<vmem>>, vector<8x8xf32>
    tpu.vector_store %arg28[%c16_135, %c16_136], %475 {strides = array<i32>} : memref<32x32xf32, #tpu.memory_space<vmem>>, vector<8x8xf32>,
    %477 = vector.extract_strided_slice %467 {offsets = [3, 0, 0], sizes = [1, 8, 8], strides = [1, 1, 1]} : vector<4x8x8xf32> to vector<1x8x8xf32>
    %478 = vector.shape_cast %477 : vector<1x8x8xf32> to vector<8x8xf32>
    %c16_137 = arith.constant 16 : index
    %c24_138 = arith.constant 24 : index
    %479 = vector.load %arg28[%c16_137, %c24_138] : memref<32x32xf32, #tpu.memory_space<vmem>>, vector<8x8xf32>
    tpu.vector_store %arg28[%c16_137, %c24_138], %478 {strides = array<i32>} : memref<32x32xf32, #tpu.memory_space<vmem>>, vector<8x8xf32>,
    %480 = vector.extract_strided_slice %317 {offsets = [24, 0], sizes = [8, 32], strides = [1, 1]} : vector<32x96xf32> to vector<8x32xf32>
    %481 = vector.extract_strided_slice %317 {offsets = [24, 32], sizes = [8, 32], strides = [1, 1]} : vector<32x96xf32> to vector<8x32xf32>
    %482 = vector.extract_strided_slice %317 {offsets = [24, 64], sizes = [8, 32], strides = [1, 1]} : vector<32x96xf32> to vector<8x32xf32>
    %483 = vector.extract_strided_slice %480 {offsets = [0, 0], sizes = [8, 8], strides = [1, 1]} : vector<8x32xf32> to vector<8x8xf32>
    %484 = vector.extract_strided_slice %480 {offsets = [0, 8], sizes = [8, 8], strides = [1, 1]} : vector<8x32xf32> to vector<8x8xf32>
    %485 = vector.extract_strided_slice %480 {offsets = [0, 16], sizes = [8, 8], strides = [1, 1]} : vector<8x32xf32> to vector<8x8xf32>
    %486 = vector.extract_strided_slice %480 {offsets = [0, 24], sizes = [8, 8], strides = [1, 1]} : vector<8x32xf32> to vector<8x8xf32>
    %487 = vector.shape_cast %483 : vector<8x8xf32> to vector<1x8x8xf32>
    %488 = vector.shape_cast %484 : vector<8x8xf32> to vector<1x8x8xf32>
    %489 = vector.shape_cast %485 : vector<8x8xf32> to vector<1x8x8xf32>
    %490 = vector.shape_cast %486 : vector<8x8xf32> to vector<1x8x8xf32>
    %491 = tpu.concatenate %487, %488, %489, %490 in 0 : vector<1x8x8xf32>, vector<1x8x8xf32>, vector<1x8x8xf32>, vector<1x8x8xf32> -> vector<4x8x8xf32>
    %492 = vector.extract_strided_slice %481 {offsets = [0, 0], sizes = [8, 8], strides = [1, 1]} : vector<8x32xf32> to vector<8x8xf32>
    %493 = vector.extract_strided_slice %481 {offsets = [0, 8], sizes = [8, 8], strides = [1, 1]} : vector<8x32xf32> to vector<8x8xf32>
    %494 = vector.extract_strided_slice %481 {offsets = [0, 16], sizes = [8, 8], strides = [1, 1]} : vector<8x32xf32> to vector<8x8xf32>
    %495 = vector.extract_strided_slice %481 {offsets = [0, 24], sizes = [8, 8], strides = [1, 1]} : vector<8x32xf32> to vector<8x8xf32>
    %496 = vector.shape_cast %492 : vector<8x8xf32> to vector<1x8x8xf32>
    %497 = vector.shape_cast %493 : vector<8x8xf32> to vector<1x8x8xf32>
    %498 = vector.shape_cast %494 : vector<8x8xf32> to vector<1x8x8xf32>
    %499 = vector.shape_cast %495 : vector<8x8xf32> to vector<1x8x8xf32>
    %500 = tpu.concatenate %496, %497, %498, %499 in 0 : vector<1x8x8xf32>, vector<1x8x8xf32>, vector<1x8x8xf32>, vector<1x8x8xf32> -> vector<4x8x8xf32>
    %501 = vector.extract_strided_slice %482 {offsets = [0, 0], sizes = [8, 8], strides = [1, 1]} : vector<8x32xf32> to vector<8x8xf32>
    %502 = vector.extract_strided_slice %482 {offsets = [0, 8], sizes = [8, 8], strides = [1, 1]} : vector<8x32xf32> to vector<8x8xf32>
    %503 = vector.extract_strided_slice %482 {offsets = [0, 16], sizes = [8, 8], strides = [1, 1]} : vector<8x32xf32> to vector<8x8xf32>
    %504 = vector.extract_strided_slice %482 {offsets = [0, 24], sizes = [8, 8], strides = [1, 1]} : vector<8x32xf32> to vector<8x8xf32>
    %505 = vector.shape_cast %501 : vector<8x8xf32> to vector<1x8x8xf32>
    %506 = vector.shape_cast %502 : vector<8x8xf32> to vector<1x8x8xf32>
    %507 = vector.shape_cast %503 : vector<8x8xf32> to vector<1x8x8xf32>
    %508 = vector.shape_cast %504 : vector<8x8xf32> to vector<1x8x8xf32>
    %509 = tpu.concatenate %505, %506, %507, %508 in 0 : vector<1x8x8xf32>, vector<1x8x8xf32>, vector<1x8x8xf32>, vector<1x8x8xf32> -> vector<4x8x8xf32>
    "tpu.trace_start"() <{level = 10 : i32, message = "hqd,hkd->hqk"}> : () -> ()
    %cst_139 = arith.constant dense<0.000000e+00> : vector<4x8x8xf32>
    %510 = tpu.matmul %491, %500, %cst_139 {dimension_numbers = #tpu.dot_dimension_numbers<[2], [2], [1], [1], [0, 0, 0, 1, 1, 1], [0], [0]>} : vector<4x8x8xf32>, vector<4x8x8xf32>, vector<4x8x8xf32> -> vector<4x8x8xf32>
    "tpu.trace_stop"() : () -> ()
    %511 = arith.addf %510, %25 : vector<4x8x8xf32>
    %cst_140 = arith.constant dense<0xFF800000> : vector<4x8xf32>
    %512 = vector.multi_reduction <maximumf>, %511, %cst_140 [2] : vector<4x8x8xf32> to vector<4x8xf32>
    %513 = vector.shape_cast %512 : vector<4x8xf32> to vector<4x8x1xf32>
    %514 = vector.broadcast %513 : vector<4x8x1xf32> to vector<4x8x8xf32>
    %515 = arith.subf %511, %514 : vector<4x8x8xf32>
    %516 = math.exp %515 : vector<4x8x8xf32>
    %cst_141 = arith.constant dense<0.000000e+00> : vector<4x8xf32>
    %517 = vector.multi_reduction <add>, %516, %cst_141 [2] : vector<4x8x8xf32> to vector<4x8xf32>
    %518 = vector.shape_cast %517 : vector<4x8xf32> to vector<4x8x1xf32>
    %519 = vector.broadcast %518 : vector<4x8x1xf32> to vector<4x8x8xf32>
    %520 = arith.divf %516, %519 : vector<4x8x8xf32>
    "tpu.trace_start"() <{level = 10 : i32, message = "hqk,hkd->hqd"}> : () -> ()
    %cst_142 = arith.constant dense<0.000000e+00> : vector<4x8x8xf32>
    %521 = tpu.matmul %520, %509, %cst_142 {dimension_numbers = #tpu.dot_dimension_numbers<[2], [1], [1], [2], [0, 0, 0, 1, 1, 2], [0], [0]>} : vector<4x8x8xf32>, vector<4x8x8xf32>, vector<4x8x8xf32> -> vector<4x8x8xf32>
    "tpu.trace_stop"() : () -> ()
    %522 = vector.extract_strided_slice %521 {offsets = [0, 0, 0], sizes = [1, 8, 8], strides = [1, 1, 1]} : vector<4x8x8xf32> to vector<1x8x8xf32>
    %523 = vector.shape_cast %522 : vector<1x8x8xf32> to vector<8x8xf32>
    %c24_143 = arith.constant 24 : index
    %c0_144 = arith.constant 0 : index
    %524 = vector.load %arg28[%c24_143, %c0_144] : memref<32x32xf32, #tpu.memory_space<vmem>>, vector<8x8xf32>
    tpu.vector_store %arg28[%c24_143, %c0_144], %523 {strides = array<i32>} : memref<32x32xf32, #tpu.memory_space<vmem>>, vector<8x8xf32>,
    %525 = vector.extract_strided_slice %521 {offsets = [1, 0, 0], sizes = [1, 8, 8], strides = [1, 1, 1]} : vector<4x8x8xf32> to vector<1x8x8xf32>
    %526 = vector.shape_cast %525 : vector<1x8x8xf32> to vector<8x8xf32>
    %c24_145 = arith.constant 24 : index
    %c8_146 = arith.constant 8 : index
    %527 = vector.load %arg28[%c24_145, %c8_146] : memref<32x32xf32, #tpu.memory_space<vmem>>, vector<8x8xf32>
    tpu.vector_store %arg28[%c24_145, %c8_146], %526 {strides = array<i32>} : memref<32x32xf32, #tpu.memory_space<vmem>>, vector<8x8xf32>,
    %528 = vector.extract_strided_slice %521 {offsets = [2, 0, 0], sizes = [1, 8, 8], strides = [1, 1, 1]} : vector<4x8x8xf32> to vector<1x8x8xf32>
    %529 = vector.shape_cast %528 : vector<1x8x8xf32> to vector<8x8xf32>
    %c24_147 = arith.constant 24 : index
    %c16_148 = arith.constant 16 : index
    %530 = vector.load %arg28[%c24_147, %c16_148] : memref<32x32xf32, #tpu.memory_space<vmem>>, vector<8x8xf32>
    tpu.vector_store %arg28[%c24_147, %c16_148], %529 {strides = array<i32>} : memref<32x32xf32, #tpu.memory_space<vmem>>, vector<8x8xf32>,
    %531 = vector.extract_strided_slice %521 {offsets = [3, 0, 0], sizes = [1, 8, 8], strides = [1, 1, 1]} : vector<4x8x8xf32> to vector<1x8x8xf32>
    %532 = vector.shape_cast %531 : vector<1x8x8xf32> to vector<8x8xf32>
    %c24_149 = arith.constant 24 : index
    %c24_150 = arith.constant 24 : index
    %533 = vector.load %arg28[%c24_149, %c24_150] : memref<32x32xf32, #tpu.memory_space<vmem>>, vector<8x8xf32>
    tpu.vector_store %arg28[%c24_149, %c24_150], %532 {strides = array<i32>} : memref<32x32xf32, #tpu.memory_space<vmem>>, vector<8x8xf32>,
    %c0_151 = arith.constant 0 : index
    %c0_152 = arith.constant 0 : index
    %534 = vector.load %arg28[%c0_151, %c0_152] : memref<32x32xf32, #tpu.memory_space<vmem>>, vector<32x32xf32>
    %c1_153 = arith.constant 1 : index
    %c0_154 = arith.constant 0 : index
    %c0_155 = arith.constant 0 : index
    %535 = vector.load %arg9[%c1_153, %c0_154, %c0_155] : memref<2x32x32xf32, #tpu.memory_space<vmem>>, vector<1x32x32xf32>
    %536 = vector.shape_cast %535 : vector<1x32x32xf32> to vector<32x32xf32>
    %cst_156 = arith.constant dense<0.000000e+00> : vector<32x32xf32>
    %537 = tpu.matmul %534, %536, %cst_156 {dimension_numbers = #tpu.dot_dimension_numbers<[1], [0], [0], [1], [0, 0, 1, 1], [], []>} : vector<32x32xf32>, vector<32x32xf32>, vector<32x32xf32> -> vector<32x32xf32>
    %538 = arith.addf %300, %537 : vector<32x32xf32>
    %c1_157 = arith.constant 1 : index
    %c0_158 = arith.constant 0 : index
    %c0_159 = arith.constant 0 : index
    %539 = vector.load %arg10[%c1_157, %c0_158, %c0_159] : memref<2x1x32xf32, #tpu.memory_space<vmem>>, vector<1x1x32xf32>
    %540 = vector.shape_cast %539 : vector<1x1x32xf32> to vector<1x32xf32>
    %541 = arith.mulf %538, %538 : vector<32x32xf32>
    %cst_160 = arith.constant dense<0.000000e+00> : vector<32xf32>
    %542 = vector.multi_reduction <add>, %541, %cst_160 [1] : vector<32x32xf32> to vector<32xf32>
    %543 = vector.shape_cast %542 : vector<32xf32> to vector<32x1xf32>
    %cst_161 = arith.constant 3.200000e+01 : f32
    %544 = vector.broadcast %cst_161 : f32 to vector<32x1xf32>
    %545 = arith.divf %543, %544 : vector<32x1xf32>
    %cst_162 = arith.constant 9.99999997E-7 : f32
    %546 = vector.broadcast %cst_162 : f32 to vector<32x1xf32>
    %547 = arith.addf %545, %546 : vector<32x1xf32>
    %548 = math.rsqrt %547 : vector<32x1xf32>
    %549 = vector.broadcast %548 : vector<32x1xf32> to vector<32x32xf32>
    %550 = arith.mulf %538, %549 : vector<32x32xf32>
    %551 = vector.broadcast %540 : vector<1x32xf32> to vector<32x32xf32>
    %552 = arith.mulf %550, %551 : vector<32x32xf32>
    %c1_163 = arith.constant 1 : index
    %c0_164 = arith.constant 0 : index
    %c0_165 = arith.constant 0 : index
    %553 = vector.load %arg11[%c1_163, %c0_164, %c0_165] : memref<2x32x128xf32, #tpu.memory_space<vmem>>, vector<1x32x128xf32>
    %554 = vector.shape_cast %553 : vector<1x32x128xf32> to vector<32x128xf32>
    %cst_166 = arith.constant dense<0.000000e+00> : vector<32x128xf32>
    %555 = tpu.matmul %552, %554, %cst_166 {dimension_numbers = #tpu.dot_dimension_numbers<[1], [0], [0], [1], [0, 0, 1, 1], [], []>} : vector<32x32xf32>, vector<32x128xf32>, vector<32x128xf32> -> vector<32x128xf32>
    %556 = vector.extract_strided_slice %555 {offsets = [0, 0], sizes = [32, 64], strides = [1, 1]} : vector<32x128xf32> to vector<32x64xf32>
    %cst_167 = arith.constant 5.000000e-01 : f32
    %557 = vector.broadcast %cst_167 : f32 to vector<32x64xf32>
    %558 = arith.mulf %557, %556 : vector<32x64xf32>
    %cst_168 = arith.constant 4.471500e-02 : f32
    %559 = vector.broadcast %cst_168 : f32 to vector<32x64xf32>
    %560 = arith.mulf %559, %556 : vector<32x64xf32>
    %561 = arith.mulf %560, %556 : vector<32x64xf32>
    %562 = arith.mulf %561, %556 : vector<32x64xf32>
    %563 = arith.addf %556, %562 : vector<32x64xf32>
    %cst_169 = arith.constant 0.797884583 : f32
    %564 = vector.broadcast %cst_169 : f32 to vector<32x64xf32>
    %565 = arith.mulf %564, %563 : vector<32x64xf32>
    %566 = math.tanh %565 : vector<32x64xf32>
    %cst_170 = arith.constant 1.000000e+00 : f32
    %567 = vector.broadcast %cst_170 : f32 to vector<32x64xf32>
    %568 = arith.addf %567, %566 : vector<32x64xf32>
    %569 = arith.mulf %558, %568 : vector<32x64xf32>
    %570 = vector.extract_strided_slice %555 {offsets = [0, 64], sizes = [32, 64], strides = [1, 1]} : vector<32x128xf32> to vector<32x64xf32>
    %571 = arith.mulf %569, %570 : vector<32x64xf32>
    %c1_171 = arith.constant 1 : index
    %c0_172 = arith.constant 0 : index
    %c0_173 = arith.constant 0 : index
    %572 = vector.load %arg12[%c1_171, %c0_172, %c0_173] : memref<2x64x32xf32, #tpu.memory_space<vmem>>, vector<1x64x32xf32>
    %573 = vector.shape_cast %572 : vector<1x64x32xf32> to vector<64x32xf32>
    %cst_174 = arith.constant dense<0.000000e+00> : vector<32x32xf32>
    %574 = tpu.matmul %571, %573, %cst_174 {dimension_numbers = #tpu.dot_dimension_numbers<[1], [0], [0], [1], [0, 0, 1, 1], [], []>} : vector<32x64xf32>, vector<64x32xf32>, vector<32x32xf32> -> vector<32x32xf32>
    %575 = arith.addf %538, %574 : vector<32x32xf32>
    %c0_175 = arith.constant 0 : index
    %c0_176 = arith.constant 0 : index
    %576 = vector.load %arg13[%c0_175, %c0_176] : memref<1x32xf32, #tpu.memory_space<vmem>>, vector<1x32xf32>
    %577 = arith.mulf %575, %575 : vector<32x32xf32>
    %cst_177 = arith.constant dense<0.000000e+00> : vector<32xf32>
    %578 = vector.multi_reduction <add>, %577, %cst_177 [1] : vector<32x32xf32> to vector<32xf32>
    %579 = vector.shape_cast %578 : vector<32xf32> to vector<32x1xf32>
    %cst_178 = arith.constant 3.200000e+01 : f32
    %580 = vector.broadcast %cst_178 : f32 to vector<32x1xf32>
    %581 = arith.divf %579, %580 : vector<32x1xf32>
    %cst_179 = arith.constant 9.99999997E-7 : f32
    %582 = vector.broadcast %cst_179 : f32 to vector<32x1xf32>
    %583 = arith.addf %581, %582 : vector<32x1xf32>
    %584 = math.rsqrt %583 : vector<32x1xf32>
    %585 = vector.broadcast %584 : vector<32x1xf32> to vector<32x32xf32>
    %586 = arith.mulf %575, %585 : vector<32x32xf32>
    %587 = vector.broadcast %576 : vector<1x32xf32> to vector<32x32xf32>
    %588 = arith.mulf %586, %587 : vector<32x32xf32>
    %c0_180 = arith.constant 0 : index
    %c0_181 = arith.constant 0 : index
    %589 = vector.load %arg3[%c0_180, %c0_181] : memref<12x32xf32, #tpu.memory_space<vmem>>, vector<12x32xf32>
    %c0_182 = arith.constant 0 : index
    %c0_183 = arith.constant 0 : index
    %c0_184 = arith.constant 0 : index
    %590 = vector.load %arg5[%c0_182, %c0_183, %c0_184] : memref<4x6x6xf32, #tpu.memory_space<vmem>>, vector<4x6x6xf32>
    %c0_185 = arith.constant 0 : index
    %c0_186 = arith.constant 0 : index
    %c0_187 = arith.constant 0 : index
    %591 = vector.load %arg4[%c0_185, %c0_186, %c0_187] : memref<2x1x16xf32, #tpu.memory_space<vmem>>, vector<2x1x16xf32>
    %592 = vector.extract_strided_slice %591 {offsets = [0, 0, 0], sizes = [1, 1, 16], strides = [1, 1, 1]} : vector<2x1x16xf32> to vector<1x1x16xf32>
    %593 = vector.shape_cast %592 : vector<1x1x16xf32> to vector<1x16xf32>
    %594 = vector.shape_cast %593 : vector<1x16xf32> to vector<1x1x16xf32>
    %595 = vector.extract_strided_slice %591 {offsets = [1, 0, 0], sizes = [1, 1, 16], strides = [1, 1, 1]} : vector<2x1x16xf32> to vector<1x1x16xf32>
    %596 = vector.shape_cast %595 : vector<1x1x16xf32> to vector<1x16xf32>
    %597 = vector.shape_cast %596 : vector<1x16xf32> to vector<1x1x16xf32>
    %c0_188 = arith.constant 0 : index
    %c0_189 = arith.constant 0 : index
    %c0_190 = arith.constant 0 : index
    %598 = vector.load %arg14[%c0_188, %c0_189, %c0_190] : memref<2x1x32xf32, #tpu.memory_space<vmem>>, vector<1x1x32xf32>
    %599 = vector.shape_cast %598 : vector<1x1x32xf32> to vector<1x32xf32>
    %600 = arith.mulf %589, %589 : vector<12x32xf32>
    %cst_191 = arith.constant dense<0.000000e+00> : vector<12xf32>
    %601 = vector.multi_reduction <add>, %600, %cst_191 [1] : vector<12x32xf32> to vector<12xf32>
    %602 = vector.shape_cast %601 : vector<12xf32> to vector<12x1xf32>
    %cst_192 = arith.constant 3.200000e+01 : f32
    %603 = vector.broadcast %cst_192 : f32 to vector<12x1xf32>
    %604 = arith.divf %602, %603 : vector<12x1xf32>
    %cst_193 = arith.constant 9.99999997E-7 : f32
    %605 = vector.broadcast %cst_193 : f32 to vector<12x1xf32>
    %606 = arith.addf %604, %605 : vector<12x1xf32>
    %607 = math.rsqrt %606 : vector<12x1xf32>
    %608 = vector.broadcast %607 : vector<12x1xf32> to vector<12x32xf32>
    %609 = arith.mulf %589, %608 : vector<12x32xf32>
    %610 = vector.broadcast %599 : vector<1x32xf32> to vector<12x32xf32>
    %611 = arith.mulf %609, %610 : vector<12x32xf32>
    %c0_194 = arith.constant 0 : index
    %c0_195 = arith.constant 0 : index
    %c0_196 = arith.constant 0 : index
    %612 = vector.load %arg15[%c0_194, %c0_195, %c0_196] : memref<2x32x96xf32, #tpu.memory_space<vmem>>, vector<1x32x96xf32>
    %613 = vector.shape_cast %612 : vector<1x32x96xf32> to vector<32x96xf32>
    %cst_197 = arith.constant dense<0.000000e+00> : vector<12x96xf32>
    %614 = tpu.matmul %611, %613, %cst_197 {dimension_numbers = #tpu.dot_dimension_numbers<[1], [0], [0], [1], [0, 0, 1, 1], [], []>} : vector<12x32xf32>, vector<32x96xf32>, vector<12x96xf32> -> vector<12x96xf32>
    %615 = vector.extract_strided_slice %614 {offsets = [0, 0], sizes = [6, 32], strides = [1, 1]} : vector<12x96xf32> to vector<6x32xf32>
    %616 = vector.extract_strided_slice %614 {offsets = [0, 32], sizes = [6, 32], strides = [1, 1]} : vector<12x96xf32> to vector<6x32xf32>
    %617 = vector.extract_strided_slice %614 {offsets = [0, 64], sizes = [6, 32], strides = [1, 1]} : vector<12x96xf32> to vector<6x32xf32>
    %618 = vector.extract_strided_slice %615 {offsets = [0, 0], sizes = [6, 8], strides = [1, 1]} : vector<6x32xf32> to vector<6x8xf32>
    %619 = vector.extract_strided_slice %615 {offsets = [0, 8], sizes = [6, 8], strides = [1, 1]} : vector<6x32xf32> to vector<6x8xf32>
    %620 = vector.extract_strided_slice %615 {offsets = [0, 16], sizes = [6, 8], strides = [1, 1]} : vector<6x32xf32> to vector<6x8xf32>
    %621 = vector.extract_strided_slice %615 {offsets = [0, 24], sizes = [6, 8], strides = [1, 1]} : vector<6x32xf32> to vector<6x8xf32>
    %622 = vector.shape_cast %618 : vector<6x8xf32> to vector<1x6x8xf32>
    %623 = vector.shape_cast %619 : vector<6x8xf32> to vector<1x6x8xf32>
    %624 = vector.shape_cast %620 : vector<6x8xf32> to vector<1x6x8xf32>
    %625 = vector.shape_cast %621 : vector<6x8xf32> to vector<1x6x8xf32>
    %626 = tpu.concatenate %622, %623, %624, %625 in 0 : vector<1x6x8xf32>, vector<1x6x8xf32>, vector<1x6x8xf32>, vector<1x6x8xf32> -> vector<4x6x8xf32>
    %627 = vector.extract_strided_slice %616 {offsets = [0, 0], sizes = [6, 8], strides = [1, 1]} : vector<6x32xf32> to vector<6x8xf32>
    %628 = vector.extract_strided_slice %616 {offsets = [0, 8], sizes = [6, 8], strides = [1, 1]} : vector<6x32xf32> to vector<6x8xf32>
    %629 = vector.extract_strided_slice %616 {offsets = [0, 16], sizes = [6, 8], strides = [1, 1]} : vector<6x32xf32> to vector<6x8xf32>
    %630 = vector.extract_strided_slice %616 {offsets = [0, 24], sizes = [6, 8], strides = [1, 1]} : vector<6x32xf32> to vector<6x8xf32>
    %631 = vector.shape_cast %627 : vector<6x8xf32> to vector<1x6x8xf32>
    %632 = vector.shape_cast %628 : vector<6x8xf32> to vector<1x6x8xf32>
    %633 = vector.shape_cast %629 : vector<6x8xf32> to vector<1x6x8xf32>
    %634 = vector.shape_cast %630 : vector<6x8xf32> to vector<1x6x8xf32>
    %635 = tpu.concatenate %631, %632, %633, %634 in 0 : vector<1x6x8xf32>, vector<1x6x8xf32>, vector<1x6x8xf32>, vector<1x6x8xf32> -> vector<4x6x8xf32>
    %636 = vector.extract_strided_slice %617 {offsets = [0, 0], sizes = [6, 8], strides = [1, 1]} : vector<6x32xf32> to vector<6x8xf32>
    %637 = vector.extract_strided_slice %617 {offsets = [0, 8], sizes = [6, 8], strides = [1, 1]} : vector<6x32xf32> to vector<6x8xf32>
    %638 = vector.extract_strided_slice %617 {offsets = [0, 16], sizes = [6, 8], strides = [1, 1]} : vector<6x32xf32> to vector<6x8xf32>
    %639 = vector.extract_strided_slice %617 {offsets = [0, 24], sizes = [6, 8], strides = [1, 1]} : vector<6x32xf32> to vector<6x8xf32>
    %640 = vector.shape_cast %636 : vector<6x8xf32> to vector<1x6x8xf32>
    %641 = vector.shape_cast %637 : vector<6x8xf32> to vector<1x6x8xf32>
    %642 = vector.shape_cast %638 : vector<6x8xf32> to vector<1x6x8xf32>
    %643 = vector.shape_cast %639 : vector<6x8xf32> to vector<1x6x8xf32>
    %644 = tpu.concatenate %640, %641, %642, %643 in 0 : vector<1x6x8xf32>, vector<1x6x8xf32>, vector<1x6x8xf32>, vector<1x6x8xf32> -> vector<4x6x8xf32>
    "tpu.trace_start"() <{level = 10 : i32, message = "hqd,hkd->hqk"}> : () -> ()
    %cst_198 = arith.constant dense<0.000000e+00> : vector<4x6x6xf32>
    %645 = tpu.matmul %626, %635, %cst_198 {dimension_numbers = #tpu.dot_dimension_numbers<[2], [2], [1], [1], [0, 0, 0, 1, 1, 1], [0], [0]>} : vector<4x6x8xf32>, vector<4x6x8xf32>, vector<4x6x6xf32> -> vector<4x6x6xf32>
    "tpu.trace_stop"() : () -> ()
    %646 = arith.addf %645, %590 : vector<4x6x6xf32>
    %cst_199 = arith.constant dense<0xFF800000> : vector<4x6xf32>
    %647 = vector.multi_reduction <maximumf>, %646, %cst_199 [2] : vector<4x6x6xf32> to vector<4x6xf32>
    %648 = vector.shape_cast %647 : vector<4x6xf32> to vector<4x6x1xf32>
    %649 = vector.broadcast %648 : vector<4x6x1xf32> to vector<4x6x6xf32>
    %650 = arith.subf %646, %649 : vector<4x6x6xf32>
    %651 = math.exp %650 : vector<4x6x6xf32>
    %cst_200 = arith.constant dense<0.000000e+00> : vector<4x6xf32>
    %652 = vector.multi_reduction <add>, %651, %cst_200 [2] : vector<4x6x6xf32> to vector<4x6xf32>
    %653 = vector.shape_cast %652 : vector<4x6xf32> to vector<4x6x1xf32>
    %654 = vector.broadcast %653 : vector<4x6x1xf32> to vector<4x6x6xf32>
    %655 = arith.divf %651, %654 : vector<4x6x6xf32>
    "tpu.trace_start"() <{level = 10 : i32, message = "hqk,hkd->hqd"}> : () -> ()
    %cst_201 = arith.constant dense<0.000000e+00> : vector<4x6x8xf32>
    %656 = tpu.matmul %655, %644, %cst_201 {dimension_numbers = #tpu.dot_dimension_numbers<[2], [1], [1], [2], [0, 0, 0, 1, 1, 2], [0], [0]>} : vector<4x6x6xf32>, vector<4x6x8xf32>, vector<4x6x8xf32> -> vector<4x6x8xf32>
    "tpu.trace_stop"() : () -> ()
    %657 = vector.extract_strided_slice %656 {offsets = [0, 0, 0], sizes = [1, 6, 8], strides = [1, 1, 1]} : vector<4x6x8xf32> to vector<1x6x8xf32>
    %658 = vector.shape_cast %657 : vector<1x6x8xf32> to vector<6x8xf32>
    %c0_202 = arith.constant 0 : index
    %c0_203 = arith.constant 0 : index
    %659 = vector.load %arg29[%c0_202, %c0_203] : memref<12x32xf32, #tpu.memory_space<vmem>>, vector<6x8xf32>
    tpu.vector_store %arg29[%c0_202, %c0_203], %658 {strides = array<i32>} : memref<12x32xf32, #tpu.memory_space<vmem>>, vector<6x8xf32>,
    %660 = vector.extract_strided_slice %656 {offsets = [1, 0, 0], sizes = [1, 6, 8], strides = [1, 1, 1]} : vector<4x6x8xf32> to vector<1x6x8xf32>
    %661 = vector.shape_cast %660 : vector<1x6x8xf32> to vector<6x8xf32>
    %c0_204 = arith.constant 0 : index
    %c8_205 = arith.constant 8 : index
    %662 = vector.load %arg29[%c0_204, %c8_205] : memref<12x32xf32, #tpu.memory_space<vmem>>, vector<6x8xf32>
    tpu.vector_store %arg29[%c0_204, %c8_205], %661 {strides = array<i32>} : memref<12x32xf32, #tpu.memory_space<vmem>>, vector<6x8xf32>,
    %663 = vector.extract_strided_slice %656 {offsets = [2, 0, 0], sizes = [1, 6, 8], strides = [1, 1, 1]} : vector<4x6x8xf32> to vector<1x6x8xf32>
    %664 = vector.shape_cast %663 : vector<1x6x8xf32> to vector<6x8xf32>
    %c0_206 = arith.constant 0 : index
    %c16_207 = arith.constant 16 : index
    %665 = vector.load %arg29[%c0_206, %c16_207] : memref<12x32xf32, #tpu.memory_space<vmem>>, vector<6x8xf32>
    tpu.vector_store %arg29[%c0_206, %c16_207], %664 {strides = array<i32>} : memref<12x32xf32, #tpu.memory_space<vmem>>, vector<6x8xf32>,
    %666 = vector.extract_strided_slice %656 {offsets = [3, 0, 0], sizes = [1, 6, 8], strides = [1, 1, 1]} : vector<4x6x8xf32> to vector<1x6x8xf32>
    %667 = vector.shape_cast %666 : vector<1x6x8xf32> to vector<6x8xf32>
    %c0_208 = arith.constant 0 : index
    %c24_209 = arith.constant 24 : index
    %668 = vector.load %arg29[%c0_208, %c24_209] : memref<12x32xf32, #tpu.memory_space<vmem>>, vector<6x8xf32>
    tpu.vector_store %arg29[%c0_208, %c24_209], %667 {strides = array<i32>} : memref<12x32xf32, #tpu.memory_space<vmem>>, vector<6x8xf32>,
    %669 = vector.extract_strided_slice %614 {offsets = [6, 0], sizes = [6, 32], strides = [1, 1]} : vector<12x96xf32> to vector<6x32xf32>
    %670 = vector.extract_strided_slice %614 {offsets = [6, 32], sizes = [6, 32], strides = [1, 1]} : vector<12x96xf32> to vector<6x32xf32>
    %671 = vector.extract_strided_slice %614 {offsets = [6, 64], sizes = [6, 32], strides = [1, 1]} : vector<12x96xf32> to vector<6x32xf32>
    %672 = vector.extract_strided_slice %669 {offsets = [0, 0], sizes = [6, 8], strides = [1, 1]} : vector<6x32xf32> to vector<6x8xf32>
    %673 = vector.extract_strided_slice %669 {offsets = [0, 8], sizes = [6, 8], strides = [1, 1]} : vector<6x32xf32> to vector<6x8xf32>
    %674 = vector.extract_strided_slice %669 {offsets = [0, 16], sizes = [6, 8], strides = [1, 1]} : vector<6x32xf32> to vector<6x8xf32>
    %675 = vector.extract_strided_slice %669 {offsets = [0, 24], sizes = [6, 8], strides = [1, 1]} : vector<6x32xf32> to vector<6x8xf32>
    %676 = vector.shape_cast %672 : vector<6x8xf32> to vector<1x6x8xf32>
    %677 = vector.shape_cast %673 : vector<6x8xf32> to vector<1x6x8xf32>
    %678 = vector.shape_cast %674 : vector<6x8xf32> to vector<1x6x8xf32>
    %679 = vector.shape_cast %675 : vector<6x8xf32> to vector<1x6x8xf32>
    %680 = tpu.concatenate %676, %677, %678, %679 in 0 : vector<1x6x8xf32>, vector<1x6x8xf32>, vector<1x6x8xf32>, vector<1x6x8xf32> -> vector<4x6x8xf32>
    %681 = vector.extract_strided_slice %670 {offsets = [0, 0], sizes = [6, 8], strides = [1, 1]} : vector<6x32xf32> to vector<6x8xf32>
    %682 = vector.extract_strided_slice %670 {offsets = [0, 8], sizes = [6, 8], strides = [1, 1]} : vector<6x32xf32> to vector<6x8xf32>
    %683 = vector.extract_strided_slice %670 {offsets = [0, 16], sizes = [6, 8], strides = [1, 1]} : vector<6x32xf32> to vector<6x8xf32>
    %684 = vector.extract_strided_slice %670 {offsets = [0, 24], sizes = [6, 8], strides = [1, 1]} : vector<6x32xf32> to vector<6x8xf32>
    %685 = vector.shape_cast %681 : vector<6x8xf32> to vector<1x6x8xf32>
    %686 = vector.shape_cast %682 : vector<6x8xf32> to vector<1x6x8xf32>
    %687 = vector.shape_cast %683 : vector<6x8xf32> to vector<1x6x8xf32>
    %688 = vector.shape_cast %684 : vector<6x8xf32> to vector<1x6x8xf32>
    %689 = tpu.concatenate %685, %686, %687, %688 in 0 : vector<1x6x8xf32>, vector<1x6x8xf32>, vector<1x6x8xf32>, vector<1x6x8xf32> -> vector<4x6x8xf32>
    %690 = vector.extract_strided_slice %671 {offsets = [0, 0], sizes = [6, 8], strides = [1, 1]} : vector<6x32xf32> to vector<6x8xf32>
    %691 = vector.extract_strided_slice %671 {offsets = [0, 8], sizes = [6, 8], strides = [1, 1]} : vector<6x32xf32> to vector<6x8xf32>
    %692 = vector.extract_strided_slice %671 {offsets = [0, 16], sizes = [6, 8], strides = [1, 1]} : vector<6x32xf32> to vector<6x8xf32>
    %693 = vector.extract_strided_slice %671 {offsets = [0, 24], sizes = [6, 8], strides = [1, 1]} : vector<6x32xf32> to vector<6x8xf32>
    %694 = vector.shape_cast %690 : vector<6x8xf32> to vector<1x6x8xf32>
    %695 = vector.shape_cast %691 : vector<6x8xf32> to vector<1x6x8xf32>
    %696 = vector.shape_cast %692 : vector<6x8xf32> to vector<1x6x8xf32>
    %697 = vector.shape_cast %693 : vector<6x8xf32> to vector<1x6x8xf32>
    %698 = tpu.concatenate %694, %695, %696, %697 in 0 : vector<1x6x8xf32>, vector<1x6x8xf32>, vector<1x6x8xf32>, vector<1x6x8xf32> -> vector<4x6x8xf32>
    "tpu.trace_start"() <{level = 10 : i32, message = "hqd,hkd->hqk"}> : () -> ()
    %cst_210 = arith.constant dense<0.000000e+00> : vector<4x6x6xf32>
    %699 = tpu.matmul %680, %689, %cst_210 {dimension_numbers = #tpu.dot_dimension_numbers<[2], [2], [1], [1], [0, 0, 0, 1, 1, 1], [0], [0]>} : vector<4x6x8xf32>, vector<4x6x8xf32>, vector<4x6x6xf32> -> vector<4x6x6xf32>
    "tpu.trace_stop"() : () -> ()
    %700 = arith.addf %699, %590 : vector<4x6x6xf32>
    %cst_211 = arith.constant dense<0xFF800000> : vector<4x6xf32>
    %701 = vector.multi_reduction <maximumf>, %700, %cst_211 [2] : vector<4x6x6xf32> to vector<4x6xf32>
    %702 = vector.shape_cast %701 : vector<4x6xf32> to vector<4x6x1xf32>
    %703 = vector.broadcast %702 : vector<4x6x1xf32> to vector<4x6x6xf32>
    %704 = arith.subf %700, %703 : vector<4x6x6xf32>
    %705 = math.exp %704 : vector<4x6x6xf32>
    %cst_212 = arith.constant dense<0.000000e+00> : vector<4x6xf32>
    %706 = vector.multi_reduction <add>, %705, %cst_212 [2] : vector<4x6x6xf32> to vector<4x6xf32>
    %707 = vector.shape_cast %706 : vector<4x6xf32> to vector<4x6x1xf32>
    %708 = vector.broadcast %707 : vector<4x6x1xf32> to vector<4x6x6xf32>
    %709 = arith.divf %705, %708 : vector<4x6x6xf32>
    "tpu.trace_start"() <{level = 10 : i32, message = "hqk,hkd->hqd"}> : () -> ()
    %cst_213 = arith.constant dense<0.000000e+00> : vector<4x6x8xf32>
    %710 = tpu.matmul %709, %698, %cst_213 {dimension_numbers = #tpu.dot_dimension_numbers<[2], [1], [1], [2], [0, 0, 0, 1, 1, 2], [0], [0]>} : vector<4x6x6xf32>, vector<4x6x8xf32>, vector<4x6x8xf32> -> vector<4x6x8xf32>
    "tpu.trace_stop"() : () -> ()
    %711 = vector.extract_strided_slice %710 {offsets = [0, 0, 0], sizes = [1, 6, 8], strides = [1, 1, 1]} : vector<4x6x8xf32> to vector<1x6x8xf32>
    %712 = vector.shape_cast %711 : vector<1x6x8xf32> to vector<6x8xf32>
    %c6 = arith.constant 6 : index
    %c0_214 = arith.constant 0 : index
    %713 = vector.load %arg29[%c6, %c0_214] : memref<12x32xf32, #tpu.memory_space<vmem>>, vector<6x8xf32>
    tpu.vector_store %arg29[%c6, %c0_214], %712 {strides = array<i32>} : memref<12x32xf32, #tpu.memory_space<vmem>>, vector<6x8xf32>,
    %714 = vector.extract_strided_slice %710 {offsets = [1, 0, 0], sizes = [1, 6, 8], strides = [1, 1, 1]} : vector<4x6x8xf32> to vector<1x6x8xf32>
    %715 = vector.shape_cast %714 : vector<1x6x8xf32> to vector<6x8xf32>
    %c6_215 = arith.constant 6 : index
    %c8_216 = arith.constant 8 : index
    %716 = vector.load %arg29[%c6_215, %c8_216] : memref<12x32xf32, #tpu.memory_space<vmem>>, vector<6x8xf32>
    tpu.vector_store %arg29[%c6_215, %c8_216], %715 {strides = array<i32>} : memref<12x32xf32, #tpu.memory_space<vmem>>, vector<6x8xf32>,
    %717 = vector.extract_strided_slice %710 {offsets = [2, 0, 0], sizes = [1, 6, 8], strides = [1, 1, 1]} : vector<4x6x8xf32> to vector<1x6x8xf32>
    %718 = vector.shape_cast %717 : vector<1x6x8xf32> to vector<6x8xf32>
    %c6_217 = arith.constant 6 : index
    %c16_218 = arith.constant 16 : index
    %719 = vector.load %arg29[%c6_217, %c16_218] : memref<12x32xf32, #tpu.memory_space<vmem>>, vector<6x8xf32>
    tpu.vector_store %arg29[%c6_217, %c16_218], %718 {strides = array<i32>} : memref<12x32xf32, #tpu.memory_space<vmem>>, vector<6x8xf32>,
    %720 = vector.extract_strided_slice %710 {offsets = [3, 0, 0], sizes = [1, 6, 8], strides = [1, 1, 1]} : vector<4x6x8xf32> to vector<1x6x8xf32>
    %721 = vector.shape_cast %720 : vector<1x6x8xf32> to vector<6x8xf32>
    %c6_219 = arith.constant 6 : index
    %c24_220 = arith.constant 24 : index
    %722 = vector.load %arg29[%c6_219, %c24_220] : memref<12x32xf32, #tpu.memory_space<vmem>>, vector<6x8xf32>
    tpu.vector_store %arg29[%c6_219, %c24_220], %721 {strides = array<i32>} : memref<12x32xf32, #tpu.memory_space<vmem>>, vector<6x8xf32>,
    %c0_221 = arith.constant 0 : index
    %c0_222 = arith.constant 0 : index
    %723 = vector.load %arg29[%c0_221, %c0_222] : memref<12x32xf32, #tpu.memory_space<vmem>>, vector<12x32xf32>
    %c0_223 = arith.constant 0 : index
    %c0_224 = arith.constant 0 : index
    %c0_225 = arith.constant 0 : index
    %724 = vector.load %arg16[%c0_223, %c0_224, %c0_225] : memref<2x32x32xf32, #tpu.memory_space<vmem>>, vector<1x32x32xf32>
    %725 = vector.shape_cast %724 : vector<1x32x32xf32> to vector<32x32xf32>
    %cst_226 = arith.constant dense<0.000000e+00> : vector<12x32xf32>
    %726 = tpu.matmul %723, %725, %cst_226 {dimension_numbers = #tpu.dot_dimension_numbers<[1], [0], [0], [1], [0, 0, 1, 1], [], []>} : vector<12x32xf32>, vector<32x32xf32>, vector<12x32xf32> -> vector<12x32xf32>
    %727 = arith.addf %589, %726 : vector<12x32xf32>
    %c0_227 = arith.constant 0 : index
    %c0_228 = arith.constant 0 : index
    %c0_229 = arith.constant 0 : index
    %728 = vector.load %arg17[%c0_227, %c0_228, %c0_229] : memref<2x1x32xf32, #tpu.memory_space<vmem>>, vector<1x1x32xf32>
    %729 = vector.shape_cast %728 : vector<1x1x32xf32> to vector<1x32xf32>
    %730 = arith.mulf %727, %727 : vector<12x32xf32>
    %cst_230 = arith.constant dense<0.000000e+00> : vector<12xf32>
    %731 = vector.multi_reduction <add>, %730, %cst_230 [1] : vector<12x32xf32> to vector<12xf32>
    %732 = vector.shape_cast %731 : vector<12xf32> to vector<12x1xf32>
    %cst_231 = arith.constant 3.200000e+01 : f32
    %733 = vector.broadcast %cst_231 : f32 to vector<12x1xf32>
    %734 = arith.divf %732, %733 : vector<12x1xf32>
    %cst_232 = arith.constant 9.99999997E-7 : f32
    %735 = vector.broadcast %cst_232 : f32 to vector<12x1xf32>
    %736 = arith.addf %734, %735 : vector<12x1xf32>
    %737 = math.rsqrt %736 : vector<12x1xf32>
    %738 = vector.broadcast %737 : vector<12x1xf32> to vector<12x32xf32>
    %739 = arith.mulf %727, %738 : vector<12x32xf32>
    %740 = vector.broadcast %729 : vector<1x32xf32> to vector<12x32xf32>
    %741 = arith.mulf %739, %740 : vector<12x32xf32>
    %c0_233 = arith.constant 0 : index
    %c0_234 = arith.constant 0 : index
    %c0_235 = arith.constant 0 : index
    %742 = vector.load %arg18[%c0_233, %c0_234, %c0_235] : memref<2x32x32xf32, #tpu.memory_space<vmem>>, vector<1x32x32xf32>
    %743 = vector.shape_cast %742 : vector<1x32x32xf32> to vector<32x32xf32>
    %cst_236 = arith.constant dense<0.000000e+00> : vector<12x32xf32>
    %744 = tpu.matmul %741, %743, %cst_236 {dimension_numbers = #tpu.dot_dimension_numbers<[1], [0], [0], [1], [0, 0, 1, 1], [], []>} : vector<12x32xf32>, vector<32x32xf32>, vector<12x32xf32> -> vector<12x32xf32>
    %c0_237 = arith.constant 0 : index
    %c0_238 = arith.constant 0 : index
    %c0_239 = arith.constant 0 : index
    %745 = vector.load %arg19[%c0_237, %c0_238, %c0_239] : memref<2x32x64xf32, #tpu.memory_space<vmem>>, vector<1x32x64xf32>
    %746 = vector.shape_cast %745 : vector<1x32x64xf32> to vector<32x64xf32>
    %cst_240 = arith.constant dense<0.000000e+00> : vector<32x64xf32>
    %747 = tpu.matmul %588, %746, %cst_240 {dimension_numbers = #tpu.dot_dimension_numbers<[1], [0], [0], [1], [0, 0, 1, 1], [], []>} : vector<32x32xf32>, vector<32x64xf32>, vector<32x64xf32> -> vector<32x64xf32>
    %748 = vector.extract_strided_slice %744 {offsets = [0, 0], sizes = [6, 32], strides = [1, 1]} : vector<12x32xf32> to vector<6x32xf32>
    %749 = vector.extract_strided_slice %747 {offsets = [0, 0], sizes = [16, 32], strides = [1, 1]} : vector<32x64xf32> to vector<16x32xf32>
    %750 = vector.extract_strided_slice %747 {offsets = [0, 32], sizes = [16, 32], strides = [1, 1]} : vector<32x64xf32> to vector<16x32xf32>
    %751 = vector.extract_strided_slice %748 {offsets = [0, 0], sizes = [6, 8], strides = [1, 1]} : vector<6x32xf32> to vector<6x8xf32>
    %752 = vector.extract_strided_slice %748 {offsets = [0, 8], sizes = [6, 8], strides = [1, 1]} : vector<6x32xf32> to vector<6x8xf32>
    %753 = vector.extract_strided_slice %748 {offsets = [0, 16], sizes = [6, 8], strides = [1, 1]} : vector<6x32xf32> to vector<6x8xf32>
    %754 = vector.extract_strided_slice %748 {offsets = [0, 24], sizes = [6, 8], strides = [1, 1]} : vector<6x32xf32> to vector<6x8xf32>
    %755 = vector.shape_cast %751 : vector<6x8xf32> to vector<1x6x8xf32>
    %756 = vector.shape_cast %752 : vector<6x8xf32> to vector<1x6x8xf32>
    %757 = vector.shape_cast %753 : vector<6x8xf32> to vector<1x6x8xf32>
    %758 = vector.shape_cast %754 : vector<6x8xf32> to vector<1x6x8xf32>
    %759 = tpu.concatenate %755, %756, %757, %758 in 0 : vector<1x6x8xf32>, vector<1x6x8xf32>, vector<1x6x8xf32>, vector<1x6x8xf32> -> vector<4x6x8xf32>
    %760 = vector.extract_strided_slice %749 {offsets = [0, 0], sizes = [16, 8], strides = [1, 1]} : vector<16x32xf32> to vector<16x8xf32>
    %761 = vector.extract_strided_slice %749 {offsets = [0, 8], sizes = [16, 8], strides = [1, 1]} : vector<16x32xf32> to vector<16x8xf32>
    %762 = vector.extract_strided_slice %749 {offsets = [0, 16], sizes = [16, 8], strides = [1, 1]} : vector<16x32xf32> to vector<16x8xf32>
    %763 = vector.extract_strided_slice %749 {offsets = [0, 24], sizes = [16, 8], strides = [1, 1]} : vector<16x32xf32> to vector<16x8xf32>
    %764 = vector.shape_cast %760 : vector<16x8xf32> to vector<1x16x8xf32>
    %765 = vector.shape_cast %761 : vector<16x8xf32> to vector<1x16x8xf32>
    %766 = vector.shape_cast %762 : vector<16x8xf32> to vector<1x16x8xf32>
    %767 = vector.shape_cast %763 : vector<16x8xf32> to vector<1x16x8xf32>
    %768 = tpu.concatenate %764, %765, %766, %767 in 0 : vector<1x16x8xf32>, vector<1x16x8xf32>, vector<1x16x8xf32>, vector<1x16x8xf32> -> vector<4x16x8xf32>
    %769 = vector.extract_strided_slice %750 {offsets = [0, 0], sizes = [16, 8], strides = [1, 1]} : vector<16x32xf32> to vector<16x8xf32>
    %770 = vector.extract_strided_slice %750 {offsets = [0, 8], sizes = [16, 8], strides = [1, 1]} : vector<16x32xf32> to vector<16x8xf32>
    %771 = vector.extract_strided_slice %750 {offsets = [0, 16], sizes = [16, 8], strides = [1, 1]} : vector<16x32xf32> to vector<16x8xf32>
    %772 = vector.extract_strided_slice %750 {offsets = [0, 24], sizes = [16, 8], strides = [1, 1]} : vector<16x32xf32> to vector<16x8xf32>
    %773 = vector.shape_cast %769 : vector<16x8xf32> to vector<1x16x8xf32>
    %774 = vector.shape_cast %770 : vector<16x8xf32> to vector<1x16x8xf32>
    %775 = vector.shape_cast %771 : vector<16x8xf32> to vector<1x16x8xf32>
    %776 = vector.shape_cast %772 : vector<16x8xf32> to vector<1x16x8xf32>
    %777 = tpu.concatenate %773, %774, %775, %776 in 0 : vector<1x16x8xf32>, vector<1x16x8xf32>, vector<1x16x8xf32>, vector<1x16x8xf32> -> vector<4x16x8xf32>
    "tpu.trace_start"() <{level = 10 : i32, message = "hqd,hkd->hqk"}> : () -> ()
    %cst_241 = arith.constant dense<0.000000e+00> : vector<4x6x16xf32>
    %778 = tpu.matmul %759, %768, %cst_241 {dimension_numbers = #tpu.dot_dimension_numbers<[2], [2], [1], [1], [0, 0, 0, 1, 1, 1], [0], [0]>} : vector<4x6x8xf32>, vector<4x16x8xf32>, vector<4x6x16xf32> -> vector<4x6x16xf32>
    "tpu.trace_stop"() : () -> ()
    %779 = vector.broadcast %594 : vector<1x1x16xf32> to vector<4x6x16xf32>
    %780 = arith.addf %778, %779 : vector<4x6x16xf32>
    %cst_242 = arith.constant dense<0xFF800000> : vector<4x6xf32>
    %781 = vector.multi_reduction <maximumf>, %780, %cst_242 [2] : vector<4x6x16xf32> to vector<4x6xf32>
    %782 = vector.shape_cast %781 : vector<4x6xf32> to vector<4x6x1xf32>
    %783 = vector.broadcast %782 : vector<4x6x1xf32> to vector<4x6x16xf32>
    %784 = arith.subf %780, %783 : vector<4x6x16xf32>
    %785 = math.exp %784 : vector<4x6x16xf32>
    %cst_243 = arith.constant dense<0.000000e+00> : vector<4x6xf32>
    %786 = vector.multi_reduction <add>, %785, %cst_243 [2] : vector<4x6x16xf32> to vector<4x6xf32>
    %787 = vector.shape_cast %786 : vector<4x6xf32> to vector<4x6x1xf32>
    %788 = vector.broadcast %787 : vector<4x6x1xf32> to vector<4x6x16xf32>
    %789 = arith.divf %785, %788 : vector<4x6x16xf32>
    "tpu.trace_start"() <{level = 10 : i32, message = "hqk,hkd->hqd"}> : () -> ()
    %cst_244 = arith.constant dense<0.000000e+00> : vector<4x6x8xf32>
    %790 = tpu.matmul %789, %777, %cst_244 {dimension_numbers = #tpu.dot_dimension_numbers<[2], [1], [1], [2], [0, 0, 0, 1, 1, 2], [0], [0]>} : vector<4x6x16xf32>, vector<4x16x8xf32>, vector<4x6x8xf32> -> vector<4x6x8xf32>
    "tpu.trace_stop"() : () -> ()
    %791 = vector.extract_strided_slice %790 {offsets = [0, 0, 0], sizes = [1, 6, 8], strides = [1, 1, 1]} : vector<4x6x8xf32> to vector<1x6x8xf32>
    %792 = vector.shape_cast %791 : vector<1x6x8xf32> to vector<6x8xf32>
    %c0_245 = arith.constant 0 : index
    %c0_246 = arith.constant 0 : index
    %793 = vector.load %arg29[%c0_245, %c0_246] : memref<12x32xf32, #tpu.memory_space<vmem>>, vector<6x8xf32>
    tpu.vector_store %arg29[%c0_245, %c0_246], %792 {strides = array<i32>} : memref<12x32xf32, #tpu.memory_space<vmem>>, vector<6x8xf32>,
    %794 = vector.extract_strided_slice %790 {offsets = [1, 0, 0], sizes = [1, 6, 8], strides = [1, 1, 1]} : vector<4x6x8xf32> to vector<1x6x8xf32>
    %795 = vector.shape_cast %794 : vector<1x6x8xf32> to vector<6x8xf32>
    %c0_247 = arith.constant 0 : index
    %c8_248 = arith.constant 8 : index
    %796 = vector.load %arg29[%c0_247, %c8_248] : memref<12x32xf32, #tpu.memory_space<vmem>>, vector<6x8xf32>
    tpu.vector_store %arg29[%c0_247, %c8_248], %795 {strides = array<i32>} : memref<12x32xf32, #tpu.memory_space<vmem>>, vector<6x8xf32>,
    %797 = vector.extract_strided_slice %790 {offsets = [2, 0, 0], sizes = [1, 6, 8], strides = [1, 1, 1]} : vector<4x6x8xf32> to vector<1x6x8xf32>
    %798 = vector.shape_cast %797 : vector<1x6x8xf32> to vector<6x8xf32>
    %c0_249 = arith.constant 0 : index
    %c16_250 = arith.constant 16 : index
    %799 = vector.load %arg29[%c0_249, %c16_250] : memref<12x32xf32, #tpu.memory_space<vmem>>, vector<6x8xf32>
    tpu.vector_store %arg29[%c0_249, %c16_250], %798 {strides = array<i32>} : memref<12x32xf32, #tpu.memory_space<vmem>>, vector<6x8xf32>,
    %800 = vector.extract_strided_slice %790 {offsets = [3, 0, 0], sizes = [1, 6, 8], strides = [1, 1, 1]} : vector<4x6x8xf32> to vector<1x6x8xf32>
    %801 = vector.shape_cast %800 : vector<1x6x8xf32> to vector<6x8xf32>
    %c0_251 = arith.constant 0 : index
    %c24_252 = arith.constant 24 : index
    %802 = vector.load %arg29[%c0_251, %c24_252] : memref<12x32xf32, #tpu.memory_space<vmem>>, vector<6x8xf32>
    tpu.vector_store %arg29[%c0_251, %c24_252], %801 {strides = array<i32>} : memref<12x32xf32, #tpu.memory_space<vmem>>, vector<6x8xf32>,
    %803 = vector.extract_strided_slice %744 {offsets = [6, 0], sizes = [6, 32], strides = [1, 1]} : vector<12x32xf32> to vector<6x32xf32>
    %804 = vector.extract_strided_slice %747 {offsets = [16, 0], sizes = [16, 32], strides = [1, 1]} : vector<32x64xf32> to vector<16x32xf32>
    %805 = vector.extract_strided_slice %747 {offsets = [16, 32], sizes = [16, 32], strides = [1, 1]} : vector<32x64xf32> to vector<16x32xf32>
    %806 = vector.extract_strided_slice %803 {offsets = [0, 0], sizes = [6, 8], strides = [1, 1]} : vector<6x32xf32> to vector<6x8xf32>
    %807 = vector.extract_strided_slice %803 {offsets = [0, 8], sizes = [6, 8], strides = [1, 1]} : vector<6x32xf32> to vector<6x8xf32>
    %808 = vector.extract_strided_slice %803 {offsets = [0, 16], sizes = [6, 8], strides = [1, 1]} : vector<6x32xf32> to vector<6x8xf32>
    %809 = vector.extract_strided_slice %803 {offsets = [0, 24], sizes = [6, 8], strides = [1, 1]} : vector<6x32xf32> to vector<6x8xf32>
    %810 = vector.shape_cast %806 : vector<6x8xf32> to vector<1x6x8xf32>
    %811 = vector.shape_cast %807 : vector<6x8xf32> to vector<1x6x8xf32>
    %812 = vector.shape_cast %808 : vector<6x8xf32> to vector<1x6x8xf32>
    %813 = vector.shape_cast %809 : vector<6x8xf32> to vector<1x6x8xf32>
    %814 = tpu.concatenate %810, %811, %812, %813 in 0 : vector<1x6x8xf32>, vector<1x6x8xf32>, vector<1x6x8xf32>, vector<1x6x8xf32> -> vector<4x6x8xf32>
    %815 = vector.extract_strided_slice %804 {offsets = [0, 0], sizes = [16, 8], strides = [1, 1]} : vector<16x32xf32> to vector<16x8xf32>
    %816 = vector.extract_strided_slice %804 {offsets = [0, 8], sizes = [16, 8], strides = [1, 1]} : vector<16x32xf32> to vector<16x8xf32>
    %817 = vector.extract_strided_slice %804 {offsets = [0, 16], sizes = [16, 8], strides = [1, 1]} : vector<16x32xf32> to vector<16x8xf32>
    %818 = vector.extract_strided_slice %804 {offsets = [0, 24], sizes = [16, 8], strides = [1, 1]} : vector<16x32xf32> to vector<16x8xf32>
    %819 = vector.shape_cast %815 : vector<16x8xf32> to vector<1x16x8xf32>
    %820 = vector.shape_cast %816 : vector<16x8xf32> to vector<1x16x8xf32>
    %821 = vector.shape_cast %817 : vector<16x8xf32> to vector<1x16x8xf32>
    %822 = vector.shape_cast %818 : vector<16x8xf32> to vector<1x16x8xf32>
    %823 = tpu.concatenate %819, %820, %821, %822 in 0 : vector<1x16x8xf32>, vector<1x16x8xf32>, vector<1x16x8xf32>, vector<1x16x8xf32> -> vector<4x16x8xf32>
    %824 = vector.extract_strided_slice %805 {offsets = [0, 0], sizes = [16, 8], strides = [1, 1]} : vector<16x32xf32> to vector<16x8xf32>
    %825 = vector.extract_strided_slice %805 {offsets = [0, 8], sizes = [16, 8], strides = [1, 1]} : vector<16x32xf32> to vector<16x8xf32>
    %826 = vector.extract_strided_slice %805 {offsets = [0, 16], sizes = [16, 8], strides = [1, 1]} : vector<16x32xf32> to vector<16x8xf32>
    %827 = vector.extract_strided_slice %805 {offsets = [0, 24], sizes = [16, 8], strides = [1, 1]} : vector<16x32xf32> to vector<16x8xf32>
    %828 = vector.shape_cast %824 : vector<16x8xf32> to vector<1x16x8xf32>
    %829 = vector.shape_cast %825 : vector<16x8xf32> to vector<1x16x8xf32>
    %830 = vector.shape_cast %826 : vector<16x8xf32> to vector<1x16x8xf32>
    %831 = vector.shape_cast %827 : vector<16x8xf32> to vector<1x16x8xf32>
    %832 = tpu.concatenate %828, %829, %830, %831 in 0 : vector<1x16x8xf32>, vector<1x16x8xf32>, vector<1x16x8xf32>, vector<1x16x8xf32> -> vector<4x16x8xf32>
    "tpu.trace_start"() <{level = 10 : i32, message = "hqd,hkd->hqk"}> : () -> ()
    %cst_253 = arith.constant dense<0.000000e+00> : vector<4x6x16xf32>
    %833 = tpu.matmul %814, %823, %cst_253 {dimension_numbers = #tpu.dot_dimension_numbers<[2], [2], [1], [1], [0, 0, 0, 1, 1, 1], [0], [0]>} : vector<4x6x8xf32>, vector<4x16x8xf32>, vector<4x6x16xf32> -> vector<4x6x16xf32>
    "tpu.trace_stop"() : () -> ()
    %834 = vector.broadcast %597 : vector<1x1x16xf32> to vector<4x6x16xf32>
    %835 = arith.addf %833, %834 : vector<4x6x16xf32>
    %cst_254 = arith.constant dense<0xFF800000> : vector<4x6xf32>
    %836 = vector.multi_reduction <maximumf>, %835, %cst_254 [2] : vector<4x6x16xf32> to vector<4x6xf32>
    %837 = vector.shape_cast %836 : vector<4x6xf32> to vector<4x6x1xf32>
    %838 = vector.broadcast %837 : vector<4x6x1xf32> to vector<4x6x16xf32>
    %839 = arith.subf %835, %838 : vector<4x6x16xf32>
    %840 = math.exp %839 : vector<4x6x16xf32>
    %cst_255 = arith.constant dense<0.000000e+00> : vector<4x6xf32>
    %841 = vector.multi_reduction <add>, %840, %cst_255 [2] : vector<4x6x16xf32> to vector<4x6xf32>
    %842 = vector.shape_cast %841 : vector<4x6xf32> to vector<4x6x1xf32>
    %843 = vector.broadcast %842 : vector<4x6x1xf32> to vector<4x6x16xf32>
    %844 = arith.divf %840, %843 : vector<4x6x16xf32>
    "tpu.trace_start"() <{level = 10 : i32, message = "hqk,hkd->hqd"}> : () -> ()
    %cst_256 = arith.constant dense<0.000000e+00> : vector<4x6x8xf32>
    %845 = tpu.matmul %844, %832, %cst_256 {dimension_numbers = #tpu.dot_dimension_numbers<[2], [1], [1], [2], [0, 0, 0, 1, 1, 2], [0], [0]>} : vector<4x6x16xf32>, vector<4x16x8xf32>, vector<4x6x8xf32> -> vector<4x6x8xf32>
    "tpu.trace_stop"() : () -> ()
    %846 = vector.extract_strided_slice %845 {offsets = [0, 0, 0], sizes = [1, 6, 8], strides = [1, 1, 1]} : vector<4x6x8xf32> to vector<1x6x8xf32>
    %847 = vector.shape_cast %846 : vector<1x6x8xf32> to vector<6x8xf32>
    %c6_257 = arith.constant 6 : index
    %c0_258 = arith.constant 0 : index
    %848 = vector.load %arg29[%c6_257, %c0_258] : memref<12x32xf32, #tpu.memory_space<vmem>>, vector<6x8xf32>
    tpu.vector_store %arg29[%c6_257, %c0_258], %847 {strides = array<i32>} : memref<12x32xf32, #tpu.memory_space<vmem>>, vector<6x8xf32>,
    %849 = vector.extract_strided_slice %845 {offsets = [1, 0, 0], sizes = [1, 6, 8], strides = [1, 1, 1]} : vector<4x6x8xf32> to vector<1x6x8xf32>
    %850 = vector.shape_cast %849 : vector<1x6x8xf32> to vector<6x8xf32>
    %c6_259 = arith.constant 6 : index
    %c8_260 = arith.constant 8 : index
    %851 = vector.load %arg29[%c6_259, %c8_260] : memref<12x32xf32, #tpu.memory_space<vmem>>, vector<6x8xf32>
    tpu.vector_store %arg29[%c6_259, %c8_260], %850 {strides = array<i32>} : memref<12x32xf32, #tpu.memory_space<vmem>>, vector<6x8xf32>,
    %852 = vector.extract_strided_slice %845 {offsets = [2, 0, 0], sizes = [1, 6, 8], strides = [1, 1, 1]} : vector<4x6x8xf32> to vector<1x6x8xf32>
    %853 = vector.shape_cast %852 : vector<1x6x8xf32> to vector<6x8xf32>
    %c6_261 = arith.constant 6 : index
    %c16_262 = arith.constant 16 : index
    %854 = vector.load %arg29[%c6_261, %c16_262] : memref<12x32xf32, #tpu.memory_space<vmem>>, vector<6x8xf32>
    tpu.vector_store %arg29[%c6_261, %c16_262], %853 {strides = array<i32>} : memref<12x32xf32, #tpu.memory_space<vmem>>, vector<6x8xf32>,
    %855 = vector.extract_strided_slice %845 {offsets = [3, 0, 0], sizes = [1, 6, 8], strides = [1, 1, 1]} : vector<4x6x8xf32> to vector<1x6x8xf32>
    %856 = vector.shape_cast %855 : vector<1x6x8xf32> to vector<6x8xf32>
    %c6_263 = arith.constant 6 : index
    %c24_264 = arith.constant 24 : index
    %857 = vector.load %arg29[%c6_263, %c24_264] : memref<12x32xf32, #tpu.memory_space<vmem>>, vector<6x8xf32>
    tpu.vector_store %arg29[%c6_263, %c24_264], %856 {strides = array<i32>} : memref<12x32xf32, #tpu.memory_space<vmem>>, vector<6x8xf32>,
    %c0_265 = arith.constant 0 : index
    %c0_266 = arith.constant 0 : index
    %858 = vector.load %arg29[%c0_265, %c0_266] : memref<12x32xf32, #tpu.memory_space<vmem>>, vector<12x32xf32>
    %c0_267 = arith.constant 0 : index
    %c0_268 = arith.constant 0 : index
    %c0_269 = arith.constant 0 : index
    %859 = vector.load %arg20[%c0_267, %c0_268, %c0_269] : memref<2x32x32xf32, #tpu.memory_space<vmem>>, vector<1x32x32xf32>
    %860 = vector.shape_cast %859 : vector<1x32x32xf32> to vector<32x32xf32>
    %cst_270 = arith.constant dense<0.000000e+00> : vector<12x32xf32>
    %861 = tpu.matmul %858, %860, %cst_270 {dimension_numbers = #tpu.dot_dimension_numbers<[1], [0], [0], [1], [0, 0, 1, 1], [], []>} : vector<12x32xf32>, vector<32x32xf32>, vector<12x32xf32> -> vector<12x32xf32>
    %862 = arith.addf %727, %861 : vector<12x32xf32>
    %c0_271 = arith.constant 0 : index
    %c0_272 = arith.constant 0 : index
    %c0_273 = arith.constant 0 : index
    %863 = vector.load %arg21[%c0_271, %c0_272, %c0_273] : memref<2x1x32xf32, #tpu.memory_space<vmem>>, vector<1x1x32xf32>
    %864 = vector.shape_cast %863 : vector<1x1x32xf32> to vector<1x32xf32>
    %865 = arith.mulf %862, %862 : vector<12x32xf32>
    %cst_274 = arith.constant dense<0.000000e+00> : vector<12xf32>
    %866 = vector.multi_reduction <add>, %865, %cst_274 [1] : vector<12x32xf32> to vector<12xf32>
    %867 = vector.shape_cast %866 : vector<12xf32> to vector<12x1xf32>
    %cst_275 = arith.constant 3.200000e+01 : f32
    %868 = vector.broadcast %cst_275 : f32 to vector<12x1xf32>
    %869 = arith.divf %867, %868 : vector<12x1xf32>
    %cst_276 = arith.constant 9.99999997E-7 : f32
    %870 = vector.broadcast %cst_276 : f32 to vector<12x1xf32>
    %871 = arith.addf %869, %870 : vector<12x1xf32>
    %872 = math.rsqrt %871 : vector<12x1xf32>
    %873 = vector.broadcast %872 : vector<12x1xf32> to vector<12x32xf32>
    %874 = arith.mulf %862, %873 : vector<12x32xf32>
    %875 = vector.broadcast %864 : vector<1x32xf32> to vector<12x32xf32>
    %876 = arith.mulf %874, %875 : vector<12x32xf32>
    %c0_277 = arith.constant 0 : index
    %c0_278 = arith.constant 0 : index
    %c0_279 = arith.constant 0 : index
    %877 = vector.load %arg22[%c0_277, %c0_278, %c0_279] : memref<2x32x128xf32, #tpu.memory_space<vmem>>, vector<1x32x128xf32>
    %878 = vector.shape_cast %877 : vector<1x32x128xf32> to vector<32x128xf32>
    %cst_280 = arith.constant dense<0.000000e+00> : vector<12x128xf32>
    %879 = tpu.matmul %876, %878, %cst_280 {dimension_numbers = #tpu.dot_dimension_numbers<[1], [0], [0], [1], [0, 0, 1, 1], [], []>} : vector<12x32xf32>, vector<32x128xf32>, vector<12x128xf32> -> vector<12x128xf32>
    %880 = vector.extract_strided_slice %879 {offsets = [0, 0], sizes = [12, 64], strides = [1, 1]} : vector<12x128xf32> to vector<12x64xf32>
    %cst_281 = arith.constant 5.000000e-01 : f32
    %881 = vector.broadcast %cst_281 : f32 to vector<12x64xf32>
    %882 = arith.mulf %881, %880 : vector<12x64xf32>
    %cst_282 = arith.constant 4.471500e-02 : f32
    %883 = vector.broadcast %cst_282 : f32 to vector<12x64xf32>
    %884 = arith.mulf %883, %880 : vector<12x64xf32>
    %885 = arith.mulf %884, %880 : vector<12x64xf32>
    %886 = arith.mulf %885, %880 : vector<12x64xf32>
    %887 = arith.addf %880, %886 : vector<12x64xf32>
    %cst_283 = arith.constant 0.797884583 : f32
    %888 = vector.broadcast %cst_283 : f32 to vector<12x64xf32>
    %889 = arith.mulf %888, %887 : vector<12x64xf32>
    %890 = math.tanh %889 : vector<12x64xf32>
    %cst_284 = arith.constant 1.000000e+00 : f32
    %891 = vector.broadcast %cst_284 : f32 to vector<12x64xf32>
    %892 = arith.addf %891, %890 : vector<12x64xf32>
    %893 = arith.mulf %882, %892 : vector<12x64xf32>
    %894 = vector.extract_strided_slice %879 {offsets = [0, 64], sizes = [12, 64], strides = [1, 1]} : vector<12x128xf32> to vector<12x64xf32>
    %895 = arith.mulf %893, %894 : vector<12x64xf32>
    %c0_285 = arith.constant 0 : index
    %c0_286 = arith.constant 0 : index
    %c0_287 = arith.constant 0 : index
    %896 = vector.load %arg23[%c0_285, %c0_286, %c0_287] : memref<2x64x32xf32, #tpu.memory_space<vmem>>, vector<1x64x32xf32>
    %897 = vector.shape_cast %896 : vector<1x64x32xf32> to vector<64x32xf32>
    %cst_288 = arith.constant dense<0.000000e+00> : vector<12x32xf32>
    %898 = tpu.matmul %895, %897, %cst_288 {dimension_numbers = #tpu.dot_dimension_numbers<[1], [0], [0], [1], [0, 0, 1, 1], [], []>} : vector<12x64xf32>, vector<64x32xf32>, vector<12x32xf32> -> vector<12x32xf32>
    %899 = arith.addf %862, %898 : vector<12x32xf32>
    %c1_289 = arith.constant 1 : index
    %c0_290 = arith.constant 0 : index
    %c0_291 = arith.constant 0 : index
    %900 = vector.load %arg14[%c1_289, %c0_290, %c0_291] : memref<2x1x32xf32, #tpu.memory_space<vmem>>, vector<1x1x32xf32>
    %901 = vector.shape_cast %900 : vector<1x1x32xf32> to vector<1x32xf32>
    %902 = arith.mulf %899, %899 : vector<12x32xf32>
    %cst_292 = arith.constant dense<0.000000e+00> : vector<12xf32>
    %903 = vector.multi_reduction <add>, %902, %cst_292 [1] : vector<12x32xf32> to vector<12xf32>
    %904 = vector.shape_cast %903 : vector<12xf32> to vector<12x1xf32>
    %cst_293 = arith.constant 3.200000e+01 : f32
    %905 = vector.broadcast %cst_293 : f32 to vector<12x1xf32>
    %906 = arith.divf %904, %905 : vector<12x1xf32>
    %cst_294 = arith.constant 9.99999997E-7 : f32
    %907 = vector.broadcast %cst_294 : f32 to vector<12x1xf32>
    %908 = arith.addf %906, %907 : vector<12x1xf32>
    %909 = math.rsqrt %908 : vector<12x1xf32>
    %910 = vector.broadcast %909 : vector<12x1xf32> to vector<12x32xf32>
    %911 = arith.mulf %899, %910 : vector<12x32xf32>
    %912 = vector.broadcast %901 : vector<1x32xf32> to vector<12x32xf32>
    %913 = arith.mulf %911, %912 : vector<12x32xf32>
    %c1_295 = arith.constant 1 : index
    %c0_296 = arith.constant 0 : index
    %c0_297 = arith.constant 0 : index
    %914 = vector.load %arg15[%c1_295, %c0_296, %c0_297] : memref<2x32x96xf32, #tpu.memory_space<vmem>>, vector<1x32x96xf32>
    %915 = vector.shape_cast %914 : vector<1x32x96xf32> to vector<32x96xf32>
    %cst_298 = arith.constant dense<0.000000e+00> : vector<12x96xf32>
    %916 = tpu.matmul %913, %915, %cst_298 {dimension_numbers = #tpu.dot_dimension_numbers<[1], [0], [0], [1], [0, 0, 1, 1], [], []>} : vector<12x32xf32>, vector<32x96xf32>, vector<12x96xf32> -> vector<12x96xf32>
    %917 = vector.extract_strided_slice %916 {offsets = [0, 0], sizes = [6, 32], strides = [1, 1]} : vector<12x96xf32> to vector<6x32xf32>
    %918 = vector.extract_strided_slice %916 {offsets = [0, 32], sizes = [6, 32], strides = [1, 1]} : vector<12x96xf32> to vector<6x32xf32>
    %919 = vector.extract_strided_slice %916 {offsets = [0, 64], sizes = [6, 32], strides = [1, 1]} : vector<12x96xf32> to vector<6x32xf32>
    %920 = vector.extract_strided_slice %917 {offsets = [0, 0], sizes = [6, 8], strides = [1, 1]} : vector<6x32xf32> to vector<6x8xf32>
    %921 = vector.extract_strided_slice %917 {offsets = [0, 8], sizes = [6, 8], strides = [1, 1]} : vector<6x32xf32> to vector<6x8xf32>
    %922 = vector.extract_strided_slice %917 {offsets = [0, 16], sizes = [6, 8], strides = [1, 1]} : vector<6x32xf32> to vector<6x8xf32>
    %923 = vector.extract_strided_slice %917 {offsets = [0, 24], sizes = [6, 8], strides = [1, 1]} : vector<6x32xf32> to vector<6x8xf32>
    %924 = vector.shape_cast %920 : vector<6x8xf32> to vector<1x6x8xf32>
    %925 = vector.shape_cast %921 : vector<6x8xf32> to vector<1x6x8xf32>
    %926 = vector.shape_cast %922 : vector<6x8xf32> to vector<1x6x8xf32>
    %927 = vector.shape_cast %923 : vector<6x8xf32> to vector<1x6x8xf32>
    %928 = tpu.concatenate %924, %925, %926, %927 in 0 : vector<1x6x8xf32>, vector<1x6x8xf32>, vector<1x6x8xf32>, vector<1x6x8xf32> -> vector<4x6x8xf32>
    %929 = vector.extract_strided_slice %918 {offsets = [0, 0], sizes = [6, 8], strides = [1, 1]} : vector<6x32xf32> to vector<6x8xf32>
    %930 = vector.extract_strided_slice %918 {offsets = [0, 8], sizes = [6, 8], strides = [1, 1]} : vector<6x32xf32> to vector<6x8xf32>
    %931 = vector.extract_strided_slice %918 {offsets = [0, 16], sizes = [6, 8], strides = [1, 1]} : vector<6x32xf32> to vector<6x8xf32>
    %932 = vector.extract_strided_slice %918 {offsets = [0, 24], sizes = [6, 8], strides = [1, 1]} : vector<6x32xf32> to vector<6x8xf32>
    %933 = vector.shape_cast %929 : vector<6x8xf32> to vector<1x6x8xf32>
    %934 = vector.shape_cast %930 : vector<6x8xf32> to vector<1x6x8xf32>
    %935 = vector.shape_cast %931 : vector<6x8xf32> to vector<1x6x8xf32>
    %936 = vector.shape_cast %932 : vector<6x8xf32> to vector<1x6x8xf32>
    %937 = tpu.concatenate %933, %934, %935, %936 in 0 : vector<1x6x8xf32>, vector<1x6x8xf32>, vector<1x6x8xf32>, vector<1x6x8xf32> -> vector<4x6x8xf32>
    %938 = vector.extract_strided_slice %919 {offsets = [0, 0], sizes = [6, 8], strides = [1, 1]} : vector<6x32xf32> to vector<6x8xf32>
    %939 = vector.extract_strided_slice %919 {offsets = [0, 8], sizes = [6, 8], strides = [1, 1]} : vector<6x32xf32> to vector<6x8xf32>
    %940 = vector.extract_strided_slice %919 {offsets = [0, 16], sizes = [6, 8], strides = [1, 1]} : vector<6x32xf32> to vector<6x8xf32>
    %941 = vector.extract_strided_slice %919 {offsets = [0, 24], sizes = [6, 8], strides = [1, 1]} : vector<6x32xf32> to vector<6x8xf32>
    %942 = vector.shape_cast %938 : vector<6x8xf32> to vector<1x6x8xf32>
    %943 = vector.shape_cast %939 : vector<6x8xf32> to vector<1x6x8xf32>
    %944 = vector.shape_cast %940 : vector<6x8xf32> to vector<1x6x8xf32>
    %945 = vector.shape_cast %941 : vector<6x8xf32> to vector<1x6x8xf32>
    %946 = tpu.concatenate %942, %943, %944, %945 in 0 : vector<1x6x8xf32>, vector<1x6x8xf32>, vector<1x6x8xf32>, vector<1x6x8xf32> -> vector<4x6x8xf32>
    "tpu.trace_start"() <{level = 10 : i32, message = "hqd,hkd->hqk"}> : () -> ()
    %cst_299 = arith.constant dense<0.000000e+00> : vector<4x6x6xf32>
    %947 = tpu.matmul %928, %937, %cst_299 {dimension_numbers = #tpu.dot_dimension_numbers<[2], [2], [1], [1], [0, 0, 0, 1, 1, 1], [0], [0]>} : vector<4x6x8xf32>, vector<4x6x8xf32>, vector<4x6x6xf32> -> vector<4x6x6xf32>
    "tpu.trace_stop"() : () -> ()
    %948 = arith.addf %947, %590 : vector<4x6x6xf32>
    %cst_300 = arith.constant dense<0xFF800000> : vector<4x6xf32>
    %949 = vector.multi_reduction <maximumf>, %948, %cst_300 [2] : vector<4x6x6xf32> to vector<4x6xf32>
    %950 = vector.shape_cast %949 : vector<4x6xf32> to vector<4x6x1xf32>
    %951 = vector.broadcast %950 : vector<4x6x1xf32> to vector<4x6x6xf32>
    %952 = arith.subf %948, %951 : vector<4x6x6xf32>
    %953 = math.exp %952 : vector<4x6x6xf32>
    %cst_301 = arith.constant dense<0.000000e+00> : vector<4x6xf32>
    %954 = vector.multi_reduction <add>, %953, %cst_301 [2] : vector<4x6x6xf32> to vector<4x6xf32>
    %955 = vector.shape_cast %954 : vector<4x6xf32> to vector<4x6x1xf32>
    %956 = vector.broadcast %955 : vector<4x6x1xf32> to vector<4x6x6xf32>
    %957 = arith.divf %953, %956 : vector<4x6x6xf32>
    "tpu.trace_start"() <{level = 10 : i32, message = "hqk,hkd->hqd"}> : () -> ()
    %cst_302 = arith.constant dense<0.000000e+00> : vector<4x6x8xf32>
    %958 = tpu.matmul %957, %946, %cst_302 {dimension_numbers = #tpu.dot_dimension_numbers<[2], [1], [1], [2], [0, 0, 0, 1, 1, 2], [0], [0]>} : vector<4x6x6xf32>, vector<4x6x8xf32>, vector<4x6x8xf32> -> vector<4x6x8xf32>
    "tpu.trace_stop"() : () -> ()
    %959 = vector.extract_strided_slice %958 {offsets = [0, 0, 0], sizes = [1, 6, 8], strides = [1, 1, 1]} : vector<4x6x8xf32> to vector<1x6x8xf32>
    %960 = vector.shape_cast %959 : vector<1x6x8xf32> to vector<6x8xf32>
    %c0_303 = arith.constant 0 : index
    %c0_304 = arith.constant 0 : index
    %961 = vector.load %arg29[%c0_303, %c0_304] : memref<12x32xf32, #tpu.memory_space<vmem>>, vector<6x8xf32>
    tpu.vector_store %arg29[%c0_303, %c0_304], %960 {strides = array<i32>} : memref<12x32xf32, #tpu.memory_space<vmem>>, vector<6x8xf32>,
    %962 = vector.extract_strided_slice %958 {offsets = [1, 0, 0], sizes = [1, 6, 8], strides = [1, 1, 1]} : vector<4x6x8xf32> to vector<1x6x8xf32>
    %963 = vector.shape_cast %962 : vector<1x6x8xf32> to vector<6x8xf32>
    %c0_305 = arith.constant 0 : index
    %c8_306 = arith.constant 8 : index
    %964 = vector.load %arg29[%c0_305, %c8_306] : memref<12x32xf32, #tpu.memory_space<vmem>>, vector<6x8xf32>
    tpu.vector_store %arg29[%c0_305, %c8_306], %963 {strides = array<i32>} : memref<12x32xf32, #tpu.memory_space<vmem>>, vector<6x8xf32>,
    %965 = vector.extract_strided_slice %958 {offsets = [2, 0, 0], sizes = [1, 6, 8], strides = [1, 1, 1]} : vector<4x6x8xf32> to vector<1x6x8xf32>
    %966 = vector.shape_cast %965 : vector<1x6x8xf32> to vector<6x8xf32>
    %c0_307 = arith.constant 0 : index
    %c16_308 = arith.constant 16 : index
    %967 = vector.load %arg29[%c0_307, %c16_308] : memref<12x32xf32, #tpu.memory_space<vmem>>, vector<6x8xf32>
    tpu.vector_store %arg29[%c0_307, %c16_308], %966 {strides = array<i32>} : memref<12x32xf32, #tpu.memory_space<vmem>>, vector<6x8xf32>,
    %968 = vector.extract_strided_slice %958 {offsets = [3, 0, 0], sizes = [1, 6, 8], strides = [1, 1, 1]} : vector<4x6x8xf32> to vector<1x6x8xf32>
    %969 = vector.shape_cast %968 : vector<1x6x8xf32> to vector<6x8xf32>
    %c0_309 = arith.constant 0 : index
    %c24_310 = arith.constant 24 : index
    %970 = vector.load %arg29[%c0_309, %c24_310] : memref<12x32xf32, #tpu.memory_space<vmem>>, vector<6x8xf32>
    tpu.vector_store %arg29[%c0_309, %c24_310], %969 {strides = array<i32>} : memref<12x32xf32, #tpu.memory_space<vmem>>, vector<6x8xf32>,
    %971 = vector.extract_strided_slice %916 {offsets = [6, 0], sizes = [6, 32], strides = [1, 1]} : vector<12x96xf32> to vector<6x32xf32>
    %972 = vector.extract_strided_slice %916 {offsets = [6, 32], sizes = [6, 32], strides = [1, 1]} : vector<12x96xf32> to vector<6x32xf32>
    %973 = vector.extract_strided_slice %916 {offsets = [6, 64], sizes = [6, 32], strides = [1, 1]} : vector<12x96xf32> to vector<6x32xf32>
    %974 = vector.extract_strided_slice %971 {offsets = [0, 0], sizes = [6, 8], strides = [1, 1]} : vector<6x32xf32> to vector<6x8xf32>
    %975 = vector.extract_strided_slice %971 {offsets = [0, 8], sizes = [6, 8], strides = [1, 1]} : vector<6x32xf32> to vector<6x8xf32>
    %976 = vector.extract_strided_slice %971 {offsets = [0, 16], sizes = [6, 8], strides = [1, 1]} : vector<6x32xf32> to vector<6x8xf32>
    %977 = vector.extract_strided_slice %971 {offsets = [0, 24], sizes = [6, 8], strides = [1, 1]} : vector<6x32xf32> to vector<6x8xf32>
    %978 = vector.shape_cast %974 : vector<6x8xf32> to vector<1x6x8xf32>
    %979 = vector.shape_cast %975 : vector<6x8xf32> to vector<1x6x8xf32>
    %980 = vector.shape_cast %976 : vector<6x8xf32> to vector<1x6x8xf32>
    %981 = vector.shape_cast %977 : vector<6x8xf32> to vector<1x6x8xf32>
    %982 = tpu.concatenate %978, %979, %980, %981 in 0 : vector<1x6x8xf32>, vector<1x6x8xf32>, vector<1x6x8xf32>, vector<1x6x8xf32> -> vector<4x6x8xf32>
    %983 = vector.extract_strided_slice %972 {offsets = [0, 0], sizes = [6, 8], strides = [1, 1]} : vector<6x32xf32> to vector<6x8xf32>
    %984 = vector.extract_strided_slice %972 {offsets = [0, 8], sizes = [6, 8], strides = [1, 1]} : vector<6x32xf32> to vector<6x8xf32>
    %985 = vector.extract_strided_slice %972 {offsets = [0, 16], sizes = [6, 8], strides = [1, 1]} : vector<6x32xf32> to vector<6x8xf32>
    %986 = vector.extract_strided_slice %972 {offsets = [0, 24], sizes = [6, 8], strides = [1, 1]} : vector<6x32xf32> to vector<6x8xf32>
    %987 = vector.shape_cast %983 : vector<6x8xf32> to vector<1x6x8xf32>
    %988 = vector.shape_cast %984 : vector<6x8xf32> to vector<1x6x8xf32>
    %989 = vector.shape_cast %985 : vector<6x8xf32> to vector<1x6x8xf32>
    %990 = vector.shape_cast %986 : vector<6x8xf32> to vector<1x6x8xf32>
    %991 = tpu.concatenate %987, %988, %989, %990 in 0 : vector<1x6x8xf32>, vector<1x6x8xf32>, vector<1x6x8xf32>, vector<1x6x8xf32> -> vector<4x6x8xf32>
    %992 = vector.extract_strided_slice %973 {offsets = [0, 0], sizes = [6, 8], strides = [1, 1]} : vector<6x32xf32> to vector<6x8xf32>
    %993 = vector.extract_strided_slice %973 {offsets = [0, 8], sizes = [6, 8], strides = [1, 1]} : vector<6x32xf32> to vector<6x8xf32>
    %994 = vector.extract_strided_slice %973 {offsets = [0, 16], sizes = [6, 8], strides = [1, 1]} : vector<6x32xf32> to vector<6x8xf32>
    %995 = vector.extract_strided_slice %973 {offsets = [0, 24], sizes = [6, 8], strides = [1, 1]} : vector<6x32xf32> to vector<6x8xf32>
    %996 = vector.shape_cast %992 : vector<6x8xf32> to vector<1x6x8xf32>
    %997 = vector.shape_cast %993 : vector<6x8xf32> to vector<1x6x8xf32>
    %998 = vector.shape_cast %994 : vector<6x8xf32> to vector<1x6x8xf32>
    %999 = vector.shape_cast %995 : vector<6x8xf32> to vector<1x6x8xf32>
    %1000 = tpu.concatenate %996, %997, %998, %999 in 0 : vector<1x6x8xf32>, vector<1x6x8xf32>, vector<1x6x8xf32>, vector<1x6x8xf32> -> vector<4x6x8xf32>
    "tpu.trace_start"() <{level = 10 : i32, message = "hqd,hkd->hqk"}> : () -> ()
    %cst_311 = arith.constant dense<0.000000e+00> : vector<4x6x6xf32>
    %1001 = tpu.matmul %982, %991, %cst_311 {dimension_numbers = #tpu.dot_dimension_numbers<[2], [2], [1], [1], [0, 0, 0, 1, 1, 1], [0], [0]>} : vector<4x6x8xf32>, vector<4x6x8xf32>, vector<4x6x6xf32> -> vector<4x6x6xf32>
    "tpu.trace_stop"() : () -> ()
    %1002 = arith.addf %1001, %590 : vector<4x6x6xf32>
    %cst_312 = arith.constant dense<0xFF800000> : vector<4x6xf32>
    %1003 = vector.multi_reduction <maximumf>, %1002, %cst_312 [2] : vector<4x6x6xf32> to vector<4x6xf32>
    %1004 = vector.shape_cast %1003 : vector<4x6xf32> to vector<4x6x1xf32>
    %1005 = vector.broadcast %1004 : vector<4x6x1xf32> to vector<4x6x6xf32>
    %1006 = arith.subf %1002, %1005 : vector<4x6x6xf32>
    %1007 = math.exp %1006 : vector<4x6x6xf32>
    %cst_313 = arith.constant dense<0.000000e+00> : vector<4x6xf32>
    %1008 = vector.multi_reduction <add>, %1007, %cst_313 [2] : vector<4x6x6xf32> to vector<4x6xf32>
    %1009 = vector.shape_cast %1008 : vector<4x6xf32> to vector<4x6x1xf32>
    %1010 = vector.broadcast %1009 : vector<4x6x1xf32> to vector<4x6x6xf32>
    %1011 = arith.divf %1007, %1010 : vector<4x6x6xf32>
    "tpu.trace_start"() <{level = 10 : i32, message = "hqk,hkd->hqd"}> : () -> ()
    %cst_314 = arith.constant dense<0.000000e+00> : vector<4x6x8xf32>
    %1012 = tpu.matmul %1011, %1000, %cst_314 {dimension_numbers = #tpu.dot_dimension_numbers<[2], [1], [1], [2], [0, 0, 0, 1, 1, 2], [0], [0]>} : vector<4x6x6xf32>, vector<4x6x8xf32>, vector<4x6x8xf32> -> vector<4x6x8xf32>
    "tpu.trace_stop"() : () -> ()
    %1013 = vector.extract_strided_slice %1012 {offsets = [0, 0, 0], sizes = [1, 6, 8], strides = [1, 1, 1]} : vector<4x6x8xf32> to vector<1x6x8xf32>
    %1014 = vector.shape_cast %1013 : vector<1x6x8xf32> to vector<6x8xf32>
    %c6_315 = arith.constant 6 : index
    %c0_316 = arith.constant 0 : index
    %1015 = vector.load %arg29[%c6_315, %c0_316] : memref<12x32xf32, #tpu.memory_space<vmem>>, vector<6x8xf32>
    tpu.vector_store %arg29[%c6_315, %c0_316], %1014 {strides = array<i32>} : memref<12x32xf32, #tpu.memory_space<vmem>>, vector<6x8xf32>,
    %1016 = vector.extract_strided_slice %1012 {offsets = [1, 0, 0], sizes = [1, 6, 8], strides = [1, 1, 1]} : vector<4x6x8xf32> to vector<1x6x8xf32>
    %1017 = vector.shape_cast %1016 : vector<1x6x8xf32> to vector<6x8xf32>
    %c6_317 = arith.constant 6 : index
    %c8_318 = arith.constant 8 : index
    %1018 = vector.load %arg29[%c6_317, %c8_318] : memref<12x32xf32, #tpu.memory_space<vmem>>, vector<6x8xf32>
    tpu.vector_store %arg29[%c6_317, %c8_318], %1017 {strides = array<i32>} : memref<12x32xf32, #tpu.memory_space<vmem>>, vector<6x8xf32>,
    %1019 = vector.extract_strided_slice %1012 {offsets = [2, 0, 0], sizes = [1, 6, 8], strides = [1, 1, 1]} : vector<4x6x8xf32> to vector<1x6x8xf32>
    %1020 = vector.shape_cast %1019 : vector<1x6x8xf32> to vector<6x8xf32>
    %c6_319 = arith.constant 6 : index
    %c16_320 = arith.constant 16 : index
    %1021 = vector.load %arg29[%c6_319, %c16_320] : memref<12x32xf32, #tpu.memory_space<vmem>>, vector<6x8xf32>
    tpu.vector_store %arg29[%c6_319, %c16_320], %1020 {strides = array<i32>} : memref<12x32xf32, #tpu.memory_space<vmem>>, vector<6x8xf32>,
    %1022 = vector.extract_strided_slice %1012 {offsets = [3, 0, 0], sizes = [1, 6, 8], strides = [1, 1, 1]} : vector<4x6x8xf32> to vector<1x6x8xf32>
    %1023 = vector.shape_cast %1022 : vector<1x6x8xf32> to vector<6x8xf32>
    %c6_321 = arith.constant 6 : index
    %c24_322 = arith.constant 24 : index
    %1024 = vector.load %arg29[%c6_321, %c24_322] : memref<12x32xf32, #tpu.memory_space<vmem>>, vector<6x8xf32>
    tpu.vector_store %arg29[%c6_321, %c24_322], %1023 {strides = array<i32>} : memref<12x32xf32, #tpu.memory_space<vmem>>, vector<6x8xf32>,
    %c0_323 = arith.constant 0 : index
    %c0_324 = arith.constant 0 : index
    %1025 = vector.load %arg29[%c0_323, %c0_324] : memref<12x32xf32, #tpu.memory_space<vmem>>, vector<12x32xf32>
    %c1_325 = arith.constant 1 : index
    %c0_326 = arith.constant 0 : index
    %c0_327 = arith.constant 0 : index
    %1026 = vector.load %arg16[%c1_325, %c0_326, %c0_327] : memref<2x32x32xf32, #tpu.memory_space<vmem>>, vector<1x32x32xf32>
    %1027 = vector.shape_cast %1026 : vector<1x32x32xf32> to vector<32x32xf32>
    %cst_328 = arith.constant dense<0.000000e+00> : vector<12x32xf32>
    %1028 = tpu.matmul %1025, %1027, %cst_328 {dimension_numbers = #tpu.dot_dimension_numbers<[1], [0], [0], [1], [0, 0, 1, 1], [], []>} : vector<12x32xf32>, vector<32x32xf32>, vector<12x32xf32> -> vector<12x32xf32>
    %1029 = arith.addf %899, %1028 : vector<12x32xf32>
    %c1_329 = arith.constant 1 : index
    %c0_330 = arith.constant 0 : index
    %c0_331 = arith.constant 0 : index
    %1030 = vector.load %arg17[%c1_329, %c0_330, %c0_331] : memref<2x1x32xf32, #tpu.memory_space<vmem>>, vector<1x1x32xf32>
    %1031 = vector.shape_cast %1030 : vector<1x1x32xf32> to vector<1x32xf32>
    %1032 = arith.mulf %1029, %1029 : vector<12x32xf32>
    %cst_332 = arith.constant dense<0.000000e+00> : vector<12xf32>
    %1033 = vector.multi_reduction <add>, %1032, %cst_332 [1] : vector<12x32xf32> to vector<12xf32>
    %1034 = vector.shape_cast %1033 : vector<12xf32> to vector<12x1xf32>
    %cst_333 = arith.constant 3.200000e+01 : f32
    %1035 = vector.broadcast %cst_333 : f32 to vector<12x1xf32>
    %1036 = arith.divf %1034, %1035 : vector<12x1xf32>
    %cst_334 = arith.constant 9.99999997E-7 : f32
    %1037 = vector.broadcast %cst_334 : f32 to vector<12x1xf32>
    %1038 = arith.addf %1036, %1037 : vector<12x1xf32>
    %1039 = math.rsqrt %1038 : vector<12x1xf32>
    %1040 = vector.broadcast %1039 : vector<12x1xf32> to vector<12x32xf32>
    %1041 = arith.mulf %1029, %1040 : vector<12x32xf32>
    %1042 = vector.broadcast %1031 : vector<1x32xf32> to vector<12x32xf32>
    %1043 = arith.mulf %1041, %1042 : vector<12x32xf32>
    %c1_335 = arith.constant 1 : index
    %c0_336 = arith.constant 0 : index
    %c0_337 = arith.constant 0 : index
    %1044 = vector.load %arg18[%c1_335, %c0_336, %c0_337] : memref<2x32x32xf32, #tpu.memory_space<vmem>>, vector<1x32x32xf32>
    %1045 = vector.shape_cast %1044 : vector<1x32x32xf32> to vector<32x32xf32>
    %cst_338 = arith.constant dense<0.000000e+00> : vector<12x32xf32>
    %1046 = tpu.matmul %1043, %1045, %cst_338 {dimension_numbers = #tpu.dot_dimension_numbers<[1], [0], [0], [1], [0, 0, 1, 1], [], []>} : vector<12x32xf32>, vector<32x32xf32>, vector<12x32xf32> -> vector<12x32xf32>
    %c1_339 = arith.constant 1 : index
    %c0_340 = arith.constant 0 : index
    %c0_341 = arith.constant 0 : index
    %1047 = vector.load %arg19[%c1_339, %c0_340, %c0_341] : memref<2x32x64xf32, #tpu.memory_space<vmem>>, vector<1x32x64xf32>
    %1048 = vector.shape_cast %1047 : vector<1x32x64xf32> to vector<32x64xf32>
    %cst_342 = arith.constant dense<0.000000e+00> : vector<32x64xf32>
    %1049 = tpu.matmul %588, %1048, %cst_342 {dimension_numbers = #tpu.dot_dimension_numbers<[1], [0], [0], [1], [0, 0, 1, 1], [], []>} : vector<32x32xf32>, vector<32x64xf32>, vector<32x64xf32> -> vector<32x64xf32>
    %1050 = vector.extract_strided_slice %1046 {offsets = [0, 0], sizes = [6, 32], strides = [1, 1]} : vector<12x32xf32> to vector<6x32xf32>
    %1051 = vector.extract_strided_slice %1049 {offsets = [0, 0], sizes = [16, 32], strides = [1, 1]} : vector<32x64xf32> to vector<16x32xf32>
    %1052 = vector.extract_strided_slice %1049 {offsets = [0, 32], sizes = [16, 32], strides = [1, 1]} : vector<32x64xf32> to vector<16x32xf32>
    %1053 = vector.extract_strided_slice %1050 {offsets = [0, 0], sizes = [6, 8], strides = [1, 1]} : vector<6x32xf32> to vector<6x8xf32>
    %1054 = vector.extract_strided_slice %1050 {offsets = [0, 8], sizes = [6, 8], strides = [1, 1]} : vector<6x32xf32> to vector<6x8xf32>
    %1055 = vector.extract_strided_slice %1050 {offsets = [0, 16], sizes = [6, 8], strides = [1, 1]} : vector<6x32xf32> to vector<6x8xf32>
    %1056 = vector.extract_strided_slice %1050 {offsets = [0, 24], sizes = [6, 8], strides = [1, 1]} : vector<6x32xf32> to vector<6x8xf32>
    %1057 = vector.shape_cast %1053 : vector<6x8xf32> to vector<1x6x8xf32>
    %1058 = vector.shape_cast %1054 : vector<6x8xf32> to vector<1x6x8xf32>
    %1059 = vector.shape_cast %1055 : vector<6x8xf32> to vector<1x6x8xf32>
    %1060 = vector.shape_cast %1056 : vector<6x8xf32> to vector<1x6x8xf32>
    %1061 = tpu.concatenate %1057, %1058, %1059, %1060 in 0 : vector<1x6x8xf32>, vector<1x6x8xf32>, vector<1x6x8xf32>, vector<1x6x8xf32> -> vector<4x6x8xf32>
    %1062 = vector.extract_strided_slice %1051 {offsets = [0, 0], sizes = [16, 8], strides = [1, 1]} : vector<16x32xf32> to vector<16x8xf32>
    %1063 = vector.extract_strided_slice %1051 {offsets = [0, 8], sizes = [16, 8], strides = [1, 1]} : vector<16x32xf32> to vector<16x8xf32>
    %1064 = vector.extract_strided_slice %1051 {offsets = [0, 16], sizes = [16, 8], strides = [1, 1]} : vector<16x32xf32> to vector<16x8xf32>
    %1065 = vector.extract_strided_slice %1051 {offsets = [0, 24], sizes = [16, 8], strides = [1, 1]} : vector<16x32xf32> to vector<16x8xf32>
    %1066 = vector.shape_cast %1062 : vector<16x8xf32> to vector<1x16x8xf32>
    %1067 = vector.shape_cast %1063 : vector<16x8xf32> to vector<1x16x8xf32>
    %1068 = vector.shape_cast %1064 : vector<16x8xf32> to vector<1x16x8xf32>
    %1069 = vector.shape_cast %1065 : vector<16x8xf32> to vector<1x16x8xf32>
    %1070 = tpu.concatenate %1066, %1067, %1068, %1069 in 0 : vector<1x16x8xf32>, vector<1x16x8xf32>, vector<1x16x8xf32>, vector<1x16x8xf32> -> vector<4x16x8xf32>
    %1071 = vector.extract_strided_slice %1052 {offsets = [0, 0], sizes = [16, 8], strides = [1, 1]} : vector<16x32xf32> to vector<16x8xf32>
    %1072 = vector.extract_strided_slice %1052 {offsets = [0, 8], sizes = [16, 8], strides = [1, 1]} : vector<16x32xf32> to vector<16x8xf32>
    %1073 = vector.extract_strided_slice %1052 {offsets = [0, 16], sizes = [16, 8], strides = [1, 1]} : vector<16x32xf32> to vector<16x8xf32>
    %1074 = vector.extract_strided_slice %1052 {offsets = [0, 24], sizes = [16, 8], strides = [1, 1]} : vector<16x32xf32> to vector<16x8xf32>
    %1075 = vector.shape_cast %1071 : vector<16x8xf32> to vector<1x16x8xf32>
    %1076 = vector.shape_cast %1072 : vector<16x8xf32> to vector<1x16x8xf32>
    %1077 = vector.shape_cast %1073 : vector<16x8xf32> to vector<1x16x8xf32>
    %1078 = vector.shape_cast %1074 : vector<16x8xf32> to vector<1x16x8xf32>
    %1079 = tpu.concatenate %1075, %1076, %1077, %1078 in 0 : vector<1x16x8xf32>, vector<1x16x8xf32>, vector<1x16x8xf32>, vector<1x16x8xf32> -> vector<4x16x8xf32>
    "tpu.trace_start"() <{level = 10 : i32, message = "hqd,hkd->hqk"}> : () -> ()
    %cst_343 = arith.constant dense<0.000000e+00> : vector<4x6x16xf32>
    %1080 = tpu.matmul %1061, %1070, %cst_343 {dimension_numbers = #tpu.dot_dimension_numbers<[2], [2], [1], [1], [0, 0, 0, 1, 1, 1], [0], [0]>} : vector<4x6x8xf32>, vector<4x16x8xf32>, vector<4x6x16xf32> -> vector<4x6x16xf32>
    "tpu.trace_stop"() : () -> ()
    %1081 = vector.broadcast %594 : vector<1x1x16xf32> to vector<4x6x16xf32>
    %1082 = arith.addf %1080, %1081 : vector<4x6x16xf32>
    %cst_344 = arith.constant dense<0xFF800000> : vector<4x6xf32>
    %1083 = vector.multi_reduction <maximumf>, %1082, %cst_344 [2] : vector<4x6x16xf32> to vector<4x6xf32>
    %1084 = vector.shape_cast %1083 : vector<4x6xf32> to vector<4x6x1xf32>
    %1085 = vector.broadcast %1084 : vector<4x6x1xf32> to vector<4x6x16xf32>
    %1086 = arith.subf %1082, %1085 : vector<4x6x16xf32>
    %1087 = math.exp %1086 : vector<4x6x16xf32>
    %cst_345 = arith.constant dense<0.000000e+00> : vector<4x6xf32>
    %1088 = vector.multi_reduction <add>, %1087, %cst_345 [2] : vector<4x6x16xf32> to vector<4x6xf32>
    %1089 = vector.shape_cast %1088 : vector<4x6xf32> to vector<4x6x1xf32>
    %1090 = vector.broadcast %1089 : vector<4x6x1xf32> to vector<4x6x16xf32>
    %1091 = arith.divf %1087, %1090 : vector<4x6x16xf32>
    "tpu.trace_start"() <{level = 10 : i32, message = "hqk,hkd->hqd"}> : () -> ()
    %cst_346 = arith.constant dense<0.000000e+00> : vector<4x6x8xf32>
    %1092 = tpu.matmul %1091, %1079, %cst_346 {dimension_numbers = #tpu.dot_dimension_numbers<[2], [1], [1], [2], [0, 0, 0, 1, 1, 2], [0], [0]>} : vector<4x6x16xf32>, vector<4x16x8xf32>, vector<4x6x8xf32> -> vector<4x6x8xf32>
    "tpu.trace_stop"() : () -> ()
    %1093 = vector.extract_strided_slice %1092 {offsets = [0, 0, 0], sizes = [1, 6, 8], strides = [1, 1, 1]} : vector<4x6x8xf32> to vector<1x6x8xf32>
    %1094 = vector.shape_cast %1093 : vector<1x6x8xf32> to vector<6x8xf32>
    %c0_347 = arith.constant 0 : index
    %c0_348 = arith.constant 0 : index
    %1095 = vector.load %arg29[%c0_347, %c0_348] : memref<12x32xf32, #tpu.memory_space<vmem>>, vector<6x8xf32>
    tpu.vector_store %arg29[%c0_347, %c0_348], %1094 {strides = array<i32>} : memref<12x32xf32, #tpu.memory_space<vmem>>, vector<6x8xf32>,
    %1096 = vector.extract_strided_slice %1092 {offsets = [1, 0, 0], sizes = [1, 6, 8], strides = [1, 1, 1]} : vector<4x6x8xf32> to vector<1x6x8xf32>
    %1097 = vector.shape_cast %1096 : vector<1x6x8xf32> to vector<6x8xf32>
    %c0_349 = arith.constant 0 : index
    %c8_350 = arith.constant 8 : index
    %1098 = vector.load %arg29[%c0_349, %c8_350] : memref<12x32xf32, #tpu.memory_space<vmem>>, vector<6x8xf32>
    tpu.vector_store %arg29[%c0_349, %c8_350], %1097 {strides = array<i32>} : memref<12x32xf32, #tpu.memory_space<vmem>>, vector<6x8xf32>,
    %1099 = vector.extract_strided_slice %1092 {offsets = [2, 0, 0], sizes = [1, 6, 8], strides = [1, 1, 1]} : vector<4x6x8xf32> to vector<1x6x8xf32>
    %1100 = vector.shape_cast %1099 : vector<1x6x8xf32> to vector<6x8xf32>
    %c0_351 = arith.constant 0 : index
    %c16_352 = arith.constant 16 : index
    %1101 = vector.load %arg29[%c0_351, %c16_352] : memref<12x32xf32, #tpu.memory_space<vmem>>, vector<6x8xf32>
    tpu.vector_store %arg29[%c0_351, %c16_352], %1100 {strides = array<i32>} : memref<12x32xf32, #tpu.memory_space<vmem>>, vector<6x8xf32>,
    %1102 = vector.extract_strided_slice %1092 {offsets = [3, 0, 0], sizes = [1, 6, 8], strides = [1, 1, 1]} : vector<4x6x8xf32> to vector<1x6x8xf32>
    %1103 = vector.shape_cast %1102 : vector<1x6x8xf32> to vector<6x8xf32>
    %c0_353 = arith.constant 0 : index
    %c24_354 = arith.constant 24 : index
    %1104 = vector.load %arg29[%c0_353, %c24_354] : memref<12x32xf32, #tpu.memory_space<vmem>>, vector<6x8xf32>
    tpu.vector_store %arg29[%c0_353, %c24_354], %1103 {strides = array<i32>} : memref<12x32xf32, #tpu.memory_space<vmem>>, vector<6x8xf32>,
    %1105 = vector.extract_strided_slice %1046 {offsets = [6, 0], sizes = [6, 32], strides = [1, 1]} : vector<12x32xf32> to vector<6x32xf32>
    %1106 = vector.extract_strided_slice %1049 {offsets = [16, 0], sizes = [16, 32], strides = [1, 1]} : vector<32x64xf32> to vector<16x32xf32>
    %1107 = vector.extract_strided_slice %1049 {offsets = [16, 32], sizes = [16, 32], strides = [1, 1]} : vector<32x64xf32> to vector<16x32xf32>
    %1108 = vector.extract_strided_slice %1105 {offsets = [0, 0], sizes = [6, 8], strides = [1, 1]} : vector<6x32xf32> to vector<6x8xf32>
    %1109 = vector.extract_strided_slice %1105 {offsets = [0, 8], sizes = [6, 8], strides = [1, 1]} : vector<6x32xf32> to vector<6x8xf32>
    %1110 = vector.extract_strided_slice %1105 {offsets = [0, 16], sizes = [6, 8], strides = [1, 1]} : vector<6x32xf32> to vector<6x8xf32>
    %1111 = vector.extract_strided_slice %1105 {offsets = [0, 24], sizes = [6, 8], strides = [1, 1]} : vector<6x32xf32> to vector<6x8xf32>
    %1112 = vector.shape_cast %1108 : vector<6x8xf32> to vector<1x6x8xf32>
    %1113 = vector.shape_cast %1109 : vector<6x8xf32> to vector<1x6x8xf32>
    %1114 = vector.shape_cast %1110 : vector<6x8xf32> to vector<1x6x8xf32>
    %1115 = vector.shape_cast %1111 : vector<6x8xf32> to vector<1x6x8xf32>
    %1116 = tpu.concatenate %1112, %1113, %1114, %1115 in 0 : vector<1x6x8xf32>, vector<1x6x8xf32>, vector<1x6x8xf32>, vector<1x6x8xf32> -> vector<4x6x8xf32>
    %1117 = vector.extract_strided_slice %1106 {offsets = [0, 0], sizes = [16, 8], strides = [1, 1]} : vector<16x32xf32> to vector<16x8xf32>
    %1118 = vector.extract_strided_slice %1106 {offsets = [0, 8], sizes = [16, 8], strides = [1, 1]} : vector<16x32xf32> to vector<16x8xf32>
    %1119 = vector.extract_strided_slice %1106 {offsets = [0, 16], sizes = [16, 8], strides = [1, 1]} : vector<16x32xf32> to vector<16x8xf32>
    %1120 = vector.extract_strided_slice %1106 {offsets = [0, 24], sizes = [16, 8], strides = [1, 1]} : vector<16x32xf32> to vector<16x8xf32>
    %1121 = vector.shape_cast %1117 : vector<16x8xf32> to vector<1x16x8xf32>
    %1122 = vector.shape_cast %1118 : vector<16x8xf32> to vector<1x16x8xf32>
    %1123 = vector.shape_cast %1119 : vector<16x8xf32> to vector<1x16x8xf32>
    %1124 = vector.shape_cast %1120 : vector<16x8xf32> to vector<1x16x8xf32>
    %1125 = tpu.concatenate %1121, %1122, %1123, %1124 in 0 : vector<1x16x8xf32>, vector<1x16x8xf32>, vector<1x16x8xf32>, vector<1x16x8xf32> -> vector<4x16x8xf32>
    %1126 = vector.extract_strided_slice %1107 {offsets = [0, 0], sizes = [16, 8], strides = [1, 1]} : vector<16x32xf32> to vector<16x8xf32>
    %1127 = vector.extract_strided_slice %1107 {offsets = [0, 8], sizes = [16, 8], strides = [1, 1]} : vector<16x32xf32> to vector<16x8xf32>
    %1128 = vector.extract_strided_slice %1107 {offsets = [0, 16], sizes = [16, 8], strides = [1, 1]} : vector<16x32xf32> to vector<16x8xf32>
    %1129 = vector.extract_strided_slice %1107 {offsets = [0, 24], sizes = [16, 8], strides = [1, 1]} : vector<16x32xf32> to vector<16x8xf32>
    %1130 = vector.shape_cast %1126 : vector<16x8xf32> to vector<1x16x8xf32>
    %1131 = vector.shape_cast %1127 : vector<16x8xf32> to vector<1x16x8xf32>
    %1132 = vector.shape_cast %1128 : vector<16x8xf32> to vector<1x16x8xf32>
    %1133 = vector.shape_cast %1129 : vector<16x8xf32> to vector<1x16x8xf32>
    %1134 = tpu.concatenate %1130, %1131, %1132, %1133 in 0 : vector<1x16x8xf32>, vector<1x16x8xf32>, vector<1x16x8xf32>, vector<1x16x8xf32> -> vector<4x16x8xf32>
    "tpu.trace_start"() <{level = 10 : i32, message = "hqd,hkd->hqk"}> : () -> ()
    %cst_355 = arith.constant dense<0.000000e+00> : vector<4x6x16xf32>
    %1135 = tpu.matmul %1116, %1125, %cst_355 {dimension_numbers = #tpu.dot_dimension_numbers<[2], [2], [1], [1], [0, 0, 0, 1, 1, 1], [0], [0]>} : vector<4x6x8xf32>, vector<4x16x8xf32>, vector<4x6x16xf32> -> vector<4x6x16xf32>
    "tpu.trace_stop"() : () -> ()
    %1136 = vector.broadcast %597 : vector<1x1x16xf32> to vector<4x6x16xf32>
    %1137 = arith.addf %1135, %1136 : vector<4x6x16xf32>
    %cst_356 = arith.constant dense<0xFF800000> : vector<4x6xf32>
    %1138 = vector.multi_reduction <maximumf>, %1137, %cst_356 [2] : vector<4x6x16xf32> to vector<4x6xf32>
    %1139 = vector.shape_cast %1138 : vector<4x6xf32> to vector<4x6x1xf32>
    %1140 = vector.broadcast %1139 : vector<4x6x1xf32> to vector<4x6x16xf32>
    %1141 = arith.subf %1137, %1140 : vector<4x6x16xf32>
    %1142 = math.exp %1141 : vector<4x6x16xf32>
    %cst_357 = arith.constant dense<0.000000e+00> : vector<4x6xf32>
    %1143 = vector.multi_reduction <add>, %1142, %cst_357 [2] : vector<4x6x16xf32> to vector<4x6xf32>
    %1144 = vector.shape_cast %1143 : vector<4x6xf32> to vector<4x6x1xf32>
    %1145 = vector.broadcast %1144 : vector<4x6x1xf32> to vector<4x6x16xf32>
    %1146 = arith.divf %1142, %1145 : vector<4x6x16xf32>
    "tpu.trace_start"() <{level = 10 : i32, message = "hqk,hkd->hqd"}> : () -> ()
    %cst_358 = arith.constant dense<0.000000e+00> : vector<4x6x8xf32>
    %1147 = tpu.matmul %1146, %1134, %cst_358 {dimension_numbers = #tpu.dot_dimension_numbers<[2], [1], [1], [2], [0, 0, 0, 1, 1, 2], [0], [0]>} : vector<4x6x16xf32>, vector<4x16x8xf32>, vector<4x6x8xf32> -> vector<4x6x8xf32>
    "tpu.trace_stop"() : () -> ()
    %1148 = vector.extract_strided_slice %1147 {offsets = [0, 0, 0], sizes = [1, 6, 8], strides = [1, 1, 1]} : vector<4x6x8xf32> to vector<1x6x8xf32>
    %1149 = vector.shape_cast %1148 : vector<1x6x8xf32> to vector<6x8xf32>
    %c6_359 = arith.constant 6 : index
    %c0_360 = arith.constant 0 : index
    %1150 = vector.load %arg29[%c6_359, %c0_360] : memref<12x32xf32, #tpu.memory_space<vmem>>, vector<6x8xf32>
    tpu.vector_store %arg29[%c6_359, %c0_360], %1149 {strides = array<i32>} : memref<12x32xf32, #tpu.memory_space<vmem>>, vector<6x8xf32>,
    %1151 = vector.extract_strided_slice %1147 {offsets = [1, 0, 0], sizes = [1, 6, 8], strides = [1, 1, 1]} : vector<4x6x8xf32> to vector<1x6x8xf32>
    %1152 = vector.shape_cast %1151 : vector<1x6x8xf32> to vector<6x8xf32>
    %c6_361 = arith.constant 6 : index
    %c8_362 = arith.constant 8 : index
    %1153 = vector.load %arg29[%c6_361, %c8_362] : memref<12x32xf32, #tpu.memory_space<vmem>>, vector<6x8xf32>
    tpu.vector_store %arg29[%c6_361, %c8_362], %1152 {strides = array<i32>} : memref<12x32xf32, #tpu.memory_space<vmem>>, vector<6x8xf32>,
    %1154 = vector.extract_strided_slice %1147 {offsets = [2, 0, 0], sizes = [1, 6, 8], strides = [1, 1, 1]} : vector<4x6x8xf32> to vector<1x6x8xf32>
    %1155 = vector.shape_cast %1154 : vector<1x6x8xf32> to vector<6x8xf32>
    %c6_363 = arith.constant 6 : index
    %c16_364 = arith.constant 16 : index
    %1156 = vector.load %arg29[%c6_363, %c16_364] : memref<12x32xf32, #tpu.memory_space<vmem>>, vector<6x8xf32>
    tpu.vector_store %arg29[%c6_363, %c16_364], %1155 {strides = array<i32>} : memref<12x32xf32, #tpu.memory_space<vmem>>, vector<6x8xf32>,
    %1157 = vector.extract_strided_slice %1147 {offsets = [3, 0, 0], sizes = [1, 6, 8], strides = [1, 1, 1]} : vector<4x6x8xf32> to vector<1x6x8xf32>
    %1158 = vector.shape_cast %1157 : vector<1x6x8xf32> to vector<6x8xf32>
    %c6_365 = arith.constant 6 : index
    %c24_366 = arith.constant 24 : index
    %1159 = vector.load %arg29[%c6_365, %c24_366] : memref<12x32xf32, #tpu.memory_space<vmem>>, vector<6x8xf32>
    tpu.vector_store %arg29[%c6_365, %c24_366], %1158 {strides = array<i32>} : memref<12x32xf32, #tpu.memory_space<vmem>>, vector<6x8xf32>,
    %c0_367 = arith.constant 0 : index
    %c0_368 = arith.constant 0 : index
    %1160 = vector.load %arg29[%c0_367, %c0_368] : memref<12x32xf32, #tpu.memory_space<vmem>>, vector<12x32xf32>
    %c1_369 = arith.constant 1 : index
    %c0_370 = arith.constant 0 : index
    %c0_371 = arith.constant 0 : index
    %1161 = vector.load %arg20[%c1_369, %c0_370, %c0_371] : memref<2x32x32xf32, #tpu.memory_space<vmem>>, vector<1x32x32xf32>
    %1162 = vector.shape_cast %1161 : vector<1x32x32xf32> to vector<32x32xf32>
    %cst_372 = arith.constant dense<0.000000e+00> : vector<12x32xf32>
    %1163 = tpu.matmul %1160, %1162, %cst_372 {dimension_numbers = #tpu.dot_dimension_numbers<[1], [0], [0], [1], [0, 0, 1, 1], [], []>} : vector<12x32xf32>, vector<32x32xf32>, vector<12x32xf32> -> vector<12x32xf32>
    %1164 = arith.addf %1029, %1163 : vector<12x32xf32>
    %c1_373 = arith.constant 1 : index
    %c0_374 = arith.constant 0 : index
    %c0_375 = arith.constant 0 : index
    %1165 = vector.load %arg21[%c1_373, %c0_374, %c0_375] : memref<2x1x32xf32, #tpu.memory_space<vmem>>, vector<1x1x32xf32>
    %1166 = vector.shape_cast %1165 : vector<1x1x32xf32> to vector<1x32xf32>
    %1167 = arith.mulf %1164, %1164 : vector<12x32xf32>
    %cst_376 = arith.constant dense<0.000000e+00> : vector<12xf32>
    %1168 = vector.multi_reduction <add>, %1167, %cst_376 [1] : vector<12x32xf32> to vector<12xf32>
    %1169 = vector.shape_cast %1168 : vector<12xf32> to vector<12x1xf32>
    %cst_377 = arith.constant 3.200000e+01 : f32
    %1170 = vector.broadcast %cst_377 : f32 to vector<12x1xf32>
    %1171 = arith.divf %1169, %1170 : vector<12x1xf32>
    %cst_378 = arith.constant 9.99999997E-7 : f32
    %1172 = vector.broadcast %cst_378 : f32 to vector<12x1xf32>
    %1173 = arith.addf %1171, %1172 : vector<12x1xf32>
    %1174 = math.rsqrt %1173 : vector<12x1xf32>
    %1175 = vector.broadcast %1174 : vector<12x1xf32> to vector<12x32xf32>
    %1176 = arith.mulf %1164, %1175 : vector<12x32xf32>
    %1177 = vector.broadcast %1166 : vector<1x32xf32> to vector<12x32xf32>
    %1178 = arith.mulf %1176, %1177 : vector<12x32xf32>
    %c1_379 = arith.constant 1 : index
    %c0_380 = arith.constant 0 : index
    %c0_381 = arith.constant 0 : index
    %1179 = vector.load %arg22[%c1_379, %c0_380, %c0_381] : memref<2x32x128xf32, #tpu.memory_space<vmem>>, vector<1x32x128xf32>
    %1180 = vector.shape_cast %1179 : vector<1x32x128xf32> to vector<32x128xf32>
    %cst_382 = arith.constant dense<0.000000e+00> : vector<12x128xf32>
    %1181 = tpu.matmul %1178, %1180, %cst_382 {dimension_numbers = #tpu.dot_dimension_numbers<[1], [0], [0], [1], [0, 0, 1, 1], [], []>} : vector<12x32xf32>, vector<32x128xf32>, vector<12x128xf32> -> vector<12x128xf32>
    %1182 = vector.extract_strided_slice %1181 {offsets = [0, 0], sizes = [12, 64], strides = [1, 1]} : vector<12x128xf32> to vector<12x64xf32>
    %cst_383 = arith.constant 5.000000e-01 : f32
    %1183 = vector.broadcast %cst_383 : f32 to vector<12x64xf32>
    %1184 = arith.mulf %1183, %1182 : vector<12x64xf32>
    %cst_384 = arith.constant 4.471500e-02 : f32
    %1185 = vector.broadcast %cst_384 : f32 to vector<12x64xf32>
    %1186 = arith.mulf %1185, %1182 : vector<12x64xf32>
    %1187 = arith.mulf %1186, %1182 : vector<12x64xf32>
    %1188 = arith.mulf %1187, %1182 : vector<12x64xf32>
    %1189 = arith.addf %1182, %1188 : vector<12x64xf32>
    %cst_385 = arith.constant 0.797884583 : f32
    %1190 = vector.broadcast %cst_385 : f32 to vector<12x64xf32>
    %1191 = arith.mulf %1190, %1189 : vector<12x64xf32>
    %1192 = math.tanh %1191 : vector<12x64xf32>
    %cst_386 = arith.constant 1.000000e+00 : f32
    %1193 = vector.broadcast %cst_386 : f32 to vector<12x64xf32>
    %1194 = arith.addf %1193, %1192 : vector<12x64xf32>
    %1195 = arith.mulf %1184, %1194 : vector<12x64xf32>
    %1196 = vector.extract_strided_slice %1181 {offsets = [0, 64], sizes = [12, 64], strides = [1, 1]} : vector<12x128xf32> to vector<12x64xf32>
    %1197 = arith.mulf %1195, %1196 : vector<12x64xf32>
    %c1_387 = arith.constant 1 : index
    %c0_388 = arith.constant 0 : index
    %c0_389 = arith.constant 0 : index
    %1198 = vector.load %arg23[%c1_387, %c0_388, %c0_389] : memref<2x64x32xf32, #tpu.memory_space<vmem>>, vector<1x64x32xf32>
    %1199 = vector.shape_cast %1198 : vector<1x64x32xf32> to vector<64x32xf32>
    %cst_390 = arith.constant dense<0.000000e+00> : vector<12x32xf32>
    %1200 = tpu.matmul %1197, %1199, %cst_390 {dimension_numbers = #tpu.dot_dimension_numbers<[1], [0], [0], [1], [0, 0, 1, 1], [], []>} : vector<12x64xf32>, vector<64x32xf32>, vector<12x32xf32> -> vector<12x32xf32>
    %1201 = arith.addf %1164, %1200 : vector<12x32xf32>
    %c0_391 = arith.constant 0 : index
    %c0_392 = arith.constant 0 : index
    %1202 = vector.load %arg24[%c0_391, %c0_392] : memref<1x32xf32, #tpu.memory_space<vmem>>, vector<1x32xf32>
    %1203 = arith.mulf %1201, %1201 : vector<12x32xf32>
    %cst_393 = arith.constant dense<0.000000e+00> : vector<12xf32>
    %1204 = vector.multi_reduction <add>, %1203, %cst_393 [1] : vector<12x32xf32> to vector<12xf32>
    %1205 = vector.shape_cast %1204 : vector<12xf32> to vector<12x1xf32>
    %cst_394 = arith.constant 3.200000e+01 : f32
    %1206 = vector.broadcast %cst_394 : f32 to vector<12x1xf32>
    %1207 = arith.divf %1205, %1206 : vector<12x1xf32>
    %cst_395 = arith.constant 9.99999997E-7 : f32
    %1208 = vector.broadcast %cst_395 : f32 to vector<12x1xf32>
    %1209 = arith.addf %1207, %1208 : vector<12x1xf32>
    %1210 = math.rsqrt %1209 : vector<12x1xf32>
    %1211 = vector.broadcast %1210 : vector<12x1xf32> to vector<12x32xf32>
    %1212 = arith.mulf %1201, %1211 : vector<12x32xf32>
    %1213 = vector.broadcast %1202 : vector<1x32xf32> to vector<12x32xf32>
    %1214 = arith.mulf %1212, %1213 : vector<12x32xf32>
    %c0_396 = arith.constant 0 : index
    %c0_397 = arith.constant 0 : index
    %1215 = vector.load %arg25[%c0_396, %c0_397] : memref<32x64xf32, #tpu.memory_space<vmem>>, vector<32x64xf32>
    %cst_398 = arith.constant dense<0.000000e+00> : vector<12x64xf32>
    %1216 = tpu.matmul %1214, %1215, %cst_398 {dimension_numbers = #tpu.dot_dimension_numbers<[1], [0], [0], [1], [0, 0, 1, 1], [], []>} : vector<12x32xf32>, vector<32x64xf32>, vector<12x64xf32> -> vector<12x64xf32>
    %1217 = vector.shape_cast %1216 : vector<12x64xf32> to vector<2x6x64xf32>
    %c0_399 = arith.constant 0 : index
    %c0_400 = arith.constant 0 : index
    %c0_401 = arith.constant 0 : index
    %1218 = vector.load %arg26[%c0_399, %c0_400, %c0_401] : memref<2x6x64xf32, #tpu.memory_space<vmem>>, vector<2x6x64xf32>
    tpu.vector_store %arg26[%c0_399, %c0_400, %c0_401], %1217 {strides = array<i32>} : memref<2x6x64xf32, #tpu.memory_space<vmem>>, vector<2x6x64xf32>,
    %c0_402 = arith.constant 0 : index
    %c0_403 = arith.constant 0 : index
    %1219 = vector.load %arg6[%c0_402, %c0_403] : memref<12x1xi32, #tpu.memory_space<vmem>>, vector<12x1xi32>
    %c-100_i32 = arith.constant -100 : i32
    %1220 = vector.broadcast %c-100_i32 : i32 to vector<12x1xi32>
    %1221 = arith.cmpi ne, %1219, %1220 : vector<12x1xi32>
    %1222 = arith.extui %1221 : vector<12x1xi1> to vector<12x1xi32>
    %1223 = arith.sitofp %1222 : vector<12x1xi32> to vector<12x1xf32>
    %c0_i32 = arith.constant 0 : i32
    %1224 = vector.broadcast %c0_i32 : i32 to vector<12x1xi32>
    %1225 = arith.cmpi slt, %1219, %1224 : vector<12x1xi32>
    %c0_i32_404 = arith.constant 0 : i32
    %1226 = vector.broadcast %c0_i32_404 : i32 to vector<12x1xi32>
    %1227 = arith.select %1225, %1226, %1219 : vector<12x1xi1>, vector<12x1xi32>
    %1228 = tpu.iota {dimensions = array<i32: 1>} : vector<12x64xi32>
    %1229 = vector.broadcast %1227 : vector<12x1xi32> to vector<12x64xi32>
    %1230 = arith.cmpi eq, %1228, %1229 : vector<12x64xi32>
    %cst_405 = arith.constant 0.000000e+00 : f32
    %1231 = vector.broadcast %cst_405 : f32 to vector<12x64xf32>
    %1232 = arith.select %1230, %1216, %1231 : vector<12x64xi1>, vector<12x64xf32>
    %cst_406 = arith.constant dense<0.000000e+00> : vector<12xf32>
    %1233 = vector.multi_reduction <add>, %1232, %cst_406 [1] : vector<12x64xf32> to vector<12xf32>
    %1234 = vector.shape_cast %1233 : vector<12xf32> to vector<12x1xf32>
    %cst_407 = arith.constant dense<0xFF800000> : vector<12xf32>
    %1235 = vector.multi_reduction <maximumf>, %1216, %cst_407 [1] : vector<12x64xf32> to vector<12xf32>
    %1236 = vector.shape_cast %1235 : vector<12xf32> to vector<12x1xf32>
    %1237 = vector.broadcast %1236 : vector<12x1xf32> to vector<12x64xf32>
    %1238 = arith.subf %1216, %1237 : vector<12x64xf32>
    %1239 = math.exp %1238 : vector<12x64xf32>
    %cst_408 = arith.constant dense<0.000000e+00> : vector<12xf32>
    %1240 = vector.multi_reduction <add>, %1239, %cst_408 [1] : vector<12x64xf32> to vector<12xf32>
    %1241 = vector.shape_cast %1240 : vector<12xf32> to vector<12x1xf32>
    %1242 = math.log %1241 : vector<12x1xf32>
    %1243 = arith.addf %1242, %1236 : vector<12x1xf32>
    %1244 = arith.subf %1243, %1234 : vector<12x1xf32>
    %1245 = arith.mulf %1223, %1244 : vector<12x1xf32>
    %1246 = vector.shape_cast %1245 : vector<12x1xf32> to vector<1x12x1xf32>
    %cst_409 = arith.constant dense<0.000000e+00> : vector<1xf32>
    %1247 = vector.multi_reduction <add>, %1246, %cst_409 [1, 2] : vector<1x12x1xf32> to vector<1xf32>
    %1248 = vector.shape_cast %1247 : vector<1xf32> to vector<1x1x1xf32>
    %1249 = vector.extract %1248[0, 0, 0] : f32 from vector<1x1x1xf32>
    %1250 = vector.shape_cast %1223 : vector<12x1xf32> to vector<1x12x1xf32>
    %cst_410 = arith.constant dense<0.000000e+00> : vector<1xf32>
    %1251 = vector.multi_reduction <add>, %1250, %cst_410 [1, 2] : vector<1x12x1xf32> to vector<1xf32>
    %1252 = vector.shape_cast %1251 : vector<1xf32> to vector<1x1x1xf32>
    %1253 = vector.extract %1252[0, 0, 0] : f32 from vector<1x1x1xf32>
    %cst_411 = arith.constant 1.000000e+00 : f32
    %1254 = arith.maximumf %1253, %cst_411 : f32
    %1255 = arith.divf %1249, %1254 : f32
    %c0_412 = arith.constant 0 : index
    %c0_413 = arith.constant 0 : index
    %1256 = memref.load %arg27[%c0_412, %c0_413] : memref<1x1xf32, #tpu.memory_space<smem>>
    memref.store %1255, %arg27[%c0_412, %c0_413] : memref<1x1xf32, #tpu.memory_space<smem>>
    return
  }
}

</mosaic_0001>

<bundles_post_ra>
// kernel: legal_generator_forward.1
= control target key start
LH: loop header
LB: loop body
LE: loop exit
PB: predicated region body
PF: predicated region fallthrough
CT: control target
= control target key end

     0   :  { %s19384_s0 = inlined_call_operand.vmem [shape: f32[32,32], index: 0, kind: input, shape index: {}]   ;;  %s19385_s1 = inlined_call_operand.vmem [shape: f32[4,1,8], index: 1, kind: input, shape index: {}]   ;;  %s19386_s2 = inlined_call_operand.vmem [shape: f32[4,8,8], index: 2, kind: input, shape index: {}]   ;;  %s19387_s3 = inlined_call_operand.vmem [shape: f32[12,32], index: 3, kind: input, shape index: {}]   ;;  %s19388_s4 = inlined_call_operand.vmem [shape: f32[2,1,16], index: 4, kind: input, shape index: {}]   ;;  %s19389_s5 = inlined_call_operand.vmem [shape: f32[4,6,6], index: 5, kind: input, shape index: {}]   ;;  %s19390_s6 = inlined_call_operand.vmem [shape: s32[12,1], index: 6, kind: input, shape index: {}]   ;;  %s19391_s7 = inlined_call_operand.vmem [shape: f32[2,1,32], index: 7, kind: input, shape index: {}, may-alias: {7,10,14,17,21}]   ;;  %s19392_s8 = inlined_call_operand.vmem [shape: f32[2,32,96], index: 8, kind: input, shape index: {}]   ;;  %s19393_s9 = inlined_call_operand.vmem [shape: f32[2,32,32], index: 9, kind: input, shape index: {}]   ;;  %s19394_s10 = inlined_call_operand.vmem [shape: f32[2,1,32], index: 10, kind: input, shape index: {}, may-alias: {7,10,14,17,21}]   ;;  %s19395_s11 = inlined_call_operand.vmem [shape: f32[2,32,128], index: 11, kind: input, shape index: {}]   ;;  %s19396_s12 = inlined_call_operand.vmem [shape: f32[2,64,32], index: 12, kind: input, shape index: {}]   ;;  %s19397_s13 = inlined_call_operand.vmem [shape: f32[1,32], index: 13, kind: input, shape index: {}, may-alias: {13,24}]   ;;  %s19398_s14 = inlined_call_operand.vmem [shape: f32[2,1,32], index: 14, kind: input, shape index: {}, may-alias: {7,10,14,17,21}]   ;;  %s19399_s15 = inlined_call_operand.vmem [shape: f32[2,32,96], index: 15, kind: input, shape index: {}]   ;;  %s19400_s16 = inlined_call_operand.vmem [shape: f32[2,32,32], index: 16, kind: input, shape index: {}]   ;;  %s19401_s17 = inlined_call_operand.vmem [shape: f32[2,1,32], index: 17, kind: input, shape index: {}, may-alias: {7,10,14,17,21}]   ;;  %s19402_s18 = inlined_call_operand.vmem [shape: f32[2,32,32], index: 18, kind: input, shape index: {}]   ;;  %s19403_s19 = inlined_call_operand.vmem [shape: f32[2,32,64], index: 19, kind: input, shape index: {}]   ;;  %s19404_s20 = inlined_call_operand.vmem [shape: f32[2,32,32], index: 20, kind: input, shape index: {}]   ;;  %s19405_s21 = inlined_call_operand.vmem [shape: f32[2,1,32], index: 21, kind: input, shape index: {}, may-alias: {7,10,14,17,21}]   ;;  %s19406_s22 = inlined_call_operand.vmem [shape: f32[2,32,128], index: 22, kind: input, shape index: {}]   ;;  %s19407_s23 = inlined_call_operand.vmem [shape: f32[2,64,32], index: 23, kind: input, shape index: {}]   ;;  %s19408_s24 = inlined_call_operand.vmem [shape: f32[1,32], index: 24, kind: input, shape index: {}, may-alias: {13,24}]   ;;  %s19409_s25 = inlined_call_operand.vmem [shape: f32[32,64], index: 25, kind: input, shape index: {}]   ;;  %s19410_s26 = inlined_call_operand.vmem [shape: f32[2,6,64], index: 26, kind: output, shape index: {0}]   ;;  %s19411_s27 = inlined_call_operand.hbm [shape: f32[1,1], index: 27, kind: output, shape index: {1}]  }
   0x1   :  { %19442 = sst [smem:[#allocation7_spill]] %s19384_s0 }
   0x2   :  { %19443 = sst [smem:[#allocation8_spill]] %s19385_s1 }
   0x3   :  { %19444 = sst [smem:[#allocation9_spill]] %s19386_s2 }
   0x4   :  { %19445 = sst [smem:[#allocation10_spill]] %s19387_s3 }
   0x5   :  { %19446 = sst [smem:[#allocation11_spill]] %s19388_s4 }
   0x6   :  { %19447 = sst [smem:[#allocation12_spill]] %s19389_s5 }
   0x7   :  { %19448 = sst [smem:[#allocation13_spill]] %s19390_s6 }
   0x8   :  { %19449 = sst [smem:[#allocation14_spill]] %s19391_s7 }
   0x9   :  { %19450 = sst [smem:[#allocation15_spill]] %s19392_s8 }
   0xa   :  { %19451 = sst [smem:[#allocation16_spill]] %s19393_s9 }
   0xb   :  { %19452 = sst [smem:[#allocation17_spill]] %s19394_s10 }
   0xc   :  { %19453 = sst [smem:[#allocation18_spill]] %s19395_s11 }
   0xd   :  { %19454 = sst [smem:[#allocation19_spill]] %s19408_s24 }
   0xe   :  { %19455 = sst [smem:[#allocation20_spill]] %s19410_s26 }
   0xf   :  { %19456 = sst [smem:[#allocation21_spill]] %s19411_s27 }
  0x10   :  { %s19457_s8 = sld [smem:[#allocation7_spill]]  ;;  %vm143_vm0 = vcmask 261120  }
  0x16   :  { %v86_v0 = vld [vmem:[%s19457_s8] sm:$0xff]  ;;  %v87_v1 = vld [vmem:[%s19457_s8 + $0x8] sm:$0xff] }
  0x17   :  { %33 = vsyncpa [#allocation5], 0  ;;  %v139_v2 = vmul.f32 %v86_v0, %v86_v0  ;;  %v140_v3 = vmul.f32 %v87_v1, %v87_v1  ;;  %s19458_s0 = sld [smem:[#allocation15_spill]]  ;;  %s19459_s4 = sld [smem:[#allocation14_spill]]  ;;  %v16773_v25 = vmov 0.0   ;;  %vm16774_vm1 = vmmov 0  }
  0x18   :  { %14897 = vmatprep.subr.mxu1 %v16773_v25  ;;  %14899 = vmatprep.mubr.msk.f32.mxu1 %vm16774_vm1, %v16773_v25  ;;  %s19424_s30 = smov 96   ;;  %s19428_s9 = smov 120   ;;  %vm293_vm2 = vcmask 64512   ;;  %vm949_vm3 = vcmask 130112   ;;  %vm955_vm4 = vcmask 195712   ;;  %vm961_vm5 = vcmask 261312  }
  0x19   :  { %v144_v4 = vsel %vm143_vm0, %v139_v2, 0.0  ;;  %v147_v5 = vsel %vm143_vm0, %v140_v3, 0.0  ;;  %s19430_s5 = smov 112   ;;  %s19426_s28 = smov 104   ;;  %vm3305_vm6 = vcmask 523264   ;;  %vm6732_vm7 = vcmask 257024  }
  0x1a   :  { %145 = vadd.xlane.f32.xlu0 %v144_v4  ;;  %s19460_s1 = sld [smem:[#allocation8_spill]]  ;;  %s19461_s2 = sld [smem:[#allocation9_spill]]  ;;  %vm7530_vm8 = vcmask 1041408   ;;  %vm7148_vm9 = vcmask 46080   ;;  %vm7199_vm10 = vcmask 1045504   ;;  %vm7195_vm11 = vcmask 48128  }
  0x1b   :  { %s19438_s10 = smov 8   ;;  %s19436_s11 = smov 24   ;;  %vm7503_vm12 = vcmask 62464   ;;  %vm7509_vm13 = vcmask 128064   ;;  %vm7515_vm14 = vcmask 193664   ;;  %vm7521_vm15 = vcmask 259264  }
  0x1c   :  { %s19462_s29 = sld [smem:[#allocation16_spill]]  ;;  %s19463_s7 = sld [smem:[#allocation18_spill]] }
  0x1d   :  { %v183_v6 = vld [vmem:[%s19458_s0] sm:$0xff]  ;;  %v184_v7 = vld [vmem:[%s19458_s0 + $0x8] sm:$0xff]  ;;  %v185_v8 = vld [vmem:[%s19458_s0 + $0x10] sm:$0xff]  ;;  %s19465_s6 = sld [smem:[#allocation17_spill]]  ;;  %s19466_s26 = smov 64  }
  0x1e   :  { %148 = vadd.xlane.f32.xlu0 %v147_v5  ;;  %v15902_v9 = vpack.c.bf16 %v184_v7, %v183_v6  ;;  %v186_v10 = vld [vmem:[%s19458_s0 + $0x18] sm:$0xff]  ;;  %v16951_v19 = vld [vmem:[%s19459_s4] ss:$0 sm:$0xff]  ;;  %s19478_s27 = sld [smem:[#allocation19_spill]] }
  0x1f   :  { %v15906_v11 = vpack.c.bf16 %v186_v10, %v185_v8 }
  0x20   :  { %15903 = vmatprep.subr.bf16.mxu0 %v15902_v9  ;;  %v14054_v35 = vld [vmem:[%s19460_s1] ss:$0 sm:$0xff]  ;;  %v17021_v42 = vld [vmem:[%s19461_s2 + $0x8] sm:$0xff]  ;;  %v17029_v44 = vld [vmem:[%s19461_s2 + $0x10] sm:$0xff] }
  0x21   :  { %15905 = vmatpush3.bf16.msra.mxu0 %v15902_v9  ;;  %v17011_v36 = vld [vmem:[%s19461_s2] sm:$0xff]  ;;  %v17024_v43 = vadd.f32 %v14054_v35, %v17021_v42  ;;  %v17033_v48 = vadd.f32 %v14054_v35, %v17029_v44  ;;  %v17038_v49 = vld [vmem:[%s19461_s2 + $0x18] sm:$0xff]  ;;  %s19432_s2 = smov 64  }
  0x22   :  { %15907 = vmatprep.subr.bf16.mxu0 %v15906_v11  ;;  %v17014_v37 = vadd.f32 %v14054_v35, %v17011_v36  ;;  %v17043_v54 = vadd.f32 %v14054_v35, %v17038_v49 }
  0x25   :  { %15909 = vmatpush3.bf16.msra.mxu0 %v15906_v11 }
  0x26   :  { %14922 = vmatprep.subr.mxu0 %v16773_v25 }
  0xa7   :  { %v146_v12 = vpop.xlane.xlu0 %145 }
  0xa8   :  { %v157_v13 = vmul.f32 0.03125, %v146_v12 }
  0xaa   :  { %v161_v14 = vadd.f32 1e-06, %v157_v13 }
  0xab   :  { %v149_v15 = vpop.xlane.xlu0 %148 }
  0xac   :  { %16393 = vrsqrt.f32 %v161_v14  ;;  %v158_v16 = vmul.f32 0.03125, %v149_v15 }
  0xae   :  { %v162_v17 = vadd.f32 1e-06, %v158_v16 }
  0xb0   :  { %16395 = vrsqrt.f32 %v162_v17 }
  0xb6   :  { %v16394_v18 = vpop.eup %16393 }
  0xb7   :  { %v169_v20 = vmul.f32 %v16394_v18, %v86_v0  ;;  %v88_v0 = vld [vmem:[%s19457_s8 + $0x10] sm:$0xff] }
  0xb8   :  { %v141_v2 = vmul.f32 %v88_v0, %v88_v0 }
  0xb9   :  { %v179_v21 = vmul.f32 %v16951_v19, %v169_v20 }
  0xba   :  { %v16396_v22 = vpop.eup %16395  ;;  %v150_v3 = vsel %vm143_vm0, %v141_v2, 0.0 }
  0xbb   :  { %14891 = vmatprep.mubr.msk.f32.mxu0 %vm143_vm0, %v179_v21  ;;  %v170_v23 = vmul.f32 %v16396_v22, %v87_v1 }
  0xbd   :  { %v180_v24 = vmul.f32 %v16951_v19, %v170_v23 }
  0xbf   :  { %14892 = vmatmul.mubr.msk.f32.vlgmr.msra.gmra.mrb[0].mxu0 %vm143_vm0, %v180_v24  ;;  %v89_v24 = vld [vmem:[%s19457_s8 + $0x18] sm:$0xff] }
 0x192   :  { %v16961_v26 = vpop.f32.mrb[0].mxu0 }
 0x193   :  { %v16963_v27 = vpop.f32.mrb[1].mxu0 }
 0x194   :  { %291 = vrot.lane.b32.xlu0 %v16963_v27, %s19424_s30  ;;  %285 = vrot.lane.b32.xlu1 %v16963_v27, %s19428_s9 }
 0x198   :  { %287 = vrot.lane.b32.xlu1 %v16963_v27, %s19430_s5 }
 0x19c   :  { %289 = vrot.lane.b32.xlu1 %v16963_v27, %s19426_s28 }
 0x206   :  { %v292_v28 = vpop.permute.xlu0 %291  ;;  %v16973_v29 = vpop.permute.xlu1 %285 }
 0x207   :  { %14898 = vmatpush3.xpose.msk.msra.mxu1 %vm293_vm2, %v292_v28  ;;  %368 = vrot.lane.b32.xlu1 %v16973_v29, %s19424_s30  ;;  %v142_v28 = vmul.f32 %v89_v24, %v89_v24 }
 0x208   :  { %14902 = vmatprep.subr.mxu1 %v16773_v25 }
 0x20a   :  { %14900 = vmatmul.mubr.msk.f32.vlgmr.msra.gmra.mrb[0].mxu1 %vm293_vm2, %v16963_v27  ;;  %v288_v30 = vpop.permute.xlu1 %287 }
 0x20b   :  { %444 = vrot.lane.b32.xlu1 %v288_v30, %s19424_s30  ;;  %14904 = vmatprep.mubr.msk.f32.mxu1 %vm16774_vm1, %v16773_v25 }
 0x20e   :  { %v16984_v31 = vpop.permute.xlu1 %289 }
 0x20f   :  { %520 = vrot.lane.b32.xlu1 %v16984_v31, %s19424_s30 }
 0x279   :  { %v369_v32 = vpop.permute.xlu1 %368 }
 0x27a   :  { %14903 = vmatpush3.xpose.msk.msra.mxu1 %vm293_vm2, %v369_v32  ;;  %v153_v32 = vsel %vm143_vm0, %v142_v28, 0.0 }
 0x27b   :  { %14907 = vmatprep.subr.mxu1 %v16773_v25 }
 0x27d   :  { %14905 = vmatmul.mubr.msk.f32.vlgmr.msra.gmra.mrb[2].mxu1 %vm293_vm2, %v16973_v29  ;;  %v445_v33 = vpop.permute.xlu1 %444 }
 0x27e   :  { %14908 = vmatpush3.xpose.msk.msra.mxu1 %vm293_vm2, %v445_v33  ;;  %14909 = vmatprep.mubr.msk.f32.mxu1 %vm16774_vm1, %v16773_v25 }
 0x27f   :  { %14912 = vmatprep.subr.mxu1 %v16773_v25 }
 0x281   :  { %14910 = vmatmul.mubr.msk.f32.vlgmr.msra.gmra.mrb[4].mxu1 %vm293_vm2, %v288_v30  ;;  %v521_v34 = vpop.permute.xlu1 %520 }
 0x282   :  { %14913 = vmatpush3.xpose.msk.msra.mxu1 %vm293_vm2, %v521_v34  ;;  %14914 = vmatprep.mubr.msk.f32.mxu1 %vm16774_vm1, %v16773_v25 }
 0x283   :  { %14917 = vmatprep.subr.mxu1 %v16773_v25 }
 0x285   :  { %14915 = vmatmul.mubr.msk.f32.vlgmr.msra.gmra.mrb[6].mxu1 %vm293_vm2, %v16984_v31 }
 0x286   :  { %14919 = vmatprep.mubr.msk.f32.mxu1 %vm16774_vm1, %v16773_v25 }
 0x2dd   :  { %v364_v38 = vpop.f32.mrb[0].mxu1 }
 0x2de   :  { %v365_v39 = vadd.f32 %v364_v38, %v17014_v37  ;;  %v14901_v40 = vpop.f32.mrb[1].mxu1 }
 0x2e0   :  { %v596_v41 = vsel %vm293_vm2, %v365_v39, -inf }
 0x2e1   :  { %597 = vmax.xlane.f32.xlu1 %v596_v41 }
 0x350   :  { %v440_v45 = vpop.f32.mrb[2].mxu1 }
 0x351   :  { %v441_v46 = vadd.f32 %v440_v45, %v17024_v43  ;;  %v14906_v47 = vpop.f32.mrb[3].mxu1 }
 0x353   :  { %v599_v50 = vsel %vm293_vm2, %v441_v46, -inf }
 0x354   :  { %600 = vmax.xlane.f32.xlu1 %v599_v50  ;;  %v516_v51 = vpop.f32.mrb[4].mxu1 }
 0x355   :  { %v517_v52 = vadd.f32 %v516_v51, %v17033_v48  ;;  %v14911_v53 = vpop.f32.mrb[5].mxu1 }
 0x357   :  { %v602_v55 = vsel %vm293_vm2, %v517_v52, -inf }
 0x358   :  { %603 = vmax.xlane.f32.xlu0 %v602_v55  ;;  %v592_v56 = vpop.f32.mrb[6].mxu1 }
 0x359   :  { %v593_v57 = vadd.f32 %v592_v56, %v17043_v54  ;;  %v14916_v58 = vpop.f32.mrb[7].mxu1 }
 0x35b   :  { %v605_v59 = vsel %vm293_vm2, %v593_v57, -inf }
 0x35c   :  { %606 = vmax.xlane.f32.xlu0 %v605_v59 }
 0x365   :  { %966 = vrot.lane.b32.xlu1 %v16961_v26, %s19430_s5 }
 0x369   :  { %792 = vrot.lane.b32.xlu1 %v288_v30, %s19432_s2 }
 0x36d   :  { %964 = vrot.lane.b32.xlu1 %v16961_v26, %s19428_s9 }
 0x36e   :  { %v598_v60 = vpop.xlane.xlu1 %597 }
 0x36f   :  { %v608_v61 = vsub.f32 %v365_v39, %v598_v60 }
 0x371   :  { %970 = vrot.lane.b32.xlu1 %v16961_v26, %s19424_s30  ;;  %v612_v62 = vmul.f32 1.442695, %v608_v61 }
 0x372   :  { %640 = vrot.lane.b32.xlu0 %v16963_v27, %s19432_s2 }
 0x373   :  { %16397 = vpow2.f32 %v612_v62 }
 0x375   :  { %968 = vrot.lane.b32.xlu1 %v16961_v26, %s19426_s28 }
 0x37d   :  { %v16398_v63 = vpop.eup %16397 }
 0x37e   :  { %v620_v1 = vsel %vm293_vm2, %v16398_v63, 0.0 }
 0x391   :  { %621 = vadd.xlane.f32.xlu0 %v620_v1 }
 0x399   :  { %151 = vadd.xlane.f32.xlu1 %v150_v3 }
 0x3aa   :  { %868 = vrot.lane.b32.xlu1 %v16984_v31, %s19432_s2 }
 0x3e1   :  { %v601_v14 = vpop.xlane.xlu1 %600 }
 0x3e2   :  { %v609_v20 = vsub.f32 %v441_v46, %v601_v14 }
 0x3e4   :  { %v614_v22 = vmul.f32 1.442695, %v609_v20 }
 0x3e5   :  { %v604_v4 = vpop.xlane.xlu0 %603  ;;  %v17072_v16 = vpop.permute.xlu1 %966 }
 0x3e6   :  { %v610_v5 = vsub.f32 %v517_v52, %v604_v4 }
 0x3e8   :  { %v616_v6 = vmul.f32 1.442695, %v610_v5  ;;  %v14055_v5 = vld [vmem:[%s19460_s1 + $0x1] ss:$0 sm:$0xff] }
 0x3e9   :  { %v607_v7 = vpop.xlane.xlu0 %606  ;;  %v793_v17 = vpop.permute.xlu1 %792 }
 0x3ea   :  { %16399 = vpow2.f32 %v616_v6  ;;  %v611_v8 = vsub.f32 %v593_v57, %v607_v7 }
 0x3ec   :  { %v618_v9 = vmul.f32 1.442695, %v611_v8  ;;  %v17144_v8 = vadd.f32 %v14055_v5, %v17011_v36 }
 0x3ed   :  { %v641_v10 = vpop.permute.xlu0 %640  ;;  %v17074_v18 = vpop.permute.xlu1 %964 }
 0x3ee   :  { %16401 = vpow2.f32 %v618_v9  ;;  %14918 = vmatpush3.msra.mxu1 %v641_v10 }
 0x3ef   :  { %14927 = vmatprep.subr.mxu1 %v16773_v25 }
 0x3f1   :  { %v971_v21 = vpop.permute.xlu1 %970 }
 0x3f4   :  { %v16400_v11 = vpop.eup %16399 }
 0x3f5   :  { %v626_v12 = vsel %vm293_vm2, %v16400_v11, 0.0  ;;  %v17083_v27 = vpop.permute.xlu1 %968 }
 0x3f6   :  { %627 = vadd.xlane.f32.xlu0 %v626_v12  ;;  %v17148_v12 = vadd.f32 %v14055_v5, %v17029_v44 }
 0x3f8   :  { %v17068_v13 = vpop.eup %16401 }
 0x3f9   :  { %v629_v15 = vsel %vm293_vm2, %v17068_v13, 0.0 }
 0x3fa   :  { %630 = vadd.xlane.f32.xlu1 %v629_v15 }
 0x40b   :  { %1046 = vrot.lane.b32.xlu1 %v17074_v18, %s19424_s30 }
 0x40c   :  { %1122 = vrot.lane.b32.xlu0 %v17072_v16, %s19424_s30 }
 0x41e   :  { %v622_v23 = vpop.xlane.xlu0 %621 }
 0x41f   :  { %16403 = vrcp.f32 %v622_v23 }
 0x420   :  { %16405 = vpow2.f32 %v614_v22 }
 0x426   :  { %v152_v30 = vpop.xlane.xlu1 %151 }
 0x427   :  { %v159_v31 = vmul.f32 0.03125, %v152_v30 }
 0x429   :  { %v16404_v33 = vpop.eup %16403  ;;  %v163_v34 = vadd.f32 1e-06, %v159_v31  ;;  %v17166_v31 = vadd.f32 %v14055_v5, %v17021_v42 }
 0x42a   :  { %v633_v35 = vmul.f32 %v16404_v33, %v16398_v63  ;;  %v16406_v38 = vpop.eup %16405  ;;  %v869_v56 = vpop.permute.xlu1 %868 }
 0x42b   :  { %16407 = vrsqrt.f32 %v163_v34  ;;  %154 = vadd.xlane.f32.xlu0 %v153_v32  ;;  %v623_v39 = vsel %vm293_vm2, %v16406_v38, 0.0 }
 0x42c   :  { %14920 = vmatmul.mubr.msk.f32.vlgmr.msra.gmra.mrb[8].mxu1 %vm293_vm2, %v633_v35 }
 0x42d   :  { %14928 = vmatpush3.msra.mxu1 %v793_v17  ;;  %14929 = vmatprep.mubr.msk.f32.mxu1 %vm16774_vm1, %v16773_v25 }
 0x42e   :  { %14937 = vmatprep.subr.mxu1 %v16773_v25 }
 0x42f   :  { %624 = vadd.xlane.f32.xlu0 %v623_v39  ;;  %v17171_v39 = vadd.f32 %v14055_v5, %v17038_v49 }
 0x435   :  { %v16408_v40 = vpop.eup %16407 }
 0x436   :  { %v171_v41 = vmul.f32 %v16408_v40, %v88_v0 }
 0x438   :  { %v181_v45 = vmul.f32 %v16951_v19, %v171_v41 }
 0x43a   :  { %14894 = vmatprep.mubr.msk.f32.mxu0 %vm143_vm0, %v181_v45 }
 0x445   :  { %716 = vrot.lane.b32.xlu0 %v16973_v29, %s19432_s2 }
 0x449   :  { %1198 = vrot.lane.b32.xlu0 %v17083_v27, %s19424_s30 }
 0x483   :  { %v628_v46 = vpop.xlane.xlu0 %627 }
 0x484   :  { %16409 = vrcp.f32 %v628_v46 }
 0x487   :  { %v1123_v51 = vpop.permute.xlu0 %1122  ;;  %v631_v58 = vpop.xlane.xlu1 %630 }
 0x48e   :  { %v16410_v47 = vpop.eup %16409 }
 0x48f   :  { %v637_v50 = vmul.f32 %v16410_v47, %v16400_v11 }
 0x491   :  { %14930 = vmatmul.mubr.msk.f32.vlgmr.msra.gmra.mrb[10].mxu1 %vm293_vm2, %v637_v50 }
 0x492   :  { %14938 = vmatpush3.xpose.msk.msra.mxu1 %vm293_vm2, %v971_v21  ;;  %14939 = vmatprep.mubr.msk.f32.mxu1 %vm16774_vm1, %v16773_v25 }
 0x493   :  { %14947 = vmatprep.subr.mxu1 %v16773_v25 }
 0x495   :  { %14940 = vmatmul.mubr.msk.f32.vlgmr.msra.gmra.mrb[12].mxu1 %vm293_vm2, %v16961_v26 }
 0x496   :  { %14948 = vmatpush3.xpose.msk.msra.mxu1 %vm293_vm2, %v1123_v51  ;;  %14949 = vmatprep.mubr.msk.f32.mxu1 %vm16774_vm1, %v16773_v25 }
 0x497   :  { %14957 = vmatprep.subr.mxu1 %v16773_v25 }
 0x499   :  { %14950 = vmatmul.mubr.msk.f32.vlgmr.msra.gmra.mrb[14].mxu1 %vm293_vm2, %v17072_v16 }
 0x49a   :  { %14959 = vmatprep.mubr.msk.f32.mxu1 %vm16774_vm1, %v16773_v25 }
 0x4b8   :  { %v155_v29 = vpop.xlane.xlu0 %154 }
 0x4b9   :  { %v160_v52 = vmul.f32 0.03125, %v155_v29 }
 0x4bb   :  { %v164_v53 = vadd.f32 1e-06, %v160_v52 }
 0x4bc   :  { %v625_v55 = vpop.xlane.xlu0 %624 }
 0x4bd   :  { %16411 = vrsqrt.f32 %v164_v53 }
 0x4be   :  { %16413 = vrcp.f32 %v625_v55 }
 0x4bf   :  { %16415 = vrcp.f32 %v631_v58 }
 0x4c0   :  { %v717_v57 = vpop.permute.xlu0 %716 }
 0x4c1   :  { %14923 = vmatpush3.msra.mxu0 %v717_v57 }
 0x4c2   :  { %14932 = vmatprep.subr.mxu0 %v16773_v25 }
 0x4c4   :  { %v1199_v2 = vpop.permute.xlu0 %1198 }
 0x4c7   :  { %v16412_v59 = vpop.eup %16411 }
 0x4c8   :  { %v172_v60 = vmul.f32 %v16412_v59, %v89_v24  ;;  %v16414_v62 = vpop.eup %16413 }
 0x4c9   :  { %v635_v63 = vmul.f32 %v16414_v62, %v16406_v38  ;;  %v16416_v0 = vpop.eup %16415 }
 0x4ca   :  { %v182_v61 = vmul.f32 %v16951_v19, %v172_v60  ;;  %v639_v1 = vmul.f32 %v16416_v0, %v17068_v13  ;;  %v1047_v19 = vpop.permute.xlu1 %1046 }
 0x4cc   :  { %14895 = vmatmul.mubr.msk.f32.gmra.mrb[2].mxu0 %vm143_vm0, %v182_v61 }
 0x4cd   :  { %14924 = vmatprep.mubr.msk.f32.mxu0 %vm16774_vm1, %v16773_v25 }
 0x4d0   :  { %14925 = vmatmul.mubr.msk.f32.vlgmr.msra.gmra.mrb[4].mxu0 %vm293_vm2, %v635_v63 }
 0x4d1   :  { %14933 = vmatpush3.msra.mxu0 %v869_v56  ;;  %14934 = vmatprep.mubr.msk.f32.mxu0 %vm16774_vm1, %v16773_v25 }
 0x4d2   :  { %14942 = vmatprep.subr.mxu0 %v16773_v25 }
 0x4d4   :  { %14935 = vmatmul.mubr.msk.f32.vlgmr.msra.gmra.mrb[6].mxu0 %vm293_vm2, %v639_v1 }
 0x4d5   :  { %14944 = vmatprep.mubr.msk.f32.mxu0 %vm16774_vm1, %v16773_v25 }
 0x4d8   :  { %14943 = vmatpush3.xpose.msk.msra.mxu0 %vm293_vm2, %v1047_v19 }
 0x4d9   :  { %14952 = vmatprep.subr.mxu0 %v16773_v25 }
 0x4db   :  { %14945 = vmatmul.mubr.msk.f32.vlgmr.msra.gmra.mrb[8].mxu0 %vm293_vm2, %v17074_v18 }
 0x4dc   :  { %14953 = vmatpush3.xpose.msk.msra.mxu0 %vm293_vm2, %v1199_v2  ;;  %14954 = vmatprep.mubr.msk.f32.mxu0 %vm16774_vm1, %v16773_v25 }
 0x4dd   :  { %14962 = vmatprep.subr.mxu0 %v16773_v25 }
 0x4df   :  { %14955 = vmatmul.mubr.msk.f32.vlgmr.msra.gmra.mrb[10].mxu0 %vm293_vm2, %v17083_v27 }
 0x4e0   :  { %14964 = vmatprep.mubr.msk.f32.mxu0 %vm16774_vm1, %v16773_v25 }
 0x4ff   :  { %v712_v3 = vpop.f32.mrb[8].mxu1 }
 0x500   :  { %944 = vst.msk [vmem:[#allocation2] sm:$0xff] %vm293_vm2, %v712_v3  ;;  %v14921_v4 = vpop.f32.mrb[9].mxu1 }
 0x564   :  { %v17141_v6 = vpop.f32.mrb[10].mxu1 }
 0x565   :  { %v14931_v7 = vpop.f32.mrb[11].mxu1 }
 0x568   :  { %v1042_v9 = vpop.f32.mrb[12].mxu1 }
 0x569   :  { %v1043_v10 = vadd.f32 %v1042_v9, %v17144_v8  ;;  %v14941_v11 = vpop.f32.mrb[13].mxu1 }
 0x56b   :  { %v1274_v13 = vsel %vm293_vm2, %v1043_v10, -inf }
 0x56c   :  { %1275 = vmax.xlane.f32.xlu1 %v1274_v13  ;;  %v1194_v14 = vpop.f32.mrb[14].mxu1 }
 0x56d   :  { %v1195_v15 = vadd.f32 %v1194_v14, %v17148_v12  ;;  %v14951_v17 = vpop.f32.mrb[15].mxu1 }
 0x56f   :  { %v1280_v20 = vsel %vm293_vm2, %v1195_v15, -inf }
 0x570   :  { %1281 = vmax.xlane.f32.xlu0 %v1280_v20 }
 0x57d   :  { %1318 = vrot.lane.b32.xlu1 %v16961_v26, %s19432_s2 }
 0x59f   :  { %v17155_v21 = vpop.f32.mrb[2].mxu0 }
 0x5a0   :  { %v17157_v22 = vpop.f32.mrb[3].mxu0 }
 0x5a1   :  { %1645 = vrot.lane.b32.xlu1 %v17157_v22, %s19424_s30 }
 0x5a3   :  { %v17161_v23 = vpop.f32.mrb[4].mxu0 }
 0x5a4   :  { %v14926_v24 = vpop.f32.mrb[5].mxu0 }
 0x5a7   :  { %v17163_v28 = vpop.f32.mrb[6].mxu0 }
 0x5a8   :  { %v14936_v30 = vpop.f32.mrb[7].mxu0 }
 0x5ae   :  { %v1118_v32 = vpop.f32.mrb[8].mxu0 }
 0x5af   :  { %v1119_v33 = vadd.f32 %v1118_v32, %v17166_v31  ;;  %v14946_v26 = vpop.f32.mrb[9].mxu0 }
 0x5b1   :  { %v1277_v34 = vsel %vm293_vm2, %v1119_v33, -inf }
 0x5b2   :  { %1278 = vmax.xlane.f32.xlu0 %v1277_v34  ;;  %v1270_v35 = vpop.f32.mrb[10].mxu0 }
 0x5b3   :  { %v14956_v38 = vpop.f32.mrb[11].mxu0  ;;  %v1271_v40 = vadd.f32 %v1270_v35, %v17171_v39 }
 0x5b5   :  { %v1283_v41 = vsel %vm293_vm2, %v1271_v40, -inf }
 0x5c5   :  { %1284 = vmax.xlane.f32.xlu1 %v1283_v41 }
 0x5c8   :  { %1641 = vrot.lane.b32.xlu0 %v17157_v22, %s19430_s5 }
 0x5cc   :  { %1470 = vrot.lane.b32.xlu0 %v17072_v16, %s19432_s2 }
 0x5d0   :  { %1639 = vrot.lane.b32.xlu0 %v17157_v22, %s19428_s9 }
 0x5d4   :  { %1643 = vrot.lane.b32.xlu0 %v17157_v22, %s19426_s28 }
 0x5f9   :  { %v1276_v45 = vpop.xlane.xlu1 %1275 }
 0x5fa   :  { %v1286_v55 = vsub.f32 %v1043_v10, %v1276_v45 }
 0x5fc   :  { %v1290_v56 = vmul.f32 1.442695, %v1286_v55 }
 0x5fd   :  { %v1319_v46 = vpop.permute.xlu1 %1318  ;;  %v1282_v47 = vpop.xlane.xlu0 %1281 }
 0x5fe   :  { %14958 = vmatpush3.msra.mxu1 %v1319_v46  ;;  %v1288_v57 = vsub.f32 %v1195_v15, %v1282_v47 }
 0x5ff   :  { %14967 = vmatprep.subr.mxu1 %v16773_v25 }
 0x600   :  { %v1294_v58 = vmul.f32 1.442695, %v1288_v57 }
 0x613   :  { %v1646_v1 = vpop.permute.xlu1 %1645 }
 0x63f   :  { %v1279_v50 = vpop.xlane.xlu0 %1278 }
 0x640   :  { %v1287_v51 = vsub.f32 %v1119_v33, %v1279_v50  ;;  %v14056_v50 = vld [vmem:[%s19460_s1 + $0x2] ss:$0 sm:$0xff] }
 0x641   :  { %v17256_v55 = vadd.f32 %v14056_v50, %v17029_v44 }
 0x642   :  { %v1292_v29 = vmul.f32 1.442695, %v1287_v51  ;;  %v17252_v51 = vadd.f32 %v14056_v50, %v17011_v36 }
 0x643   :  { %v17184_v52 = vpop.permute.xlu0 %1641 }
 0x644   :  { %16417 = vpow2.f32 %v1292_v29  ;;  %1797 = vrot.lane.b32.xlu1 %v17184_v52, %s19424_s30 }
 0x645   :  { %16419 = vpow2.f32 %v1290_v56 }
 0x646   :  { %16421 = vpow2.f32 %v1294_v58 }
 0x647   :  { %v1471_v59 = vpop.permute.xlu0 %1470 }
 0x64b   :  { %v17192_v63 = vpop.permute.xlu0 %1639 }
 0x64e   :  { %v16418_v16 = vpop.eup %16417 }
 0x64f   :  { %v1301_v53 = vsel %vm293_vm2, %v16418_v16, 0.0  ;;  %v16420_v60 = vpop.eup %16419  ;;  %v17200_v5 = vpop.permute.xlu0 %1643 }
 0x650   :  { %1302 = vadd.xlane.f32.xlu0 %v1301_v53  ;;  %v1298_v61 = vsel %vm293_vm2, %v16420_v60, 0.0  ;;  %v16422_v62 = vpop.eup %16421 }
 0x651   :  { %v1304_v0 = vsel %vm293_vm2, %v16422_v62, 0.0 }
 0x652   :  { %v1285_v19 = vpop.xlane.xlu1 %1284 }
 0x653   :  { %v1289_v2 = vsub.f32 %v1271_v40, %v1285_v19 }
 0x655   :  { %v1296_v3 = vmul.f32 1.442695, %v1289_v2 }
 0x657   :  { %16423 = vpow2.f32 %v1296_v3 }
 0x666   :  { %1394 = vrot.lane.b32.xlu0 %v17074_v18, %s19432_s2  ;;  %v16424_v18 = vpop.eup %16423 }
 0x667   :  { %v1307_v4 = vsel %vm293_vm2, %v16424_v18, 0.0 }
 0x668   :  { %1299 = vadd.xlane.f32.xlu1 %v1298_v61 }
 0x66a   :  { %1721 = vrot.lane.b32.xlu0 %v17192_v63, %s19424_s30 }
 0x66c   :  { %1305 = vadd.xlane.f32.xlu1 %v1304_v0  ;;  %v17274_v0 = vadd.f32 %v14056_v50, %v17021_v42 }
 0x67d   :  { %1546 = vrot.lane.b32.xlu1 %v17083_v27, %s19432_s2 }
 0x6a1   :  { %1308 = vadd.xlane.f32.xlu1 %v1307_v4 }
 0x6b2   :  { %1873 = vrot.lane.b32.xlu1 %v17200_v5, %s19424_s30 }
 0x6b6   :  { %v1798_v11 = vpop.permute.xlu1 %1797 }
 0x6dd   :  { %v1303_v7 = vpop.xlane.xlu0 %1302 }
 0x6de   :  { %16425 = vrcp.f32 %v1303_v7 }
 0x6e1   :  { %v1395_v9 = vpop.permute.xlu0 %1394 }
 0x6e2   :  { %14963 = vmatpush3.msra.mxu0 %v1395_v9 }
 0x6e3   :  { %14972 = vmatprep.subr.mxu0 %v16773_v25 }
 0x6e5   :  { %v1722_v34 = vpop.permute.xlu0 %1721 }
 0x6e8   :  { %v16426_v27 = vpop.eup %16425 }
 0x6e9   :  { %v1313_v10 = vmul.f32 %v16426_v27, %v16418_v16 }
 0x6eb   :  { %14965 = vmatmul.mubr.msk.f32.vlgmr.msra.gmra.mrb[12].mxu0 %vm293_vm2, %v1313_v10 }
 0x6ec   :  { %14974 = vmatprep.mubr.msk.f32.mxu0 %vm16774_vm1, %v16773_v25 }
 0x6f5   :  { %v1300_v13 = vpop.xlane.xlu1 %1299 }
 0x6f6   :  { %16427 = vrcp.f32 %v1300_v13 }
 0x6f9   :  { %v1306_v14 = vpop.xlane.xlu1 %1305 }
 0x6fa   :  { %16429 = vrcp.f32 %v1306_v14 }
 0x6fd   :  { %v1547_v15 = vpop.permute.xlu1 %1546 }
 0x6fe   :  { %14973 = vmatpush3.msra.mxu0 %v1547_v15 }
 0x6ff   :  { %14982 = vmatprep.subr.mxu0 %v16773_v25 }
 0x700   :  { %v16428_v17 = vpop.eup %16427 }
 0x701   :  { %v1311_v20 = vmul.f32 %v16428_v17, %v16420_v60 }
 0x703   :  { %14960 = vmatmul.mubr.msk.f32.vlgmr.msra.gmra.mrb[16].mxu1 %vm293_vm2, %v1311_v20 }
 0x704   :  { %v16430_v24 = vpop.eup %16429  ;;  %14968 = vmatpush3.msra.mxu1 %v1471_v59  ;;  %14969 = vmatprep.mubr.msk.f32.mxu1 %vm16774_vm1, %v16773_v25 }
 0x705   :  { %v1315_v30 = vmul.f32 %v16430_v24, %v16422_v62  ;;  %14977 = vmatprep.subr.mxu1 %v16773_v25 }
 0x707   :  { %14970 = vmatmul.mubr.msk.f32.vlgmr.msra.gmra.mrb[18].mxu1 %vm293_vm2, %v1315_v30 }
 0x708   :  { %14979 = vmatprep.mubr.msk.f32.mxu1 %vm16774_vm1, %v16773_v25 }
 0x70b   :  { %14978 = vmatpush3.xpose.msk.msra.mxu1 %vm293_vm2, %v1646_v1 }
 0x70c   :  { %14987 = vmatprep.subr.mxu1 %v16773_v25 }
 0x70e   :  { %14980 = vmatmul.mubr.msk.f32.vlgmr.msra.gmra.mrb[20].mxu1 %vm293_vm2, %v17157_v22 }
 0x70f   :  { %14988 = vmatpush3.xpose.msk.msra.mxu1 %vm293_vm2, %v1798_v11  ;;  %14989 = vmatprep.mubr.msk.f32.mxu1 %vm16774_vm1, %v16773_v25 }
 0x710   :  { %14997 = vmatprep.subr.mxu1 %v16773_v25 }
 0x712   :  { %14990 = vmatmul.mubr.msk.f32.vlgmr.msra.gmra.mrb[22].mxu1 %vm293_vm2, %v17184_v52 }
 0x713   :  { %14999 = vmatprep.mubr.msk.f32.mxu1 %vm16774_vm1, %v16773_v25 }
 0x72e   :  { %v1309_v32 = vpop.xlane.xlu1 %1308 }
 0x72f   :  { %16431 = vrcp.f32 %v1309_v32 }
 0x732   :  { %v1874_v35 = vpop.permute.xlu1 %1873 }
 0x739   :  { %v16432_v33 = vpop.eup %16431 }
 0x73a   :  { %v1317_v26 = vmul.f32 %v16432_v33, %v16424_v18 }
 0x73c   :  { %14975 = vmatmul.mubr.msk.f32.vlgmr.msra.gmra.mrb[14].mxu0 %vm293_vm2, %v1317_v26 }
 0x73d   :  { %14983 = vmatpush3.xpose.msk.msra.mxu0 %vm293_vm2, %v1722_v34  ;;  %14984 = vmatprep.mubr.msk.f32.mxu0 %vm16774_vm1, %v16773_v25 }
 0x73e   :  { %14992 = vmatprep.subr.mxu0 %v16773_v25 }
 0x740   :  { %14985 = vmatmul.mubr.msk.f32.vlgmr.msra.gmra.mrb[16].mxu0 %vm293_vm2, %v17192_v63 }
 0x741   :  { %14993 = vmatpush3.xpose.msk.msra.mxu0 %vm293_vm2, %v1874_v35  ;;  %14994 = vmatprep.mubr.msk.f32.mxu0 %vm16774_vm1, %v16773_v25 }
 0x742   :  { %15002 = vmatprep.subr.mxu0 %v16773_v25 }
 0x744   :  { %14995 = vmatmul.mubr.msk.f32.vlgmr.msra.gmra.mrb[18].mxu0 %vm293_vm2, %v17200_v5 }
 0x745   :  { %15004 = vmatprep.mubr.msk.f32.mxu0 %vm16774_vm1, %v16773_v25 }
 0x7be   :  { %v17243_v38 = vpop.f32.mrb[12].mxu0 }
 0x7bf   :  { %v14966_v40 = vpop.f32.mrb[13].mxu0 }
 0x7d6   :  { %v1390_v41 = vpop.f32.mrb[16].mxu1 }
 0x7d7   :  { %1622 = vst.msk [vmem:[#allocation2 + $0x8] sm:$0xff] %vm293_vm2, %v1390_v41  ;;  %v14961_v45 = vpop.f32.mrb[17].mxu1 }
 0x7da   :  { %v17246_v46 = vpop.f32.mrb[18].mxu1 }
 0x7db   :  { %v14971_v47 = vpop.f32.mrb[19].mxu1 }
 0x7e1   :  { %v1717_v29 = vpop.f32.mrb[20].mxu1 }
 0x7e2   :  { %v1718_v16 = vadd.f32 %v1717_v29, %v17252_v51  ;;  %v14981_v53 = vpop.f32.mrb[21].mxu1 }
 0x7e4   :  { %v1949_v56 = vsel %vm293_vm2, %v1718_v16, -inf }
 0x7e5   :  { %1950 = vmax.xlane.f32.xlu0 %v1949_v56  ;;  %v1869_v57 = vpop.f32.mrb[22].mxu1 }
 0x7e6   :  { %v1870_v58 = vadd.f32 %v1869_v57, %v17256_v55  ;;  %v14991_v59 = vpop.f32.mrb[23].mxu1 }
 0x7e8   :  { %v1955_v60 = vsel %vm293_vm2, %v1870_v58, -inf }
 0x7e9   :  { %1956 = vmax.xlane.f32.xlu1 %v1955_v60 }
 0x7fa   :  { %2316 = vrot.lane.b32.xlu1 %v17155_v21, %s19430_s5  ;;  %s19471_s5 = smov 8  }
 0x7fe   :  { %2145 = vrot.lane.b32.xlu1 %v17184_v52, %s19432_s2  ;;  %v17278_v52 = vadd.f32 %v14056_v50, %v17038_v49 }
 0x802   :  { %2314 = vrot.lane.b32.xlu1 %v17155_v21, %s19428_s9  ;;  %s19470_s9 = smov 96  }
 0x806   :  { %2318 = vrot.lane.b32.xlu1 %v17155_v21, %s19426_s28  ;;  %s19472_s28 = smov 24  }
 0x80a   :  { %2320 = vrot.lane.b32.xlu1 %v17155_v21, %s19424_s30 }
 0x80f   :  { %v17271_v61 = vpop.f32.mrb[14].mxu0 }
 0x810   :  { %v14976_v62 = vpop.f32.mrb[15].mxu0 }
 0x813   :  { %v1793_v1 = vpop.f32.mrb[16].mxu0 }
 0x814   :  { %v1794_v19 = vadd.f32 %v1793_v1, %v17274_v0  ;;  %v14986_v2 = vpop.f32.mrb[17].mxu0 }
 0x816   :  { %v1952_v3 = vsel %vm293_vm2, %v1794_v19, -inf }
 0x817   :  { %1953 = vmax.xlane.f32.xlu0 %v1952_v3  ;;  %v1945_v18 = vpop.f32.mrb[18].mxu0 }
 0x818   :  { %v1946_v4 = vadd.f32 %v1945_v18, %v17278_v52  ;;  %v14996_v7 = vpop.f32.mrb[19].mxu0 }
 0x81a   :  { %v1958_v9 = vsel %vm293_vm2, %v1946_v4, -inf }
 0x81b   :  { %1959 = vmax.xlane.f32.xlu0 %v1958_v9 }
 0x831   :  { %1993 = vrot.lane.b32.xlu0 %v17157_v22, %s19432_s2 }
 0x872   :  { %v1951_v27 = vpop.xlane.xlu0 %1950 }
 0x873   :  { %v1961_v10 = vsub.f32 %v1718_v16, %v1951_v27 }
 0x875   :  { %v1965_v11 = vmul.f32 1.442695, %v1961_v10 }
 0x876   :  { %v1957_v13 = vpop.xlane.xlu1 %1956 }
 0x877   :  { %16433 = vpow2.f32 %v1965_v11  ;;  %v1963_v14 = vsub.f32 %v1870_v58, %v1957_v13 }
 0x879   :  { %v1969_v15 = vmul.f32 1.442695, %v1963_v14 }
 0x87a   :  { %v17287_v32 = vpop.permute.xlu1 %2316 }
 0x87b   :  { %16435 = vpow2.f32 %v1969_v15 }
 0x87e   :  { %v2146_v16 = vpop.permute.xlu1 %2145 }
 0x881   :  { %v16434_v17 = vpop.eup %16433 }
 0x882   :  { %v1973_v20 = vsel %vm293_vm2, %v16434_v17, 0.0  ;;  %v17296_v53 = vpop.permute.xlu1 %2314 }
 0x883   :  { %1974 = vadd.xlane.f32.xlu0 %v1973_v20  ;;  %v14057_v20 = vld [vmem:[%s19460_s1 + $0x3] ss:$0 sm:$0xff]  ;;  %s19434_s1 = smov 16  }
 0x885   :  { %v16436_v24 = vpop.eup %16435 }
 0x886   :  { %v1979_v30 = vsel %vm293_vm2, %v16436_v24, 0.0  ;;  %v17304_v56 = vpop.permute.xlu1 %2318 }
 0x887   :  { %1980 = vadd.xlane.f32.xlu0 %v1979_v30 }
 0x88a   :  { %v2321_v60 = vpop.permute.xlu1 %2320 }
 0x89d   :  { %2472 = vrot.lane.b32.xlu0 %v17287_v32, %s19424_s30 }
 0x8a4   :  { %v1954_v22 = vpop.xlane.xlu0 %1953 }
 0x8a5   :  { %v1962_v33 = vsub.f32 %v1794_v19, %v1954_v22 }
 0x8a7   :  { %v1967_v26 = vmul.f32 1.442695, %v1962_v33 }
 0x8a8   :  { %v1960_v34 = vpop.xlane.xlu0 %1959 }
 0x8a9   :  { %16437 = vpow2.f32 %v1967_v26  ;;  %v1964_v35 = vsub.f32 %v1946_v4, %v1960_v34  ;;  %v17362_v26 = vadd.f32 %v14057_v20, %v17029_v44 }
 0x8ab   :  { %v1971_v40 = vmul.f32 1.442695, %v1964_v35 }
 0x8ac   :  { %v1994_v41 = vpop.permute.xlu0 %1993 }
 0x8ad   :  { %14998 = vmatpush3.msra.mxu1 %v1994_v41  ;;  %16439 = vpow2.f32 %v1971_v40 }
 0x8ae   :  { %15007 = vmatprep.subr.mxu1 %v16773_v25 }
 0x8b3   :  { %v16438_v45 = vpop.eup %16437 }
 0x8b4   :  { %v1976_v47 = vsel %vm293_vm2, %v16438_v45, 0.0 }
 0x8b5   :  { %1977 = vadd.xlane.f32.xlu1 %v1976_v47 }
 0x8b7   :  { %v16440_v50 = vpop.eup %16439 }
 0x8b8   :  { %v1982_v29 = vsel %vm293_vm2, %v16440_v50, 0.0 }
 0x8bc   :  { %1983 = vadd.xlane.f32.xlu0 %v1982_v29 }
 0x8c6   :  { %2221 = vrot.lane.b32.xlu1 %v17200_v5, %s19432_s2 }
 0x8ca   :  { %2396 = vrot.lane.b32.xlu1 %v17296_v53, %s19424_s30 }
 0x8ce   :  { %946 = vrot.lane.b32.xlu1 %v17161_v23, %s19438_s10 }
 0x8d2   :  { %2069 = vrot.lane.b32.xlu0 %v17192_v63, %s19432_s2 }
 0x8d6   :  { %2548 = vrot.lane.b32.xlu0 %v17304_v56, %s19424_s30  ;;  %s19468_s30 = smov 120  }
 0x8da   :  { %2668 = vrot.lane.b32.xlu0 %v17155_v21, %s19432_s2 }
 0x910   :  { %v1975_v5 = vpop.xlane.xlu0 %1974 }
 0x911   :  { %16441 = vrcp.f32 %v1975_v5  ;;  %v17376_v5 = vadd.f32 %v14057_v20, %v17038_v49 }
 0x914   :  { %v1981_v57 = vpop.xlane.xlu0 %1980 }
 0x915   :  { %16443 = vrcp.f32 %v1981_v57  ;;  %v17379_v57 = vadd.f32 %v14057_v20, %v17021_v42 }
 0x918   :  { %v2473_v62 = vpop.permute.xlu0 %2472 }
 0x91b   :  { %v16442_v58 = vpop.eup %16441 }
 0x91c   :  { %v1986_v59 = vmul.f32 %v16442_v58, %v16434_v17 }
 0x91e   :  { %15000 = vmatmul.mubr.msk.f32.vlgmr.msra.gmra.mrb[24].mxu1 %vm293_vm2, %v1986_v59 }
 0x91f   :  { %v16444_v23 = vpop.eup %16443  ;;  %15008 = vmatpush3.msra.mxu1 %v2146_v16  ;;  %15009 = vmatprep.mubr.msk.f32.mxu1 %vm16774_vm1, %v16773_v25 }
 0x920   :  { %v1990_v63 = vmul.f32 %v16444_v23, %v16436_v24  ;;  %15017 = vmatprep.subr.mxu1 %v16773_v25  ;;  %v17358_v24 = vadd.f32 %v14057_v20, %v17011_v36 }
 0x922   :  { %15010 = vmatmul.mubr.msk.f32.vlgmr.msra.gmra.mrb[26].mxu1 %vm293_vm2, %v1990_v63 }
 0x923   :  { %15019 = vmatprep.mubr.msk.f32.mxu1 %vm16774_vm1, %v16773_v25 }
 0x926   :  { %15018 = vmatpush3.xpose.msk.msra.mxu1 %vm293_vm2, %v2321_v60 }
 0x927   :  { %15027 = vmatprep.subr.mxu1 %v16773_v25 }
 0x929   :  { %15020 = vmatmul.mubr.msk.f32.vlgmr.msra.gmra.mrb[28].mxu1 %vm293_vm2, %v17155_v21 }
 0x92a   :  { %15028 = vmatpush3.xpose.msk.msra.mxu1 %vm293_vm2, %v2473_v62  ;;  %15029 = vmatprep.mubr.msk.f32.mxu1 %vm16774_vm1, %v16773_v25 }
 0x92b   :  { %15037 = vmatprep.subr.mxu1 %v16773_v25 }
 0x92d   :  { %15030 = vmatmul.mubr.msk.f32.vlgmr.msra.gmra.mrb[30].mxu1 %vm293_vm2, %v17287_v32 }
 0x92e   :  { %15039 = vmatprep.mubr.msk.f32.mxu1 %vm16774_vm1, %v16773_v25 }
 0x942   :  { %v1978_v1 = vpop.xlane.xlu1 %1977 }
 0x943   :  { %16445 = vrcp.f32 %v1978_v1 }
 0x946   :  { %v2222_v19 = vpop.permute.xlu1 %2221 }
 0x949   :  { %v1984_v2 = vpop.xlane.xlu0 %1983 }
 0x94a   :  { %16447 = vrcp.f32 %v1984_v2  ;;  %v2397_v3 = vpop.permute.xlu1 %2396 }
 0x94d   :  { %v16446_v21 = vpop.eup %16445  ;;  %v2070_v18 = vpop.permute.xlu0 %2069 }
 0x94e   :  { %15003 = vmatpush3.msra.mxu0 %v2070_v18  ;;  %v947_v4 = vpop.permute.xlu1 %946  ;;  %v1988_v7 = vmul.f32 %v16446_v21, %v16438_v45 }
 0x94f   :  { %950 = vst.msk [vmem:[#allocation2] sm:$0xff] %vm949_vm3, %v947_v4  ;;  %15012 = vmatprep.subr.mxu0 %v16773_v25 }
 0x950   :  { %15005 = vmatmul.mubr.msk.f32.vlgmr.msra.gmra.mrb[20].mxu0 %vm293_vm2, %v1988_v7 }
 0x951   :  { %v2549_v9 = vpop.permute.xlu0 %2548  ;;  %15013 = vmatpush3.msra.mxu0 %v2222_v19  ;;  %15014 = vmatprep.mubr.msk.f32.mxu0 %vm16774_vm1, %v16773_v25 }
 0x952   :  { %15022 = vmatprep.subr.mxu0 %v16773_v25 }
 0x954   :  { %v16448_v27 = vpop.eup %16447 }
 0x955   :  { %v2669_v10 = vpop.permute.xlu0 %2668  ;;  %v1992_v11 = vmul.f32 %v16448_v27, %v16440_v50 }
 0x956   :  { %15038 = vmatpush3.msra.mxu1 %v2669_v10 }
 0x957   :  { %15015 = vmatmul.mubr.msk.f32.vlgmr.msra.gmra.mrb[22].mxu0 %vm293_vm2, %v1992_v11  ;;  %15047 = vmatprep.subr.mxu1 %v16773_v25 }
 0x958   :  { %15023 = vmatpush3.xpose.msk.msra.mxu0 %vm293_vm2, %v2397_v3  ;;  %15024 = vmatprep.mubr.msk.f32.mxu0 %vm16774_vm1, %v16773_v25 }
 0x959   :  { %15032 = vmatprep.subr.mxu0 %v16773_v25 }
 0x95b   :  { %15025 = vmatmul.mubr.msk.f32.vlgmr.msra.gmra.mrb[24].mxu0 %vm293_vm2, %v17296_v53 }
 0x95c   :  { %15033 = vmatpush3.xpose.msk.msra.mxu0 %vm293_vm2, %v2549_v9  ;;  %15034 = vmatprep.mubr.msk.f32.mxu0 %vm16774_vm1, %v16773_v25 }
 0x95d   :  { %15042 = vmatprep.subr.mxu0 %v16773_v25 }
 0x95f   :  { %15035 = vmatmul.mubr.msk.f32.vlgmr.msra.gmra.mrb[26].mxu0 %vm293_vm2, %v17304_v56 }
 0x960   :  { %15044 = vmatprep.mubr.msk.f32.mxu0 %vm16774_vm1, %v16773_v25 }
 0x9f1   :  { %v2065_v13 = vpop.f32.mrb[24].mxu1 }
 0x9f2   :  { %2297 = vst.msk [vmem:[#allocation2 + $0x10] sm:$0xff] %vm293_vm2, %v2065_v13  ;;  %v15001_v14 = vpop.f32.mrb[25].mxu1 }
 0x9f5   :  { %v17352_v15 = vpop.f32.mrb[26].mxu1 }
 0x9f6   :  { %v15011_v17 = vpop.f32.mrb[27].mxu1 }
 0x9fc   :  { %v2392_v30 = vpop.f32.mrb[28].mxu1 }
 0x9fd   :  { %v2393_v22 = vadd.f32 %v2392_v30, %v17358_v24  ;;  %v15021_v33 = vpop.f32.mrb[29].mxu1 }
 0x9ff   :  { %v2624_v34 = vsel %vm293_vm2, %v2393_v22, -inf }
 0xa00   :  { %2625 = vmax.xlane.f32.xlu1 %v2624_v34  ;;  %v2544_v35 = vpop.f32.mrb[30].mxu1  ;;  %v2992_v34 = vld [vmem:[%s19462_s29] sm:$0xff] }
 0xa01   :  { %v2545_v40 = vadd.f32 %v2544_v35, %v17362_v26  ;;  %v15031_v41 = vpop.f32.mrb[31].mxu1 }
 0xa02   :  { %v2995_v41 = vld [vmem:[%s19462_s29 + $0x18] sm:$0xff] }
 0xa03   :  { %v2630_v45 = vsel %vm293_vm2, %v2545_v40, -inf }
 0xa04   :  { %2631 = vmax.xlane.f32.xlu0 %v2630_v45 }
 0xa11   :  { %952 = vrot.lane.b32.xlu1 %v17141_v6, %s19434_s1 }
 0xa1a   :  { %1624 = vrot.lane.b32.xlu0 %v17243_v38, %s19438_s10 }
 0xa23   :  { %v17371_v36 = vpop.f32.mrb[20].mxu0 }
 0xa24   :  { %v15006_v44 = vpop.f32.mrb[21].mxu0 }
 0xa2a   :  { %v17373_v47 = vpop.f32.mrb[22].mxu0 }
 0xa2b   :  { %v15016_v50 = vpop.f32.mrb[23].mxu0 }
 0xa2e   :  { %v2468_v29 = vpop.f32.mrb[24].mxu0 }
 0xa2f   :  { %v15026_v16 = vpop.f32.mrb[25].mxu0  ;;  %v2469_v38 = vadd.f32 %v2468_v29, %v17379_v57 }
 0xa31   :  { %v2627_v63 = vsel %vm293_vm2, %v2469_v38, -inf }
 0xa32   :  { %v2620_v58 = vpop.f32.mrb[26].mxu0 }
 0xa33   :  { %v2621_v6 = vadd.f32 %v2620_v58, %v17376_v5  ;;  %v15036_v59 = vpop.f32.mrb[27].mxu0 }
 0xa35   :  { %v2633_v23 = vsel %vm293_vm2, %v2621_v6, -inf }
 0xa36   :  { %2634 = vmax.xlane.f32.xlu1 %v2633_v23 }
 0xa39   :  { %2628 = vmax.xlane.f32.xlu0 %v2627_v63 }
 0xa47   :  { %958 = vrot.lane.b32.xlu1 %v17163_v28, %s19436_s11 }
 0xa4f   :  { %1629 = vrot.lane.b32.xlu0 %v17246_v46, %s19434_s1 }
 0xa8d   :  { %v2626_v42 = vpop.xlane.xlu1 %2625 }
 0xa8e   :  { %v2636_v49 = vsub.f32 %v2393_v22, %v2626_v42 }
 0xa90   :  { %v2640_v60 = vmul.f32 1.442695, %v2636_v49 }
 0xa91   :  { %v2632_v62 = vpop.xlane.xlu0 %2631  ;;  %v953_v1 = vpop.permute.xlu1 %952 }
 0xa92   :  { %16449 = vpow2.f32 %v2640_v60  ;;  %v2638_v19 = vsub.f32 %v2545_v40, %v2632_v62  ;;  %956 = vst.msk [vmem:[#allocation2] sm:$0xff] %vm955_vm4, %v953_v1 }
 0xa94   :  { %v2644_v2 = vmul.f32 1.442695, %v2638_v19 }
 0xa95   :  { %v1625_v3 = vpop.permute.xlu0 %1624 }
 0xa96   :  { %16451 = vpow2.f32 %v2644_v2  ;;  %1627 = vst.msk [vmem:[#allocation2 + $0x8] sm:$0xff] %vm949_vm3, %v1625_v3 }
 0xa9c   :  { %v16450_v21 = vpop.eup %16449 }
 0xa9d   :  { %v2648_v28 = vsel %vm293_vm2, %v16450_v21, 0.0 }
 0xa9e   :  { %2649 = vadd.xlane.f32.xlu0 %v2648_v28 }
 0xaa0   :  { %v16452_v46 = vpop.eup %16451 }
 0xaa1   :  { %v2654_v18 = vsel %vm293_vm2, %v16452_v46, 0.0 }
 0xaa2   :  { %2655 = vadd.xlane.f32.xlu1 %v2654_v18  ;;  %v16752_v18 = vld [vmem:[%s19457_s8] sm:$0xff] }
 0xab3   :  { %2820 = vrot.lane.b32.xlu1 %v17287_v32, %s19432_s2 }
 0xab4   :  { %1634 = vrot.lane.b32.xlu0 %v17271_v61, %s19436_s11 }
 0xac3   :  { %v2635_v4 = vpop.xlane.xlu1 %2634 }
 0xac4   :  { %v2639_v7 = vsub.f32 %v2621_v6, %v2635_v4 }
 0xac6   :  { %v2646_v9 = vmul.f32 1.442695, %v2639_v7  ;;  %v2629_v27 = vpop.xlane.xlu0 %2628 }
 0xac7   :  { %v2637_v10 = vsub.f32 %v2469_v38, %v2629_v27  ;;  %v959_v11 = vpop.permute.xlu1 %958 }
 0xac8   :  { %16453 = vpow2.f32 %v2646_v9  ;;  %962 = vst.msk [vmem:[#allocation2] sm:$0xff] %vm961_vm5, %v959_v11  ;;  %v3140_v11 = vld [vmem:[%s19463_s7] sm:$0xff] }
 0xac9   :  { %v2642_v13 = vmul.f32 1.442695, %v2637_v10 }
 0xaca   :  { %v1630_v14 = vpop.permute.xlu0 %1629 }
 0xacb   :  { %16455 = vpow2.f32 %v2642_v13  ;;  %1632 = vst.msk [vmem:[#allocation2 + $0x8] sm:$0xff] %vm955_vm4, %v1630_v14  ;;  %v3141_v13 = vld [vmem:[%s19463_s7 + $0x8] sm:$0xff] }
 0xacc   :  { %v15918_v14 = vpack.c.bf16 %v3141_v13, %v3140_v11 }
 0xacf   :  { %v2988_v16 = vld [vmem:[#allocation2] sm:$0xff] }
 0xad2   :  { %v16454_v17 = vpop.eup %16453 }
 0xad3   :  { %v2657_v32 = vsel %vm293_vm2, %v16454_v17, 0.0 }
 0xad4   :  { %2658 = vadd.xlane.f32.xlu0 %v2657_v32 }
 0xad5   :  { %v16456_v61 = vpop.eup %16455 }
 0xad6   :  { %v2651_v20 = vsel %vm293_vm2, %v16456_v61, 0.0 }
 0xad7   :  { %2652 = vadd.xlane.f32.xlu1 %v2651_v20 }
 0xae8   :  { %2896 = vrot.lane.b32.xlu1 %v17304_v56, %s19432_s2  ;;  %v2993_v56 = vld [vmem:[%s19462_s29 + $0x8] sm:$0xff] }
 0xae9   :  { %v15910_v40 = vpack.c.bf16 %v2993_v56, %v2992_v34 }
 0xaea   :  { %2744 = vrot.lane.b32.xlu0 %v17296_v53, %s19432_s2  ;;  %s19464_s2 = smov 16  }
 0xaec   :  { %2304 = vrot.lane.b32.xlu1 %v17352_v15, %s19434_s1  ;;  %v2994_v15 = vld [vmem:[%s19462_s29 + $0x10] sm:$0xff]  ;;  %s19473_s1 = sld [smem:[#allocation10_spill]] }
 0xaed   :  { %v15914_v29 = vpack.c.bf16 %v2995_v41, %v2994_v15 }
 0xb2b   :  { %v2650_v30 = vpop.xlane.xlu0 %2649 }
 0xb2c   :  { %16457 = vrcp.f32 %v2650_v30 }
 0xb2f   :  { %v1635_v22 = vpop.permute.xlu0 %1634  ;;  %v2656_v33 = vpop.xlane.xlu1 %2655 }
 0xb30   :  { %1637 = vst.msk [vmem:[#allocation2 + $0x8] sm:$0xff] %vm961_vm5, %v1635_v22  ;;  %16459 = vrcp.f32 %v2656_v33 }
 0xb33   :  { %v2821_v45 = vpop.permute.xlu1 %2820 }
 0xb36   :  { %v16458_v35 = vpop.eup %16457 }
 0xb37   :  { %v2661_v53 = vmul.f32 %v16458_v35, %v16450_v21  ;;  %v2989_v58 = vld [vmem:[#allocation2 + $0x8] sm:$0xff] }
 0xb38   :  { %v16751_v21 = vld [vmem:[%s19457_s8 + $0x8] sm:$0xff] }
 0xb39   :  { %15040 = vmatmul.mubr.msk.f32.vlgmr.msra.gmra.mrb[32].mxu1 %vm293_vm2, %v2661_v53 }
 0xb3a   :  { %v16460_v44 = vpop.eup %16459  ;;  %15048 = vmatpush3.msra.mxu1 %v2821_v45  ;;  %15049 = vmatprep.mubr.msk.f32.mxu1 %vm16774_vm1, %v16773_v25 }
 0xb3b   :  { %15911 = vmatprep.subr.bf16.mxu1 %v15910_v40  ;;  %v2665_v50 = vmul.f32 %v16460_v44, %v16452_v46 }
 0xb3d   :  { %15050 = vmatmul.mubr.msk.f32.vlgmr.msra.gmra.mrb[34].mxu1 %vm293_vm2, %v2665_v50 }
 0xb3e   :  { %15913 = vmatpush3.bf16.msra.mxu1 %v15910_v40  ;;  %15065 = vmatprep.mubr.msk.f32.mxu1 %vm143_vm0, %v2988_v16 }
 0xb3f   :  { %15915 = vmatprep.subr.bf16.mxu1 %v15914_v29 }
 0xb42   :  { %15917 = vmatpush3.bf16.msra.mxu1 %v15914_v29 }
 0xb45   :  { %15066 = vmatmul.mubr.msk.f32.vlgmr.msra.gmra.mrb[36].mxu1 %vm143_vm0, %v2989_v58  ;;  %v17475_v58 = vld [vmem:[%s19465_s6] ss:$0 sm:$0xff] }
 0xb61   :  { %v2659_v6 = vpop.xlane.xlu0 %2658 }
 0xb64   :  { %v2653_v59 = vpop.xlane.xlu1 %2652 }
 0xb65   :  { %16461 = vrcp.f32 %v2653_v59  ;;  %v2745_v38 = vpop.permute.xlu0 %2744 }
 0xb66   :  { %15043 = vmatpush3.msra.mxu0 %v2745_v38  ;;  %16463 = vrcp.f32 %v2659_v6 }
 0xb67   :  { %15052 = vmatprep.subr.mxu0 %v16773_v25 }
 0xb68   :  { %v2897_v49 = vpop.permute.xlu1 %2896 }
 0xb6c   :  { %v2305_v22 = vpop.permute.xlu1 %2304 }
 0xb6f   :  { %v16462_v23 = vpop.eup %16461 }
 0xb70   :  { %v2663_v63 = vmul.f32 %v16462_v23, %v16456_v61  ;;  %v16464_v42 = vpop.eup %16463 }
 0xb71   :  { %v2667_v60 = vmul.f32 %v16464_v42, %v16454_v17  ;;  %v3142_v17 = vld [vmem:[%s19463_s7 + $0x10] sm:$0xff] }
 0xb72   :  { %15045 = vmatmul.mubr.msk.f32.vlgmr.msra.gmra.mrb[28].mxu0 %vm293_vm2, %v2663_v63 }
 0xb73   :  { %15053 = vmatpush3.msra.mxu0 %v2897_v49  ;;  %15054 = vmatprep.mubr.msk.f32.mxu0 %vm16774_vm1, %v16773_v25  ;;  %v3297_v49 = vld [vmem:[%s19396_s12] sm:$0xff] }
 0xb74   :  { %15919 = vmatprep.subr.bf16.mxu0 %v15918_v14 }
 0xb76   :  { %15055 = vmatmul.mubr.msk.f32.vlgmr.msra.gmra.mrb[30].mxu0 %vm293_vm2, %v2667_v60  ;;  %v3298_v60 = vld [vmem:[%s19396_s12 + $0x8] sm:$0xff] }
 0xb77   :  { %15921 = vmatpush3.bf16.msra.mxu0 %v15918_v14  ;;  %v16753_v14 = vld [vmem:[%s19457_s8 + $0x18] sm:$0xff] }
 0xc0c   :  { %v2740_v62 = vpop.f32.mrb[32].mxu1 }
 0xc0d   :  { %2972 = vst.msk [vmem:[#allocation2 + $0x18] sm:$0xff] %vm293_vm2, %v2740_v62  ;;  %v15041_v1 = vpop.f32.mrb[33].mxu1  ;;  %v3299_v62 = vld [vmem:[%s19396_s12 + $0x10] sm:$0xff] }
 0xc0e   :  { %v15926_v1 = vpack.c.bf16 %v3298_v60, %v3297_v49 }
 0xc10   :  { %v2892_v19 = vpop.f32.mrb[34].mxu1  ;;  %15927 = vmatprep.subr.bf16.mxu1 %v15926_v1 }
 0xc11   :  { %v15051_v2 = vpop.f32.mrb[35].mxu1  ;;  %15929 = vmatpush3.bf16.msra.mxu1 %v15926_v1 }
 0xc18   :  { %v15067_v3 = vpop.f32.mrb[36].mxu1 }
 0xc19   :  { %v17435_v28 = vadd.f32 %v16751_v21, %v15067_v3  ;;  %v3074_v46 = vpop.f32.mrb[37].mxu1  ;;  %v3301_v3 = vld [vmem:[%s19396_s12 + $0x20] sm:$0xff]  ;;  %v3302_v21 = vld [vmem:[%s19396_s12 + $0x28] sm:$0xff] }
 0xc1a   :  { %v17440_v4 = vadd.f32 %v16752_v18, %v3074_v46  ;;  %v15934_v46 = vpack.c.bf16 %v3302_v21, %v3301_v3  ;;  %v3303_v18 = vld [vmem:[%s19396_s12 + $0x30] sm:$0xff] }
 0xc1b   :  { %v3099_v7 = vmul.f32 %v17435_v28, %v17435_v28 }
 0xc1c   :  { %v3098_v9 = vmul.f32 %v17440_v4, %v17440_v4 }
 0xc1d   :  { %v3105_v27 = vsel %vm143_vm0, %v3099_v7, 0.0  ;;  %v3304_v7 = vld [vmem:[%s19396_s12 + $0x38] sm:$0xff] }
 0xc1e   :  { %3106 = vadd.xlane.f32.xlu0 %v3105_v27  ;;  %v3102_v10 = vsel %vm143_vm0, %v3098_v9, 0.0  ;;  %v15938_v9 = vpack.c.bf16 %v3304_v7, %v3303_v18 }
 0xc1f   :  { %3103 = vadd.xlane.f32.xlu1 %v3102_v10 }
 0xc34   :  { %2299 = vrot.lane.b32.xlu0 %v17371_v36, %s19438_s10  ;;  %v3143_v36 = vld [vmem:[%s19463_s7 + $0x18] sm:$0xff] }
 0xc35   :  { %v15922_v32 = vpack.c.bf16 %v3143_v36, %v3142_v17 }
 0xc37   :  { %15923 = vmatprep.subr.bf16.mxu0 %v15922_v32 }
 0xc38   :  { %2309 = vrot.lane.b32.xlu0 %v17373_v47, %s19436_s11  ;;  %15925 = vmatpush3.bf16.msra.mxu0 %v15922_v32  ;;  %v16754_v32 = vld [vmem:[%s19457_s8 + $0x10] sm:$0xff]  ;;  %s19469_s8 = smov 104  }
 0xc45   :  { %v2816_v61 = vpop.f32.mrb[28].mxu0 }
 0xc46   :  { %2974 = vrot.lane.b32.xlu1 %v2816_v61, %s19438_s10  ;;  %v15046_v20 = vpop.f32.mrb[29].mxu0 }
 0xc49   :  { %v2968_v30 = vpop.f32.mrb[30].mxu0 }
 0xc4a   :  { %2979 = vrot.lane.b32.xlu1 %v2892_v19, %s19464_s2  ;;  %2984 = vrot.lane.b32.xlu0 %v2968_v30, %s19436_s11  ;;  %v15056_v47 = vpop.f32.mrb[31].mxu0  ;;  %v3300_v19 = vld [vmem:[%s19396_s12 + $0x18] sm:$0xff]  ;;  %s19477_s11 = sld [smem:[#allocation11_spill]] }
 0xc4b   :  { %v15930_v2 = vpack.c.bf16 %v3300_v19, %v3299_v62 }
 0xc4d   :  { %15931 = vmatprep.subr.bf16.mxu1 %v15930_v2 }
 0xc4e   :  { %15933 = vmatpush3.bf16.msra.mxu1 %v15930_v2 }
 0xc4f   :  { %15935 = vmatprep.subr.bf16.mxu1 %v15934_v46 }
 0xc52   :  { %15937 = vmatpush3.bf16.msra.mxu1 %v15934_v46 }
 0xc53   :  { %15939 = vmatprep.subr.bf16.mxu1 %v15938_v9 }
 0xc56   :  { %15941 = vmatpush3.bf16.msra.mxu1 %v15938_v9 }
 0xc57   :  { %15131 = vmatprep.subr.mxu1 %v16773_v25 }
 0xcab   :  { %v3107_v33 = vpop.xlane.xlu0 %3106 }
 0xcac   :  { %v3115_v34 = vmul.f32 0.03125, %v3107_v33  ;;  %v3104_v56 = vpop.xlane.xlu1 %3103 }
 0xcad   :  { %v3114_v35 = vmul.f32 0.03125, %v3104_v56 }
 0xcae   :  { %v3119_v53 = vadd.f32 1e-06, %v3115_v34 }
 0xcaf   :  { %v3118_v40 = vadd.f32 1e-06, %v3114_v35  ;;  %v2300_v15 = vpop.permute.xlu0 %2299 }
 0xcb0   :  { %16465 = vrsqrt.f32 %v3119_v53  ;;  %2302 = vst.msk [vmem:[#allocation2 + $0x10] sm:$0xff] %vm949_vm3, %v2300_v15 }
 0xcb1   :  { %16467 = vrsqrt.f32 %v3118_v40  ;;  %2307 = vst.msk [vmem:[#allocation2 + $0x10] sm:$0xff] %vm955_vm4, %v2305_v22 }
 0xcb3   :  { %v2310_v41 = vpop.permute.xlu0 %2309 }
 0xcb4   :  { %2312 = vst.msk [vmem:[#allocation2 + $0x10] sm:$0xff] %vm961_vm5, %v2310_v41 }
 0xcb8   :  { %v2975_v45 = vpop.permute.xlu1 %2974 }
 0xcb9   :  { %2977 = vst.msk [vmem:[#allocation2 + $0x18] sm:$0xff] %vm949_vm3, %v2975_v45 }
 0xcba   :  { %v16466_v44 = vpop.eup %16465 }
 0xcbb   :  { %v16468_v50 = vpop.eup %16467  ;;  %v3127_v29 = vmul.f32 %v16466_v44, %v17435_v28  ;;  %v2990_v16 = vld [vmem:[#allocation2 + $0x10] sm:$0xff] }
 0xcbc   :  { %15068 = vmatprep.mubr.msk.f32.mxu1 %vm143_vm0, %v2990_v16  ;;  %v2985_v6 = vpop.permute.xlu0 %2984  ;;  %v2980_v59 = vpop.permute.xlu1 %2979  ;;  %v3126_v38 = vmul.f32 %v16468_v50, %v17440_v4 }
 0xcbd   :  { %2982 = vst.msk [vmem:[#allocation2 + $0x18] sm:$0xff] %vm955_vm4, %v2980_v59  ;;  %v3137_v63 = vmul.f32 %v17475_v58, %v3127_v29 }
 0xcbe   :  { %2987 = vst.msk [vmem:[#allocation2 + $0x18] sm:$0xff] %vm961_vm5, %v2985_v6  ;;  %v3136_v23 = vmul.f32 %v17475_v58, %v3126_v38 }
 0xcc0   :  { %15079 = vmatprep.mubr.msk.f32.mxu0 %vm143_vm0, %v3136_v23 }
 0xcc1   :  { %15080 = vmatmul.mubr.msk.f32.vlgmr.msra.gmra.mrb[32].mxu0 %vm143_vm0, %v3137_v63 }
 0xcc5   :  { %v2991_v42 = vld [vmem:[#allocation2 + $0x18] sm:$0xff] }
 0xcc6   :  { %15069 = vmatmul.mubr.msk.f32.gmra.mrb[38].mxu1 %vm143_vm0, %v2991_v42 }
 0xd94   :  { %v15081_v27 = vpop.f32.mrb[32].mxu0 }
 0xd95   :  { %3283 = vrot.lane.b32.xlu0 %v15081_v27, %s19466_s26  ;;  %v3222_v10 = vpop.f32.mrb[33].mxu0  ;;  %v3246_v33 = vmul.f32 0.044715, %v15081_v27  ;;  %v3242_v59 = vmul.f32 0.5, %v15081_v27 }
 0xd96   :  { %3281 = vrot.lane.b32.xlu1 %v3222_v10, %s19466_s26  ;;  %v3245_v22 = vmul.f32 0.044715, %v3222_v10  ;;  %v3241_v6 = vmul.f32 0.5, %v3222_v10 }
 0xd97   :  { %v3250_v56 = vmul.f32 %v15081_v27, %v3246_v33  ;;  %v14129_v33 = vld [vmem:[%s19458_s0 + $0x38] sm:$0xff] }
 0xd98   :  { %v3249_v34 = vmul.f32 %v3245_v22, %v3222_v10  ;;  %v14128_v22 = vld [vmem:[%s19458_s0 + $0x30] sm:$0xff] }
 0xd99   :  { %v15070_v11 = vpop.f32.mrb[38].mxu1  ;;  %v3254_v53 = vmul.f32 %v15081_v27, %v3250_v56 }
 0xd9a   :  { %v3084_v13 = vpop.f32.mrb[39].mxu1  ;;  %v17516_v17 = vadd.f32 %v16753_v14, %v15070_v11  ;;  %v3253_v35 = vmul.f32 %v3249_v34, %v3222_v10  ;;  %v15946_v34 = vpack.c.bf16 %v14129_v33, %v14128_v22 }
 0xd9b   :  { %v17523_v61 = vadd.f32 %v16754_v32, %v3084_v13  ;;  %v3258_v15 = vadd.f32 %v15081_v27, %v3254_v53 }
 0xd9c   :  { %v3101_v36 = vmul.f32 %v17516_v17, %v17516_v17  ;;  %v3257_v40 = vadd.f32 %v3253_v35, %v3222_v10 }
 0xd9d   :  { %v3100_v30 = vmul.f32 %v17523_v61, %v17523_v61  ;;  %v3262_v45 = vmul.f32 0.7978846, %v3258_v15 }
 0xd9e   :  { %v3111_v20 = vsel %vm143_vm0, %v3101_v36, 0.0  ;;  %v3261_v41 = vmul.f32 0.7978846, %v3257_v40 }
 0xd9f   :  { %v3108_v47 = vsel %vm143_vm0, %v3100_v30, 0.0 }
 0xda0   :  { %16469 = vtanh.f32 %v3261_v41 }
 0xda1   :  { %16471 = vtanh.f32 %v3262_v45 }
 0xdaa   :  { %v16470_v44 = vpop.eup %16469 }
 0xdab   :  { %v16472_v50 = vpop.eup %16471  ;;  %v3269_v29 = vadd.f32 1.0, %v16470_v44 }
 0xdac   :  { %v3270_v16 = vadd.f32 1.0, %v16472_v50 }
 0xdad   :  { %v3273_v23 = vmul.f32 %v3269_v29, %v3241_v6 }
 0xdae   :  { %v3274_v63 = vmul.f32 %v3270_v16, %v3242_v59 }
 0xdb4   :  { %3112 = vadd.xlane.f32.xlu0 %v3111_v20 }
 0xdba   :  { %3109 = vadd.xlane.f32.xlu1 %v3108_v47 }
 0xe07   :  { %v3284_v38 = vpop.permute.xlu0 %3283 }
 0xe08   :  { %v3282_v42 = vpop.permute.xlu1 %3281  ;;  %v3294_v60 = vmul.f32 %v3284_v38, %v3274_v63  ;;  %v17568_v63 = vld [vmem:[%s19459_s4 + $0x1] ss:$0 sm:$0xff]  ;;  %s19467_s4 = smov 112  }
 0xe09   :  { %v3293_v49 = vmul.f32 %v3282_v42, %v3273_v23 }
 0xe0b   :  { %15101 = vmatprep.mubr.msk.f32.mxu1 %vm3305_vm6, %v3293_v49 }
 0xe0c   :  { %15102 = vmatmul.mubr.msk.f32.vlgmr.msra.gmra.mrb[40].mxu1 %vm3305_vm6, %v3294_v60 }
 0xe41   :  { %v3113_v62 = vpop.xlane.xlu0 %3112 }
 0xe42   :  { %v3117_v1 = vmul.f32 0.03125, %v3113_v62 }
 0xe44   :  { %v3121_v19 = vadd.f32 1e-06, %v3117_v1 }
 0xe46   :  { %16473 = vrsqrt.f32 %v3121_v19 }
 0xe47   :  { %v3110_v2 = vpop.xlane.xlu1 %3109 }
 0xe48   :  { %v3116_v3 = vmul.f32 0.03125, %v3110_v2 }
 0xe4a   :  { %v3120_v21 = vadd.f32 1e-06, %v3116_v3 }
 0xe4c   :  { %16475 = vrsqrt.f32 %v3120_v21 }
 0xe50   :  { %v16474_v46 = vpop.eup %16473 }
 0xe51   :  { %v3129_v7 = vmul.f32 %v16474_v46, %v17516_v17 }
 0xe53   :  { %v3139_v10 = vmul.f32 %v17475_v58, %v3129_v7 }
 0xe56   :  { %v16476_v18 = vpop.eup %16475 }
 0xe57   :  { %v3128_v9 = vmul.f32 %v16476_v18, %v17523_v61 }
 0xe59   :  { %v3138_v27 = vmul.f32 %v17475_v58, %v3128_v9 }
 0xe5b   :  { %15082 = vmatprep.mubr.msk.f32.mxu0 %vm143_vm0, %v3138_v27 }
 0xe5c   :  { %15083 = vmatmul.mubr.msk.f32.gmra.mrb[34].mxu0 %vm143_vm0, %v3139_v10 }
 0xedf   :  { %v15103_v11 = vpop.f32.mrb[40].mxu1 }
 0xee0   :  { %v17538_v13 = vadd.f32 %v15103_v11, %v17435_v28  ;;  %v3384_v14 = vpop.f32.mrb[41].mxu1  ;;  %v14126_v28 = vld [vmem:[%s19458_s0 + $0x20] sm:$0xff] }
 0xee1   :  { %v17541_v36 = vadd.f32 %v3384_v14, %v17440_v4  ;;  %v14127_v4 = vld [vmem:[%s19458_s0 + $0x28] sm:$0xff] }
 0xee2   :  { %v3410_v32 = vmul.f32 %v17538_v13, %v17538_v13  ;;  %v15942_v47 = vpack.c.bf16 %v14127_v4, %v14126_v28 }
 0xee3   :  { %v3409_v20 = vmul.f32 %v17541_v36, %v17541_v36 }
 0xee4   :  { %v3416_v58 = vsel %vm143_vm0, %v3410_v32, 0.0  ;;  %15943 = vmatprep.subr.bf16.mxu0 %v15942_v47 }
 0xee5   :  { %3417 = vadd.xlane.f32.xlu1 %v3416_v58  ;;  %v3413_v30 = vsel %vm143_vm0, %v3409_v20, 0.0  ;;  %15945 = vmatpush3.bf16.msra.mxu0 %v15942_v47 }
 0xee6   :  { %3414 = vadd.xlane.f32.xlu0 %v3413_v30  ;;  %15947 = vmatprep.subr.bf16.mxu0 %v15946_v34 }
 0xee9   :  { %15949 = vmatpush3.bf16.msra.mxu0 %v15946_v34 }
 0xeea   :  { %15121 = vmatprep.subr.mxu0 %v16773_v25 }
 0xf2f   :  { %v15084_v56 = vpop.f32.mrb[34].mxu0 }
 0xf30   :  { %3287 = vrot.lane.b32.xlu1 %v15084_v56, %s19466_s26  ;;  %v3232_v35 = vpop.f32.mrb[35].mxu0  ;;  %v3248_v29 = vmul.f32 0.044715, %v15084_v56  ;;  %v3244_v10 = vmul.f32 0.5, %v15084_v56 }
 0xf31   :  { %3285 = vrot.lane.b32.xlu0 %v3232_v35, %s19466_s26  ;;  %v3247_v50 = vmul.f32 0.044715, %v3232_v35  ;;  %v3243_v27 = vmul.f32 0.5, %v3232_v35 }
 0xf32   :  { %v3252_v38 = vmul.f32 %v15084_v56, %v3248_v29 }
 0xf33   :  { %v3251_v6 = vmul.f32 %v3247_v50, %v3232_v35 }
 0xf34   :  { %v3256_v1 = vmul.f32 %v15084_v56, %v3252_v38 }
 0xf35   :  { %v3255_v60 = vmul.f32 %v3251_v6, %v3232_v35 }
 0xf36   :  { %v3260_v2 = vadd.f32 %v15084_v56, %v3256_v1 }
 0xf37   :  { %v3259_v19 = vadd.f32 %v3255_v60, %v3232_v35 }
 0xf38   :  { %v3264_v21 = vmul.f32 0.7978846, %v3260_v2 }
 0xf39   :  { %v3263_v3 = vmul.f32 0.7978846, %v3259_v19 }
 0xf72   :  { %v3418_v53 = vpop.xlane.xlu1 %3417 }
 0xf73   :  { %v3426_v40 = vmul.f32 0.03125, %v3418_v53  ;;  %v3415_v15 = vpop.xlane.xlu0 %3414 }
 0xf74   :  { %v3425_v41 = vmul.f32 0.03125, %v3415_v15 }
 0xf75   :  { %v3430_v45 = vadd.f32 1e-06, %v3426_v40 }
 0xf76   :  { %v3429_v44 = vadd.f32 1e-06, %v3425_v41 }
 0xf77   :  { %16477 = vrsqrt.f32 %v3430_v45 }
 0xf78   :  { %16479 = vrsqrt.f32 %v3429_v44 }
 0xf79   :  { %16481 = vtanh.f32 %v3263_v3 }
 0xf7a   :  { %16483 = vtanh.f32 %v3264_v21 }
 0xf81   :  { %v16478_v16 = vpop.eup %16477 }
 0xf82   :  { %v16480_v59 = vpop.eup %16479  ;;  %v3438_v23 = vmul.f32 %v16478_v16, %v17538_v13 }
 0xf83   :  { %v3437_v42 = vmul.f32 %v16480_v59, %v17541_v36  ;;  %v16482_v46 = vpop.eup %16481 }
 0xf84   :  { %v3448_v62 = vmul.f32 %v17568_v63, %v3438_v23  ;;  %v16484_v18 = vpop.eup %16483  ;;  %v3271_v7 = vadd.f32 1.0, %v16482_v46 }
 0xf85   :  { %v3447_v49 = vmul.f32 %v17568_v63, %v3437_v42  ;;  %v3272_v9 = vadd.f32 1.0, %v16484_v18 }
 0xf86   :  { %v3275_v14 = vmul.f32 %v3271_v7, %v3243_v27 }
 0xf87   :  { %15115 = vmatprep.mubr.msk.f32.mxu0 %vm143_vm0, %v3447_v49  ;;  %v3276_v32 = vmul.f32 %v3272_v9, %v3244_v10 }
 0xf88   :  { %15116 = vmatmul.mubr.msk.f32.vlgmr.msra.gmra.mrb[36].mxu0 %vm143_vm0, %v3448_v62 }
 0xfa2   :  { %v3288_v11 = vpop.permute.xlu1 %3287 }
 0xfa3   :  { %v3286_v20 = vpop.permute.xlu0 %3285  ;;  %v3296_v30 = vmul.f32 %v3288_v11, %v3276_v32 }
 0xfa4   :  { %v3295_v58 = vmul.f32 %v3286_v20, %v3275_v14 }
 0xfa6   :  { %15104 = vmatprep.mubr.msk.f32.mxu1 %vm3305_vm6, %v3295_v58 }
 0xfa7   :  { %15105 = vmatmul.mubr.msk.f32.gmra.mrb[42].mxu1 %vm3305_vm6, %v3296_v30 }
 0xfa8   :  { %15133 = vmatprep.mubr.msk.f32.mxu1 %vm16774_vm1, %v16773_v25 }
0x105b   :  { %v17579_v28 = vpop.f32.mrb[36].mxu0 }
0x105c   :  { %v17581_v4 = vpop.f32.mrb[37].mxu0 }
0x105d   :  { %3556 = vrot.lane.b32.xlu0 %v17581_v4, %s19467_s4  ;;  %3554 = vrot.lane.b32.xlu1 %v17581_v4, %s19468_s30 }
0x1061   :  { %3558 = vrot.lane.b32.xlu1 %v17581_v4, %s19469_s8 }
0x107a   :  { %v15106_v47 = vpop.f32.mrb[42].mxu1 }
0x107b   :  { %v3394_v22 = vpop.f32.mrb[43].mxu1  ;;  %v17590_v33 = vadd.f32 %v15106_v47, %v17516_v17 }
0x107c   :  { %v17593_v34 = vadd.f32 %v3394_v22, %v17523_v61 }
0x107d   :  { %v3412_v53 = vmul.f32 %v17590_v33, %v17590_v33 }
0x107e   :  { %v3411_v56 = vmul.f32 %v17593_v34, %v17593_v34 }
0x107f   :  { %v3422_v40 = vsel %vm143_vm0, %v3412_v53, 0.0 }
0x1080   :  { %v3419_v35 = vsel %vm143_vm0, %v3411_v56, 0.0 }
0x1081   :  { %3420 = vadd.xlane.f32.xlu0 %v3419_v35 }
0x1085   :  { %3423 = vadd.xlane.f32.xlu1 %v3422_v40 }
0x1097   :  { %3560 = vrot.lane.b32.xlu0 %v17581_v4, %s19470_s9 }
0x10cf   :  { %v17603_v17 = vpop.permute.xlu0 %3556  ;;  %v17605_v15 = vpop.permute.xlu1 %3554 }
0x10d0   :  { %3712 = vrot.lane.b32.xlu0 %v17603_v17, %s19470_s9  ;;  %3636 = vrot.lane.b32.xlu1 %v17605_v15, %s19470_s9 }
0x10d3   :  { %v17611_v61 = vpop.permute.xlu1 %3558 }
0x10d4   :  { %3788 = vrot.lane.b32.xlu1 %v17611_v61, %s19470_s9 }
0x110e   :  { %v3421_v41 = vpop.xlane.xlu0 %3420 }
0x110f   :  { %v3427_v45 = vmul.f32 0.03125, %v3421_v41 }
0x1111   :  { %v3431_v44 = vadd.f32 1e-06, %v3427_v45 }
0x1112   :  { %v3561_v50 = vpop.permute.xlu0 %3560  ;;  %v3424_v29 = vpop.xlane.xlu1 %3423 }
0x1113   :  { %16485 = vrsqrt.f32 %v3431_v44  ;;  %v3428_v16 = vmul.f32 0.03125, %v3424_v29  ;;  %15122 = vmatpush3.xpose.msk.msra.mxu0 %vm293_vm2, %v3561_v50 }
0x1114   :  { %15126 = vmatprep.subr.mxu0 %v16773_v25 }
0x1115   :  { %v3432_v6 = vadd.f32 1e-06, %v3428_v16 }
0x1117   :  { %16487 = vrsqrt.f32 %v3432_v6 }
0x111d   :  { %v16486_v59 = vpop.eup %16485 }
0x111e   :  { %v3439_v38 = vmul.f32 %v16486_v59, %v17593_v34 }
0x1120   :  { %v3449_v23 = vmul.f32 %v17568_v63, %v3439_v38 }
0x1121   :  { %v16488_v42 = vpop.eup %16487 }
0x1122   :  { %15118 = vmatprep.mubr.msk.f32.mxu0 %vm143_vm0, %v3449_v23  ;;  %v3440_v49 = vmul.f32 %v16488_v42, %v17590_v33 }
0x1124   :  { %v3450_v60 = vmul.f32 %v17568_v63, %v3440_v49 }
0x1126   :  { %15119 = vmatmul.mubr.msk.f32.gmra.mrb[38].mxu0 %vm143_vm0, %v3450_v60 }
0x1127   :  { %15123 = vmatprep.mubr.msk.f32.mxu0 %vm16774_vm1, %v16773_v25 }
0x112a   :  { %15124 = vmatmul.mubr.msk.f32.vlgmr.msra.gmra.mrb[40].mxu0 %vm293_vm2, %v17581_v4 }
0x112b   :  { %15128 = vmatprep.mubr.msk.f32.mxu0 %vm16774_vm1, %v16773_v25 }
0x1142   :  { %v3713_v62 = vpop.permute.xlu0 %3712  ;;  %v3637_v1 = vpop.permute.xlu1 %3636 }
0x1143   :  { %15127 = vmatpush3.xpose.msk.msra.mxu0 %vm293_vm2, %v3637_v1  ;;  %15132 = vmatpush3.xpose.msk.msra.mxu1 %vm293_vm2, %v3713_v62 }
0x1144   :  { %15136 = vmatprep.subr.mxu0 %v16773_v25  ;;  %15141 = vmatprep.subr.mxu1 %v16773_v25 }
0x1146   :  { %15129 = vmatmul.mubr.msk.f32.vlgmr.msra.gmra.mrb[42].mxu0 %vm293_vm2, %v17605_v15  ;;  %15134 = vmatmul.mubr.msk.f32.vlgmr.msra.gmra.mrb[44].mxu1 %vm293_vm2, %v17603_v17  ;;  %v3789_v63 = vpop.permute.xlu1 %3788 }
0x1147   :  { %15137 = vmatpush3.xpose.msk.msra.mxu0 %vm293_vm2, %v3789_v63  ;;  %15138 = vmatprep.mubr.msk.f32.mxu0 %vm16774_vm1, %v16773_v25 }
0x1148   :  { %15146 = vmatprep.subr.mxu0 %v16773_v25  ;;  %15143 = vmatprep.mubr.msk.f32.mxu1 %vm16774_vm1, %v16773_v25 }
0x114a   :  { %15139 = vmatmul.mubr.msk.f32.vlgmr.msra.gmra.mrb[44].mxu0 %vm293_vm2, %v17611_v61 }
0x114b   :  { %15148 = vmatprep.mubr.msk.f32.mxu0 %vm16774_vm1, %v16773_v25 }
0x11f9   :  { %v17647_v19 = vpop.f32.mrb[38].mxu0 }
0x11fa   :  { %v17649_v2 = vpop.f32.mrb[39].mxu0 }
0x11fd   :  { %v3632_v3 = vpop.f32.mrb[40].mxu0 }
0x11fe   :  { %v3633_v21 = vadd.f32 %v3632_v3, %v17014_v37  ;;  %v15125_v46 = vpop.f32.mrb[41].mxu0 }
0x1200   :  { %v3864_v18 = vsel %vm293_vm2, %v3633_v21, -inf }
0x1201   :  { %3865 = vmax.xlane.f32.xlu0 %v3864_v18 }
0x1219   :  { %v3708_v7 = vpop.f32.mrb[42].mxu0  ;;  %v3784_v9 = vpop.f32.mrb[44].mxu1 }
0x121a   :  { %v3709_v27 = vadd.f32 %v3708_v7, %v17024_v43  ;;  %v3785_v10 = vadd.f32 %v3784_v9, %v17033_v48  ;;  %v15130_v11 = vpop.f32.mrb[43].mxu0  ;;  %v15135_v14 = vpop.f32.mrb[45].mxu1 }
0x121c   :  { %v3870_v32 = vsel %vm293_vm2, %v3785_v10, -inf  ;;  %v3867_v20 = vsel %vm293_vm2, %v3709_v27, -inf }
0x121d   :  { %3871 = vmax.xlane.f32.xlu0 %v3870_v32  ;;  %3868 = vmax.xlane.f32.xlu1 %v3867_v20  ;;  %v3860_v58 = vpop.f32.mrb[44].mxu0 }
0x121e   :  { %v3861_v37 = vadd.f32 %v3860_v58, %v17043_v54  ;;  %v15140_v30 = vpop.f32.mrb[45].mxu0 }
0x1220   :  { %v3873_v47 = vsel %vm293_vm2, %v3861_v37, -inf }
0x1221   :  { %3874 = vmax.xlane.f32.xlu0 %v3873_v47 }
0x122e   :  { %4229 = vrot.lane.b32.xlu1 %v17579_v28, %s19468_s30 }
0x1232   :  { %4233 = vrot.lane.b32.xlu1 %v17579_v28, %s19469_s8 }
0x1236   :  { %3984 = vrot.lane.b32.xlu1 %v17605_v15, %s19466_s26 }
0x1237   :  { %4231 = vrot.lane.b32.xlu0 %v17579_v28, %s19467_s4 }
0x123a   :  { %4060 = vrot.lane.b32.xlu1 %v17603_v17, %s19466_s26 }
0x123b   :  { %3908 = vrot.lane.b32.xlu0 %v17581_v4, %s19466_s26 }
0x123e   :  { %4235 = vrot.lane.b32.xlu1 %v17579_v28, %s19470_s9 }
0x123f   :  { %4136 = vrot.lane.b32.xlu0 %v17611_v61, %s19466_s26 }
0x128e   :  { %v3866_v43 = vpop.xlane.xlu0 %3865 }
0x128f   :  { %v3876_v48 = vsub.f32 %v3633_v21, %v3866_v43 }
0x1291   :  { %v3880_v54 = vmul.f32 1.442695, %v3876_v48 }
0x1293   :  { %16489 = vpow2.f32 %v3880_v54 }
0x129d   :  { %v16490_v22 = vpop.eup %16489 }
0x129e   :  { %v3888_v56 = vsel %vm293_vm2, %v16490_v22, 0.0 }
0x129f   :  { %3889 = vadd.xlane.f32.xlu1 %v3888_v56 }
0x12aa   :  { %v3872_v35 = vpop.xlane.xlu0 %3871  ;;  %v3869_v53 = vpop.xlane.xlu1 %3868 }
0x12ab   :  { %v3878_v40 = vsub.f32 %v3785_v10, %v3872_v35  ;;  %v3877_v17 = vsub.f32 %v3709_v27, %v3869_v53 }
0x12ad   :  { %v3882_v15 = vmul.f32 1.442695, %v3877_v17  ;;  %v3884_v4 = vmul.f32 1.442695, %v3878_v40 }
0x12ae   :  { %v3875_v41 = vpop.xlane.xlu0 %3874  ;;  %v17676_v45 = vpop.permute.xlu1 %4229 }
0x12af   :  { %v3879_v44 = vsub.f32 %v3861_v37, %v3875_v41  ;;  %16491 = vpow2.f32 %v3882_v15 }
0x12b0   :  { %16493 = vpow2.f32 %v3884_v4 }
0x12b1   :  { %v3886_v61 = vmul.f32 1.442695, %v3879_v44 }
0x12b2   :  { %v17678_v50 = vpop.permute.xlu0 %4231  ;;  %v17680_v29 = vpop.permute.xlu1 %4233 }
0x12b3   :  { %16495 = vpow2.f32 %v3886_v61 }
0x12b6   :  { %v3909_v16 = vpop.permute.xlu0 %3908  ;;  %v3985_v6 = vpop.permute.xlu1 %3984 }
0x12b7   :  { %15142 = vmatpush3.msra.mxu1 %v3909_v16  ;;  %15147 = vmatpush3.msra.mxu0 %v3985_v6 }
0x12b8   :  { %15151 = vmatprep.subr.mxu1 %v16773_v25  ;;  %15156 = vmatprep.subr.mxu0 %v16773_v25 }
0x12b9   :  { %v16492_v59 = vpop.eup %16491 }
0x12ba   :  { %v3891_v38 = vsel %vm293_vm2, %v16492_v59, 0.0  ;;  %v16494_v23 = vpop.eup %16493  ;;  %v4061_v62 = vpop.permute.xlu1 %4060 }
0x12bb   :  { %3892 = vadd.xlane.f32.xlu0 %v3891_v38  ;;  %v3894_v60 = vsel %vm293_vm2, %v16494_v23, 0.0  ;;  %v4137_v46 = vpop.permute.xlu0 %4136 }
0x12bd   :  { %v16496_v42 = vpop.eup %16495 }
0x12be   :  { %v3897_v49 = vsel %vm293_vm2, %v16496_v42, 0.0  ;;  %v4236_v1 = vpop.permute.xlu1 %4235 }
0x12bf   :  { %3898 = vadd.xlane.f32.xlu1 %v3897_v49  ;;  %3895 = vadd.xlane.f32.xlu0 %v3894_v60 }
0x12d0   :  { %4387 = vrot.lane.b32.xlu1 %v17678_v50, %s19470_s9 }
0x12d5   :  { %4311 = vrot.lane.b32.xlu0 %v17676_v45, %s19470_s9 }
0x12d9   :  { %4463 = vrot.lane.b32.xlu0 %v17680_v29, %s19470_s9 }
0x132c   :  { %v3890_v63 = vpop.xlane.xlu1 %3889 }
0x132d   :  { %16497 = vrcp.f32 %v3890_v63 }
0x1337   :  { %v16498_v3 = vpop.eup %16497 }
0x1338   :  { %v3901_v21 = vmul.f32 %v16498_v3, %v16490_v22 }
0x133a   :  { %15144 = vmatmul.mubr.msk.f32.vlgmr.msra.gmra.mrb[46].mxu1 %vm293_vm2, %v3901_v21 }
0x133b   :  { %15152 = vmatpush3.msra.mxu1 %v4061_v62  ;;  %15153 = vmatprep.mubr.msk.f32.mxu1 %vm16774_vm1, %v16773_v25 }
0x133c   :  { %15161 = vmatprep.subr.mxu1 %v16773_v25 }
0x1348   :  { %v3893_v18 = vpop.xlane.xlu0 %3892 }
0x1349   :  { %16499 = vrcp.f32 %v3893_v18 }
0x134c   :  { %v3899_v7 = vpop.xlane.xlu1 %3898  ;;  %v3896_v9 = vpop.xlane.xlu0 %3895 }
0x134d   :  { %16501 = vrcp.f32 %v3899_v7 }
0x134e   :  { %16503 = vrcp.f32 %v3896_v9 }
0x1350   :  { %v4312_v58 = vpop.permute.xlu0 %4311  ;;  %v4388_v37 = vpop.permute.xlu1 %4387 }
0x1353   :  { %v16500_v27 = vpop.eup %16499 }
0x1354   :  { %v3903_v10 = vmul.f32 %v16500_v27, %v16492_v59  ;;  %v4464_v30 = vpop.permute.xlu0 %4463 }
0x1356   :  { %15149 = vmatmul.mubr.msk.f32.vlgmr.msra.gmra.mrb[46].mxu0 %vm293_vm2, %v3903_v10 }
0x1357   :  { %v16502_v11 = vpop.eup %16501  ;;  %15157 = vmatpush3.msra.mxu0 %v4137_v46  ;;  %15158 = vmatprep.mubr.msk.f32.mxu0 %vm16774_vm1, %v16773_v25 }
0x1358   :  { %v16504_v14 = vpop.eup %16503  ;;  %v3907_v32 = vmul.f32 %v16502_v11, %v16496_v42  ;;  %15166 = vmatprep.subr.mxu0 %v16773_v25 }
0x1359   :  { %v3905_v20 = vmul.f32 %v16504_v14, %v16494_v23 }
0x135a   :  { %15159 = vmatmul.mubr.msk.f32.vlgmr.msra.gmra.mrb[48].mxu0 %vm293_vm2, %v3907_v32 }
0x135b   :  { %15154 = vmatmul.mubr.msk.f32.vlgmr.msra.gmra.mrb[48].mxu1 %vm293_vm2, %v3905_v20  ;;  %15168 = vmatprep.mubr.msk.f32.mxu0 %vm16774_vm1, %v16773_v25 }
0x135c   :  { %15162 = vmatpush3.xpose.msk.msra.mxu1 %vm293_vm2, %v4236_v1  ;;  %15163 = vmatprep.mubr.msk.f32.mxu1 %vm16774_vm1, %v16773_v25 }
0x135d   :  { %15171 = vmatprep.subr.mxu1 %v16773_v25 }
0x135e   :  { %15167 = vmatpush3.xpose.msk.msra.mxu0 %vm293_vm2, %v4312_v58 }
0x135f   :  { %15164 = vmatmul.mubr.msk.f32.vlgmr.msra.gmra.mrb[50].mxu1 %vm293_vm2, %v17579_v28  ;;  %15176 = vmatprep.subr.mxu0 %v16773_v25 }
0x1360   :  { %15172 = vmatpush3.xpose.msk.msra.mxu1 %vm293_vm2, %v4388_v37  ;;  %15173 = vmatprep.mubr.msk.f32.mxu1 %vm16774_vm1, %v16773_v25 }
0x1361   :  { %15181 = vmatprep.subr.mxu1 %v16773_v25  ;;  %15169 = vmatmul.mubr.msk.f32.vlgmr.msra.gmra.mrb[50].mxu0 %vm293_vm2, %v17676_v45 }
0x1362   :  { %15177 = vmatpush3.xpose.msk.msra.mxu0 %vm293_vm2, %v4464_v30  ;;  %15178 = vmatprep.mubr.msk.f32.mxu0 %vm16774_vm1, %v16773_v25 }
0x1363   :  { %15174 = vmatmul.mubr.msk.f32.vlgmr.msra.gmra.mrb[52].mxu1 %vm293_vm2, %v17678_v50  ;;  %15186 = vmatprep.subr.mxu0 %v16773_v25 }
0x1364   :  { %15183 = vmatprep.mubr.msk.f32.mxu1 %vm16774_vm1, %v16773_v25 }
0x1365   :  { %15179 = vmatmul.mubr.msk.f32.vlgmr.msra.gmra.mrb[52].mxu0 %vm293_vm2, %v17680_v29 }
0x1366   :  { %15188 = vmatprep.mubr.msk.f32.mxu0 %vm16774_vm1, %v16773_v25 }
0x140d   :  { %v3980_v47 = vpop.f32.mrb[46].mxu1 }
0x140e   :  { %4212 = vst.msk [vmem:[#allocation2] sm:$0xff] %vm293_vm2, %v3980_v47  ;;  %v15145_v43 = vpop.f32.mrb[47].mxu1 }
0x1429   :  { %v17732_v48 = vpop.f32.mrb[46].mxu0 }
0x142a   :  { %v15150_v54 = vpop.f32.mrb[47].mxu0 }
0x142d   :  { %v17736_v56 = vpop.f32.mrb[48].mxu0 }
0x142e   :  { %v17734_v22 = vpop.f32.mrb[48].mxu1  ;;  %v15160_v53 = vpop.f32.mrb[49].mxu0 }
0x142f   :  { %v15155_v35 = vpop.f32.mrb[49].mxu1 }
0x1432   :  { %v4307_v40 = vpop.f32.mrb[50].mxu1 }
0x1433   :  { %v4308_v17 = vadd.f32 %v4307_v40, %v17144_v8  ;;  %v15165_v15 = vpop.f32.mrb[51].mxu1 }
0x1434   :  { %v4383_v4 = vpop.f32.mrb[50].mxu0 }
0x1435   :  { %v4539_v41 = vsel %vm293_vm2, %v4308_v17, -inf  ;;  %v4384_v44 = vadd.f32 %v4383_v4, %v17166_v31  ;;  %v15170_v61 = vpop.f32.mrb[51].mxu0 }
0x1436   :  { %4540 = vmax.xlane.f32.xlu1 %v4539_v41  ;;  %v4459_v16 = vpop.f32.mrb[52].mxu1 }
0x1437   :  { %v15175_v6 = vpop.f32.mrb[53].mxu1  ;;  %v4460_v59 = vadd.f32 %v4459_v16, %v17148_v12  ;;  %v4542_v38 = vsel %vm293_vm2, %v4384_v44, -inf }
0x1438   :  { %4543 = vmax.xlane.f32.xlu0 %v4542_v38  ;;  %v4535_v23 = vpop.f32.mrb[52].mxu0 }
0x1439   :  { %v4536_v42 = vadd.f32 %v4535_v23, %v17171_v39  ;;  %v15180_v49 = vpop.f32.mrb[53].mxu0  ;;  %v4545_v60 = vsel %vm293_vm2, %v4460_v59, -inf }
0x143b   :  { %v4548_v8 = vsel %vm293_vm2, %v4536_v42, -inf }
0x143c   :  { %4549 = vmax.xlane.f32.xlu1 %v4548_v8  ;;  %4546 = vmax.xlane.f32.xlu0 %v4545_v60 }
0x144d   :  { %4906 = vrot.lane.b32.xlu1 %v17649_v2, %s19467_s4 }
0x1451   :  { %4908 = vrot.lane.b32.xlu1 %v17649_v2, %s19469_s8 }
0x1452   :  { %4904 = vrot.lane.b32.xlu0 %v17649_v2, %s19468_s30 }
0x1455   :  { %4583 = vrot.lane.b32.xlu1 %v17579_v28, %s19466_s26 }
0x1456   :  { %4659 = vrot.lane.b32.xlu0 %v17676_v45, %s19466_s26 }
0x1459   :  { %4735 = vrot.lane.b32.xlu1 %v17678_v50, %s19466_s26 }
0x145d   :  { %4811 = vrot.lane.b32.xlu1 %v17680_v29, %s19466_s26 }
0x14c3   :  { %v4541_v12 = vpop.xlane.xlu1 %4540 }
0x14c4   :  { %v4551_v31 = vsub.f32 %v4308_v17, %v4541_v12 }
0x14c5   :  { %v4544_v62 = vpop.xlane.xlu0 %4543 }
0x14c6   :  { %v4555_v39 = vmul.f32 1.442695, %v4551_v31  ;;  %v4552_v1 = vsub.f32 %v4384_v44, %v4544_v62 }
0x14c8   :  { %16505 = vpow2.f32 %v4555_v39  ;;  %v4557_v63 = vmul.f32 1.442695, %v4552_v1 }
0x14c9   :  { %v4547_v3 = vpop.xlane.xlu0 %4546  ;;  %v4550_v21 = vpop.xlane.xlu1 %4549 }
0x14ca   :  { %16507 = vpow2.f32 %v4557_v63  ;;  %v4553_v28 = vsub.f32 %v4460_v59, %v4547_v3  ;;  %v4554_v46 = vsub.f32 %v4536_v42, %v4550_v21 }
0x14cc   :  { %v4559_v18 = vmul.f32 1.442695, %v4553_v28  ;;  %v4561_v45 = vmul.f32 1.442695, %v4554_v46 }
0x14cd   :  { %v17760_v7 = vpop.permute.xlu0 %4904  ;;  %v17762_v50 = vpop.permute.xlu1 %4906 }
0x14ce   :  { %16509 = vpow2.f32 %v4559_v18 }
0x14cf   :  { %16511 = vpow2.f32 %v4561_v45 }
0x14d1   :  { %v4660_v9 = vpop.permute.xlu0 %4659  ;;  %v17764_v27 = vpop.permute.xlu1 %4908 }
0x14d2   :  { %v16506_v29 = vpop.eup %16505  ;;  %15187 = vmatpush3.msra.mxu0 %v4660_v9 }
0x14d3   :  { %v4563_v10 = vsel %vm293_vm2, %v16506_v29, 0.0  ;;  %15196 = vmatprep.subr.mxu0 %v16773_v25 }
0x14d4   :  { %4564 = vadd.xlane.f32.xlu0 %v4563_v10  ;;  %v16508_v11 = vpop.eup %16507 }
0x14d5   :  { %v4584_v14 = vpop.permute.xlu1 %4583  ;;  %v4566_v32 = vsel %vm293_vm2, %v16508_v11, 0.0 }
0x14d6   :  { %4567 = vadd.xlane.f32.xlu1 %v4566_v32  ;;  %15182 = vmatpush3.msra.mxu1 %v4584_v14 }
0x14d7   :  { %15191 = vmatprep.subr.mxu1 %v16773_v25 }
0x14d8   :  { %v16510_v20 = vpop.eup %16509 }
0x14d9   :  { %v4569_v58 = vsel %vm293_vm2, %v16510_v20, 0.0  ;;  %v16512_v37 = vpop.eup %16511  ;;  %v4736_v47 = vpop.permute.xlu1 %4735 }
0x14da   :  { %4570 = vadd.xlane.f32.xlu0 %v4569_v58  ;;  %v4572_v30 = vsel %vm293_vm2, %v16512_v37, 0.0 }
0x14dd   :  { %v4812_v43 = vpop.permute.xlu1 %4811 }
0x14de   :  { %4573 = vadd.xlane.f32.xlu0 %v4572_v30 }
0x14e7   :  { %4986 = vrot.lane.b32.xlu1 %v17760_v7, %s19470_s9 }
0x14eb   :  { %5138 = vrot.lane.b32.xlu1 %v17764_v27, %s19470_s9 }
0x14f4   :  { %4910 = vrot.lane.b32.xlu0 %v17649_v2, %s19470_s9 }
0x14f8   :  { %5062 = vrot.lane.b32.xlu0 %v17762_v50, %s19470_s9 }
0x1561   :  { %v4565_v54 = vpop.xlane.xlu0 %4564 }
0x1562   :  { %16513 = vrcp.f32 %v4565_v54 }
0x1563   :  { %v4568_v35 = vpop.xlane.xlu1 %4567 }
0x1564   :  { %16515 = vrcp.f32 %v4568_v35 }
0x1567   :  { %v4571_v53 = vpop.xlane.xlu0 %4570  ;;  %v4987_v59 = vpop.permute.xlu1 %4986 }
0x1568   :  { %16517 = vrcp.f32 %v4571_v53 }
0x156b   :  { %v4574_v17 = vpop.xlane.xlu0 %4573  ;;  %v5139_v42 = vpop.permute.xlu1 %5138 }
0x156c   :  { %v16514_v40 = vpop.eup %16513  ;;  %16519 = vrcp.f32 %v4574_v17 }
0x156d   :  { %v4576_v15 = vmul.f32 %v16514_v40, %v16506_v29 }
0x156e   :  { %v16516_v4 = vpop.eup %16515 }
0x156f   :  { %15184 = vmatmul.mubr.msk.f32.vlgmr.msra.gmra.mrb[54].mxu1 %vm293_vm2, %v4576_v15  ;;  %v4578_v41 = vmul.f32 %v16516_v4, %v16508_v11  ;;  %v4911_v61 = vpop.permute.xlu0 %4910 }
0x1570   :  { %15192 = vmatpush3.msra.mxu1 %v4736_v47  ;;  %15193 = vmatprep.mubr.msk.f32.mxu1 %vm16774_vm1, %v16773_v25 }
0x1571   :  { %15201 = vmatprep.subr.mxu1 %v16773_v25  ;;  %15189 = vmatmul.mubr.msk.f32.vlgmr.msra.gmra.mrb[54].mxu0 %vm293_vm2, %v4578_v41 }
0x1572   :  { %v16518_v44 = vpop.eup %16517  ;;  %15197 = vmatpush3.msra.mxu0 %v4812_v43  ;;  %15198 = vmatprep.mubr.msk.f32.mxu0 %vm16774_vm1, %v16773_v25 }
0x1573   :  { %v4580_v16 = vmul.f32 %v16518_v44, %v16510_v20  ;;  %15206 = vmatprep.subr.mxu0 %v16773_v25  ;;  %v5063_v23 = vpop.permute.xlu0 %5062 }
0x1575   :  { %15194 = vmatmul.mubr.msk.f32.vlgmr.msra.gmra.mrb[56].mxu1 %vm293_vm2, %v4580_v16 }
0x1576   :  { %v16520_v6 = vpop.eup %16519  ;;  %15203 = vmatprep.mubr.msk.f32.mxu1 %vm16774_vm1, %v16773_v25 }
0x1577   :  { %15202 = vmatpush3.xpose.msk.msra.mxu1 %vm293_vm2, %v4911_v61  ;;  %v4582_v38 = vmul.f32 %v16520_v6, %v16512_v37 }
0x1578   :  { %15211 = vmatprep.subr.mxu1 %v16773_v25 }
0x1579   :  { %15199 = vmatmul.mubr.msk.f32.vlgmr.msra.gmra.mrb[56].mxu0 %vm293_vm2, %v4582_v38 }
0x157a   :  { %15204 = vmatmul.mubr.msk.f32.vlgmr.msra.gmra.mrb[58].mxu1 %vm293_vm2, %v17649_v2  ;;  %15207 = vmatpush3.xpose.msk.msra.mxu0 %vm293_vm2, %v4987_v59 }
0x157b   :  { %15212 = vmatpush3.xpose.msk.msra.mxu1 %vm293_vm2, %v5063_v23  ;;  %15208 = vmatprep.mubr.msk.f32.mxu0 %vm16774_vm1, %v16773_v25 }
0x157c   :  { %15213 = vmatprep.mubr.msk.f32.mxu1 %vm16774_vm1, %v16773_v25  ;;  %15216 = vmatprep.subr.mxu0 %v16773_v25 }
0x157d   :  { %15221 = vmatprep.subr.mxu1 %v16773_v25  ;;  %15209 = vmatmul.mubr.msk.f32.vlgmr.msra.gmra.mrb[58].mxu0 %vm293_vm2, %v17760_v7 }
0x157e   :  { %15214 = vmatmul.mubr.msk.f32.vlgmr.msra.gmra.mrb[60].mxu1 %vm293_vm2, %v17762_v50  ;;  %15217 = vmatpush3.xpose.msk.msra.mxu0 %vm293_vm2, %v5139_v42 }
0x157f   :  { %15218 = vmatprep.mubr.msk.f32.mxu0 %vm16774_vm1, %v16773_v25  ;;  %15226 = vmatprep.subr.mxu0 %v16773_v25 }
0x1580   :  { %15223 = vmatprep.mubr.msk.f32.mxu1 %vm16774_vm1, %v16773_v25 }
0x1581   :  { %15219 = vmatmul.mubr.msk.f32.vlgmr.msra.gmra.mrb[60].mxu0 %vm293_vm2, %v17764_v27 }
0x1582   :  { %15228 = vmatprep.mubr.msk.f32.mxu0 %vm16774_vm1, %v16773_v25 }
0x1642   :  { %v4655_v49 = vpop.f32.mrb[54].mxu1 }
0x1643   :  { %4887 = vst.msk [vmem:[#allocation2 + $0x8] sm:$0xff] %vm293_vm2, %v4655_v49  ;;  %v15185_v8 = vpop.f32.mrb[55].mxu1 }
0x1644   :  { %v17819_v60 = vpop.f32.mrb[54].mxu0 }
0x1645   :  { %v15190_v12 = vpop.f32.mrb[55].mxu0 }
0x1648   :  { %v17821_v31 = vpop.f32.mrb[56].mxu1 }
0x1649   :  { %v15195_v39 = vpop.f32.mrb[57].mxu1 }
0x164c   :  { %v17823_v62 = vpop.f32.mrb[56].mxu0 }
0x164d   :  { %v4982_v1 = vpop.f32.mrb[58].mxu1  ;;  %v15200_v3 = vpop.f32.mrb[57].mxu0 }
0x164e   :  { %v4983_v63 = vadd.f32 %v4982_v1, %v17252_v51  ;;  %v15205_v21 = vpop.f32.mrb[59].mxu1 }
0x1650   :  { %v5214_v28 = vsel %vm293_vm2, %v4983_v63, -inf  ;;  %v5058_v46 = vpop.f32.mrb[58].mxu0 }
0x1651   :  { %5215 = vmax.xlane.f32.xlu0 %v5214_v28  ;;  %v5134_v18 = vpop.f32.mrb[60].mxu1  ;;  %v5059_v45 = vadd.f32 %v5058_v46, %v17274_v0  ;;  %v15210_v9 = vpop.f32.mrb[59].mxu0 }
0x1652   :  { %v5135_v29 = vadd.f32 %v5134_v18, %v17256_v55  ;;  %v15215_v10 = vpop.f32.mrb[61].mxu1 }
0x1653   :  { %v5217_v14 = vsel %vm293_vm2, %v5059_v45, -inf }
0x1654   :  { %v5220_v11 = vsel %vm293_vm2, %v5135_v29, -inf  ;;  %5218 = vmax.xlane.f32.xlu1 %v5217_v14  ;;  %v5210_v51 = vpop.f32.mrb[60].mxu0 }
0x1655   :  { %5221 = vmax.xlane.f32.xlu0 %v5220_v11  ;;  %v5211_v32 = vadd.f32 %v5210_v51, %v17278_v52  ;;  %v15220_v20 = vpop.f32.mrb[61].mxu0 }
0x1657   :  { %v5223_v58 = vsel %vm293_vm2, %v5211_v32, -inf }
0x1659   :  { %5224 = vmax.xlane.f32.xlu0 %v5223_v58 }
0x1665   :  { %5579 = vrot.lane.b32.xlu1 %v17647_v19, %s19468_s30 }
0x1669   :  { %5583 = vrot.lane.b32.xlu1 %v17647_v19, %s19469_s8 }
0x166d   :  { %5334 = vrot.lane.b32.xlu1 %v17760_v7, %s19466_s26 }
0x166f   :  { %5581 = vrot.lane.b32.xlu0 %v17647_v19, %s19467_s4 }
0x1671   :  { %5410 = vrot.lane.b32.xlu1 %v17762_v50, %s19466_s26 }
0x1673   :  { %5258 = vrot.lane.b32.xlu0 %v17649_v2, %s19466_s26 }
0x16de   :  { %v5216_v55 = vpop.xlane.xlu0 %5215 }
0x16df   :  { %v5226_v0 = vsub.f32 %v4983_v63, %v5216_v55 }
0x16e1   :  { %v5230_v52 = vmul.f32 1.442695, %v5226_v0  ;;  %v5219_v30 = vpop.xlane.xlu1 %5218 }
0x16e2   :  { %v5222_v37 = vpop.xlane.xlu0 %5221  ;;  %v5227_v43 = vsub.f32 %v5059_v45, %v5219_v30 }
0x16e3   :  { %16521 = vpow2.f32 %v5230_v52  ;;  %v5228_v47 = vsub.f32 %v5135_v29, %v5222_v37 }
0x16e4   :  { %v5232_v35 = vmul.f32 1.442695, %v5227_v43 }
0x16e5   :  { %v5234_v54 = vmul.f32 1.442695, %v5228_v47  ;;  %v17845_v53 = vpop.permute.xlu1 %5579 }
0x16e6   :  { %v5225_v7 = vpop.xlane.xlu0 %5224 }
0x16e7   :  { %16523 = vpow2.f32 %v5234_v54  ;;  %v5229_v6 = vsub.f32 %v5211_v32, %v5225_v7 }
0x16e8   :  { %16525 = vpow2.f32 %v5232_v35 }
0x16e9   :  { %v17849_v50 = vpop.permute.xlu1 %5583  ;;  %v5236_v59 = vmul.f32 1.442695, %v5229_v6 }
0x16ea   :  { %v17847_v40 = vpop.permute.xlu0 %5581 }
0x16eb   :  { %16527 = vpow2.f32 %v5236_v59 }
0x16ed   :  { %v16522_v2 = vpop.eup %16521  ;;  %v5335_v15 = vpop.permute.xlu1 %5334 }
0x16ee   :  { %v5259_v17 = vpop.permute.xlu0 %5258  ;;  %v5238_v4 = vsel %vm293_vm2, %v16522_v2, 0.0  ;;  %15227 = vmatpush3.msra.mxu0 %v5335_v15 }
0x16ef   :  { %5239 = vadd.xlane.f32.xlu1 %v5238_v4  ;;  %15222 = vmatpush3.msra.mxu1 %v5259_v17 }
0x16f0   :  { %15231 = vmatprep.subr.mxu1 %v16773_v25  ;;  %15236 = vmatprep.subr.mxu0 %v16773_v25 }
0x16f1   :  { %v16524_v41 = vpop.eup %16523  ;;  %v5411_v42 = vpop.permute.xlu1 %5410 }
0x16f2   :  { %v5244_v44 = vsel %vm293_vm2, %v16524_v41, 0.0  ;;  %v16526_v61 = vpop.eup %16525 }
0x16f3   :  { %5245 = vadd.xlane.f32.xlu0 %v5244_v44  ;;  %v5241_v16 = vsel %vm293_vm2, %v16526_v61, 0.0 }
0x16f5   :  { %v16528_v38 = vpop.eup %16527 }
0x16f6   :  { %v5247_v23 = vsel %vm293_vm2, %v16528_v38, 0.0 }
0x16f7   :  { %5242 = vadd.xlane.f32.xlu0 %v5241_v16 }
0x1700   :  { %5585 = vrot.lane.b32.xlu1 %v17647_v19, %s19470_s9 }
0x170d   :  { %5486 = vrot.lane.b32.xlu0 %v17764_v27, %s19466_s26 }
0x1711   :  { %5661 = vrot.lane.b32.xlu0 %v17845_v53, %s19470_s9 }
0x1715   :  { %5813 = vrot.lane.b32.xlu0 %v17849_v50, %s19470_s9 }
0x1724   :  { %5248 = vadd.xlane.f32.xlu1 %v5247_v23 }
0x1735   :  { %5737 = vrot.lane.b32.xlu1 %v17847_v40, %s19470_s9 }
0x177c   :  { %v5240_v49 = vpop.xlane.xlu1 %5239 }
0x177d   :  { %16529 = vrcp.f32 %v5240_v49 }
0x1780   :  { %v5246_v27 = vpop.xlane.xlu0 %5245  ;;  %v5586_v28 = vpop.permute.xlu1 %5585 }
0x1781   :  { %16531 = vrcp.f32 %v5246_v27 }
0x1784   :  { %v5243_v8 = vpop.xlane.xlu0 %5242 }
0x1785   :  { %16533 = vrcp.f32 %v5243_v8 }
0x1787   :  { %v16530_v12 = vpop.eup %16529 }
0x1788   :  { %v5251_v39 = vmul.f32 %v16530_v12, %v16522_v2  ;;  %v5487_v46 = vpop.permute.xlu0 %5486 }
0x178a   :  { %15224 = vmatmul.mubr.msk.f32.vlgmr.msra.gmra.mrb[62].mxu1 %vm293_vm2, %v5251_v39 }
0x178b   :  { %v16532_v1 = vpop.eup %16531  ;;  %15232 = vmatpush3.msra.mxu1 %v5411_v42  ;;  %15233 = vmatprep.mubr.msk.f32.mxu1 %vm16774_vm1, %v16773_v25 }
0x178c   :  { %v5255_v63 = vmul.f32 %v16532_v1, %v16524_v41  ;;  %15241 = vmatprep.subr.mxu1 %v16773_v25  ;;  %v5662_v9 = vpop.permute.xlu0 %5661 }
0x178e   :  { %15234 = vmatmul.mubr.msk.f32.vlgmr.msra.gmra.mrb[64].mxu1 %vm293_vm2, %v5255_v63 }
0x178f   :  { %v16534_v3 = vpop.eup %16533  ;;  %15243 = vmatprep.mubr.msk.f32.mxu1 %vm16774_vm1, %v16773_v25 }
0x1790   :  { %v5253_v21 = vmul.f32 %v16534_v3, %v16526_v61  ;;  %v5814_v11 = vpop.permute.xlu0 %5813 }
0x1792   :  { %15242 = vmatpush3.xpose.msk.msra.mxu1 %vm293_vm2, %v5586_v28  ;;  %15229 = vmatmul.mubr.msk.f32.vlgmr.msra.gmra.mrb[62].mxu0 %vm293_vm2, %v5253_v21 }
0x1793   :  { %15237 = vmatpush3.msra.mxu0 %v5487_v46  ;;  %15251 = vmatprep.subr.mxu1 %v16773_v25 }
0x1794   :  { %15238 = vmatprep.mubr.msk.f32.mxu0 %vm16774_vm1, %v16773_v25  ;;  %15246 = vmatprep.subr.mxu0 %v16773_v25 }
0x1795   :  { %15244 = vmatmul.mubr.msk.f32.vlgmr.msra.gmra.mrb[66].mxu1 %vm293_vm2, %v17647_v19 }
0x1796   :  { %15253 = vmatprep.mubr.msk.f32.mxu1 %vm16774_vm1, %v16773_v25 }
0x17b1   :  { %v5249_v18 = vpop.xlane.xlu1 %5248 }
0x17b2   :  { %16535 = vrcp.f32 %v5249_v18 }
0x17b5   :  { %v5738_v45 = vpop.permute.xlu1 %5737 }
0x17b6   :  { %15252 = vmatpush3.xpose.msk.msra.mxu1 %vm293_vm2, %v5738_v45 }
0x17b7   :  { %15261 = vmatprep.subr.mxu1 %v16773_v25 }
0x17b9   :  { %15254 = vmatmul.mubr.msk.f32.vlgmr.msra.gmra.mrb[68].mxu1 %vm293_vm2, %v17847_v40 }
0x17ba   :  { %15263 = vmatprep.mubr.msk.f32.mxu1 %vm16774_vm1, %v16773_v25 }
0x17bc   :  { %v16536_v29 = vpop.eup %16535 }
0x17bd   :  { %v5257_v10 = vmul.f32 %v16536_v29, %v16528_v38 }
0x17bf   :  { %15239 = vmatmul.mubr.msk.f32.vlgmr.msra.gmra.mrb[64].mxu0 %vm293_vm2, %v5257_v10 }
0x17c0   :  { %15247 = vmatpush3.xpose.msk.msra.mxu0 %vm293_vm2, %v5662_v9  ;;  %15248 = vmatprep.mubr.msk.f32.mxu0 %vm16774_vm1, %v16773_v25 }
0x17c1   :  { %15256 = vmatprep.subr.mxu0 %v16773_v25 }
0x17c3   :  { %15249 = vmatmul.mubr.msk.f32.vlgmr.msra.gmra.mrb[66].mxu0 %vm293_vm2, %v17845_v53 }
0x17c4   :  { %15257 = vmatpush3.xpose.msk.msra.mxu0 %vm293_vm2, %v5814_v11  ;;  %15258 = vmatprep.mubr.msk.f32.mxu0 %vm16774_vm1, %v16773_v25 }
0x17c5   :  { %15266 = vmatprep.subr.mxu0 %v16773_v25 }
0x17c7   :  { %15259 = vmatmul.mubr.msk.f32.vlgmr.msra.gmra.mrb[68].mxu0 %vm293_vm2, %v17849_v50 }
0x17c8   :  { %15268 = vmatprep.mubr.msk.f32.mxu0 %vm16774_vm1, %v16773_v25 }
0x185d   :  { %v5330_v14 = vpop.f32.mrb[62].mxu1 }
0x185e   :  { %5562 = vst.msk [vmem:[#allocation2 + $0x10] sm:$0xff] %vm293_vm2, %v5330_v14  ;;  %v15225_v51 = vpop.f32.mrb[63].mxu1 }
0x1861   :  { %v17906_v32 = vpop.f32.mrb[64].mxu1 }
0x1862   :  { %v15235_v20 = vpop.f32.mrb[65].mxu1 }
0x1863   :  { %v14185_v20 = vld [vmem:[%s19462_s29 + $0x38] sm:$0xff] }
0x1865   :  { %v17908_v58 = vpop.f32.mrb[62].mxu0 }
0x1866   :  { %v15230_v55 = vpop.f32.mrb[63].mxu0 }
0x1868   :  { %v5657_v0 = vpop.f32.mrb[66].mxu1 }
0x1869   :  { %v5658_v52 = vadd.f32 %v5657_v0, %v17358_v24  ;;  %v15245_v37 = vpop.f32.mrb[67].mxu1 }
0x186b   :  { %v5889_v30 = vsel %vm293_vm2, %v5658_v52, -inf }
0x186c   :  { %5890 = vmax.xlane.f32.xlu1 %v5889_v30 }
0x188c   :  { %v5809_v47 = vpop.f32.mrb[68].mxu1 }
0x188d   :  { %v15255_v43 = vpop.f32.mrb[69].mxu1  ;;  %v5810_v15 = vadd.f32 %v5809_v47, %v17362_v26 }
0x188f   :  { %v5895_v16 = vsel %vm293_vm2, %v5810_v15, -inf }
0x1892   :  { %v5558_v54 = vpop.f32.mrb[64].mxu0 }
0x1893   :  { %v15240_v35 = vpop.f32.mrb[65].mxu0 }
0x1896   :  { %v5733_v7 = vpop.f32.mrb[66].mxu0 }
0x1897   :  { %v5734_v2 = vadd.f32 %v5733_v7, %v17379_v57  ;;  %v15250_v17 = vpop.f32.mrb[67].mxu0 }
0x1899   :  { %v5892_v4 = vsel %vm293_vm2, %v5734_v2, -inf }
0x189a   :  { %5893 = vmax.xlane.f32.xlu0 %v5892_v4  ;;  %v5885_v41 = vpop.f32.mrb[68].mxu0 }
0x189b   :  { %v5886_v24 = vadd.f32 %v5885_v41, %v17376_v5  ;;  %v15260_v44 = vpop.f32.mrb[69].mxu0 }
0x189d   :  { %v5898_v61 = vsel %vm293_vm2, %v5886_v24, -inf }
0x189e   :  { %5899 = vmax.xlane.f32.xlu1 %v5898_v61  ;;  %5896 = vmax.xlane.f32.xlu0 %v5895_v16 }
0x18af   :  { %6009 = vrot.lane.b32.xlu1 %v17845_v53, %s19466_s26 }
0x18b4   :  { %5933 = vrot.lane.b32.xlu0 %v17647_v19, %s19466_s26 }
0x18f9   :  { %v5891_v26 = vpop.xlane.xlu1 %5890 }
0x18fa   :  { %v5901_v57 = vsub.f32 %v5658_v52, %v5891_v26 }
0x18fc   :  { %v5905_v6 = vmul.f32 1.442695, %v5901_v57 }
0x18fe   :  { %16537 = vpow2.f32 %v5905_v6 }
0x1908   :  { %v16538_v59 = vpop.eup %16537 }
0x1909   :  { %v5913_v5 = vsel %vm293_vm2, %v16538_v59, 0.0 }
0x190a   :  { %5914 = vadd.xlane.f32.xlu0 %v5913_v5 }
0x1927   :  { %v5894_v38 = vpop.xlane.xlu0 %5893 }
0x1928   :  { %v5902_v23 = vsub.f32 %v5734_v2, %v5894_v38 }
0x192a   :  { %v5907_v42 = vmul.f32 1.442695, %v5902_v23 }
0x192b   :  { %v5897_v49 = vpop.xlane.xlu0 %5896  ;;  %v5900_v27 = vpop.xlane.xlu1 %5899 }
0x192c   :  { %16539 = vpow2.f32 %v5907_v42  ;;  %v5903_v8 = vsub.f32 %v5810_v15, %v5897_v49  ;;  %v5904_v12 = vsub.f32 %v5886_v24, %v5900_v27 }
0x192e   :  { %v5909_v53 = vmul.f32 1.442695, %v5903_v8  ;;  %v5911_v39 = vmul.f32 1.442695, %v5904_v12 }
0x192f   :  { %v5934_v1 = vpop.permute.xlu0 %5933  ;;  %v6010_v19 = vpop.permute.xlu1 %6009 }
0x1930   :  { %16541 = vpow2.f32 %v5909_v53  ;;  %15262 = vmatpush3.msra.mxu1 %v5934_v1  ;;  %15267 = vmatpush3.msra.mxu0 %v6010_v19  ;;  %v14194_v53 = vld [vmem:[%s19463_s7 + $0x30] sm:$0xff] }
0x1931   :  { %16543 = vpow2.f32 %v5911_v39  ;;  %15271 = vmatprep.subr.mxu1 %v16773_v25  ;;  %15276 = vmatprep.subr.mxu0 %v16773_v25  ;;  %v14195_v39 = vld [vmem:[%s19463_s7 + $0x38] sm:$0xff] }
0x1932   :  { %v15962_v1 = vpack.c.bf16 %v14195_v39, %v14194_v53 }
0x1936   :  { %v16540_v63 = vpop.eup %16539 }
0x1937   :  { %v5916_v3 = vsel %vm293_vm2, %v16540_v63, 0.0 }
0x1938   :  { %5917 = vadd.xlane.f32.xlu1 %v5916_v3 }
0x193a   :  { %v16542_v21 = vpop.eup %16541 }
0x193b   :  { %v16544_v28 = vpop.eup %16543  ;;  %v5919_v46 = vsel %vm293_vm2, %v16542_v21, 0.0 }
0x193c   :  { %5920 = vadd.xlane.f32.xlu0 %v5919_v46  ;;  %v5922_v18 = vsel %vm293_vm2, %v16544_v28, 0.0 }
0x193d   :  { %5923 = vadd.xlane.f32.xlu1 %v5922_v18 }
0x194e   :  { %6085 = vrot.lane.b32.xlu1 %v17847_v40, %s19466_s26  ;;  %v14183_v40 = vld [vmem:[%s19462_s29 + $0x28] sm:$0xff] }
0x1952   :  { %4214 = vrot.lane.b32.xlu1 %v17732_v48, %s19471_s5  ;;  %6161 = vrot.lane.b32.xlu0 %v17849_v50, %s19466_s26 }
0x1956   :  { %4889 = vrot.lane.b32.xlu1 %v17819_v60, %s19471_s5  ;;  %4219 = vrot.lane.b32.xlu0 %v17734_v22, %s19464_s2 }
0x195a   :  { %4894 = vrot.lane.b32.xlu1 %v17821_v31, %s19464_s2  ;;  %4224 = vrot.lane.b32.xlu0 %v17736_v56, %s19472_s28 }
0x195e   :  { %5564 = vrot.lane.b32.xlu1 %v17908_v58, %s19471_s5  ;;  %4899 = vrot.lane.b32.xlu0 %v17823_v62, %s19472_s28  ;;  %v14182_v62 = vld [vmem:[%s19462_s29 + $0x20] sm:$0xff] }
0x195f   :  { %v15950_v45 = vpack.c.bf16 %v14183_v40, %v14182_v62  ;;  %v14191_v40 = vld [vmem:[%s19465_s6 + $0x1] ss:$0 sm:$0xff]  ;;  %s19480_s6 = sld [smem:[#allocation20_spill]] }
0x1962   :  { %5569 = vrot.lane.b32.xlu0 %v17906_v32, %s19464_s2  ;;  %v14184_v32 = vld [vmem:[%s19462_s29 + $0x30] sm:$0xff] }
0x1963   :  { %v15954_v37 = vpack.c.bf16 %v14185_v20, %v14184_v32 }
0x1966   :  { %5574 = vrot.lane.b32.xlu0 %v5558_v54, %s19472_s28 }
0x1997   :  { %v5915_v48 = vpop.xlane.xlu0 %5914 }
0x1998   :  { %16545 = vrcp.f32 %v5915_v48 }
0x19a2   :  { %v16546_v22 = vpop.eup %16545 }
0x19a3   :  { %v5926_v60 = vmul.f32 %v16546_v22, %v16538_v59 }
0x19a5   :  { %15264 = vmatmul.mubr.msk.f32.vlgmr.msra.gmra.mrb[70].mxu1 %vm293_vm2, %v5926_v60 }
0x19a6   :  { %15273 = vmatprep.mubr.msk.f32.mxu1 %vm16774_vm1, %v16773_v25 }
0x19c5   :  { %v5918_v56 = vpop.xlane.xlu1 %5917 }
0x19c6   :  { %16547 = vrcp.f32 %v5918_v56 }
0x19c9   :  { %v5921_v31 = vpop.xlane.xlu0 %5920 }
0x19ca   :  { %16549 = vrcp.f32 %v5921_v31  ;;  %v5924_v50 = vpop.xlane.xlu1 %5923 }
0x19cb   :  { %16551 = vrcp.f32 %v5924_v50 }
0x19cd   :  { %v6162_v29 = vpop.permute.xlu0 %6161 }
0x19ce   :  { %v6086_v9 = vpop.permute.xlu1 %6085 }
0x19cf   :  { %15272 = vmatpush3.msra.mxu1 %v6086_v9 }
0x19d0   :  { %v16548_v10 = vpop.eup %16547  ;;  %15951 = vmatprep.subr.bf16.mxu1 %v15950_v45 }
0x19d1   :  { %v4220_v11 = vpop.permute.xlu0 %4219  ;;  %v5928_v14 = vmul.f32 %v16548_v10, %v16540_v63  ;;  %v18023_v10 = vld [vmem:[%s19473_s1 + $0x8] sm:$0xf] }
0x19d2   :  { %v4215_v51 = vpop.permute.xlu1 %4214 }
0x19d3   :  { %4217 = vst.msk [vmem:[#allocation2] sm:$0xff] %vm949_vm3, %v4215_v51  ;;  %15269 = vmatmul.mubr.msk.f32.vlgmr.msra.gmra.mrb[70].mxu0 %vm293_vm2, %v5928_v14  ;;  %v18031_v51 = vld [vmem:[%s19473_s1] sm:$0xff]  ;;  %s19474_s1 = sld [smem:[#allocation12_spill]] }
0x19d4   :  { %v16550_v58 = vpop.eup %16549  ;;  %4222 = vst.msk [vmem:[#allocation2] sm:$0xff] %vm955_vm4, %v4220_v11  ;;  %15277 = vmatpush3.msra.mxu0 %v6162_v29  ;;  %15278 = vmatprep.mubr.msk.f32.mxu0 %vm16774_vm1, %v16773_v25 }
0x19d5   :  { %v16552_v55 = vpop.eup %16551  ;;  %v4225_v0 = vpop.permute.xlu0 %4224  ;;  %v5930_v52 = vmul.f32 %v16550_v58, %v16542_v21  ;;  %v6728_v58 = vmul.f32 %v18023_v10, %v18023_v10 }
0x19d6   :  { %4227 = vst.msk [vmem:[#allocation2] sm:$0xff] %vm961_vm5, %v4225_v0  ;;  %v4890_v30 = vpop.permute.xlu1 %4889  ;;  %v5932_v47 = vmul.f32 %v16552_v55, %v16544_v28 }
0x19d7   :  { %4892 = vst.msk [vmem:[#allocation2 + $0x8] sm:$0xff] %vm949_vm3, %v4890_v30  ;;  %15274 = vmatmul.mubr.msk.f32.vlgmr.msra.gmra.mrb[72].mxu1 %vm293_vm2, %v5930_v52  ;;  %v6752_v30 = vld [vmem:[%s19399_s15] sm:$0xff] }
0x19d8   :  { %15279 = vmatmul.mubr.msk.f32.vlgmr.msra.gmra.mrb[72].mxu0 %vm293_vm2, %v5932_v47  ;;  %15953 = vmatpush3.bf16.msra.mxu1 %v15950_v45  ;;  %v6753_v47 = vld [vmem:[%s19399_s15 + $0x8] sm:$0xff] }
0x19d9   :  { %v4900_v43 = vpop.permute.xlu0 %4899  ;;  %15955 = vmatprep.subr.bf16.mxu1 %v15954_v37 }
0x19da   :  { %v4895_v54 = vpop.permute.xlu1 %4894 }
0x19db   :  { %4897 = vst.msk [vmem:[#allocation2 + $0x8] sm:$0xff] %vm955_vm4, %v4895_v54  ;;  %v6754_v54 = vld [vmem:[%s19399_s15 + $0x10] sm:$0xff] }
0x19dc   :  { %4902 = vst.msk [vmem:[#allocation2 + $0x8] sm:$0xff] %vm961_vm5, %v4900_v43  ;;  %15957 = vmatpush3.bf16.msra.mxu1 %v15954_v37  ;;  %v15982_v43 = vpack.c.bf16 %v6753_v47, %v6752_v30 }
0x19dd   :  { %v5570_v35 = vpop.permute.xlu0 %5569  ;;  %v6253_v7 = vld [vmem:[#allocation2] sm:$0xff] }
0x19de   :  { %v5565_v2 = vpop.permute.xlu1 %5564  ;;  %15289 = vmatprep.mubr.msk.f32.mxu1 %vm143_vm0, %v6253_v7 }
0x19df   :  { %5567 = vst.msk [vmem:[#allocation2 + $0x10] sm:$0xff] %vm949_vm3, %v5565_v2 }
0x19e0   :  { %5572 = vst.msk [vmem:[#allocation2 + $0x10] sm:$0xff] %vm955_vm4, %v5570_v35  ;;  %v6755_v35 = vld [vmem:[%s19399_s15 + $0x18] sm:$0xff] }
0x19e1   :  { %v5575_v17 = vpop.permute.xlu0 %5574  ;;  %v15986_v7 = vpack.c.bf16 %v6755_v35, %v6754_v54 }
0x19e2   :  { %5577 = vst.msk [vmem:[#allocation2 + $0x10] sm:$0xff] %vm961_vm5, %v5575_v17 }
0x19e3   :  { %v6254_v15 = vld [vmem:[#allocation2 + $0x8] sm:$0xff] }
0x19e4   :  { %15290 = vmatmul.mubr.msk.f32.vlgmr.msra.gmra.mrb[74].mxu1 %vm143_vm0, %v6254_v15 }
0x19e9   :  { %v6255_v4 = vld [vmem:[#allocation2 + $0x10] sm:$0xff] }
0x19ea   :  { %15292 = vmatprep.mubr.msk.f32.mxu1 %vm143_vm0, %v6255_v4 }
0x1a78   :  { %v6005_v41 = vpop.f32.mrb[70].mxu1 }
0x1a79   :  { %6237 = vst.msk [vmem:[#allocation2 + $0x18] sm:$0xff] %vm293_vm2, %v6005_v41  ;;  %v15265_v24 = vpop.f32.mrb[71].mxu1 }
0x1aa6   :  { %v6081_v44 = vpop.f32.mrb[70].mxu0 }
0x1aa7   :  { %6239 = vrot.lane.b32.xlu1 %v6081_v44, %s19471_s5  ;;  %v15270_v61 = vpop.f32.mrb[71].mxu0 }
0x1aaa   :  { %v6157_v16 = vpop.f32.mrb[72].mxu1 }
0x1aab   :  { %v6233_v26 = vpop.f32.mrb[72].mxu0  ;;  %6244 = vrot.lane.b32.xlu1 %v6157_v16, %s19464_s2  ;;  %v15275_v57 = vpop.f32.mrb[73].mxu1 }
0x1aac   :  { %6249 = vrot.lane.b32.xlu0 %v6233_v26, %s19472_s28  ;;  %v15280_v6 = vpop.f32.mrb[73].mxu0 }
0x1ab7   :  { %v15291_v59 = vpop.f32.mrb[74].mxu1 }
0x1ab8   :  { %v6340_v5 = vpop.f32.mrb[75].mxu1  ;;  %v17986_v38 = vadd.f32 %v15291_v59, %v17538_v13  ;;  %v14192_v13 = vld [vmem:[%s19463_s7 + $0x20] sm:$0xff] }
0x1ab9   :  { %v17989_v23 = vadd.f32 %v6340_v5, %v17541_v36  ;;  %v14193_v36 = vld [vmem:[%s19463_s7 + $0x28] sm:$0xff] }
0x1aba   :  { %v6366_v42 = vmul.f32 %v17986_v38, %v17986_v38  ;;  %v15958_v12 = vpack.c.bf16 %v14193_v36, %v14192_v13 }
0x1abb   :  { %v6365_v27 = vmul.f32 %v17989_v23, %v17989_v23 }
0x1abc   :  { %v6372_v49 = vsel %vm143_vm0, %v6366_v42, 0.0  ;;  %15959 = vmatprep.subr.bf16.mxu0 %v15958_v12 }
0x1abd   :  { %v6369_v8 = vsel %vm143_vm0, %v6365_v27, 0.0  ;;  %15961 = vmatpush3.bf16.msra.mxu0 %v15958_v12  ;;  %v14213_v12 = vld [vmem:[%s19398_s14] ss:$0 sm:$0xff] }
0x1abe   :  { %15963 = vmatprep.subr.bf16.mxu0 %v15962_v1 }
0x1ac1   :  { %15965 = vmatpush3.bf16.msra.mxu0 %v15962_v1 }
0x1ac2   :  { %15983 = vmatprep.subr.bf16.mxu0 %v15982_v43 }
0x1acb   :  { %6373 = vadd.xlane.f32.xlu0 %v6372_v49 }
0x1acf   :  { %6370 = vadd.xlane.f32.xlu1 %v6369_v8 }
0x1b19   :  { %v6240_v19 = vpop.permute.xlu1 %6239 }
0x1b1a   :  { %6242 = vst.msk [vmem:[#allocation2 + $0x18] sm:$0xff] %vm949_vm3, %v6240_v19  ;;  %vm18455_vm3 = vmpackc.low %vm293_vm2, %vm293_vm2 }
0x1b1d   :  { %v6245_v63 = vpop.permute.xlu1 %6244 }
0x1b1e   :  { %v6250_v3 = vpop.permute.xlu0 %6249  ;;  %6247 = vst.msk [vmem:[#allocation2 + $0x18] sm:$0xff] %vm955_vm4, %v6245_v63  ;;  %vm8846_vm4 = vcmask 128000  }
0x1b1f   :  { %6252 = vst.msk [vmem:[#allocation2 + $0x18] sm:$0xff] %vm961_vm5, %v6250_v3  ;;  %vm8897_vm5 = vcmask 130048  }
0x1b26   :  { %v6256_v21 = vld [vmem:[#allocation2 + $0x18] sm:$0xff] }
0x1b27   :  { %15293 = vmatmul.mubr.msk.f32.gmra.mrb[76].mxu1 %vm143_vm0, %v6256_v21  ;;  %v14200_v21 = vld [vmem:[%s19396_s12 + $0x40] sm:$0xff] }
0x1b58   :  { %v6374_v28 = vpop.xlane.xlu0 %6373 }
0x1b59   :  { %v6382_v46 = vmul.f32 0.03125, %v6374_v28  ;;  %v14201_v28 = vld [vmem:[%s19396_s12 + $0x48] sm:$0xff] }
0x1b5b   :  { %v6386_v18 = vadd.f32 1e-06, %v6382_v46  ;;  %v14202_v46 = vld [vmem:[%s19396_s12 + $0x50] sm:$0xff] }
0x1b5c   :  { %v6371_v48 = vpop.xlane.xlu1 %6370 }
0x1b5d   :  { %v6381_v22 = vmul.f32 0.03125, %v6371_v48  ;;  %16553 = vrsqrt.f32 %v6386_v18  ;;  %v15966_v18 = vpack.c.bf16 %v14201_v28, %v14200_v21  ;;  %v14203_v48 = vld [vmem:[%s19396_s12 + $0x58] sm:$0xff] }
0x1b5f   :  { %v6385_v60 = vadd.f32 1e-06, %v6381_v22  ;;  %v15970_v22 = vpack.c.bf16 %v14203_v48, %v14202_v46  ;;  %15967 = vmatprep.subr.bf16.mxu1 %v15966_v18 }
0x1b60   :  { %15969 = vmatpush3.bf16.msra.mxu1 %v15966_v18 }
0x1b61   :  { %16555 = vrsqrt.f32 %v6385_v60  ;;  %15971 = vmatprep.subr.bf16.mxu1 %v15970_v22  ;;  %v14204_v60 = vld [vmem:[%s19396_s12 + $0x60] sm:$0xff] }
0x1b64   :  { %15973 = vmatpush3.bf16.msra.mxu1 %v15970_v22 }
0x1b67   :  { %v16554_v56 = vpop.eup %16553 }
0x1b68   :  { %v6394_v62 = vmul.f32 %v16554_v56, %v17986_v38  ;;  %v14205_v56 = vld [vmem:[%s19396_s12 + $0x68] sm:$0xff] }
0x1b6a   :  { %v6404_v29 = vmul.f32 %v14191_v40, %v6394_v62  ;;  %v14206_v62 = vld [vmem:[%s19396_s12 + $0x70] sm:$0xff] }
0x1b6b   :  { %v16556_v31 = vpop.eup %16555 }
0x1b6c   :  { %v6393_v50 = vmul.f32 %v16556_v31, %v17989_v23  ;;  %v15974_v31 = vpack.c.bf16 %v14205_v56, %v14204_v60 }
0x1b6e   :  { %v6403_v45 = vmul.f32 %v14191_v40, %v6393_v50  ;;  %15975 = vmatprep.subr.bf16.mxu1 %v15974_v31 }
0x1b6f   :  { %15977 = vmatpush3.bf16.msra.mxu1 %v15974_v31 }
0x1b70   :  { %15303 = vmatprep.mubr.msk.f32.mxu0 %vm143_vm0, %v6403_v45 }
0x1b71   :  { %15304 = vmatmul.mubr.msk.f32.vlgmr.msra.gmra.mrb[74].mxu0 %vm143_vm0, %v6404_v29 }
0x1b72   :  { %15985 = vmatpush3.bf16.msra.mxu0 %v15982_v43 }
0x1b73   :  { %15987 = vmatprep.subr.bf16.mxu0 %v15986_v7 }
0x1b76   :  { %15989 = vmatpush3.bf16.msra.mxu0 %v15986_v7 }
0x1b77   :  { %15342 = vmatprep.subr.mxu0 %v16773_v25 }
0x1bfa   :  { %v15294_v9 = vpop.f32.mrb[76].mxu1 }
0x1bfb   :  { %v18026_v11 = vadd.f32 %v15294_v9, %v17590_v33  ;;  %v6350_v14 = vpop.f32.mrb[77].mxu1  ;;  %v6727_v33 = vmul.f32 %v18031_v51, %v18031_v51 }
0x1bfc   :  { %v18034_v32 = vadd.f32 %v6350_v14, %v17593_v34  ;;  %v6733_v34 = vsel %vm6732_vm7, %v6728_v58, 0.0 }
0x1bfd   :  { %v6368_v20 = vmul.f32 %v18026_v11, %v18026_v11  ;;  %v6729_v37 = vsel %vm143_vm0, %v6727_v33, 0.0 }
0x1bfe   :  { %v6367_v55 = vmul.f32 %v18034_v32, %v18034_v32 }
0x1bff   :  { %v6378_v0 = vsel %vm143_vm0, %v6368_v20, 0.0 }
0x1c00   :  { %6379 = vadd.xlane.f32.xlu1 %v6378_v0  ;;  %v6375_v52 = vsel %vm143_vm0, %v6367_v55, 0.0 }
0x1c01   :  { %6376 = vadd.xlane.f32.xlu0 %v6375_v52 }
0x1c04   :  { %6734 = vadd.xlane.f32.xlu1 %v6733_v34 }
0x1c05   :  { %6730 = vadd.xlane.f32.xlu0 %v6729_v37 }
0x1c44   :  { %v18061_v2 = vpop.f32.mrb[74].mxu0 }
0x1c45   :  { %v18063_v17 = vpop.f32.mrb[75].mxu0  ;;  %v6514_v33 = vmul.f32 0.044715, %v18061_v2 }
0x1c46   :  { %v6513_v0 = vmul.f32 0.044715, %v18063_v17 }
0x1c47   :  { %v6518_v52 = vmul.f32 %v18061_v2, %v6514_v33 }
0x1c48   :  { %v6517_v34 = vmul.f32 %v6513_v0, %v18063_v17 }
0x1c49   :  { %v6522_v30 = vmul.f32 %v18061_v2, %v6518_v52 }
0x1c4a   :  { %v6521_v43 = vmul.f32 %v6517_v34, %v18063_v17 }
0x1c4b   :  { %v6526_v54 = vadd.f32 %v18061_v2, %v6522_v30 }
0x1c4c   :  { %v6525_v35 = vadd.f32 %v6521_v43, %v18063_v17 }
0x1c8d   :  { %v6380_v15 = vpop.xlane.xlu1 %6379 }
0x1c8e   :  { %v6384_v4 = vmul.f32 0.03125, %v6380_v15  ;;  %v6377_v41 = vpop.xlane.xlu0 %6376  ;;  %v6530_v15 = vmul.f32 0.7978846, %v6526_v54  ;;  %v18206_v54 = vld [vmem:[%s19474_s1 + $0x10] sm:$0x3f] }
0x1c8f   :  { %v6383_v24 = vmul.f32 0.03125, %v6377_v41 }
0x1c90   :  { %v6388_v44 = vadd.f32 1e-06, %v6384_v4  ;;  %v6529_v4 = vmul.f32 0.7978846, %v6525_v35 }
0x1c91   :  { %v6387_v61 = vadd.f32 1e-06, %v6383_v24  ;;  %v6735_v16 = vpop.xlane.xlu1 %6734 }
0x1c92   :  { %16557 = vrsqrt.f32 %v6388_v44  ;;  %v6731_v26 = vpop.xlane.xlu0 %6730  ;;  %v6737_v57 = vmul.f32 0.03125, %v6735_v16 }
0x1c93   :  { %16559 = vrsqrt.f32 %v6387_v61  ;;  %v6736_v6 = vmul.f32 0.03125, %v6731_v26 }
0x1c94   :  { %v6739_v59 = vadd.f32 1e-06, %v6737_v57 }
0x1c95   :  { %v6738_v5 = vadd.f32 1e-06, %v6736_v6 }
0x1c96   :  { %16561 = vrsqrt.f32 %v6739_v59 }
0x1c97   :  { %16563 = vrsqrt.f32 %v6738_v5 }
0x1c98   :  { %16565 = vtanh.f32 %v6530_v15 }
0x1c99   :  { %16567 = vtanh.f32 %v6529_v4 }
0x1c9c   :  { %v16558_v42 = vpop.eup %16557 }
0x1c9d   :  { %v16560_v49 = vpop.eup %16559  ;;  %v6396_v27 = vmul.f32 %v16558_v42, %v18026_v11 }
0x1c9e   :  { %v6395_v8 = vmul.f32 %v16560_v49, %v18034_v32  ;;  %v6509_v49 = vmul.f32 0.5, %v18063_v17 }
0x1c9f   :  { %v6406_v39 = vmul.f32 %v14191_v40, %v6396_v27  ;;  %v6510_v27 = vmul.f32 0.5, %v18061_v2 }
0x1ca0   :  { %v16562_v13 = vpop.eup %16561  ;;  %v6405_v36 = vmul.f32 %v14191_v40, %v6395_v8  ;;  %v14207_v40 = vld [vmem:[%s19396_s12 + $0x78] sm:$0xff] }
0x1ca1   :  { %v16564_v53 = vpop.eup %16563  ;;  %v6743_v1 = vmul.f32 %v16562_v13, %v18023_v10  ;;  %v15978_v50 = vpack.c.bf16 %v14207_v40, %v14206_v62 }
0x1ca2   :  { %15306 = vmatprep.mubr.msk.f32.mxu0 %vm143_vm0, %v6405_v36  ;;  %v6742_v19 = vmul.f32 %v16564_v53, %v18031_v51  ;;  %v16566_v44 = vpop.eup %16565 }
0x1ca3   :  { %15307 = vmatmul.mubr.msk.f32.gmra.mrb[76].mxu0 %vm143_vm0, %v6406_v39  ;;  %v6751_v63 = vmul.f32 %v14213_v12, %v6743_v1  ;;  %15979 = vmatprep.subr.bf16.mxu1 %v15978_v50  ;;  %v16568_v61 = vpop.eup %16567  ;;  %v6538_v6 = vadd.f32 1.0, %v16566_v44  ;;  %v18217_v44 = vld [vmem:[%s19474_s1 + $0x18] sm:$0x3f] }
0x1ca4   :  { %v6750_v3 = vmul.f32 %v14213_v12, %v6742_v19  ;;  %15981 = vmatpush3.bf16.msra.mxu1 %v15978_v50  ;;  %v6537_v57 = vadd.f32 1.0, %v16568_v61 }
0x1ca5   :  { %15357 = vmatprep.subr.mxu1 %v16773_v25  ;;  %v6542_v13 = vmul.f32 %v6538_v6, %v6510_v27 }
0x1ca6   :  { %15339 = vmatprep.mubr.msk.f32.mxu0 %vm143_vm0, %v6750_v3  ;;  %v6541_v8 = vmul.f32 %v6537_v57, %v6509_v49 }
0x1ca7   :  { %15340 = vmatmul.mubr.msk.f32.vlgmr.msra.gmra.mrb[78].mxu0 %vm143_vm0, %v6751_v63 }
0x1ca8   :  { %15344 = vmatprep.mubr.msk.f32.mxu0 %vm16774_vm1, %v16773_v25 }
0x1d76   :  { %v18102_v45 = vpop.f32.mrb[76].mxu0 }
0x1d77   :  { %v6500_v29 = vpop.f32.mrb[77].mxu0  ;;  %v6516_v3 = vmul.f32 0.044715, %v18102_v45  ;;  %v6512_v56 = vmul.f32 0.5, %v18102_v45 }
0x1d78   :  { %v6515_v37 = vmul.f32 0.044715, %v6500_v29  ;;  %v6511_v19 = vmul.f32 0.5, %v6500_v29 }
0x1d79   :  { %v6520_v21 = vmul.f32 %v18102_v45, %v6516_v3 }
0x1d7a   :  { %v18105_v9 = vpop.f32.mrb[78].mxu0  ;;  %v6519_v47 = vmul.f32 %v6515_v37, %v6500_v29  ;;  %v18200_v37 = vld [vmem:[%s19474_s1 + $0x8] sm:$0x3f] }
0x1d7b   :  { %v7532_v14 = vrot.slane %v18105_v9, 6  ;;  %v18108_v20 = vpop.f32.mrb[79].mxu0  ;;  %v6524_v28 = vmul.f32 %v18102_v45, %v6520_v21 }
0x1d7c   :  { %6840 = vrot.lane.b32.xlu1 %v18108_v20, %s19467_s4  ;;  %6838 = vrot.lane.b32.xlu0 %v18108_v20, %s19468_s30  ;;  %v7531_v58 = vrot.slane %v18108_v20, 6  ;;  %v6523_v7 = vmul.f32 %v6519_v47, %v6500_v29 }
0x1d7d   :  { %v6528_v46 = vadd.f32 %v18102_v45, %v6524_v28 }
0x1d7e   :  { %v18116_v55 = vsel %vm7530_vm8, %v7531_v58, %v7532_v14  ;;  %v6527_v41 = vadd.f32 %v6523_v7, %v6500_v29 }
0x1d7f   :  { %v6532_v18 = vmul.f32 0.7978846, %v6528_v46 }
0x1d80   :  { %6842 = vrot.lane.b32.xlu1 %v18108_v20, %s19469_s8  ;;  %6844 = vrot.lane.b32.xlu0 %v18108_v20, %s19470_s9  ;;  %v6531_v24 = vmul.f32 0.7978846, %v6527_v41 }
0x1d82   :  { %16569 = vtanh.f32 %v6531_v24 }
0x1d83   :  { %16571 = vtanh.f32 %v6532_v18 }
0x1d84   :  { %6549 = vrot.lane.b32.xlu1 %v18063_v17, %s19466_s26  ;;  %6551 = vrot.lane.b32.xlu0 %v18061_v2, %s19466_s26 }
0x1d88   :  { %6553 = vrot.lane.b32.xlu0 %v6500_v29, %s19466_s26 }
0x1d8c   :  { %v16570_v59 = vpop.eup %16569 }
0x1d8d   :  { %v6539_v36 = vadd.f32 1.0, %v16570_v59  ;;  %v16572_v48 = vpop.eup %16571 }
0x1d8e   :  { %v6540_v22 = vadd.f32 1.0, %v16572_v48 }
0x1d8f   :  { %v6543_v2 = vmul.f32 %v6539_v36, %v6511_v19 }
0x1d90   :  { %v6544_v31 = vmul.f32 %v6540_v22, %v6512_v56 }
0x1dee   :  { %v18135_v16 = vpop.permute.xlu1 %6840  ;;  %v18137_v26 = vpop.permute.xlu0 %6838 }
0x1def   :  { %6996 = vrot.lane.b32.xlu0 %v18135_v16, %s19470_s9  ;;  %6920 = vrot.lane.b32.xlu1 %v18137_v26, %s19470_s9 }
0x1df2   :  { %v18143_v5 = vpop.permute.xlu1 %6842  ;;  %v6845_v42 = vpop.permute.xlu0 %6844 }
0x1df3   :  { %6555 = vrot.lane.b32.xlu1 %v18102_v45, %s19466_s26  ;;  %15343 = vmatpush3.xpose.msk.msra.mxu0 %vm293_vm2, %v6845_v42  ;;  %v18189_v45 = vld [vmem:[%s19474_s1] sm:$0x3f] }
0x1df4   :  { %15347 = vmatprep.subr.mxu0 %v16773_v25 }
0x1df6   :  { %v6550_v12 = vpop.permute.xlu1 %6549  ;;  %15345 = vmatmul.mubr.msk.f32.vlgmr.msra.gmra.mrb[80].mxu0 %vm293_vm2, %v18108_v20  ;;  %v6552_v53 = vpop.permute.xlu0 %6551 }
0x1df7   :  { %v6561_v39 = vmul.f32 %v6550_v12, %v6541_v8  ;;  %v6562_v1 = vmul.f32 %v6552_v53, %v6542_v13  ;;  %7072 = vrot.lane.b32.xlu1 %v18143_v5, %s19470_s9  ;;  %15349 = vmatprep.mubr.msk.f32.mxu0 %vm16774_vm1, %v16773_v25 }
0x1df9   :  { %15325 = vmatprep.mubr.msk.f32.mxu1 %vm3305_vm6, %v6561_v39 }
0x1dfa   :  { %15326 = vmatmul.mubr.msk.f32.vlgmr.msra.gmra.mrb[78].mxu1 %vm3305_vm6, %v6562_v1  ;;  %v6554_v17 = vpop.permute.xlu0 %6553 }
0x1dfb   :  { %v6563_v63 = vmul.f32 %v6554_v17, %v6543_v2 }
0x1dfd   :  { %15328 = vmatprep.mubr.msk.f32.mxu1 %vm3305_vm6, %v6563_v63 }
0x1e61   :  { %v6921_v60 = vpop.permute.xlu1 %6920  ;;  %v6997_v62 = vpop.permute.xlu0 %6996 }
0x1e62   :  { %15348 = vmatpush3.xpose.msk.msra.mxu0 %vm293_vm2, %v6921_v60 }
0x1e63   :  { %15352 = vmatprep.subr.mxu0 %v16773_v25 }
0x1e65   :  { %v6556_v40 = vpop.permute.xlu1 %6555  ;;  %15350 = vmatmul.mubr.msk.f32.vlgmr.msra.gmra.mrb[82].mxu0 %vm293_vm2, %v18137_v26 }
0x1e66   :  { %v6564_v50 = vmul.f32 %v6556_v40, %v6544_v31  ;;  %15353 = vmatpush3.xpose.msk.msra.mxu0 %vm293_vm2, %v6997_v62  ;;  %15354 = vmatprep.mubr.msk.f32.mxu0 %vm16774_vm1, %v16773_v25 }
0x1e67   :  { %15362 = vmatprep.subr.mxu0 %v16773_v25 }
0x1e68   :  { %15329 = vmatmul.mubr.msk.f32.gmra.mrb[80].mxu1 %vm3305_vm6, %v6564_v50  ;;  %v7689_v50 = vrot.slane %v18135_v16, 6 }
0x1e69   :  { %v7073_v29 = vpop.permute.xlu1 %7072  ;;  %15355 = vmatmul.mubr.msk.f32.vlgmr.msra.gmra.mrb[84].mxu0 %vm293_vm2, %v18135_v16  ;;  %15359 = vmatprep.mubr.msk.f32.mxu1 %vm16774_vm1, %v16773_v25 }
0x1e6a   :  { %15358 = vmatpush3.xpose.msk.msra.mxu1 %vm293_vm2, %v7073_v29  ;;  %15364 = vmatprep.mubr.msk.f32.mxu0 %vm16774_vm1, %v16773_v25  ;;  %v7610_v29 = vrot.slane %v18137_v26, 6 }
0x1e6b   :  { %15367 = vmatprep.subr.mxu1 %v16773_v25 }
0x1e6d   :  { %15360 = vmatmul.mubr.msk.f32.vlgmr.msra.gmra.mrb[82].mxu1 %vm293_vm2, %v18143_v5 }
0x1e6e   :  { %15369 = vmatprep.mubr.msk.f32.mxu1 %vm16774_vm1, %v16773_v25 }
0x1ec9   :  { %v6916_v14 = vpop.f32.mrb[80].mxu0 }
0x1eca   :  { %v6917_v58 = vadd.f32 %v6916_v14, %v18189_v45  ;;  %v15346_v33 = vpop.f32.mrb[81].mxu0 }
0x1ecc   :  { %v7149_v0 = vsel %vm7148_vm9, %v6917_v58, -inf }
0x1ecd   :  { %7150 = vmax.xlane.f32.xlu0 %v7149_v0  ;;  %v18193_v52 = vpop.f32.mrb[78].mxu1  ;;  %v7768_v0 = vrot.slane %v18143_v5, 6 }
0x1ece   :  { %v18195_v34 = vpop.f32.mrb[79].mxu1 }
0x1f38   :  { %v6992_v30 = vpop.f32.mrb[82].mxu0 }
0x1f39   :  { %v6993_v47 = vadd.f32 %v6992_v30, %v18200_v37  ;;  %v15351_v43 = vpop.f32.mrb[83].mxu0 }
0x1f3b   :  { %v18208_v35 = vpop.f32.mrb[80].mxu1  ;;  %v7152_v7 = vsel %vm7148_vm9, %v6993_v47, -inf }
0x1f3c   :  { %7153 = vmax.xlane.f32.xlu1 %v7152_v7  ;;  %v18211_v15 = vpop.f32.mrb[81].mxu1  ;;  %v7068_v4 = vpop.f32.mrb[84].mxu0 }
0x1f3d   :  { %v7069_v41 = vadd.f32 %v7068_v4, %v18206_v54  ;;  %v15356_v24 = vpop.f32.mrb[85].mxu0 }
0x1f3f   :  { %v7155_v61 = vsel %vm7148_vm9, %v7069_v41, -inf }
0x1f40   :  { %v7144_v57 = vpop.f32.mrb[82].mxu1  ;;  %7156 = vmax.xlane.f32.xlu0 %v7155_v61 }
0x1f41   :  { %v7145_v6 = vadd.f32 %v7144_v57, %v18217_v44  ;;  %v15361_v59 = vpop.f32.mrb[83].mxu1 }
0x1f43   :  { %v7158_v42 = vsel %vm7148_vm9, %v7145_v6, -inf }
0x1f44   :  { %7159 = vmax.xlane.f32.xlu0 %v7158_v42 }
0x1f4d   :  { %7524 = vrot.lane.b32.xlu1 %v18105_v9, %s19468_s30 }
0x1f51   :  { %7528 = vrot.lane.b32.xlu1 %v18105_v9, %s19469_s8 }
0x1f55   :  { %7272 = vrot.lane.b32.xlu1 %v18137_v26, %s19466_s26 }
0x1f59   :  { %7349 = vrot.lane.b32.xlu1 %v18135_v16, %s19466_s26 }
0x1f5a   :  { %7526 = vrot.lane.b32.xlu0 %v18105_v9, %s19467_s4  ;;  %v7151_v49 = vpop.xlane.xlu0 %7150 }
0x1f5b   :  { %v7161_v27 = vsub.f32 %v6917_v58, %v7151_v49 }
0x1f5d   :  { %7534 = vrot.lane.b32.xlu1 %v18116_v55, %s19470_s9  ;;  %v7165_v8 = vmul.f32 1.442695, %v7161_v27 }
0x1f5e   :  { %7193 = vrot.lane.b32.xlu0 %v18108_v20, %s19466_s26 }
0x1f5f   :  { %16573 = vpow2.f32 %v7165_v8 }
0x1f62   :  { %7426 = vrot.lane.b32.xlu0 %v18143_v5, %s19466_s26 }
0x1f69   :  { %v16574_v13 = vpop.eup %16573 }
0x1f6a   :  { %v7173_v36 = vsel %vm7148_vm9, %v16574_v13, 0.0 }
0x1f81   :  { %7174 = vadd.xlane.f32.xlu1 %v7173_v36 }
0x1fc9   :  { %v7154_v12 = vpop.xlane.xlu1 %7153 }
0x1fca   :  { %v7162_v53 = vsub.f32 %v6993_v47, %v7154_v12 }
0x1fcc   :  { %v7167_v9 = vmul.f32 1.442695, %v7162_v53 }
0x1fcd   :  { %v7525_v39 = vpop.permute.xlu1 %7524  ;;  %v7157_v1 = vpop.xlane.xlu0 %7156 }
0x1fce   :  { %16575 = vpow2.f32 %v7167_v9  ;;  %v7163_v19 = vsub.f32 %v7069_v41, %v7157_v1  ;;  %v7611_v40 = vrot.slane %v7525_v39, 6 }
0x1fd0   :  { %v7169_v2 = vmul.f32 1.442695, %v7163_v19  ;;  %v18254_v33 = vsel %vm7530_vm8, %v7610_v29, %v7611_v40 }
0x1fd1   :  { %v7529_v20 = vpop.permute.xlu1 %7528  ;;  %v7160_v17 = vpop.xlane.xlu0 %7159 }
0x1fd2   :  { %16577 = vpow2.f32 %v7169_v2  ;;  %v7164_v63 = vsub.f32 %v7145_v6, %v7160_v17  ;;  %v7769_v58 = vrot.slane %v7529_v20, 6 }
0x1fd4   :  { %v7171_v3 = vmul.f32 1.442695, %v7164_v63  ;;  %v18260_v30 = vsel %vm7530_vm8, %v7768_v0, %v7769_v58 }
0x1fd5   :  { %v7273_v21 = vpop.permute.xlu1 %7272  ;;  %v7527_v28 = vpop.permute.xlu0 %7526 }
0x1fd6   :  { %16579 = vpow2.f32 %v7171_v3  ;;  %15368 = vmatpush3.msk.msra.mxu1 %vm7199_vm10, %v7273_v21  ;;  %v7690_v62 = vrot.slane %v7527_v28, 6 }
0x1fd7   :  { %15377 = vmatprep.subr.mxu1 %v16773_v25 }
0x1fd8   :  { %v16576_v46 = vpop.eup %16575  ;;  %v18249_v14 = vsel %vm7530_vm8, %v7689_v50, %v7690_v62 }
0x1fd9   :  { %v7194_v18 = vpop.permute.xlu0 %7193  ;;  %v7176_v48 = vsel %vm7148_vm9, %v16576_v46, 0.0  ;;  %v7350_v16 = vpop.permute.xlu1 %7349 }
0x1fda   :  { %7177 = vadd.xlane.f32.xlu0 %v7176_v48  ;;  %15363 = vmatpush3.msk.msra.mxu0 %vm7199_vm10, %v7194_v18 }
0x1fdb   :  { %15372 = vmatprep.subr.mxu0 %v16773_v25 }
0x1fdc   :  { %v16578_v22 = vpop.eup %16577 }
0x1fdd   :  { %v7179_v60 = vsel %vm7148_vm9, %v16578_v22, 0.0  ;;  %v7535_v26 = vpop.permute.xlu1 %7534  ;;  %v7427_v5 = vpop.permute.xlu0 %7426 }
0x1fde   :  { %7180 = vadd.xlane.f32.xlu0 %v7179_v60 }
0x1fe0   :  { %v16580_v56 = vpop.eup %16579 }
0x1fe1   :  { %v7182_v31 = vsel %vm7148_vm9, %v16580_v56, 0.0 }
0x1fe2   :  { %7183 = vadd.xlane.f32.xlu1 %v7182_v31 }
0x1ff3   :  { %7692 = vrot.lane.b32.xlu1 %v18249_v14, %s19470_s9 }
0x1ff4   :  { %7613 = vrot.lane.b32.xlu0 %v18254_v33, %s19470_s9 }
0x1ff8   :  { %7771 = vrot.lane.b32.xlu0 %v18260_v30, %s19470_s9 }
0x200e   :  { %v7175_v47 = vpop.xlane.xlu1 %7174 }
0x200f   :  { %16581 = vrcp.f32 %v7175_v47 }
0x2019   :  { %v16582_v43 = vpop.eup %16581 }
0x201a   :  { %v7186_v7 = vmul.f32 %v16582_v43, %v16574_v13 }
0x201c   :  { %15365 = vmatmul.mubr.msk.f32.vlgmr.msra.gmra.mrb[86].mxu0 %vm7195_vm11, %v7186_v7 }
0x201d   :  { %15373 = vmatpush3.msk.msra.mxu0 %vm7199_vm10, %v7350_v16  ;;  %15374 = vmatprep.mubr.msk.f32.mxu0 %vm16774_vm1, %v16773_v25 }
0x201e   :  { %15382 = vmatprep.subr.mxu0 %v16773_v25 }
0x2067   :  { %v7178_v4 = vpop.xlane.xlu0 %7177 }
0x2068   :  { %16583 = vrcp.f32 %v7178_v4 }
0x206b   :  { %v7181_v41 = vpop.xlane.xlu0 %7180 }
0x206c   :  { %16585 = vrcp.f32 %v7181_v41 }
0x206f   :  { %v7184_v24 = vpop.xlane.xlu1 %7183  ;;  %v7614_v49 = vpop.permute.xlu0 %7613 }
0x2070   :  { %16587 = vrcp.f32 %v7184_v24 }
0x2072   :  { %v16584_v61 = vpop.eup %16583 }
0x2073   :  { %v7188_v57 = vmul.f32 %v16584_v61, %v16576_v46  ;;  %v7693_v8 = vpop.permute.xlu1 %7692  ;;  %v7772_v13 = vpop.permute.xlu0 %7771 }
0x2075   :  { %15370 = vmatmul.mubr.msk.f32.vlgmr.msra.gmra.mrb[84].mxu1 %vm7195_vm11, %v7188_v57 }
0x2076   :  { %v16586_v6 = vpop.eup %16585  ;;  %15378 = vmatpush3.msk.msra.mxu1 %vm7199_vm10, %v7427_v5  ;;  %15379 = vmatprep.mubr.msk.f32.mxu1 %vm16774_vm1, %v16773_v25 }
0x2077   :  { %v7190_v59 = vmul.f32 %v16586_v6, %v16578_v22  ;;  %15387 = vmatprep.subr.mxu1 %v16773_v25 }
0x2079   :  { %15375 = vmatmul.mubr.msk.f32.vlgmr.msra.gmra.mrb[88].mxu0 %vm7195_vm11, %v7190_v59 }
0x207a   :  { %v16588_v42 = vpop.eup %16587  ;;  %15383 = vmatpush3.xpose.msk.msra.mxu0 %vm293_vm2, %v7535_v26  ;;  %15384 = vmatprep.mubr.msk.f32.mxu0 %vm16774_vm1, %v16773_v25 }
0x207b   :  { %15392 = vmatprep.subr.mxu0 %v16773_v25  ;;  %v7192_v27 = vmul.f32 %v16588_v42, %v16580_v56  ;;  %v18334_v42 = vadd.f32 %v18195_v34, %v17989_v23 }
0x207d   :  { %15380 = vmatmul.mubr.msk.f32.vlgmr.msra.gmra.mrb[86].mxu1 %vm7195_vm11, %v7192_v27  ;;  %15385 = vmatmul.mubr.msk.f32.vlgmr.msra.gmra.mrb[90].mxu0 %vm293_vm2, %v18116_v55 }
0x207e   :  { %15388 = vmatpush3.xpose.msk.msra.mxu1 %vm293_vm2, %v7614_v49  ;;  %15393 = vmatpush3.xpose.msk.msra.mxu0 %vm293_vm2, %v7693_v8  ;;  %v6676_v49 = vmul.f32 %v18334_v42, %v18334_v42 }
0x207f   :  { %15389 = vmatprep.mubr.msk.f32.mxu1 %vm16774_vm1, %v16773_v25  ;;  %15394 = vmatprep.mubr.msk.f32.mxu0 %vm16774_vm1, %v16773_v25 }
0x2080   :  { %15397 = vmatprep.subr.mxu1 %v16773_v25  ;;  %15402 = vmatprep.subr.mxu0 %v16773_v25  ;;  %v6680_v27 = vsel %vm143_vm0, %v6676_v49, 0.0 }
0x2081   :  { %15390 = vmatmul.mubr.msk.f32.vlgmr.msra.gmra.mrb[88].mxu1 %vm293_vm2, %v18254_v33  ;;  %15395 = vmatmul.mubr.msk.f32.vlgmr.msra.gmra.mrb[92].mxu0 %vm293_vm2, %v18249_v14 }
0x2082   :  { %15398 = vmatpush3.xpose.msk.msra.mxu1 %vm293_vm2, %v7772_v13  ;;  %15399 = vmatprep.mubr.msk.f32.mxu1 %vm16774_vm1, %v16773_v25 }
0x2083   :  { %15407 = vmatprep.subr.mxu1 %v16773_v25  ;;  %15404 = vmatprep.mubr.msk.f32.mxu0 %vm16774_vm1, %v16773_v25 }
0x2085   :  { %15400 = vmatmul.mubr.msk.f32.vlgmr.msra.gmra.mrb[90].mxu1 %vm293_vm2, %v18260_v30 }
0x2086   :  { %15409 = vmatprep.mubr.msk.f32.mxu1 %vm16774_vm1, %v16773_v25 }
0x20ef   :  { %v7268_v36 = vpop.f32.mrb[86].mxu0 }
0x20f0   :  { %7504 = vst.msk [vmem:[#allocation3] sm:$0x3f] %vm7503_vm12, %v7268_v36  ;;  %v15366_v12 = vpop.f32.mrb[87].mxu0 }
0x2148   :  { %v7345_v53 = vpop.f32.mrb[84].mxu1 }
0x2149   :  { %v15371_v9 = vpop.f32.mrb[85].mxu1 }
0x214c   :  { %v7422_v39 = vpop.f32.mrb[88].mxu0 }
0x214d   :  { %v15376_v1 = vpop.f32.mrb[89].mxu0 }
0x2150   :  { %v7499_v19 = vpop.f32.mrb[86].mxu1  ;;  %v7606_v2 = vpop.f32.mrb[90].mxu0 }
0x2151   :  { %v7607_v20 = vadd.f32 %v7606_v2, %v18189_v45  ;;  %v15381_v17 = vpop.f32.mrb[87].mxu1  ;;  %v15386_v63 = vpop.f32.mrb[91].mxu0 }
0x2153   :  { %v7847_v3 = vsel %vm7148_vm9, %v7607_v20, -inf }
0x2154   :  { %7848 = vmax.xlane.f32.xlu1 %v7847_v3  ;;  %v7685_v21 = vpop.f32.mrb[88].mxu1  ;;  %v7764_v28 = vpop.f32.mrb[92].mxu0  ;;  %v8217_v3 = vld [vmem:[%s19400_s16] sm:$0xff] }
0x2155   :  { %v7686_v46 = vadd.f32 %v7685_v21, %v18200_v37  ;;  %v15391_v18 = vpop.f32.mrb[89].mxu1  ;;  %v15396_v48 = vpop.f32.mrb[93].mxu0  ;;  %v7765_v22 = vadd.f32 %v7764_v28, %v18206_v54  ;;  %v8218_v21 = vld [vmem:[%s19400_s16 + $0x8] sm:$0xff] }
0x2156   :  { %v8219_v48 = vld [vmem:[%s19400_s16 + $0x10] sm:$0xff] }
0x2157   :  { %v7850_v60 = vsel %vm7148_vm9, %v7686_v46, -inf  ;;  %v7853_v40 = vsel %vm7148_vm9, %v7765_v22, -inf }
0x2158   :  { %7851 = vmax.xlane.f32.xlu0 %v7850_v60  ;;  %v7843_v56 = vpop.f32.mrb[90].mxu1 }
0x2159   :  { %v7844_v31 = vadd.f32 %v7843_v56, %v18217_v44  ;;  %v15401_v45 = vpop.f32.mrb[91].mxu1 }
0x215b   :  { %v7856_v62 = vsel %vm7148_vm9, %v7844_v31, -inf }
0x215c   :  { %7857 = vmax.xlane.f32.xlu1 %v7856_v62  ;;  %7854 = vmax.xlane.f32.xlu0 %v7853_v40 }
0x216d   :  { %7968 = vrot.lane.b32.xlu1 %v18254_v33, %s19466_s26 }
0x2172   :  { %7891 = vrot.lane.b32.xlu0 %v18116_v55, %s19466_s26 }
0x21e1   :  { %v7849_v37 = vpop.xlane.xlu1 %7848 }
0x21e2   :  { %v7859_v54 = vsub.f32 %v7607_v20, %v7849_v37 }
0x21e4   :  { %v7863_v50 = vmul.f32 1.442695, %v7859_v54  ;;  %v6672_v54 = vadd.f32 %v18193_v52, %v17986_v38 }
0x21e5   :  { %v7852_v29 = vpop.xlane.xlu0 %7851 }
0x21e6   :  { %16589 = vpow2.f32 %v7863_v50  ;;  %v7860_v58 = vsub.f32 %v7686_v46, %v7852_v29  ;;  %v15990_v46 = vpack.c.bf16 %v8218_v21, %v8217_v3  ;;  %v6677_v50 = vmul.f32 %v6672_v54, %v6672_v54 }
0x21e8   :  { %v7865_v44 = vmul.f32 1.442695, %v7860_v58  ;;  %v6683_v29 = vsel %vm143_vm0, %v6677_v50, 0.0  ;;  %v8414_v58 = vld [vmem:[%s19403_s19] sm:$0xff] }
0x21e9   :  { %v7855_v0 = vpop.xlane.xlu0 %7854  ;;  %v7858_v16 = vpop.xlane.xlu1 %7857 }
0x21ea   :  { %16591 = vpow2.f32 %v7865_v44  ;;  %v7861_v26 = vsub.f32 %v7765_v22, %v7855_v0  ;;  %v7862_v47 = vsub.f32 %v7844_v31, %v7858_v16  ;;  %v8220_v22 = vld [vmem:[%s19400_s16 + $0x18] sm:$0xff]  ;;  %v8415_v44 = vld [vmem:[%s19403_s19 + $0x8] sm:$0xff] }
0x21eb   :  { %v15994_v56 = vpack.c.bf16 %v8220_v22, %v8219_v48  ;;  %v16006_v0 = vpack.c.bf16 %v8415_v44, %v8414_v58  ;;  %v14250_v58 = vld [vmem:[%s19401_s17] ss:$0 sm:$0xff] }
0x21ec   :  { %v7867_v43 = vmul.f32 1.442695, %v7861_v26  ;;  %v7869_v7 = vmul.f32 1.442695, %v7862_v47 }
0x21ed   :  { %v7892_v5 = vpop.permute.xlu0 %7891  ;;  %v7969_v4 = vpop.permute.xlu1 %7968 }
0x21ee   :  { %16593 = vpow2.f32 %v7867_v43  ;;  %15403 = vmatpush3.msk.msra.mxu0 %vm7199_vm10, %v7892_v5  ;;  %15408 = vmatpush3.msk.msra.mxu1 %vm7199_vm10, %v7969_v4  ;;  %v8416_v4 = vld [vmem:[%s19403_s19 + $0x10] sm:$0xff] }
0x21ef   :  { %16595 = vpow2.f32 %v7869_v7  ;;  %15412 = vmatprep.subr.mxu0 %v16773_v25  ;;  %15417 = vmatprep.subr.mxu1 %v16773_v25 }
0x21f0   :  { %v16590_v55 = vpop.eup %16589 }
0x21f1   :  { %v7871_v33 = vsel %vm7148_vm9, %v16590_v55, 0.0 }
0x21f2   :  { %7872 = vadd.xlane.f32.xlu0 %v7871_v33  ;;  %v18390_v33 = vld [vmem:[%s19397_s13] ss:$0 sm:$0xff] }
0x21f4   :  { %v16592_v41 = vpop.eup %16591 }
0x21f5   :  { %v7874_v24 = vsel %vm7148_vm9, %v16592_v41, 0.0 }
0x21f6   :  { %7875 = vadd.xlane.f32.xlu1 %v7874_v24 }
0x21f8   :  { %v16594_v61 = vpop.eup %16593 }
0x21f9   :  { %v16596_v57 = vpop.eup %16595  ;;  %v7877_v6 = vsel %vm7148_vm9, %v16594_v61, 0.0 }
0x21fa   :  { %7878 = vadd.xlane.f32.xlu0 %v7877_v6  ;;  %v7880_v59 = vsel %vm7148_vm9, %v16596_v57, 0.0 }
0x21fb   :  { %7881 = vadd.xlane.f32.xlu1 %v7880_v59 }
0x220c   :  { %8045 = vrot.lane.b32.xlu1 %v18249_v14, %s19466_s26 }
0x2210   :  { %7506 = vrot.lane.b32.xlu1 %v7345_v53, %s19471_s5  ;;  %8122 = vrot.lane.b32.xlu0 %v18260_v30, %s19466_s26 }
0x2214   :  { %7512 = vrot.lane.b32.xlu1 %v7422_v39, %s19464_s2 }
0x2218   :  { %7518 = vrot.lane.b32.xlu1 %v7499_v19, %s19472_s28 }
0x223c   :  { %6681 = vadd.xlane.f32.xlu1 %v6680_v27 }
0x227f   :  { %v7873_v14 = vpop.xlane.xlu0 %7872 }
0x2280   :  { %16597 = vrcp.f32 %v7873_v14 }
0x2283   :  { %v7876_v8 = vpop.xlane.xlu1 %7875 }
0x2284   :  { %16599 = vrcp.f32 %v7876_v8 }
0x2287   :  { %v7879_v13 = vpop.xlane.xlu0 %7878 }
0x2288   :  { %16601 = vrcp.f32 %v7879_v13  ;;  %v7882_v30 = vpop.xlane.xlu1 %7881  ;;  %v18406_v13 = vadd.f32 %v18208_v35, %v18026_v11 }
0x2289   :  { %16603 = vrcp.f32 %v7882_v30 }
0x228a   :  { %v16598_v36 = vpop.eup %16597  ;;  %v6679_v11 = vmul.f32 %v18406_v13, %v18406_v13 }
0x228b   :  { %v7884_v12 = vmul.f32 %v16598_v36, %v16590_v55  ;;  %v8123_v39 = vpop.permute.xlu0 %8122  ;;  %v8417_v55 = vld [vmem:[%s19403_s19 + $0x18] sm:$0xff] }
0x228c   :  { %v8046_v53 = vpop.permute.xlu1 %8045 }
0x228d   :  { %15405 = vmatmul.mubr.msk.f32.vlgmr.msra.gmra.mrb[94].mxu0 %vm7195_vm11, %v7884_v12  ;;  %v6673_v12 = vadd.f32 %v18211_v15, %v18034_v32  ;;  %v6689_v32 = vsel %vm143_vm0, %v6679_v11, 0.0  ;;  %v8329_v15 = vld [vmem:[%s19402_s18] sm:$0xff] }
0x228e   :  { %v16600_v23 = vpop.eup %16599  ;;  %15413 = vmatpush3.msk.msra.mxu0 %vm7199_vm10, %v8046_v53  ;;  %15414 = vmatprep.mubr.msk.f32.mxu0 %vm16774_vm1, %v16773_v25 }
0x228f   :  { %v7886_v34 = vmul.f32 %v16600_v23, %v16592_v41  ;;  %15991 = vmatprep.subr.bf16.mxu0 %v15990_v46 }
0x2290   :  { %v7507_v9 = vpop.permute.xlu1 %7506 }
0x2291   :  { %7510 = vst.msk [vmem:[#allocation3] sm:$0x3f] %vm7509_vm13, %v7507_v9  ;;  %15410 = vmatmul.mubr.msk.f32.vlgmr.msra.gmra.mrb[92].mxu1 %vm7195_vm11, %v7886_v34 }
0x2292   :  { %v16602_v1 = vpop.eup %16601  ;;  %15418 = vmatpush3.msk.msra.mxu1 %vm7199_vm10, %v8123_v39  ;;  %15419 = vmatprep.mubr.msk.f32.mxu1 %vm16774_vm1, %v16773_v25  ;;  %v8330_v39 = vld [vmem:[%s19402_s18 + $0x8] sm:$0xff] }
0x2293   :  { %v16604_v19 = vpop.eup %16603  ;;  %v7888_v2 = vmul.f32 %v16602_v1, %v16594_v61  ;;  %v16010_v61 = vpack.c.bf16 %v8417_v55, %v8416_v4  ;;  %v15998_v1 = vpack.c.bf16 %v8330_v39, %v8329_v15 }
0x2294   :  { %v7513_v20 = vpop.permute.xlu1 %7512  ;;  %v7890_v17 = vmul.f32 %v16604_v19, %v16596_v57  ;;  %v8331_v19 = vld [vmem:[%s19402_s18 + $0x10] sm:$0xff] }
0x2295   :  { %7516 = vst.msk [vmem:[#allocation3] sm:$0x3f] %vm7515_vm14, %v7513_v20  ;;  %15415 = vmatmul.mubr.msk.f32.vlgmr.msra.gmra.mrb[96].mxu0 %vm7195_vm11, %v7888_v2  ;;  %15999 = vmatprep.subr.bf16.mxu1 %v15998_v1  ;;  %v8332_v2 = vld [vmem:[%s19402_s18 + $0x18] sm:$0xff] }
0x2296   :  { %15420 = vmatmul.mubr.msk.f32.vlgmr.msra.gmra.mrb[94].mxu1 %vm7195_vm11, %v7890_v17  ;;  %15993 = vmatpush3.bf16.msra.mxu0 %v15990_v46  ;;  %v16002_v20 = vpack.c.bf16 %v8332_v2, %v8331_v19  ;;  %v16783_v17 = vmov 0.0|0.0  }
0x2297   :  { %15995 = vmatprep.subr.bf16.mxu0 %v15994_v56  ;;  %16001 = vmatpush3.bf16.msra.mxu1 %v15998_v1  ;;  %v14257_v1 = vld [vmem:[%s19477_s11] ss:$0 sm:$0xff] }
0x2298   :  { %v7519_v63 = vpop.permute.xlu1 %7518  ;;  %16003 = vmatprep.subr.bf16.mxu1 %v16002_v20 }
0x2299   :  { %7522 = vst.msk [vmem:[#allocation3] sm:$0x3f] %vm7521_vm15, %v7519_v63 }
0x229a   :  { %15997 = vmatpush3.bf16.msra.mxu0 %v15994_v56 }
0x229b   :  { %16007 = vmatprep.subr.bf16.mxu0 %v16006_v0  ;;  %16005 = vmatpush3.bf16.msra.mxu1 %v16002_v20 }
0x229c   :  { %16014 = vmatprep.subr.bf16.mxu1 %v16783_v17 }
0x22c9   :  { %v6682_v16 = vpop.xlane.xlu1 %6681 }
0x22ca   :  { %v6692_v26 = vmul.f32 0.03125, %v6682_v16 }
0x22cc   :  { %v6696_v47 = vadd.f32 1e-06, %v6692_v26 }
0x22ce   :  { %16605 = vrsqrt.f32 %v6696_v47 }
0x22d8   :  { %v16606_v7 = vpop.eup %16605 }
0x22d9   :  { %v6704_v5 = vmul.f32 %v16606_v7, %v18334_v42 }
0x22db   :  { %v18394_v57 = vmul.f32 %v18390_v33, %v6704_v5 }
0x2360   :  { %v7964_v28 = vpop.f32.mrb[94].mxu0 }
0x2361   :  { %8199 = vst.msk [vmem:[#allocation3 + $0x6] sm:$0x3f] %vm7503_vm12, %v7964_v28  ;;  %v15406_v18 = vpop.f32.mrb[95].mxu0 }
0x2364   :  { %v8041_v60 = vpop.f32.mrb[92].mxu1 }
0x2365   :  { %8201 = vrot.lane.b32.xlu0 %v8041_v60, %s19471_s5  ;;  %v15411_v31 = vpop.f32.mrb[93].mxu1 }
0x2368   :  { %v8118_v45 = vpop.f32.mrb[96].mxu0 }
0x2369   :  { %v8195_v62 = vpop.f32.mrb[94].mxu1  ;;  %8206 = vrot.lane.b32.xlu0 %v8118_v45, %s19464_s2  ;;  %v15416_v40 = vpop.f32.mrb[97].mxu0 }
0x236a   :  { %v15421_v37 = vpop.f32.mrb[95].mxu1 }
0x236d   :  { %8211 = vrot.lane.b32.xlu0 %v8195_v62, %s19472_s28 }
0x238c   :  { %6684 = vadd.xlane.f32.xlu0 %v6683_v29 }
0x23d7   :  { %v8202_v43 = vpop.permute.xlu0 %8201 }
0x23d8   :  { %8204 = vst.msk [vmem:[#allocation3 + $0x6] sm:$0x3f] %vm7509_vm13, %v8202_v43 }
0x23db   :  { %v8207_v38 = vpop.permute.xlu0 %8206 }
0x23dc   :  { %8209 = vst.msk [vmem:[#allocation3 + $0x6] sm:$0x3f] %vm7515_vm14, %v8207_v38 }
0x23df   :  { %v8212_v52 = vpop.permute.xlu0 %8211 }
0x23e0   :  { %8214 = vst.msk [vmem:[#allocation3 + $0x6] sm:$0x3f] %vm7521_vm15, %v8212_v52 }
0x23e7   :  { %v8215_v41 = vld [vmem:[#allocation3] sm:$0xff]  ;;  %v8216_v24 = vld [vmem:[#allocation3 + $0x8] sm:$0xf] }
0x23e8   :  { %15430 = vmatprep.mubr.msk.f32.mxu0 %vm143_vm0, %v8215_v41 }
0x23e9   :  { %15431 = vmatmul.mubr.msk.f32.vlgmr.msra.gmra.mrb[98].mxu0 %vm143_vm0, %v8216_v24 }
0x23ea   :  { %15452 = vmatprep.mubr.msk.f32.mxu0 %vm143_vm0, %v18394_v57  ;;  %16009 = vmatpush3.bf16.msra.mxu0 %v16006_v0 }
0x23eb   :  { %16011 = vmatprep.subr.bf16.mxu0 %v16010_v61 }
0x23ee   :  { %16013 = vmatpush3.bf16.msra.mxu0 %v16010_v61 }
0x23ef   :  { %16018 = vmatprep.subr.bf16.mxu0 %v16783_v17 }
0x2419   :  { %v6685_v6 = vpop.xlane.xlu0 %6684 }
0x241a   :  { %v6693_v59 = vmul.f32 0.03125, %v6685_v6 }
0x241c   :  { %v6697_v42 = vadd.f32 1e-06, %v6693_v59 }
0x241e   :  { %16607 = vrsqrt.f32 %v6697_v42 }
0x2428   :  { %v16608_v49 = vpop.eup %16607 }
0x2429   :  { %v6705_v27 = vmul.f32 %v16608_v49, %v6672_v54 }
0x242b   :  { %v18400_v14 = vmul.f32 %v18390_v33, %v6705_v27 }
0x242d   :  { %15453 = vmatmul.mubr.msk.f32.vlgmr.msra.gmra.mrb[100].mxu0 %vm143_vm0, %v18400_v14 }
0x24bc   :  { %v15432_v8 = vpop.f32.mrb[98].mxu0 }
0x24bd   :  { %v18409_v30 = vadd.f32 %v15432_v8, %v18023_v10  ;;  %v8293_v36 = vpop.f32.mrb[99].mxu0  ;;  %v6678_v10 = vmul.f32 %v6673_v12, %v6673_v12 }
0x24be   :  { %v18414_v53 = vadd.f32 %v8293_v36, %v18031_v51 }
0x24bf   :  { %v8306_v23 = vmul.f32 %v18409_v30, %v18409_v30  ;;  %v6686_v51 = vsel %vm143_vm0, %v6678_v10, 0.0 }
0x24c0   :  { %v8305_v34 = vmul.f32 %v18414_v53, %v18414_v53 }
0x24c1   :  { %v8310_v35 = vsel %vm6732_vm7, %v8306_v23, 0.0 }
0x24c2   :  { %8311 = vadd.xlane.f32.xlu1 %v8310_v35  ;;  %v8307_v9 = vsel %vm143_vm0, %v8305_v34, 0.0 }
0x24c3   :  { %8308 = vadd.xlane.f32.xlu0 %v8307_v9 }
0x24c6   :  { %6690 = vadd.xlane.f32.xlu1 %v6689_v32 }
0x24c7   :  { %6687 = vadd.xlane.f32.xlu0 %v6686_v51 }
0x2500   :  { %v15454_v63 = vpop.f32.mrb[100].mxu0 }
0x2501   :  { %v8496_v3 = vpop.f32.mrb[101].mxu0 }
0x2502   :  { %v16015_v21 = vpack.c.bf16 %v15454_v63, %v8496_v3  ;;  %v18440_v28 = vpack.i.bf16 %v15454_v63, %v8496_v3 }
0x2504   :  { %16257 = vrot.lane.b32.xlu1 %v18440_v28, %s19467_s4  ;;  %16252 = vrot.lane.b32.xlu0 %v18440_v28, %s19468_s30 }
0x2508   :  { %16262 = vrot.lane.b32.xlu0 %v18440_v28, %s19469_s8 }
0x254f   :  { %v8312_v46 = vpop.xlane.xlu1 %8311 }
0x2550   :  { %v8314_v18 = vmul.f32 0.03125, %v8312_v46  ;;  %v8309_v48 = vpop.xlane.xlu0 %8308 }
0x2551   :  { %v8313_v22 = vmul.f32 0.03125, %v8309_v48 }
0x2552   :  { %v8316_v60 = vadd.f32 1e-06, %v8314_v18 }
0x2553   :  { %v8315_v56 = vadd.f32 1e-06, %v8313_v22  ;;  %v6691_v31 = vpop.xlane.xlu1 %6690 }
0x2554   :  { %16609 = vrsqrt.f32 %v8316_v60  ;;  %v6695_v45 = vmul.f32 0.03125, %v6691_v31  ;;  %v6688_v62 = vpop.xlane.xlu0 %6687 }
0x2555   :  { %16611 = vrsqrt.f32 %v8315_v56  ;;  %v6694_v40 = vmul.f32 0.03125, %v6688_v62 }
0x2556   :  { %v6699_v37 = vadd.f32 1e-06, %v6695_v45 }
0x2557   :  { %v6698_v54 = vadd.f32 1e-06, %v6694_v40 }
0x2558   :  { %16613 = vrsqrt.f32 %v6699_v37 }
0x2559   :  { %16615 = vrsqrt.f32 %v6698_v54 }
0x255e   :  { %v16610_v50 = vpop.eup %16609 }
0x255f   :  { %v16612_v29 = vpop.eup %16611  ;;  %v8320_v44 = vmul.f32 %v16610_v50, %v18409_v30 }
0x2560   :  { %v8319_v0 = vmul.f32 %v16612_v29, %v18414_v53 }
0x2561   :  { %v8328_v43 = vmul.f32 %v14250_v58, %v8320_v44 }
0x2562   :  { %v16614_v16 = vpop.eup %16613  ;;  %v8327_v26 = vmul.f32 %v14250_v58, %v8319_v0 }
0x2563   :  { %v16616_v47 = vpop.eup %16615  ;;  %v6707_v52 = vmul.f32 %v16614_v16, %v18406_v13 }
0x2564   :  { %15441 = vmatprep.mubr.msk.f32.mxu1 %vm143_vm0, %v8327_v26  ;;  %v6706_v7 = vmul.f32 %v16616_v47, %v6673_v12 }
0x2565   :  { %15442 = vmatmul.mubr.msk.f32.vlgmr.msra.gmra.mrb[96].mxu1 %vm143_vm0, %v8328_v43  ;;  %v18470_v4 = vmul.f32 %v18390_v33, %v6707_v52 }
0x2566   :  { %16017 = vmatpush3.bf16.xpose.msk.msra.mxu1 %vm18455_vm3, %v16015_v21  ;;  %v18465_v5 = vmul.f32 %v18390_v33, %v6706_v7  ;;  %15462 = vmatprep.mubr.msk.f32.mxu1 %vm16774_vm1, %v16773_v25 }
0x2567   :  { %16022 = vmatprep.subr.bf16.mxu1 %v16783_v17 }
0x2568   :  { %15455 = vmatprep.mubr.msk.f32.mxu0 %vm143_vm0, %v18465_v5 }
0x2569   :  { %15456 = vmatmul.mubr.msk.f32.gmra.mrb[102].mxu0 %vm143_vm0, %v18470_v4 }
0x256a   :  { %15469 = vmatprep.mubr.msk.f32.mxu0 %vm16774_vm1, %v16773_v25 }
0x2576   :  { %v16253_v55 = vpop.permute.xlu0 %16252  ;;  %v16258_v41 = vpop.permute.xlu1 %16257 }
0x2577   :  { %v16255_v24 = vunpack.i.h.bf16 %v16253_v55  ;;  %v16254_v61 = vunpack.i.l.bf16 %v16253_v55  ;;  %v16260_v6 = vunpack.i.h.bf16 %v16258_v41  ;;  %v16259_v59 = vunpack.i.l.bf16 %v16258_v41 }
0x2579   :  { %v16019_v42 = vpack.c.bf16 %v16255_v24, %v16254_v61  ;;  %v16023_v12 = vpack.c.bf16 %v16260_v6, %v16259_v59 }
0x257a   :  { %v18479_v33 = vpop.permute.xlu0 %16262 }
0x257b   :  { %v16265_v49 = vunpack.i.h.bf16 %v18479_v33  ;;  %v16264_v27 = vunpack.i.l.bf16 %v18479_v33  ;;  %16021 = vmatpush3.bf16.xpose.msk.msra.mxu0 %vm18455_vm3, %v16019_v42 }
0x257c   :  { %16026 = vmatprep.subr.bf16.mxu0 %v16783_v17 }
0x257d   :  { %v16027_v32 = vpack.c.bf16 %v16265_v49, %v16264_v27 }
0x2638   :  { %v18486_v8 = vpop.f32.mrb[96].mxu1 }
0x2639   :  { %v9252_v13 = vrot.slane %v18486_v8, 6  ;;  %v8405_v36 = vpop.f32.mrb[97].mxu1 }
0x263a   :  { %v9251_v23 = vrot.slane %v8405_v36, 6  ;;  %8520 = vrot.lane.b32.xlu0 %v8405_v36, %s19469_s8  ;;  %8516 = vrot.lane.b32.xlu1 %v8405_v36, %s19468_s30 }
0x263b   :  { %15463 = vmatmul.mubr.msk.f32.vlgmr.msra.gmra.mrb[98].mxu1 %vm293_vm2, %v8405_v36 }
0x263c   :  { %16025 = vmatpush3.bf16.xpose.msk.msra.mxu1 %vm18455_vm3, %v16023_v12  ;;  %v18494_v34 = vpop.f32.mrb[102].mxu0  ;;  %15476 = vmatprep.mubr.msk.f32.mxu1 %vm16774_vm1, %v16773_v25  ;;  %v18499_v11 = vsel %vm7530_vm8, %v9251_v23, %v9252_v13 }
0x263d   :  { %v18501_v35 = vpop.f32.mrb[103].mxu0  ;;  %16030 = vmatprep.subr.bf16.mxu1 %v16783_v17 }
0x263e   :  { %v16043_v10 = vpack.c.bf16 %v18494_v34, %v18501_v35  ;;  %8518 = vrot.lane.b32.xlu1 %v8405_v36, %s19467_s4  ;;  %v18509_v9 = vpack.i.bf16 %v18494_v34, %v18501_v35 }
0x26ac   :  { %v18511_v51 = vpop.permute.xlu1 %8516  ;;  %v18526_v39 = vpop.permute.xlu0 %8520 }
0x26ad   :  { %15470 = vmatmul.mubr.msk.f32.vlgmr.msra.gmra.mrb[104].mxu0 %vm293_vm2, %v18511_v51 }
0x26ae   :  { %16029 = vmatpush3.bf16.xpose.msk.msra.mxu0 %vm18455_vm3, %v16027_v32  ;;  %15483 = vmatprep.mubr.msk.f32.mxu0 %vm16774_vm1, %v16773_v25 }
0x26af   :  { %16036 = vmatprep.subr.bf16.mxu0 %v16783_v17 }
0x26b0   :  { %v18520_v15 = vpop.permute.xlu1 %8518 }
0x26b1   :  { %15477 = vmatmul.mubr.msk.f32.vlgmr.msra.gmra.mrb[100].mxu1 %vm293_vm2, %v18520_v15 }
0x26b2   :  { %15490 = vmatprep.mubr.msk.f32.mxu1 %vm16774_vm1, %v16773_v25 }
0x26b5   :  { %15484 = vmatmul.mubr.msk.f32.vlgmr.msra.gmra.mrb[106].mxu0 %vm293_vm2, %v18526_v39 }
0x26b6   :  { %15504 = vmatprep.mubr.msk.f32.mxu0 %vm16774_vm1, %v16773_v25 }
0x270e   :  { %v8614_v19 = vpop.f32.mrb[98].mxu1 }
0x270f   :  { %v8615_v2 = vadd.f32 %v14257_v1, %v8614_v19  ;;  %v15464_v20 = vpop.f32.mrb[99].mxu1 }
0x2711   :  { %v8847_v63 = vsel %vm8846_vm4, %v8615_v2, -inf }
0x2712   :  { %8848 = vmax.xlane.f32.xlu1 %v8847_v63 }
0x2723   :  { %16272 = vrot.lane.b32.xlu1 %v16253_v55, %s19470_s9 }
0x2780   :  { %v8690_v3 = vpop.f32.mrb[104].mxu0 }
0x2781   :  { %v8691_v21 = vadd.f32 %v14257_v1, %v8690_v3  ;;  %v15471_v46 = vpop.f32.mrb[105].mxu0 }
0x2783   :  { %v8850_v18 = vsel %vm8846_vm4, %v8691_v21, -inf }
0x2784   :  { %8851 = vmax.xlane.f32.xlu0 %v8850_v18  ;;  %v8766_v48 = vpop.f32.mrb[100].mxu1 }
0x2785   :  { %v8767_v22 = vadd.f32 %v14257_v1, %v8766_v48  ;;  %v15478_v60 = vpop.f32.mrb[101].mxu1 }
0x2787   :  { %v8853_v56 = vsel %vm8846_vm4, %v8767_v22, -inf }
0x2788   :  { %v8842_v31 = vpop.f32.mrb[106].mxu0  ;;  %8854 = vmax.xlane.f32.xlu0 %v8853_v56 }
0x2789   :  { %v8843_v45 = vadd.f32 %v14257_v1, %v8842_v31  ;;  %v15485_v62 = vpop.f32.mrb[107].mxu0 }
0x278b   :  { %v8856_v40 = vsel %vm8846_vm4, %v8843_v45, -inf }
0x278c   :  { %8857 = vmax.xlane.f32.xlu1 %v8856_v40 }
0x279d   :  { %16277 = vrot.lane.b32.xlu1 %v16258_v41, %s19470_s9 }
0x279e   :  { %16267 = vrot.lane.b32.xlu0 %v18440_v28, %s19470_s9 }
0x279f   :  { %v8849_v37 = vpop.xlane.xlu1 %8848 }
0x27a0   :  { %v8859_v54 = vsub.f32 %v8615_v2, %v8849_v37 }
0x27a2   :  { %v8863_v50 = vmul.f32 1.442695, %v8859_v54 }
0x27a3   :  { %v16273_v26 = vpop.permute.xlu1 %16272 }
0x27a4   :  { %16617 = vpow2.f32 %v8863_v50  ;;  %v16275_v1 = vunpack.i.h.bf16 %v16273_v26  ;;  %v16274_v19 = vunpack.i.l.bf16 %v16273_v26 }
0x27a6   :  { %v16034_v3 = vpack.c.bf16 %v16275_v1, %v16274_v19 }
0x27ae   :  { %v16618_v29 = vpop.eup %16617 }
0x27af   :  { %v8871_v58 = vsel %vm8846_vm4, %v16618_v29, 0.0 }
0x27bd   :  { %8872 = vadd.xlane.f32.xlu0 %v8871_v58 }
0x27d3   :  { %16282 = vrot.lane.b32.xlu0 %v18479_v33, %s19470_s9 }
0x2811   :  { %v8852_v44 = vpop.xlane.xlu0 %8851 }
0x2812   :  { %v8860_v0 = vsub.f32 %v8691_v21, %v8852_v44 }
0x2814   :  { %v8865_v16 = vmul.f32 1.442695, %v8860_v0 }
0x2815   :  { %v8855_v47 = vpop.xlane.xlu0 %8854 }
0x2816   :  { %16619 = vpow2.f32 %v8865_v16  ;;  %v8861_v43 = vsub.f32 %v8767_v22, %v8855_v47 }
0x2818   :  { %v8867_v52 = vmul.f32 1.442695, %v8861_v43  ;;  %v9409_v43 = vrot.slane %v18520_v15, 6  ;;  %v9330_v15 = vrot.slane %v18511_v51, 6 }
0x2819   :  { %v8858_v28 = vpop.xlane.xlu1 %8857  ;;  %v16268_v7 = vpop.permute.xlu0 %16267 }
0x281a   :  { %16621 = vpow2.f32 %v8867_v52  ;;  %v16270_v55 = vunpack.i.h.bf16 %v16268_v7  ;;  %v16269_v41 = vunpack.i.l.bf16 %v16268_v7  ;;  %v8862_v36 = vsub.f32 %v8843_v45, %v8858_v28 }
0x281c   :  { %v16031_v24 = vpack.c.bf16 %v16270_v55, %v16269_v41  ;;  %v8869_v12 = vmul.f32 1.442695, %v8862_v36 }
0x281d   :  { %v16278_v61 = vpop.permute.xlu1 %16277 }
0x281e   :  { %v16280_v6 = vunpack.i.h.bf16 %v16278_v61  ;;  %v16279_v59 = vunpack.i.l.bf16 %v16278_v61  ;;  %16032 = vmatpush3.bf16.msra.mxu1 %v16031_v24  ;;  %16623 = vpow2.f32 %v8869_v12 }
0x281f   :  { %16033 = vmatprep.subr.bf16.mxu1 %v16783_v17 }
0x2820   :  { %v16620_v42 = vpop.eup %16619  ;;  %v16037_v33 = vpack.c.bf16 %v16280_v6, %v16279_v59  ;;  %v9488_v6 = vrot.slane %v18526_v39, 6  ;;  %v14274_v39 = vld [vmem:[%s19477_s11 + $0x1] ss:$0 sm:$0xff] }
0x2821   :  { %v8874_v49 = vsel %vm8846_vm4, %v16620_v42, 0.0 }
0x2822   :  { %16038 = vmatpush3.bf16.msra.mxu0 %v16037_v33  ;;  %8875 = vadd.xlane.f32.xlu1 %v8874_v49 }
0x2823   :  { %16042 = vmatprep.subr.bf16.mxu0 %v16783_v17 }
0x2824   :  { %v16622_v27 = vpop.eup %16621 }
0x2825   :  { %v8877_v13 = vsel %vm8846_vm4, %v16622_v27, 0.0 }
0x2826   :  { %8878 = vadd.xlane.f32.xlu0 %v8877_v13 }
0x2828   :  { %v16624_v32 = vpop.eup %16623 }
0x2829   :  { %v8880_v20 = vsel %vm8846_vm4, %v16624_v32, 0.0 }
0x2833   :  { %16287 = vrot.lane.b32.xlu1 %v18509_v9, %s19468_s30 }
0x283c   :  { %9225 = vrot.lane.b32.xlu0 %v18486_v8, %s19468_s30 }
0x2840   :  { %16297 = vrot.lane.b32.xlu0 %v18509_v9, %s19469_s8 }
0x2844   :  { %9229 = vrot.lane.b32.xlu0 %v18486_v8, %s19469_s8 }
0x284a   :  { %v8873_v23 = vpop.xlane.xlu0 %8872 }
0x284b   :  { %16625 = vrcp.f32 %v8873_v23 }
0x284e   :  { %v16283_v21 = vpop.permute.xlu0 %16282 }
0x284f   :  { %v16285_v31 = vunpack.i.h.bf16 %v16283_v21  ;;  %v16284_v45 = vunpack.i.l.bf16 %v16283_v21 }
0x2851   :  { %v16040_v54 = vpack.c.bf16 %v16285_v31, %v16284_v45 }
0x2855   :  { %v16626_v2 = vpop.eup %16625 }
0x2856   :  { %v8884_v63 = vmul.f32 %v16626_v2, %v16618_v29 }
0x2857   :  { %8881 = vadd.xlane.f32.xlu1 %v8880_v20 }
0x2858   :  { %15491 = vmatmul.mubr.msk.f32.vlgmr.msra.gmra.mrb[102].mxu1 %vm8897_vm5, %v8884_v63 }
0x2859   :  { %16035 = vmatpush3.bf16.msra.mxu1 %v16034_v3  ;;  %15497 = vmatprep.mubr.msk.f32.mxu1 %vm16774_vm1, %v16773_v25 }
0x285a   :  { %16039 = vmatprep.subr.bf16.mxu1 %v16783_v17 }
0x2868   :  { %16292 = vrot.lane.b32.xlu1 %v18509_v9, %s19467_s4 }
0x286c   :  { %9227 = vrot.lane.b32.xlu1 %v18486_v8, %s19467_s4 }
0x28af   :  { %v8876_v46 = vpop.xlane.xlu1 %8875 }
0x28b0   :  { %16627 = vrcp.f32 %v8876_v46 }
0x28b3   :  { %v8879_v18 = vpop.xlane.xlu0 %8878  ;;  %v18567_v48 = vpop.permute.xlu1 %16287 }
0x28b4   :  { %16629 = vrcp.f32 %v8879_v18  ;;  %v16290_v22 = vunpack.i.h.bf16 %v18567_v48  ;;  %v16289_v60 = vunpack.i.l.bf16 %v18567_v48 }
0x28b6   :  { %v16047_v52 = vpack.c.bf16 %v16290_v22, %v16289_v60 }
0x28b7   :  { %v9226_v56 = vpop.permute.xlu0 %9225 }
0x28b8   :  { %v9331_v7 = vrot.slane %v9226_v56, 6 }
0x28ba   :  { %v16628_v62 = vpop.eup %16627  ;;  %v9332_v41 = vsel %vm7530_vm8, %v9330_v15, %v9331_v7 }
0x28bb   :  { %v18571_v40 = vpop.permute.xlu0 %16297  ;;  %v8886_v37 = vmul.f32 %v16628_v62, %v16620_v42 }
0x28bc   :  { %v16300_v8 = vunpack.i.h.bf16 %v18571_v40  ;;  %v16299_v50 = vunpack.i.l.bf16 %v18571_v40 }
0x28bd   :  { %15498 = vmatmul.mubr.msk.f32.vlgmr.msra.gmra.mrb[104].mxu1 %vm8897_vm5, %v8886_v37 }
0x28be   :  { %v16630_v29 = vpop.eup %16629  ;;  %16041 = vmatpush3.bf16.msra.mxu1 %v16040_v54  ;;  %15511 = vmatprep.mubr.msk.f32.mxu1 %vm16774_vm1, %v16773_v25  ;;  %v16055_v55 = vpack.c.bf16 %v16300_v8, %v16299_v50 }
0x28bf   :  { %v8888_v58 = vmul.f32 %v16630_v29, %v16622_v27  ;;  %16046 = vmatprep.subr.bf16.mxu1 %v16783_v17  ;;  %v9230_v24 = vpop.permute.xlu0 %9229 }
0x28c0   :  { %v9489_v61 = vrot.slane %v9230_v24, 6 }
0x28c1   :  { %15505 = vmatmul.mubr.msk.f32.vlgmr.msra.gmra.mrb[108].mxu0 %vm8897_vm5, %v8888_v58 }
0x28c2   :  { %16045 = vmatpush3.bf16.xpose.msk.msra.mxu0 %vm18455_vm3, %v16043_v10  ;;  %15518 = vmatprep.mubr.msk.f32.mxu0 %vm16774_vm1, %v16773_v25  ;;  %v9490_v59 = vsel %vm7530_vm8, %v9488_v6, %v9489_v61 }
0x28c3   :  { %16050 = vmatprep.subr.bf16.mxu0 %v16783_v17 }
0x28c9   :  { %15519 = vmatmul.mubr.msk.f32.vlgmr.msra.gmra.mrb[110].mxu0 %vm293_vm2, %v18499_v11 }
0x28ca   :  { %15532 = vmatprep.mubr.msk.f32.mxu0 %vm16774_vm1, %v16773_v25 }
0x28e4   :  { %v8882_v44 = vpop.xlane.xlu1 %8881 }
0x28e5   :  { %16631 = vrcp.f32 %v8882_v44 }
0x28e8   :  { %v18592_v0 = vpop.permute.xlu1 %16292 }
0x28e9   :  { %v16295_v34 = vunpack.i.h.bf16 %v18592_v0  ;;  %v16294_v35 = vunpack.i.l.bf16 %v18592_v0 }
0x28eb   :  { %v16051_v10 = vpack.c.bf16 %v16295_v34, %v16294_v35 }
0x28ec   :  { %v9228_v16 = vpop.permute.xlu1 %9227 }
0x28ed   :  { %16053 = vmatpush3.bf16.xpose.msk.msra.mxu0 %vm18455_vm3, %v16051_v10  ;;  %v9410_v11 = vrot.slane %v9228_v16, 6 }
0x28ee   :  { %16058 = vmatprep.subr.bf16.mxu0 %v16783_v17 }
0x28ef   :  { %v16632_v26 = vpop.eup %16631  ;;  %v9411_v28 = vsel %vm7530_vm8, %v9409_v43, %v9410_v11 }
0x28f0   :  { %v8890_v47 = vmul.f32 %v16632_v26, %v16624_v32 }
0x28f2   :  { %15512 = vmatmul.mubr.msk.f32.vlgmr.msra.gmra.mrb[106].mxu1 %vm8897_vm5, %v8890_v47 }
0x28f3   :  { %16049 = vmatpush3.bf16.xpose.msk.msra.mxu1 %vm18455_vm3, %v16047_v52  ;;  %15525 = vmatprep.mubr.msk.f32.mxu1 %vm16774_vm1, %v16773_v25 }
0x28f4   :  { %15533 = vmatmul.mubr.msk.f32.vlgmr.msra.gmra.mrb[112].mxu0 %vm293_vm2, %v9411_v28  ;;  %16054 = vmatprep.subr.bf16.mxu1 %v16783_v17 }
0x28f5   :  { %15546 = vmatprep.mubr.msk.f32.mxu0 %vm16774_vm1, %v16773_v25 }
0x28fa   :  { %15526 = vmatmul.mubr.msk.f32.vlgmr.msra.gmra.mrb[108].mxu1 %vm293_vm2, %v9332_v41 }
0x28fb   :  { %16057 = vmatpush3.bf16.xpose.msk.msra.mxu1 %vm18455_vm3, %v16055_v55  ;;  %15539 = vmatprep.mubr.msk.f32.mxu1 %vm16774_vm1, %v16773_v25 }
0x28fc   :  { %16061 = vmatprep.subr.bf16.mxu1 %v16783_v17 }
0x2902   :  { %15540 = vmatmul.mubr.msk.f32.vlgmr.msra.gmra.mrb[110].mxu1 %vm293_vm2, %v9490_v59 }
0x2903   :  { %15553 = vmatprep.mubr.msk.f32.mxu1 %vm16774_vm1, %v16773_v25 }
0x292b   :  { %v8967_v51 = vpop.f32.mrb[102].mxu1 }
0x292c   :  { %9208 = vst.msk [vmem:[#allocation3] sm:$0x3f] %vm7503_vm12, %v8967_v51  ;;  %v15492_v42 = vpop.f32.mrb[103].mxu1 }
0x2990   :  { %v18624_v33 = vpop.f32.mrb[104].mxu1 }
0x2991   :  { %v15499_v49 = vpop.f32.mrb[105].mxu1 }
0x2994   :  { %v18626_v27 = vpop.f32.mrb[108].mxu0 }
0x2995   :  { %v15506_v13 = vpop.f32.mrb[109].mxu0 }
0x299c   :  { %v9326_v36 = vpop.f32.mrb[110].mxu0 }
0x299d   :  { %v9327_v12 = vadd.f32 %v14274_v39, %v9326_v36  ;;  %v15520_v23 = vpop.f32.mrb[111].mxu0 }
0x299f   :  { %v9567_v32 = vsel %vm8846_vm4, %v9327_v12, -inf }
0x29a0   :  { %9568 = vmax.xlane.f32.xlu1 %v9567_v32 }
0x29c5   :  { %v9204_v1 = vpop.f32.mrb[106].mxu1 }
0x29c6   :  { %v15513_v19 = vpop.f32.mrb[107].mxu1 }
0x29c7   :  { %v9484_v2 = vpop.f32.mrb[112].mxu0 }
0x29c8   :  { %v15534_v20 = vpop.f32.mrb[113].mxu0  ;;  %v9485_v46 = vadd.f32 %v14274_v39, %v9484_v2 }
0x29ca   :  { %v9573_v22 = vsel %vm8846_vm4, %v9485_v46, -inf }
0x29cd   :  { %v9405_v63 = vpop.f32.mrb[108].mxu1 }
0x29ce   :  { %v9406_v3 = vadd.f32 %v14274_v39, %v9405_v63  ;;  %v15527_v21 = vpop.f32.mrb[109].mxu1 }
0x29d0   :  { %v9570_v18 = vsel %vm8846_vm4, %v9406_v3, -inf }
0x29d1   :  { %9571 = vmax.xlane.f32.xlu0 %v9570_v18 }
0x29d5   :  { %v9563_v60 = vpop.f32.mrb[110].mxu1  ;;  %9574 = vmax.xlane.f32.xlu0 %v9573_v22 }
0x29d6   :  { %v9564_v56 = vadd.f32 %v14274_v39, %v9563_v60  ;;  %v15541_v31 = vpop.f32.mrb[111].mxu1 }
0x29d8   :  { %v9576_v45 = vsel %vm8846_vm4, %v9564_v56, -inf }
0x29d9   :  { %9577 = vmax.xlane.f32.xlu1 %v9576_v45 }
0x29ea   :  { %16307 = vrot.lane.b32.xlu1 %v18567_v48, %s19470_s9 }
0x29eb   :  { %16302 = vrot.lane.b32.xlu0 %v18509_v9, %s19470_s9 }
0x2a2d   :  { %v9569_v62 = vpop.xlane.xlu1 %9568 }
0x2a2e   :  { %v9579_v37 = vsub.f32 %v9327_v12, %v9569_v62  ;;  %v9945_v62 = vld [vmem:[%s19404_s20] sm:$0xff] }
0x2a30   :  { %v9583_v54 = vmul.f32 1.442695, %v9579_v37  ;;  %v9946_v37 = vld [vmem:[%s19404_s20 + $0x8] sm:$0xff] }
0x2a32   :  { %16633 = vpow2.f32 %v9583_v54  ;;  %v16070_v54 = vpack.c.bf16 %v9946_v37, %v9945_v62 }
0x2a3c   :  { %v16634_v8 = vpop.eup %16633 }
0x2a3d   :  { %v9591_v50 = vsel %vm8846_vm4, %v16634_v8, 0.0 }
0x2a3e   :  { %9592 = vadd.xlane.f32.xlu0 %v9591_v50  ;;  %v9948_v50 = vld [vmem:[%s19404_s20 + $0x18] sm:$0xff] }
0x2a5e   :  { %v9572_v29 = vpop.xlane.xlu0 %9571 }
0x2a5f   :  { %v9580_v58 = vsub.f32 %v9406_v3, %v9572_v29 }
0x2a61   :  { %v9585_v44 = vmul.f32 1.442695, %v9580_v58 }
0x2a62   :  { %v9575_v34 = vpop.xlane.xlu0 %9574 }
0x2a63   :  { %16635 = vpow2.f32 %v9585_v44  ;;  %v9581_v35 = vsub.f32 %v9485_v46, %v9575_v34 }
0x2a65   :  { %v9587_v10 = vmul.f32 1.442695, %v9581_v35 }
0x2a66   :  { %v9578_v16 = vpop.xlane.xlu1 %9577  ;;  %v16303_v48 = vpop.permute.xlu0 %16302 }
0x2a67   :  { %16637 = vpow2.f32 %v9587_v10  ;;  %v9582_v26 = vsub.f32 %v9564_v56, %v9578_v16  ;;  %v16305_v9 = vunpack.i.h.bf16 %v16303_v48  ;;  %v16304_v11 = vunpack.i.l.bf16 %v16303_v48 }
0x2a69   :  { %v9589_v47 = vmul.f32 1.442695, %v9582_v26  ;;  %v16059_v43 = vpack.c.bf16 %v16305_v9, %v16304_v11 }
0x2a6a   :  { %v16308_v52 = vpop.permute.xlu1 %16307 }
0x2a6b   :  { %16639 = vpow2.f32 %v9589_v47  ;;  %v16310_v28 = vunpack.i.h.bf16 %v16308_v52  ;;  %v16309_v7 = vunpack.i.l.bf16 %v16308_v52  ;;  %16060 = vmatpush3.bf16.msra.mxu0 %v16059_v43 }
0x2a6c   :  { %16064 = vmatprep.subr.bf16.mxu0 %v16783_v17 }
0x2a6d   :  { %v16636_v15 = vpop.eup %16635  ;;  %v16062_v55 = vpack.c.bf16 %v16310_v28, %v16309_v7 }
0x2a6e   :  { %v9594_v41 = vsel %vm8846_vm4, %v16636_v15, 0.0 }
0x2a6f   :  { %9595 = vadd.xlane.f32.xlu1 %v9594_v41  ;;  %16063 = vmatpush3.bf16.msra.mxu1 %v16062_v55  ;;  %v10059_v41 = vld [vmem:[%s19406_s22 + $0x10] sm:$0xff] }
0x2a70   :  { %16067 = vmatprep.subr.bf16.mxu1 %v16783_v17 }
0x2a71   :  { %v16638_v24 = vpop.eup %16637 }
0x2a72   :  { %v9597_v61 = vsel %vm8846_vm4, %v16638_v24, 0.0 }
0x2a73   :  { %9598 = vadd.xlane.f32.xlu0 %v9597_v61  ;;  %v10060_v61 = vld [vmem:[%s19406_s22 + $0x18] sm:$0xff] }
0x2a75   :  { %v16640_v6 = vpop.eup %16639 }
0x2a76   :  { %v9600_v59 = vsel %vm8846_vm4, %v16640_v6, 0.0 }
0x2a77   :  { %9601 = vadd.xlane.f32.xlu1 %v9600_v59 }
0x2a88   :  { %16312 = vrot.lane.b32.xlu1 %v18592_v0, %s19470_s9 }
0x2a89   :  { %16317 = vrot.lane.b32.xlu0 %v18571_v40, %s19470_s9 }
0x2a8c   :  { %9210 = vrot.lane.b32.xlu1 %v18624_v33, %s19471_s5 }
0x2a90   :  { %9215 = vrot.lane.b32.xlu1 %v18626_v27, %s19464_s2 }
0x2a94   :  { %9220 = vrot.lane.b32.xlu1 %v9204_v1, %s19472_s28 }
0x2acb   :  { %v9593_v51 = vpop.xlane.xlu0 %9592 }
0x2acc   :  { %16641 = vrcp.f32 %v9593_v51 }
0x2ad6   :  { %v16642_v42 = vpop.eup %16641 }
0x2ad7   :  { %v9604_v49 = vmul.f32 %v16642_v42, %v16634_v8  ;;  %v9947_v8 = vld [vmem:[%s19404_s20 + $0x10] sm:$0xff] }
0x2ad8   :  { %v16074_v58 = vpack.c.bf16 %v9948_v50, %v9947_v8 }
0x2ad9   :  { %15547 = vmatmul.mubr.msk.f32.vlgmr.msra.gmra.mrb[114].mxu0 %vm8897_vm5, %v9604_v49 }
0x2ada   :  { %15560 = vmatprep.mubr.msk.f32.mxu0 %vm16774_vm1, %v16773_v25 }
0x2afc   :  { %v9596_v0 = vpop.xlane.xlu1 %9595 }
0x2afd   :  { %16643 = vrcp.f32 %v9596_v0 }
0x2b00   :  { %v9599_v40 = vpop.xlane.xlu0 %9598 }
0x2b01   :  { %16645 = vrcp.f32 %v9599_v40 }
0x2b04   :  { %v9602_v13 = vpop.xlane.xlu1 %9601  ;;  %v16318_v33 = vpop.permute.xlu0 %16317 }
0x2b05   :  { %16647 = vrcp.f32 %v9602_v13  ;;  %v16320_v39 = vunpack.i.h.bf16 %v16318_v33  ;;  %v16319_v27 = vunpack.i.l.bf16 %v16318_v33 }
0x2b07   :  { %v16644_v36 = vpop.eup %16643  ;;  %v16068_v12 = vpack.c.bf16 %v16320_v39, %v16319_v27  ;;  %v14293_v39 = vld [vmem:[%s19405_s21] ss:$0 sm:$0xff] }
0x2b08   :  { %v16313_v23 = vpop.permute.xlu1 %16312  ;;  %v9606_v32 = vmul.f32 %v16644_v36, %v16636_v15 }
0x2b09   :  { %v16315_v1 = vunpack.i.h.bf16 %v16313_v23  ;;  %v16314_v19 = vunpack.i.l.bf16 %v16313_v23 }
0x2b0a   :  { %15554 = vmatmul.mubr.msk.f32.vlgmr.msra.gmra.mrb[112].mxu1 %vm8897_vm5, %v9606_v32  ;;  %v10170_v32 = vld [vmem:[%s19407_s23] sm:$0xff] }
0x2b0b   :  { %v16646_v2 = vpop.eup %16645  ;;  %v16065_v20 = vpack.c.bf16 %v16315_v1, %v16314_v19  ;;  %16069 = vmatpush3.bf16.msra.mxu1 %v16068_v12  ;;  %15567 = vmatprep.mubr.msk.f32.mxu1 %vm16774_vm1, %v16773_v25  ;;  %v10171_v1 = vld [vmem:[%s19407_s23 + $0x8] sm:$0xff]  ;;  %v10172_v19 = vld [vmem:[%s19407_s23 + $0x10] sm:$0xff] }
0x2b0c   :  { %v9211_v63 = vpop.permute.xlu1 %9210  ;;  %v9608_v3 = vmul.f32 %v16646_v2, %v16638_v24  ;;  %v16086_v2 = vpack.c.bf16 %v10171_v1, %v10170_v32  ;;  %v14299_v1 = vld [vmem:[%s19398_s14 + $0x1] ss:$0 sm:$0xff]  ;;  %s19479_s14 = sld [smem:[#allocation13_spill]] }
0x2b0d   :  { %9213 = vst.msk [vmem:[#allocation3] sm:$0x3f] %vm7509_vm13, %v9211_v63  ;;  %16066 = vmatpush3.bf16.msra.mxu0 %v16065_v20  ;;  %v10173_v20 = vld [vmem:[%s19407_s23 + $0x18] sm:$0xff] }
0x2b0e   :  { %16071 = vmatprep.subr.bf16.mxu0 %v16070_v54  ;;  %v16090_v63 = vpack.c.bf16 %v10173_v20, %v10172_v19 }
0x2b0f   :  { %v16648_v21 = vpop.eup %16647 }
0x2b10   :  { %v9216_v46 = vpop.permute.xlu1 %9215  ;;  %15561 = vmatmul.mubr.msk.f32.vlgmr.msra.gmra.mrb[116].mxu0 %vm8897_vm5, %v9608_v3  ;;  %v9610_v18 = vmul.f32 %v16648_v21, %v16640_v6  ;;  %v16082_v6 = vpack.c.bf16 %v10060_v61, %v10059_v41  ;;  %v10174_v3 = vld [vmem:[%s19407_s23 + $0x20] sm:$0xff]  ;;  %v10175_v21 = vld [vmem:[%s19407_s23 + $0x28] sm:$0xff] }
0x2b11   :  { %9218 = vst.msk [vmem:[#allocation3] sm:$0x3f] %vm7515_vm14, %v9216_v46  ;;  %16073 = vmatpush3.bf16.msra.mxu0 %v16070_v54  ;;  %v16094_v46 = vpack.c.bf16 %v10175_v21, %v10174_v3 }
0x2b12   :  { %15568 = vmatmul.mubr.msk.f32.vlgmr.msra.gmra.mrb[114].mxu1 %vm8897_vm5, %v9610_v18  ;;  %16075 = vmatprep.subr.bf16.mxu0 %v16074_v58  ;;  %v10176_v18 = vld [vmem:[%s19407_s23 + $0x30] sm:$0xff] }
0x2b14   :  { %v9221_v22 = vpop.permute.xlu1 %9220 }
0x2b15   :  { %9223 = vst.msk [vmem:[#allocation3] sm:$0x3f] %vm7521_vm15, %v9221_v22  ;;  %16077 = vmatpush3.bf16.msra.mxu0 %v16074_v58  ;;  %v10177_v22 = vld [vmem:[%s19407_s23 + $0x38] sm:$0xff] }
0x2b16   :  { %16087 = vmatprep.subr.bf16.mxu0 %v16086_v2 }
0x2bac   :  { %v9686_v60 = vpop.f32.mrb[114].mxu0 }
0x2bad   :  { %9927 = vst.msk [vmem:[#allocation3 + $0x6] sm:$0x3f] %vm7503_vm12, %v9686_v60  ;;  %v15548_v56 = vpop.f32.mrb[115].mxu0  ;;  %v16098_v60 = vpack.c.bf16 %v10177_v22, %v10176_v18 }
0x2bdd   :  { %v9765_v31 = vpop.f32.mrb[112].mxu1 }
0x2bde   :  { %v15555_v45 = vpop.f32.mrb[113].mxu1 }
0x2be3   :  { %v9844_v29 = vpop.f32.mrb[116].mxu0 }
0x2be4   :  { %9934 = vrot.lane.b32.xlu0 %v9844_v29, %s19464_s2  ;;  %v15562_v44 = vpop.f32.mrb[117].mxu0 }
0x2be5   :  { %v9923_v34 = vpop.f32.mrb[114].mxu1 }
0x2be6   :  { %v15569_v35 = vpop.f32.mrb[115].mxu1 }
0x2be8   :  { %9929 = vrot.lane.b32.xlu0 %v9765_v31, %s19471_s5 }
0x2bec   :  { %9939 = vrot.lane.b32.xlu0 %v9923_v34, %s19472_s28 }
0x2c56   :  { %v9935_v10 = vpop.permute.xlu0 %9934 }
0x2c5a   :  { %v9930_v16 = vpop.permute.xlu0 %9929 }
0x2c5b   :  { %9932 = vst.msk [vmem:[#allocation3 + $0x6] sm:$0x3f] %vm7509_vm13, %v9930_v16 }
0x2c5c   :  { %9937 = vst.msk [vmem:[#allocation3 + $0x6] sm:$0x3f] %vm7515_vm14, %v9935_v10 }
0x2c5e   :  { %v9940_v48 = vpop.permute.xlu0 %9939 }
0x2c5f   :  { %9942 = vst.msk [vmem:[#allocation3 + $0x6] sm:$0x3f] %vm7521_vm15, %v9940_v48 }
0x2c66   :  { %v9943_v26 = vld [vmem:[#allocation3] sm:$0xff]  ;;  %v9944_v9 = vld [vmem:[#allocation3 + $0x8] sm:$0xf] }
0x2c67   :  { %15578 = vmatprep.mubr.msk.f32.mxu0 %vm143_vm0, %v9943_v26 }
0x2c68   :  { %15579 = vmatmul.mubr.msk.f32.vlgmr.msra.gmra.mrb[118].mxu0 %vm143_vm0, %v9944_v9 }
0x2c69   :  { %16089 = vmatpush3.bf16.msra.mxu0 %v16086_v2 }
0x2c6a   :  { %16091 = vmatprep.subr.bf16.mxu0 %v16090_v63 }
0x2c6d   :  { %16093 = vmatpush3.bf16.msra.mxu0 %v16090_v63 }
0x2c6e   :  { %16095 = vmatprep.subr.bf16.mxu0 %v16094_v46 }
0x2c71   :  { %16097 = vmatpush3.bf16.msra.mxu0 %v16094_v46 }
0x2c72   :  { %16099 = vmatprep.subr.bf16.mxu0 %v16098_v60 }
0x2c75   :  { %16101 = vmatpush3.bf16.msra.mxu0 %v16098_v60 }
0x2c76   :  { %15632 = vmatprep.subr.mxu0 %v16773_v25 }
0x2d3b   :  { %v15580_v11 = vpop.f32.mrb[118].mxu0 }
0x2d3c   :  { %v18687_v47 = vadd.f32 %v15580_v11, %v18409_v30  ;;  %v10021_v43 = vpop.f32.mrb[119].mxu0  ;;  %v10057_v30 = vld [vmem:[%s19406_s22] sm:$0xff] }
0x2d3d   :  { %v18690_v52 = vadd.f32 %v10021_v43, %v18414_v53  ;;  %v10058_v53 = vld [vmem:[%s19406_s22 + $0x8] sm:$0xff] }
0x2d3e   :  { %v10034_v28 = vmul.f32 %v18687_v47, %v18687_v47  ;;  %v16078_v24 = vpack.c.bf16 %v10058_v53, %v10057_v30 }
0x2d3f   :  { %v10033_v7 = vmul.f32 %v18690_v52, %v18690_v52 }
0x2d40   :  { %v10038_v15 = vsel %vm6732_vm7, %v10034_v28, 0.0  ;;  %16079 = vmatprep.subr.bf16.mxu1 %v16078_v24 }
0x2d41   :  { %10039 = vadd.xlane.f32.xlu0 %v10038_v15  ;;  %v10035_v55 = vsel %vm143_vm0, %v10033_v7, 0.0  ;;  %16081 = vmatpush3.bf16.msra.mxu1 %v16078_v24 }
0x2d42   :  { %10036 = vadd.xlane.f32.xlu1 %v10035_v55  ;;  %16083 = vmatprep.subr.bf16.mxu1 %v16082_v6 }
0x2d45   :  { %16085 = vmatpush3.bf16.msra.mxu1 %v16082_v6 }
0x2dce   :  { %v10040_v59 = vpop.xlane.xlu0 %10039 }
0x2dcf   :  { %v10042_v51 = vmul.f32 0.03125, %v10040_v59  ;;  %v10037_v42 = vpop.xlane.xlu1 %10036 }
0x2dd0   :  { %v10041_v49 = vmul.f32 0.03125, %v10037_v42  ;;  %v14302_v42 = vld [vmem:[%s19399_s15 + $0x30] sm:$0xff] }
0x2dd1   :  { %v10044_v0 = vadd.f32 1e-06, %v10042_v51 }
0x2dd2   :  { %v10043_v40 = vadd.f32 1e-06, %v10041_v49 }
0x2dd3   :  { %16649 = vrsqrt.f32 %v10044_v0  ;;  %v14303_v0 = vld [vmem:[%s19399_s15 + $0x38] sm:$0xff] }
0x2dd4   :  { %16651 = vrsqrt.f32 %v10043_v40  ;;  %v16106_v40 = vpack.c.bf16 %v14303_v0, %v14302_v42 }
0x2ddd   :  { %v16650_v13 = vpop.eup %16649 }
0x2dde   :  { %v16652_v33 = vpop.eup %16651  ;;  %v10048_v27 = vmul.f32 %v16650_v13, %v18687_v47 }
0x2ddf   :  { %v10047_v36 = vmul.f32 %v16652_v33, %v18690_v52 }
0x2de0   :  { %v10056_v23 = vmul.f32 %v14293_v39, %v10048_v27 }
0x2de1   :  { %v10055_v12 = vmul.f32 %v14293_v39, %v10047_v36 }
0x2de3   :  { %15589 = vmatprep.mubr.msk.f32.mxu1 %vm143_vm0, %v10055_v12 }
0x2de4   :  { %15590 = vmatmul.mubr.msk.f32.vlgmr.msra.gmra.mrb[116].mxu1 %vm143_vm0, %v10056_v23 }
0x2eb7   :  { %v15591_v56 = vpop.f32.mrb[116].mxu1 }
0x2eb8   :  { %10164 = vrot.lane.b32.xlu1 %v15591_v56, %s19466_s26  ;;  %v10133_v31 = vpop.f32.mrb[117].mxu1  ;;  %v10145_v62 = vmul.f32 0.044715, %v15591_v56  ;;  %v10143_v9 = vmul.f32 0.5, %v15591_v56 }
0x2eb9   :  { %10162 = vrot.lane.b32.xlu0 %v10133_v31, %s19466_s26  ;;  %v10144_v45 = vmul.f32 0.044715, %v10133_v31  ;;  %v10142_v26 = vmul.f32 0.5, %v10133_v31 }
0x2eba   :  { %v10147_v54 = vmul.f32 %v15591_v56, %v10145_v62 }
0x2ebb   :  { %v10146_v37 = vmul.f32 %v10144_v45, %v10133_v31 }
0x2ebc   :  { %v10149_v50 = vmul.f32 %v15591_v56, %v10147_v54 }
0x2ebd   :  { %v10148_v8 = vmul.f32 %v10146_v37, %v10133_v31 }
0x2ebe   :  { %v10151_v58 = vadd.f32 %v15591_v56, %v10149_v50  ;;  %v18827_v50 = vld [vmem:[%s19474_s1] sm:$0x3f] }
0x2ebf   :  { %v10150_v29 = vadd.f32 %v10148_v8, %v10133_v31 }
0x2ec0   :  { %v10153_v34 = vmul.f32 0.7978846, %v10151_v58 }
0x2ec1   :  { %v10152_v44 = vmul.f32 0.7978846, %v10150_v29 }
0x2ec3   :  { %16653 = vtanh.f32 %v10152_v44 }
0x2ec4   :  { %16655 = vtanh.f32 %v10153_v34 }
0x2ecd   :  { %v16654_v35 = vpop.eup %16653 }
0x2ece   :  { %v16656_v10 = vpop.eup %16655  ;;  %v10156_v16 = vadd.f32 1.0, %v16654_v35 }
0x2ecf   :  { %v10157_v48 = vadd.f32 1.0, %v16656_v10  ;;  %v18834_v10 = vld [vmem:[%s19474_s1 + $0x8] sm:$0x3f] }
0x2ed0   :  { %v10158_v43 = vmul.f32 %v10156_v16, %v10142_v26 }
0x2ed1   :  { %v10159_v28 = vmul.f32 %v10157_v48, %v10143_v9  ;;  %v18840_v48 = vld [vmem:[%s19474_s1 + $0x10] sm:$0x3f] }
0x2f2a   :  { %v10165_v11 = vpop.permute.xlu1 %10164 }
0x2f2b   :  { %v10163_v7 = vpop.permute.xlu0 %10162  ;;  %v10169_v55 = vmul.f32 %v10165_v11, %v10159_v28 }
0x2f2c   :  { %v10168_v15 = vmul.f32 %v10163_v7, %v10158_v43 }
0x2f2e   :  { %15608 = vmatprep.mubr.msk.f32.mxu0 %vm3305_vm6, %v10168_v15  ;;  %v18848_v15 = vld [vmem:[%s19474_s1 + $0x18] sm:$0x3f] }
0x2f2f   :  { %15609 = vmatmul.mubr.msk.f32.vlgmr.msra.gmra.mrb[120].mxu0 %vm3305_vm6, %v10169_v55 }
0x2f30   :  { %15634 = vmatprep.mubr.msk.f32.mxu0 %vm16774_vm1, %v16773_v25 }
0x3002   :  { %v15610_v30 = vpop.f32.mrb[120].mxu0 }
0x3003   :  { %v18749_v53 = vadd.f32 %v15610_v30, %v18687_v47  ;;  %v10250_v41 = vpop.f32.mrb[121].mxu0  ;;  %v14300_v47 = vld [vmem:[%s19399_s15 + $0x20] sm:$0xff] }
0x3004   :  { %v18752_v24 = vadd.f32 %v10250_v41, %v18690_v52  ;;  %v14301_v52 = vld [vmem:[%s19399_s15 + $0x28] sm:$0xff] }
0x3005   :  { %v10264_v61 = vmul.f32 %v18749_v53, %v18749_v53  ;;  %v16102_v49 = vpack.c.bf16 %v14301_v52, %v14300_v47 }
0x3006   :  { %v10263_v6 = vmul.f32 %v18752_v24, %v18752_v24 }
0x3007   :  { %v10268_v59 = vsel %vm6732_vm7, %v10264_v61, 0.0  ;;  %16103 = vmatprep.subr.bf16.mxu1 %v16102_v49 }
0x3008   :  { %10269 = vadd.xlane.f32.xlu0 %v10268_v59  ;;  %v10265_v51 = vsel %vm143_vm0, %v10263_v6, 0.0  ;;  %16105 = vmatpush3.bf16.msra.mxu1 %v16102_v49 }
0x3009   :  { %10266 = vadd.xlane.f32.xlu1 %v10265_v51  ;;  %16107 = vmatprep.subr.bf16.mxu1 %v16106_v40 }
0x300c   :  { %16109 = vmatpush3.bf16.msra.mxu1 %v16106_v40 }
0x300d   :  { %15622 = vmatprep.subr.mxu1 %v16773_v25 }
0x3095   :  { %v10270_v13 = vpop.xlane.xlu0 %10269 }
0x3096   :  { %v10272_v33 = vmul.f32 0.03125, %v10270_v13  ;;  %v10267_v39 = vpop.xlane.xlu1 %10266 }
0x3097   :  { %v10271_v27 = vmul.f32 0.03125, %v10267_v39 }
0x3098   :  { %v10274_v36 = vadd.f32 1e-06, %v10272_v33 }
0x3099   :  { %v10273_v12 = vadd.f32 1e-06, %v10271_v27 }
0x309a   :  { %16657 = vrsqrt.f32 %v10274_v36 }
0x309b   :  { %16659 = vrsqrt.f32 %v10273_v12 }
0x30a4   :  { %v16658_v23 = vpop.eup %16657 }
0x30a5   :  { %v16660_v32 = vpop.eup %16659  ;;  %v10278_v19 = vmul.f32 %v16658_v23, %v18749_v53 }
0x30a6   :  { %v10277_v2 = vmul.f32 %v16660_v32, %v18752_v24 }
0x30a7   :  { %v10286_v63 = vmul.f32 %v14299_v1, %v10278_v19 }
0x30a8   :  { %v10285_v20 = vmul.f32 %v14299_v1, %v10277_v2 }
0x30aa   :  { %15619 = vmatprep.mubr.msk.f32.mxu1 %vm143_vm0, %v10285_v20 }
0x30ab   :  { %15620 = vmatmul.mubr.msk.f32.vlgmr.msra.gmra.mrb[118].mxu1 %vm143_vm0, %v10286_v63 }
0x30ac   :  { %15624 = vmatprep.mubr.msk.f32.mxu1 %vm16774_vm1, %v16773_v25 }
0x317e   :  { %v15621_v3 = vpop.f32.mrb[118].mxu1 }
0x317f   :  { %v11060_v21 = vrot.slane %v15621_v3, 6  ;;  %v10364_v46 = vpop.f32.mrb[119].mxu1 }
0x3180   :  { %10376 = vrot.lane.b32.xlu1 %v10364_v46, %s19467_s4  ;;  %10374 = vrot.lane.b32.xlu0 %v10364_v46, %s19468_s30  ;;  %v11059_v18 = vrot.slane %v10364_v46, 6 }
0x3182   :  { %v18785_v22 = vsel %vm7530_vm8, %v11059_v18, %v11060_v21 }
0x3184   :  { %10378 = vrot.lane.b32.xlu1 %v10364_v46, %s19469_s8  ;;  %10380 = vrot.lane.b32.xlu0 %v10364_v46, %s19470_s9 }
0x31f2   :  { %v18789_v60 = vpop.permute.xlu1 %10376  ;;  %v18791_v56 = vpop.permute.xlu0 %10374 }
0x31f3   :  { %10532 = vrot.lane.b32.xlu0 %v18789_v60, %s19470_s9  ;;  %10456 = vrot.lane.b32.xlu1 %v18791_v56, %s19470_s9  ;;  %v11217_v18 = vrot.slane %v18789_v60, 6 }
0x31f6   :  { %v18797_v31 = vpop.permute.xlu1 %10378  ;;  %v10381_v45 = vpop.permute.xlu0 %10380 }
0x31f7   :  { %10608 = vrot.lane.b32.xlu1 %v18797_v31, %s19470_s9  ;;  %15623 = vmatpush3.xpose.msk.msra.mxu1 %vm293_vm2, %v10381_v45 }
0x31f8   :  { %15627 = vmatprep.subr.mxu1 %v16773_v25 }
0x31fa   :  { %15625 = vmatmul.mubr.msk.f32.vlgmr.msra.gmra.mrb[120].mxu1 %vm293_vm2, %v10364_v46 }
0x31fb   :  { %15629 = vmatprep.mubr.msk.f32.mxu1 %vm16774_vm1, %v16773_v25 }
0x3265   :  { %v10457_v62 = vpop.permute.xlu1 %10456  ;;  %v10533_v37 = vpop.permute.xlu0 %10532 }
0x3266   :  { %15628 = vmatpush3.xpose.msk.msra.mxu1 %vm293_vm2, %v10457_v62  ;;  %15633 = vmatpush3.xpose.msk.msra.mxu0 %vm293_vm2, %v10533_v37  ;;  %v11138_v37 = vrot.slane %v18791_v56, 6 }
0x3267   :  { %15637 = vmatprep.subr.mxu1 %v16773_v25  ;;  %15642 = vmatprep.subr.mxu0 %v16773_v25 }
0x3269   :  { %v10609_v54 = vpop.permute.xlu1 %10608  ;;  %15630 = vmatmul.mubr.msk.f32.vlgmr.msra.gmra.mrb[122].mxu1 %vm293_vm2, %v18791_v56  ;;  %15635 = vmatmul.mubr.msk.f32.vlgmr.msra.gmra.mrb[122].mxu0 %vm293_vm2, %v18789_v60 }
0x326a   :  { %15638 = vmatpush3.xpose.msk.msra.mxu1 %vm293_vm2, %v10609_v54  ;;  %15639 = vmatprep.mubr.msk.f32.mxu1 %vm16774_vm1, %v16773_v25 }
0x326b   :  { %15647 = vmatprep.subr.mxu1 %v16773_v25  ;;  %15644 = vmatprep.mubr.msk.f32.mxu0 %vm16774_vm1, %v16773_v25 }
0x326d   :  { %15640 = vmatmul.mubr.msk.f32.vlgmr.msra.gmra.mrb[124].mxu1 %vm293_vm2, %v18797_v31 }
0x326e   :  { %15649 = vmatprep.mubr.msk.f32.mxu1 %vm16774_vm1, %v16773_v25 }
0x32cd   :  { %v10452_v8 = vpop.f32.mrb[120].mxu1 }
0x32ce   :  { %v10453_v29 = vadd.f32 %v18827_v50, %v10452_v8  ;;  %v15626_v58 = vpop.f32.mrb[121].mxu1 }
0x32d0   :  { %v10684_v44 = vsel %vm7148_vm9, %v10453_v29, -inf }
0x32d1   :  { %10685 = vmax.xlane.f32.xlu0 %v10684_v44 }
0x333c   :  { %v10528_v34 = vpop.f32.mrb[122].mxu1  ;;  %v10604_v35 = vpop.f32.mrb[122].mxu0 }
0x333d   :  { %v10529_v16 = vadd.f32 %v18834_v10, %v10528_v34  ;;  %v10605_v26 = vadd.f32 %v18840_v48, %v10604_v35  ;;  %v15631_v9 = vpop.f32.mrb[123].mxu1  ;;  %v15636_v11 = vpop.f32.mrb[123].mxu0 }
0x333f   :  { %v10687_v43 = vsel %vm7148_vm9, %v10529_v16, -inf  ;;  %v10690_v28 = vsel %vm7148_vm9, %v10605_v26, -inf }
0x3340   :  { %10688 = vmax.xlane.f32.xlu1 %v10687_v43  ;;  %v10680_v7 = vpop.f32.mrb[124].mxu1  ;;  %10691 = vmax.xlane.f32.xlu0 %v10690_v28 }
0x3341   :  { %v10681_v55 = vadd.f32 %v18848_v15, %v10680_v7  ;;  %v15641_v30 = vpop.f32.mrb[125].mxu1 }
0x3343   :  { %v10693_v41 = vsel %vm7148_vm9, %v10681_v55, -inf }
0x3344   :  { %10694 = vmax.xlane.f32.xlu0 %v10693_v41 }
0x3351   :  { %11053 = vrot.lane.b32.xlu1 %v15621_v3, %s19468_s30 }
0x3355   :  { %11057 = vrot.lane.b32.xlu1 %v15621_v3, %s19469_s8 }
0x3359   :  { %10805 = vrot.lane.b32.xlu1 %v18791_v56, %s19466_s26 }
0x335a   :  { %11055 = vrot.lane.b32.xlu0 %v15621_v3, %s19467_s4 }
0x335d   :  { %10882 = vrot.lane.b32.xlu1 %v18789_v60, %s19466_s26 }
0x335e   :  { %10728 = vrot.lane.b32.xlu0 %v10364_v46, %s19466_s26  ;;  %v10686_v61 = vpop.xlane.xlu0 %10685 }
0x335f   :  { %v10696_v6 = vsub.f32 %v10453_v29, %v10686_v61  ;;  %v11296_v29 = vrot.slane %v18797_v31, 6 }
0x3361   :  { %11062 = vrot.lane.b32.xlu1 %v18785_v22, %s19470_s9  ;;  %v10700_v59 = vmul.f32 1.442695, %v10696_v6 }
0x3362   :  { %10959 = vrot.lane.b32.xlu0 %v18797_v31, %s19466_s26 }
0x3363   :  { %16661 = vpow2.f32 %v10700_v59 }
0x336d   :  { %v16662_v51 = vpop.eup %16661 }
0x336e   :  { %v10708_v47 = vsel %vm7148_vm9, %v16662_v51, 0.0 }
0x3385   :  { %10709 = vadd.xlane.f32.xlu1 %v10708_v47 }
0x33cd   :  { %v10689_v52 = vpop.xlane.xlu1 %10688  ;;  %v10692_v42 = vpop.xlane.xlu0 %10691 }
0x33ce   :  { %v10697_v49 = vsub.f32 %v10529_v16, %v10689_v52  ;;  %v10698_v0 = vsub.f32 %v10605_v26, %v10692_v42 }
0x33d0   :  { %v10702_v40 = vmul.f32 1.442695, %v10697_v49  ;;  %v10704_v13 = vmul.f32 1.442695, %v10698_v0 }
0x33d1   :  { %v11054_v33 = vpop.permute.xlu1 %11053  ;;  %v10695_v39 = vpop.xlane.xlu0 %10694 }
0x33d2   :  { %16663 = vpow2.f32 %v10702_v40  ;;  %v10699_v27 = vsub.f32 %v10681_v55, %v10695_v39  ;;  %v11139_v62 = vrot.slane %v11054_v33, 6 }
0x33d3   :  { %16665 = vpow2.f32 %v10704_v13 }
0x33d4   :  { %v10706_v36 = vmul.f32 1.442695, %v10699_v27  ;;  %v18880_v8 = vsel %vm7530_vm8, %v11138_v37, %v11139_v62 }
0x33d5   :  { %v11058_v12 = vpop.permute.xlu1 %11057  ;;  %v11056_v23 = vpop.permute.xlu0 %11055 }
0x33d6   :  { %16667 = vpow2.f32 %v10706_v36  ;;  %v11218_v46 = vrot.slane %v11056_v23, 6  ;;  %v11297_v54 = vrot.slane %v11058_v12, 6 }
0x33d8   :  { %v18874_v45 = vsel %vm7530_vm8, %v11217_v18, %v11218_v46  ;;  %v18886_v60 = vsel %vm7530_vm8, %v11296_v29, %v11297_v54 }
0x33d9   :  { %v10806_v32 = vpop.permute.xlu1 %10805  ;;  %v10729_v1 = vpop.permute.xlu0 %10728 }
0x33da   :  { %15643 = vmatpush3.msk.msra.mxu0 %vm7199_vm10, %v10729_v1  ;;  %15648 = vmatpush3.msk.msra.mxu1 %vm7199_vm10, %v10806_v32 }
0x33db   :  { %15652 = vmatprep.subr.mxu0 %v16773_v25  ;;  %15657 = vmatprep.subr.mxu1 %v16773_v25 }
0x33dc   :  { %v16664_v19 = vpop.eup %16663 }
0x33dd   :  { %v10711_v2 = vsel %vm7148_vm9, %v16664_v19, 0.0  ;;  %v16666_v20 = vpop.eup %16665  ;;  %v10883_v58 = vpop.permute.xlu1 %10882 }
0x33de   :  { %10712 = vadd.xlane.f32.xlu0 %v10711_v2  ;;  %v10714_v3 = vsel %vm7148_vm9, %v16666_v20, 0.0  ;;  %v10960_v31 = vpop.permute.xlu0 %10959 }
0x33e0   :  { %v16668_v63 = vpop.eup %16667 }
0x33e1   :  { %v10717_v21 = vsel %vm7148_vm9, %v16668_v63, 0.0  ;;  %v11063_v44 = vpop.permute.xlu1 %11062 }
0x33e2   :  { %10715 = vadd.xlane.f32.xlu0 %v10714_v3  ;;  %10718 = vadd.xlane.f32.xlu1 %v10717_v21 }
0x33f3   :  { %11220 = vrot.lane.b32.xlu1 %v18874_v45, %s19470_s9 }
0x33f8   :  { %11141 = vrot.lane.b32.xlu0 %v18880_v8, %s19470_s9 }
0x33fc   :  { %11299 = vrot.lane.b32.xlu0 %v18886_v60, %s19470_s9 }
0x3412   :  { %v10710_v34 = vpop.xlane.xlu1 %10709 }
0x3413   :  { %16669 = vrcp.f32 %v10710_v34 }
0x341d   :  { %v16670_v56 = vpop.eup %16669 }
0x341e   :  { %v10721_v35 = vmul.f32 %v16670_v56, %v16662_v51 }
0x3420   :  { %15645 = vmatmul.mubr.msk.f32.vlgmr.msra.gmra.mrb[124].mxu0 %vm7195_vm11, %v10721_v35 }
0x3421   :  { %15653 = vmatpush3.msk.msra.mxu0 %vm7199_vm10, %v10883_v58  ;;  %15654 = vmatprep.mubr.msk.f32.mxu0 %vm16774_vm1, %v16773_v25 }
0x3422   :  { %15662 = vmatprep.subr.mxu0 %v16773_v25 }
0x346b   :  { %v10713_v16 = vpop.xlane.xlu0 %10712 }
0x346c   :  { %16671 = vrcp.f32 %v10713_v16 }
0x346f   :  { %v10716_v26 = vpop.xlane.xlu0 %10715  ;;  %v10719_v9 = vpop.xlane.xlu1 %10718 }
0x3470   :  { %16673 = vrcp.f32 %v10716_v26 }
0x3471   :  { %16675 = vrcp.f32 %v10719_v9 }
0x3473   :  { %v11142_v41 = vpop.permute.xlu0 %11141  ;;  %v11221_v61 = vpop.permute.xlu1 %11220 }
0x3476   :  { %v16672_v11 = vpop.eup %16671 }
0x3477   :  { %v10723_v43 = vmul.f32 %v16672_v11, %v16664_v19  ;;  %v11300_v6 = vpop.permute.xlu0 %11299 }
0x3479   :  { %15650 = vmatmul.mubr.msk.f32.vlgmr.msra.gmra.mrb[126].mxu1 %vm7195_vm11, %v10723_v43 }
0x347a   :  { %v16674_v28 = vpop.eup %16673  ;;  %15658 = vmatpush3.msk.msra.mxu1 %vm7199_vm10, %v10960_v31  ;;  %15659 = vmatprep.mubr.msk.f32.mxu1 %vm16774_vm1, %v16773_v25 }
0x347b   :  { %v16676_v7 = vpop.eup %16675  ;;  %v10725_v55 = vmul.f32 %v16674_v28, %v16666_v20  ;;  %15667 = vmatprep.subr.mxu1 %v16773_v25 }
0x347c   :  { %v10727_v30 = vmul.f32 %v16676_v7, %v16668_v63 }
0x347d   :  { %15655 = vmatmul.mubr.msk.f32.vlgmr.msra.gmra.mrb[126].mxu0 %vm7195_vm11, %v10725_v55 }
0x347e   :  { %15660 = vmatmul.mubr.msk.f32.vlgmr.msra.gmra.mrb[128].mxu1 %vm7195_vm11, %v10727_v30  ;;  %15663 = vmatpush3.xpose.msk.msra.mxu0 %vm293_vm2, %v11063_v44 }
0x347f   :  { %15664 = vmatprep.mubr.msk.f32.mxu0 %vm16774_vm1, %v16773_v25  ;;  %15672 = vmatprep.subr.mxu0 %v16773_v25 }
0x3480   :  { %15669 = vmatprep.mubr.msk.f32.mxu1 %vm16774_vm1, %v16773_v25 }
0x3481   :  { %15668 = vmatpush3.xpose.msk.msra.mxu1 %vm293_vm2, %v11142_v41  ;;  %15665 = vmatmul.mubr.msk.f32.vlgmr.msra.gmra.mrb[128].mxu0 %vm293_vm2, %v18785_v22 }
0x3482   :  { %15673 = vmatpush3.xpose.msk.msra.mxu0 %vm293_vm2, %v11221_v61  ;;  %15677 = vmatprep.subr.mxu1 %v16773_v25 }
0x3483   :  { %15674 = vmatprep.mubr.msk.f32.mxu0 %vm16774_vm1, %v16773_v25  ;;  %15682 = vmatprep.subr.mxu0 %v16773_v25 }
0x3484   :  { %15670 = vmatmul.mubr.msk.f32.vlgmr.msra.gmra.mrb[130].mxu1 %vm293_vm2, %v18880_v8 }
0x3485   :  { %15678 = vmatpush3.xpose.msk.msra.mxu1 %vm293_vm2, %v11300_v6  ;;  %15675 = vmatmul.mubr.msk.f32.vlgmr.msra.gmra.mrb[130].mxu0 %vm293_vm2, %v18874_v45 }
0x3486   :  { %15679 = vmatprep.mubr.msk.f32.mxu1 %vm16774_vm1, %v16773_v25  ;;  %15687 = vmatprep.subr.mxu1 %v16773_v25 }
0x3487   :  { %15684 = vmatprep.mubr.msk.f32.mxu0 %vm16774_vm1, %v16773_v25 }
0x3488   :  { %15680 = vmatmul.mubr.msk.f32.vlgmr.msra.gmra.mrb[132].mxu1 %vm293_vm2, %v18886_v60 }
0x3489   :  { %15689 = vmatprep.mubr.msk.f32.mxu1 %vm16774_vm1, %v16773_v25 }
0x34f3   :  { %v10801_v59 = vpop.f32.mrb[124].mxu0 }
0x34f4   :  { %11036 = vst.msk [vmem:[#allocation3] sm:$0x3f] %vm7503_vm12, %v10801_v59  ;;  %v15646_v51 = vpop.f32.mrb[125].mxu0 }
0x354c   :  { %v10878_v47 = vpop.f32.mrb[126].mxu1 }
0x354d   :  { %v15651_v52 = vpop.f32.mrb[127].mxu1 }
0x3550   :  { %v10955_v42 = vpop.f32.mrb[126].mxu0 }
0x3551   :  { %v11032_v49 = vpop.f32.mrb[128].mxu1  ;;  %v15656_v0 = vpop.f32.mrb[127].mxu0 }
0x3552   :  { %v15661_v40 = vpop.f32.mrb[129].mxu1 }
0x3554   :  { %v11134_v13 = vpop.f32.mrb[128].mxu0 }
0x3555   :  { %v11135_v33 = vadd.f32 %v18827_v50, %v11134_v13  ;;  %v15666_v39 = vpop.f32.mrb[129].mxu0 }
0x3556   :  { %v14338_v39 = vld [vmem:[%s19400_s16 + $0x20] sm:$0xff] }
0x3557   :  { %v11213_v27 = vpop.f32.mrb[130].mxu1  ;;  %v11375_v36 = vsel %vm7148_vm9, %v11135_v33, -inf }
0x3558   :  { %v11214_v12 = vadd.f32 %v18834_v10, %v11213_v27  ;;  %v15671_v23 = vpop.f32.mrb[131].mxu1  ;;  %11376 = vmax.xlane.f32.xlu1 %v11375_v36  ;;  %v11292_v32 = vpop.f32.mrb[130].mxu0  ;;  %v14339_v27 = vld [vmem:[%s19400_s16 + $0x28] sm:$0xff] }
0x3559   :  { %v15676_v1 = vpop.f32.mrb[131].mxu0  ;;  %v11293_v19 = vadd.f32 %v18840_v48, %v11292_v32  ;;  %v16110_v36 = vpack.c.bf16 %v14339_v27, %v14338_v39  ;;  %v14340_v23 = vld [vmem:[%s19400_s16 + $0x30] sm:$0xff]  ;;  %v14341_v32 = vld [vmem:[%s19400_s16 + $0x38] sm:$0xff]  ;;  %s19481_s16 = sld [smem:[#allocation21_spill]] }
0x355a   :  { %v11378_v2 = vsel %vm7148_vm9, %v11214_v12, -inf }
0x355b   :  { %11379 = vmax.xlane.f32.xlu0 %v11378_v2  ;;  %v11371_v20 = vpop.f32.mrb[132].mxu1  ;;  %v11381_v21 = vsel %vm7148_vm9, %v11293_v19, -inf }
0x355c   :  { %v11372_v63 = vadd.f32 %v18848_v15, %v11371_v20  ;;  %v15681_v3 = vpop.f32.mrb[133].mxu1 }
0x355e   :  { %v11384_v50 = vsel %vm7148_vm9, %v11372_v63, -inf }
0x355f   :  { %11385 = vmax.xlane.f32.xlu1 %v11384_v50  ;;  %11382 = vmax.xlane.f32.xlu0 %v11381_v21  ;;  %v14352_v50 = vld [vmem:[%s19403_s19 + $0x20] sm:$0xff]  ;;  %v14353_v21 = vld [vmem:[%s19403_s19 + $0x28] sm:$0xff]  ;;  %s16761_s7 = scalar_lea.hbm %s19481_s16, 16 }
0x3560   :  { %p16762_p0 = scmp.ne.s32.totalorder %s19481_s16, %s16761_s7  ;;  %p16765_p1 = scmp.lt.u32.totalorder %s16761_s7, %s19481_s16 }
0x3562   :  { %p16767_p2 = pnand %p16765_p1, %p16762_p0 }
0x3570   :  { %11496 = vrot.lane.b32.xlu1 %v18880_v8, %s19466_s26 }
0x3575   :  { %11419 = vrot.lane.b32.xlu0 %v18785_v22, %s19466_s26 }
0x35e5   :  { %v11377_v10 = vpop.xlane.xlu1 %11376 }
0x35e6   :  { %v11387_v48 = vsub.f32 %v11135_v33, %v11377_v10  ;;  %v16126_v10 = vpack.c.bf16 %v14353_v21, %v14352_v50 }
0x35e8   :  { %v11391_v46 = vmul.f32 1.442695, %v11387_v48  ;;  %v11380_v18 = vpop.xlane.xlu0 %11379 }
0x35e9   :  { %v11388_v62 = vsub.f32 %v11214_v12, %v11380_v18 }
0x35ea   :  { %16677 = vpow2.f32 %v11391_v46 }
0x35eb   :  { %v11393_v15 = vmul.f32 1.442695, %v11388_v62  ;;  %v14354_v62 = vld [vmem:[%s19403_s19 + $0x30] sm:$0xff] }
0x35ec   :  { %v11383_v37 = vpop.xlane.xlu0 %11382  ;;  %v11386_v54 = vpop.xlane.xlu1 %11385 }
0x35ed   :  { %16679 = vpow2.f32 %v11393_v15  ;;  %v11389_v29 = vsub.f32 %v11293_v19, %v11383_v37  ;;  %v11390_v58 = vsub.f32 %v11372_v63, %v11386_v54  ;;  %v16114_v19 = vpack.c.bf16 %v14341_v32, %v14340_v23  ;;  %v14355_v15 = vld [vmem:[%s19403_s19 + $0x38] sm:$0xff] }
0x35ef   :  { %v11395_v44 = vmul.f32 1.442695, %v11389_v29  ;;  %v11397_v34 = vmul.f32 1.442695, %v11390_v58  ;;  %v16130_v29 = vpack.c.bf16 %v14355_v15, %v14354_v62  ;;  %v16759_v62 = vld [vmem:[%s19477_s11] ss:$0 sm:$0xff] }
0x35f0   :  { %v11420_v56 = vpop.permute.xlu0 %11419  ;;  %v11497_v35 = vpop.permute.xlu1 %11496 }
0x35f1   :  { %16681 = vpow2.f32 %v11395_v44  ;;  %15683 = vmatpush3.msk.msra.mxu0 %vm7199_vm10, %v11420_v56  ;;  %15688 = vmatpush3.msk.msra.mxu1 %vm7199_vm10, %v11497_v35 }
0x35f2   :  { %16683 = vpow2.f32 %v11397_v34  ;;  %15692 = vmatprep.subr.mxu0 %v16773_v25  ;;  %15697 = vmatprep.subr.mxu1 %v16773_v25 }
0x35f4   :  { %v16678_v22 = vpop.eup %16677 }
0x35f5   :  { %v11399_v8 = vsel %vm7148_vm9, %v16678_v22, 0.0 }
0x35f6   :  { %11400 = vadd.xlane.f32.xlu0 %v11399_v8 }
0x35f7   :  { %v16680_v31 = vpop.eup %16679 }
0x35f8   :  { %v11402_v16 = vsel %vm7148_vm9, %v16680_v31, 0.0 }
0x35f9   :  { %11403 = vadd.xlane.f32.xlu1 %v11402_v16 }
0x35fb   :  { %v16682_v26 = vpop.eup %16681 }
0x35fc   :  { %v16684_v9 = vpop.eup %16683  ;;  %v11405_v11 = vsel %vm7148_vm9, %v16682_v26, 0.0 }
0x35fd   :  { %11406 = vadd.xlane.f32.xlu0 %v11405_v11  ;;  %v11408_v43 = vsel %vm7148_vm9, %v16684_v9, 0.0  ;;  %v14347_v11 = vld [vmem:[%s19402_s18 + $0x28] sm:$0xff] }
0x35fe   :  { %11409 = vadd.xlane.f32.xlu1 %v11408_v43 }
0x360f   :  { %11573 = vrot.lane.b32.xlu1 %v18874_v45, %s19466_s26 }
0x3613   :  { %11038 = vrot.lane.b32.xlu1 %v10878_v47, %s19471_s5  ;;  %11650 = vrot.lane.b32.xlu0 %v18886_v60, %s19466_s26 }
0x3617   :  { %11043 = vrot.lane.b32.xlu1 %v10955_v42, %s19464_s2 }
0x361b   :  { %11048 = vrot.lane.b32.xlu1 %v11032_v49, %s19472_s28 }
0x3683   :  { %v11401_v28 = vpop.xlane.xlu0 %11400 }
0x3684   :  { %16685 = vrcp.f32 %v11401_v28  ;;  %v14348_v28 = vld [vmem:[%s19402_s18 + $0x30] sm:$0xff] }
0x3686   :  { %v11404_v7 = vpop.xlane.xlu1 %11403 }
0x3687   :  { %16687 = vrcp.f32 %v11404_v7  ;;  %v14349_v7 = vld [vmem:[%s19402_s18 + $0x38] sm:$0xff] }
0x368a   :  { %v11407_v55 = vpop.xlane.xlu0 %11406 }
0x368b   :  { %16689 = vrcp.f32 %v11407_v55  ;;  %v11410_v30 = vpop.xlane.xlu1 %11409  ;;  %v16122_v55 = vpack.c.bf16 %v14349_v7, %v14348_v28 }
0x368c   :  { %16691 = vrcp.f32 %v11410_v30 }
0x368e   :  { %v16686_v41 = vpop.eup %16685  ;;  %v11651_v51 = vpop.permute.xlu0 %11650 }
0x368f   :  { %v11412_v61 = vmul.f32 %v16686_v41, %v16678_v22  ;;  %v11574_v45 = vpop.permute.xlu1 %11573 }
0x3691   :  { %v16688_v6 = vpop.eup %16687  ;;  %15685 = vmatmul.mubr.msk.f32.vlgmr.msra.gmra.mrb[132].mxu0 %vm7195_vm11, %v11412_v61 }
0x3692   :  { %v11414_v59 = vmul.f32 %v16688_v6, %v16680_v31  ;;  %15693 = vmatpush3.msk.msra.mxu0 %vm7199_vm10, %v11574_v45  ;;  %15694 = vmatprep.mubr.msk.f32.mxu0 %vm16774_vm1, %v16773_v25 }
0x3693   :  { %v11039_v60 = vpop.permute.xlu1 %11038  ;;  %16111 = vmatprep.subr.bf16.mxu0 %v16110_v36 }
0x3694   :  { %11041 = vst.msk [vmem:[#allocation3] sm:$0x3f] %vm7509_vm13, %v11039_v60  ;;  %15690 = vmatmul.mubr.msk.f32.vlgmr.msra.gmra.mrb[134].mxu1 %vm7195_vm11, %v11414_v59 }
0x3695   :  { %v16690_v47 = vpop.eup %16689  ;;  %15698 = vmatpush3.msk.msra.mxu1 %vm7199_vm10, %v11651_v51  ;;  %15699 = vmatprep.mubr.msk.f32.mxu1 %vm16774_vm1, %v16773_v25 }
0x3696   :  { %v16692_v52 = vpop.eup %16691  ;;  %v11416_v42 = vmul.f32 %v16690_v47, %v16682_v26 }
0x3697   :  { %v11418_v49 = vmul.f32 %v16692_v52, %v16684_v9  ;;  %v11044_v0 = vpop.permute.xlu1 %11043  ;;  %v14346_v9 = vld [vmem:[%s19402_s18 + $0x20] sm:$0xff] }
0x3698   :  { %11046 = vst.msk [vmem:[#allocation3] sm:$0x3f] %vm7515_vm14, %v11044_v0  ;;  %15695 = vmatmul.mubr.msk.f32.vlgmr.msra.gmra.mrb[134].mxu0 %vm7195_vm11, %v11416_v42  ;;  %v16118_v43 = vpack.c.bf16 %v14347_v11, %v14346_v9 }
0x3699   :  { %15700 = vmatmul.mubr.msk.f32.vlgmr.msra.gmra.mrb[136].mxu1 %vm7195_vm11, %v11418_v49  ;;  %16113 = vmatpush3.bf16.msra.mxu0 %v16110_v36  ;;  %v14345_v36 = vld [vmem:[%s19401_s17 + $0x1] ss:$0 sm:$0xff] }
0x369a   :  { %16115 = vmatprep.subr.bf16.mxu0 %v16114_v19  ;;  %16119 = vmatprep.subr.bf16.mxu1 %v16118_v43 }
0x369b   :  { %v11049_v40 = vpop.permute.xlu1 %11048  ;;  %16121 = vmatpush3.bf16.msra.mxu1 %v16118_v43 }
0x369c   :  { %11051 = vst.msk [vmem:[#allocation3] sm:$0x3f] %vm7521_vm15, %v11049_v40  ;;  %16123 = vmatprep.subr.bf16.mxu1 %v16122_v55 }
0x369d   :  { %16117 = vmatpush3.bf16.msra.mxu0 %v16114_v19 }
0x369e   :  { %16127 = vmatprep.subr.bf16.mxu0 %v16126_v10 }
0x369f   :  { %16125 = vmatpush3.bf16.msra.mxu1 %v16122_v55 }
0x36a0   :  { %16134 = vmatprep.subr.bf16.mxu1 %v16783_v17 }
0x3764   :  { %v11492_v13 = vpop.f32.mrb[132].mxu0 }
0x3765   :  { %11727 = vst.msk [vmem:[#allocation3 + $0x6] sm:$0x3f] %vm7503_vm12, %v11492_v13  ;;  %v15686_v33 = vpop.f32.mrb[133].mxu0 }
0x3767   :  { %v11569_v12 = vpop.f32.mrb[134].mxu1 }
0x3768   :  { %v15691_v1 = vpop.f32.mrb[135].mxu1 }
0x376b   :  { %v11646_v2 = vpop.f32.mrb[134].mxu0 }
0x376c   :  { %v11723_v20 = vpop.f32.mrb[136].mxu1  ;;  %11734 = vrot.lane.b32.xlu0 %v11646_v2, %s19464_s2  ;;  %v15696_v63 = vpop.f32.mrb[135].mxu0 }
0x376d   :  { %v15701_v3 = vpop.f32.mrb[137].mxu1 }
0x3770   :  { %11729 = vrot.lane.b32.xlu0 %v11569_v12, %s19471_s5 }
0x3774   :  { %11739 = vrot.lane.b32.xlu0 %v11723_v20, %s19472_s28 }
0x37de   :  { %v11735_v48 = vpop.permute.xlu0 %11734 }
0x37e2   :  { %v11730_v46 = vpop.permute.xlu0 %11729 }
0x37e3   :  { %11732 = vst.msk [vmem:[#allocation3 + $0x6] sm:$0x3f] %vm7509_vm13, %v11730_v46 }
0x37e4   :  { %11737 = vst.msk [vmem:[#allocation3 + $0x6] sm:$0x3f] %vm7515_vm14, %v11735_v48 }
0x37e6   :  { %v11740_v18 = vpop.permute.xlu0 %11739 }
0x37e7   :  { %11742 = vst.msk [vmem:[#allocation3 + $0x6] sm:$0x3f] %vm7521_vm15, %v11740_v18 }
0x37ee   :  { %v11743_v37 = vld [vmem:[#allocation3] sm:$0xff]  ;;  %v11744_v54 = vld [vmem:[#allocation3 + $0x8] sm:$0xf] }
0x37ef   :  { %15710 = vmatprep.mubr.msk.f32.mxu0 %vm143_vm0, %v11743_v37 }
0x37f0   :  { %15711 = vmatmul.mubr.msk.f32.vlgmr.msra.gmra.mrb[136].mxu0 %vm143_vm0, %v11744_v54 }
0x37f1   :  { %16129 = vmatpush3.bf16.msra.mxu0 %v16126_v10  ;;  %15732 = vmatprep.mubr.msk.f32.mxu0 %vm143_vm0, %v18394_v57 }
0x37f2   :  { %16131 = vmatprep.subr.bf16.mxu0 %v16130_v29 }
0x37f5   :  { %16133 = vmatpush3.bf16.msra.mxu0 %v16130_v29 }
0x37f6   :  { %16138 = vmatprep.subr.bf16.mxu0 %v16783_v17 }
0x37f8   :  { %15733 = vmatmul.mubr.msk.f32.vlgmr.msra.gmra.mrb[138].mxu0 %vm143_vm0, %v18400_v14 }
0x37f9   :  { %15735 = vmatprep.mubr.msk.f32.mxu0 %vm143_vm0, %v18465_v5 }
0x37fc   :  { %15736 = vmatmul.mubr.msk.f32.gmra.mrb[140].mxu0 %vm143_vm0, %v18470_v4 }
0x37fd   :  { %15749 = vmatprep.mubr.msk.f32.mxu0 %vm16774_vm1, %v16773_v25 }
0x38c3   :  { %v15712_v58 = vpop.f32.mrb[136].mxu0 }
0x38c4   :  { %v19016_v44 = vadd.f32 %v15712_v58, %v18749_v53  ;;  %v11822_v57 = vpop.f32.mrb[137].mxu0 }
0x38c5   :  { %v19019_v34 = vadd.f32 %v11822_v57, %v18752_v24 }
0x38c6   :  { %v11836_v14 = vmul.f32 %v19016_v44, %v19016_v44 }
0x38c7   :  { %v11835_v5 = vmul.f32 %v19019_v34, %v19019_v34 }
0x38c8   :  { %v11840_v56 = vsel %vm6732_vm7, %v11836_v14, 0.0 }
0x38c9   :  { %11841 = vadd.xlane.f32.xlu0 %v11840_v56  ;;  %v11837_v4 = vsel %vm143_vm0, %v11835_v5, 0.0 }
0x38ca   :  { %11838 = vadd.xlane.f32.xlu1 %v11837_v4 }
0x38cb   :  { %v15734_v35 = vpop.f32.mrb[138].mxu0 }
0x38cc   :  { %v12016_v22 = vpop.f32.mrb[139].mxu0 }
0x38cd   :  { %v16135_v53 = vpack.c.bf16 %v15734_v35, %v12016_v22  ;;  %v19027_v8 = vpack.i.bf16 %v15734_v35, %v12016_v22 }
0x38cf   :  { %v19029_v31 = vpop.f32.mrb[140].mxu0 }
0x38d0   :  { %v19031_v24 = vpop.f32.mrb[141].mxu0 }
0x38d1   :  { %v16163_v16 = vpack.c.bf16 %v19029_v31, %v19031_v24  ;;  %v19037_v26 = vpack.i.bf16 %v19029_v31, %v19031_v24 }
0x38db   :  { %16327 = vrot.lane.b32.xlu1 %v19027_v8, %s19467_s4 }
0x38df   :  { %16322 = vrot.lane.b32.xlu0 %v19027_v8, %s19468_s30 }
0x38e3   :  { %16332 = vrot.lane.b32.xlu0 %v19027_v8, %s19469_s8 }
0x3956   :  { %v11842_v30 = vpop.xlane.xlu0 %11841 }
0x3957   :  { %v11844_v41 = vmul.f32 0.03125, %v11842_v30  ;;  %v11839_v61 = vpop.xlane.xlu1 %11838 }
0x3958   :  { %v11843_v45 = vmul.f32 0.03125, %v11839_v61 }
0x3959   :  { %v11846_v6 = vadd.f32 1e-06, %v11844_v41 }
0x395a   :  { %v11845_v59 = vadd.f32 1e-06, %v11843_v45  ;;  %v16323_v60 = vpop.permute.xlu0 %16322 }
0x395b   :  { %16693 = vrsqrt.f32 %v11846_v6  ;;  %v16325_v51 = vunpack.i.h.bf16 %v16323_v60  ;;  %v16324_v47 = vunpack.i.l.bf16 %v16323_v60  ;;  %v19058_v52 = vpop.permute.xlu1 %16327 }
0x395c   :  { %16695 = vrsqrt.f32 %v11845_v59  ;;  %v16330_v42 = vunpack.i.h.bf16 %v19058_v52  ;;  %v16329_v49 = vunpack.i.l.bf16 %v19058_v52 }
0x395d   :  { %v16139_v0 = vpack.c.bf16 %v16325_v51, %v16324_v47 }
0x395e   :  { %v19062_v40 = vpop.permute.xlu0 %16332  ;;  %v16143_v63 = vpack.c.bf16 %v16330_v42, %v16329_v49 }
0x395f   :  { %v16335_v13 = vunpack.i.h.bf16 %v19062_v40  ;;  %v16334_v33 = vunpack.i.l.bf16 %v19062_v40  ;;  %16141 = vmatpush3.bf16.xpose.msk.msra.mxu0 %vm18455_vm3, %v16139_v0 }
0x3960   :  { %16146 = vmatprep.subr.bf16.mxu0 %v16783_v17 }
0x3961   :  { %v16147_v21 = vpack.c.bf16 %v16335_v13, %v16334_v33 }
0x3965   :  { %v16694_v39 = vpop.eup %16693 }
0x3966   :  { %v16696_v27 = vpop.eup %16695  ;;  %v11850_v12 = vmul.f32 %v16694_v39, %v19016_v44 }
0x3967   :  { %v11849_v23 = vmul.f32 %v16696_v27, %v19019_v34 }
0x3968   :  { %v11858_v1 = vmul.f32 %v14345_v36, %v11850_v12 }
0x3969   :  { %v11857_v32 = vmul.f32 %v14345_v36, %v11849_v23 }
0x396b   :  { %15721 = vmatprep.mubr.msk.f32.mxu1 %vm143_vm0, %v11857_v32 }
0x396c   :  { %15722 = vmatmul.mubr.msk.f32.vlgmr.msra.gmra.mrb[138].mxu1 %vm143_vm0, %v11858_v1 }
0x396d   :  { %16137 = vmatpush3.bf16.xpose.msk.msra.mxu1 %vm18455_vm3, %v16135_v53  ;;  %15742 = vmatprep.mubr.msk.f32.mxu1 %vm16774_vm1, %v16773_v25 }
0x396e   :  { %16142 = vmatprep.subr.bf16.mxu1 %v16783_v17 }
0x3a3f   :  { %v19081_v19 = vpop.f32.mrb[138].mxu1 }
0x3a40   :  { %v12758_v2 = vrot.slane %v19081_v19, 6  ;;  %v11936_v20 = vpop.f32.mrb[139].mxu1 }
0x3a41   :  { %v12757_v3 = vrot.slane %v11936_v20, 6  ;;  %12040 = vrot.lane.b32.xlu0 %v11936_v20, %s19469_s8  ;;  %12036 = vrot.lane.b32.xlu1 %v11936_v20, %s19468_s30 }
0x3a42   :  { %15743 = vmatmul.mubr.msk.f32.vlgmr.msra.gmra.mrb[140].mxu1 %vm293_vm2, %v11936_v20 }
0x3a43   :  { %16145 = vmatpush3.bf16.xpose.msk.msra.mxu1 %vm18455_vm3, %v16143_v63  ;;  %15756 = vmatprep.mubr.msk.f32.mxu1 %vm16774_vm1, %v16773_v25  ;;  %v19092_v50 = vsel %vm7530_vm8, %v12757_v3, %v12758_v2 }
0x3a44   :  { %16150 = vmatprep.subr.bf16.mxu1 %v16783_v17 }
0x3a45   :  { %12038 = vrot.lane.b32.xlu1 %v11936_v20, %s19467_s4 }
0x3ab3   :  { %v19096_v10 = vpop.permute.xlu1 %12036  ;;  %v19111_v46 = vpop.permute.xlu0 %12040 }
0x3ab4   :  { %15750 = vmatmul.mubr.msk.f32.vlgmr.msra.gmra.mrb[142].mxu0 %vm293_vm2, %v19096_v10 }
0x3ab5   :  { %16149 = vmatpush3.bf16.xpose.msk.msra.mxu0 %vm18455_vm3, %v16147_v21  ;;  %15763 = vmatprep.mubr.msk.f32.mxu0 %vm16774_vm1, %v16773_v25 }
0x3ab6   :  { %16156 = vmatprep.subr.bf16.mxu0 %v16783_v17 }
0x3ab7   :  { %v19105_v48 = vpop.permute.xlu1 %12038 }
0x3ab8   :  { %15757 = vmatmul.mubr.msk.f32.vlgmr.msra.gmra.mrb[142].mxu1 %vm293_vm2, %v19105_v48 }
0x3ab9   :  { %15770 = vmatprep.mubr.msk.f32.mxu1 %vm16774_vm1, %v16773_v25 }
0x3abc   :  { %15764 = vmatmul.mubr.msk.f32.vlgmr.msra.gmra.mrb[144].mxu0 %vm293_vm2, %v19111_v46 }
0x3abd   :  { %15784 = vmatprep.mubr.msk.f32.mxu0 %vm16774_vm1, %v16773_v25 }
0x3b15   :  { %v12128_v18 = vpop.f32.mrb[140].mxu1 }
0x3b16   :  { %v12129_v15 = vadd.f32 %v16759_v62, %v12128_v18  ;;  %v15744_v37 = vpop.f32.mrb[141].mxu1 }
0x3b18   :  { %v12360_v54 = vsel %vm8846_vm4, %v12129_v15, -inf }
0x3b19   :  { %12361 = vmax.xlane.f32.xlu1 %v12360_v54 }
0x3b2a   :  { %16342 = vrot.lane.b32.xlu1 %v16323_v60, %s19470_s9 }
0x3b87   :  { %v12204_v29 = vpop.f32.mrb[142].mxu0 }
0x3b88   :  { %v12205_v58 = vadd.f32 %v16759_v62, %v12204_v29  ;;  %v15751_v57 = vpop.f32.mrb[143].mxu0 }
0x3b8a   :  { %v12363_v14 = vsel %vm8846_vm4, %v12205_v58, -inf }
0x3b8b   :  { %12364 = vmax.xlane.f32.xlu0 %v12363_v14  ;;  %v12280_v5 = vpop.f32.mrb[142].mxu1 }
0x3b8c   :  { %v12281_v56 = vadd.f32 %v16759_v62, %v12280_v5  ;;  %v15758_v4 = vpop.f32.mrb[143].mxu1 }
0x3b8e   :  { %v12366_v35 = vsel %vm8846_vm4, %v12281_v56, -inf }
0x3b8f   :  { %v12356_v22 = vpop.f32.mrb[144].mxu0  ;;  %12367 = vmax.xlane.f32.xlu0 %v12366_v35 }
0x3b90   :  { %v12357_v53 = vadd.f32 %v16759_v62, %v12356_v22  ;;  %v15765_v9 = vpop.f32.mrb[145].mxu0 }
0x3b92   :  { %v12369_v11 = vsel %vm8846_vm4, %v12357_v53, -inf }
0x3b93   :  { %12370 = vmax.xlane.f32.xlu1 %v12369_v11 }
0x3ba4   :  { %16347 = vrot.lane.b32.xlu1 %v19058_v52, %s19470_s9 }
0x3ba5   :  { %16337 = vrot.lane.b32.xlu0 %v19027_v8, %s19470_s9 }
0x3ba6   :  { %v12362_v43 = vpop.xlane.xlu1 %12361 }
0x3ba7   :  { %v12372_v28 = vsub.f32 %v12129_v15, %v12362_v43 }
0x3ba9   :  { %v12376_v7 = vmul.f32 1.442695, %v12372_v28 }
0x3baa   :  { %v16343_v6 = vpop.permute.xlu1 %16342 }
0x3bab   :  { %16697 = vpow2.f32 %v12376_v7  ;;  %v16345_v20 = vunpack.i.h.bf16 %v16343_v6  ;;  %v16344_v63 = vunpack.i.l.bf16 %v16343_v6 }
0x3bad   :  { %v16154_v62 = vpack.c.bf16 %v16345_v20, %v16344_v63 }
0x3bb5   :  { %v16698_v55 = vpop.eup %16697 }
0x3bb6   :  { %v12384_v30 = vsel %vm8846_vm4, %v16698_v55, 0.0 }
0x3bc4   :  { %12385 = vadd.xlane.f32.xlu0 %v12384_v30 }
0x3bda   :  { %16352 = vrot.lane.b32.xlu0 %v19062_v40, %s19470_s9 }
0x3c18   :  { %v12365_v41 = vpop.xlane.xlu0 %12364 }
0x3c19   :  { %v12373_v61 = vsub.f32 %v12205_v58, %v12365_v41 }
0x3c1b   :  { %v12378_v45 = vmul.f32 1.442695, %v12373_v61  ;;  %v12915_v61 = vrot.slane %v19105_v48, 6  ;;  %v12836_v48 = vrot.slane %v19096_v10, 6 }
0x3c1c   :  { %v12368_v59 = vpop.xlane.xlu0 %12367 }
0x3c1d   :  { %16699 = vpow2.f32 %v12378_v45  ;;  %v12374_v60 = vsub.f32 %v12281_v56, %v12368_v59 }
0x3c1f   :  { %v12380_v51 = vmul.f32 1.442695, %v12374_v60 }
0x3c20   :  { %v12371_v8 = vpop.xlane.xlu1 %12370  ;;  %v16338_v47 = vpop.permute.xlu0 %16337 }
0x3c21   :  { %16701 = vpow2.f32 %v12380_v51  ;;  %v16340_v52 = vunpack.i.h.bf16 %v16338_v47  ;;  %v16339_v42 = vunpack.i.l.bf16 %v16338_v47  ;;  %v12375_v23 = vsub.f32 %v12357_v53, %v12371_v8 }
0x3c23   :  { %v16151_v49 = vpack.c.bf16 %v16340_v52, %v16339_v42  ;;  %v12382_v32 = vmul.f32 1.442695, %v12375_v23  ;;  %v12994_v52 = vrot.slane %v19111_v46, 6  ;;  %v16760_v46 = vld [vmem:[%s19477_s11 + $0x1] ss:$0 sm:$0xff] }
0x3c24   :  { %v16348_v0 = vpop.permute.xlu1 %16347 }
0x3c25   :  { %v16350_v13 = vunpack.i.h.bf16 %v16348_v0  ;;  %v16349_v33 = vunpack.i.l.bf16 %v16348_v0  ;;  %16152 = vmatpush3.bf16.msra.mxu1 %v16151_v49  ;;  %16703 = vpow2.f32 %v12382_v32 }
0x3c26   :  { %16153 = vmatprep.subr.bf16.mxu1 %v16783_v17 }
0x3c27   :  { %v16700_v40 = vpop.eup %16699  ;;  %v16157_v39 = vpack.c.bf16 %v16350_v13, %v16349_v33 }
0x3c28   :  { %v12387_v27 = vsel %vm8846_vm4, %v16700_v40, 0.0 }
0x3c29   :  { %16158 = vmatpush3.bf16.msra.mxu0 %v16157_v39  ;;  %12388 = vadd.xlane.f32.xlu1 %v12387_v27 }
0x3c2a   :  { %16162 = vmatprep.subr.bf16.mxu0 %v16783_v17 }
0x3c2b   :  { %v16702_v36 = vpop.eup %16701 }
0x3c2c   :  { %v12390_v12 = vsel %vm8846_vm4, %v16702_v36, 0.0 }
0x3c2d   :  { %12391 = vadd.xlane.f32.xlu0 %v12390_v12 }
0x3c2f   :  { %v16704_v2 = vpop.eup %16703 }
0x3c30   :  { %v12393_v18 = vsel %vm8846_vm4, %v16704_v2, 0.0 }
0x3c3a   :  { %16357 = vrot.lane.b32.xlu1 %v19037_v26, %s19468_s30 }
0x3c43   :  { %12737 = vrot.lane.b32.xlu0 %v19081_v19, %s19468_s30 }
0x3c47   :  { %16367 = vrot.lane.b32.xlu0 %v19037_v26, %s19469_s8 }
0x3c4b   :  { %12741 = vrot.lane.b32.xlu0 %v19081_v19, %s19469_s8 }
0x3c51   :  { %v12386_v1 = vpop.xlane.xlu0 %12385 }
0x3c52   :  { %16705 = vrcp.f32 %v12386_v1 }
0x3c55   :  { %v16353_v15 = vpop.permute.xlu0 %16352 }
0x3c56   :  { %v16355_v5 = vunpack.i.h.bf16 %v16353_v15  ;;  %v16354_v56 = vunpack.i.l.bf16 %v16353_v15 }
0x3c58   :  { %v16160_v53 = vpack.c.bf16 %v16355_v5, %v16354_v56 }
0x3c5c   :  { %v16706_v3 = vpop.eup %16705 }
0x3c5d   :  { %v12397_v21 = vmul.f32 %v16706_v3, %v16698_v55 }
0x3c5e   :  { %12394 = vadd.xlane.f32.xlu1 %v12393_v18 }
0x3c5f   :  { %15771 = vmatmul.mubr.msk.f32.vlgmr.msra.gmra.mrb[144].mxu1 %vm8897_vm5, %v12397_v21 }
0x3c60   :  { %16155 = vmatpush3.bf16.msra.mxu1 %v16154_v62  ;;  %15777 = vmatprep.mubr.msk.f32.mxu1 %vm16774_vm1, %v16773_v25 }
0x3c61   :  { %16159 = vmatprep.subr.bf16.mxu1 %v16783_v17 }
0x3c6f   :  { %16362 = vrot.lane.b32.xlu1 %v19037_v26, %s19467_s4 }
0x3c73   :  { %12739 = vrot.lane.b32.xlu1 %v19081_v19, %s19467_s4  ;;  %s16786_s4 = smov 1.0  }
0x3cb6   :  { %v12389_v37 = vpop.xlane.xlu1 %12388 }
0x3cb7   :  { %16707 = vrcp.f32 %v12389_v37 }
0x3cba   :  { %v12392_v54 = vpop.xlane.xlu0 %12391  ;;  %v19153_v29 = vpop.permute.xlu1 %16357 }
0x3cbb   :  { %16709 = vrcp.f32 %v12392_v54  ;;  %v16360_v58 = vunpack.i.h.bf16 %v19153_v29  ;;  %v16359_v57 = vunpack.i.l.bf16 %v19153_v29 }
0x3cbd   :  { %v16167_v45 = vpack.c.bf16 %v16360_v58, %v16359_v57 }
0x3cbe   :  { %v12738_v14 = vpop.permute.xlu0 %12737 }
0x3cbf   :  { %v12837_v59 = vrot.slane %v12738_v14, 6 }
0x3cc1   :  { %v16708_v4 = vpop.eup %16707  ;;  %v12838_v60 = vsel %vm7530_vm8, %v12836_v48, %v12837_v59 }
0x3cc2   :  { %v12399_v35 = vmul.f32 %v16708_v4, %v16700_v40  ;;  %v19157_v22 = vpop.permute.xlu0 %16367 }
0x3cc3   :  { %v16370_v19 = vunpack.i.h.bf16 %v19157_v22  ;;  %v16369_v9 = vunpack.i.l.bf16 %v19157_v22 }
0x3cc4   :  { %15778 = vmatmul.mubr.msk.f32.vlgmr.msra.gmra.mrb[146].mxu1 %vm8897_vm5, %v12399_v35 }
0x3cc5   :  { %v16710_v11 = vpop.eup %16709  ;;  %16161 = vmatpush3.bf16.msra.mxu1 %v16160_v53  ;;  %15791 = vmatprep.mubr.msk.f32.mxu1 %vm16774_vm1, %v16773_v25  ;;  %v16175_v51 = vpack.c.bf16 %v16370_v19, %v16369_v9 }
0x3cc6   :  { %v12401_v43 = vmul.f32 %v16710_v11, %v16702_v36  ;;  %16166 = vmatprep.subr.bf16.mxu1 %v16783_v17  ;;  %v12742_v8 = vpop.permute.xlu0 %12741 }
0x3cc7   :  { %v12995_v47 = vrot.slane %v12742_v8, 6 }
0x3cc8   :  { %15785 = vmatmul.mubr.msk.f32.vlgmr.msra.gmra.mrb[146].mxu0 %vm8897_vm5, %v12401_v43 }
0x3cc9   :  { %16165 = vmatpush3.bf16.xpose.msk.msra.mxu0 %vm18455_vm3, %v16163_v16  ;;  %15798 = vmatprep.mubr.msk.f32.mxu0 %vm16774_vm1, %v16773_v25  ;;  %v12996_v42 = vsel %vm7530_vm8, %v12994_v52, %v12995_v47 }
0x3cca   :  { %16170 = vmatprep.subr.bf16.mxu0 %v16783_v17 }
0x3cd0   :  { %15799 = vmatmul.mubr.msk.f32.vlgmr.msra.gmra.mrb[148].mxu0 %vm293_vm2, %v19092_v50 }
0x3cd1   :  { %15812 = vmatprep.mubr.msk.f32.mxu0 %vm16774_vm1, %v16773_v25 }
0x3ceb   :  { %v12395_v28 = vpop.xlane.xlu1 %12394 }
0x3cec   :  { %16711 = vrcp.f32 %v12395_v28 }
0x3cef   :  { %v19178_v7 = vpop.permute.xlu1 %16362 }
0x3cf0   :  { %v16365_v31 = vunpack.i.h.bf16 %v19178_v7  ;;  %v16364_v24 = vunpack.i.l.bf16 %v19178_v7 }
0x3cf2   :  { %v16171_v16 = vpack.c.bf16 %v16365_v31, %v16364_v24 }
0x3cf3   :  { %v12740_v55 = vpop.permute.xlu1 %12739 }
0x3cf4   :  { %16173 = vmatpush3.bf16.xpose.msk.msra.mxu0 %vm18455_vm3, %v16171_v16  ;;  %v12916_v50 = vrot.slane %v12740_v55, 6 }
0x3cf5   :  { %16178 = vmatprep.subr.bf16.mxu0 %v16783_v17 }
0x3cf6   :  { %v16712_v30 = vpop.eup %16711  ;;  %v12917_v6 = vsel %vm7530_vm8, %v12915_v61, %v12916_v50 }
0x3cf7   :  { %v12403_v41 = vmul.f32 %v16712_v30, %v16704_v2 }
0x3cf9   :  { %15792 = vmatmul.mubr.msk.f32.vlgmr.msra.gmra.mrb[148].mxu1 %vm8897_vm5, %v12403_v41 }
0x3cfa   :  { %16169 = vmatpush3.bf16.xpose.msk.msra.mxu1 %vm18455_vm3, %v16167_v45  ;;  %15805 = vmatprep.mubr.msk.f32.mxu1 %vm16774_vm1, %v16773_v25 }
0x3cfb   :  { %15813 = vmatmul.mubr.msk.f32.vlgmr.msra.gmra.mrb[150].mxu0 %vm293_vm2, %v12917_v6  ;;  %16174 = vmatprep.subr.bf16.mxu1 %v16783_v17 }
0x3cfc   :  { %15826 = vmatprep.mubr.msk.f32.mxu0 %vm16774_vm1, %v16773_v25 }
0x3d01   :  { %15806 = vmatmul.mubr.msk.f32.vlgmr.msra.gmra.mrb[150].mxu1 %vm293_vm2, %v12838_v60 }
0x3d02   :  { %16177 = vmatpush3.bf16.xpose.msk.msra.mxu1 %vm18455_vm3, %v16175_v51  ;;  %15819 = vmatprep.mubr.msk.f32.mxu1 %vm16774_vm1, %v16773_v25 }
0x3d03   :  { %16181 = vmatprep.subr.bf16.mxu1 %v16783_v17 }
0x3d09   :  { %15820 = vmatmul.mubr.msk.f32.vlgmr.msra.gmra.mrb[152].mxu1 %vm293_vm2, %v12996_v42 }
0x3d0a   :  { %15833 = vmatprep.mubr.msk.f32.mxu1 %vm16774_vm1, %v16773_v25 }
0x3d32   :  { %v12479_v10 = vpop.f32.mrb[144].mxu1 }
0x3d33   :  { %12720 = vst.msk [vmem:[#allocation3] sm:$0x3f] %vm7503_vm12, %v12479_v10  ;;  %v15772_v38 = vpop.f32.mrb[145].mxu1 }
0x3d97   :  { %v19210_v49 = vpop.f32.mrb[146].mxu1 }
0x3d98   :  { %v15779_v0 = vpop.f32.mrb[147].mxu1 }
0x3d9b   :  { %v19212_v13 = vpop.f32.mrb[146].mxu0 }
0x3d9c   :  { %v15786_v33 = vpop.f32.mrb[147].mxu0 }
0x3da3   :  { %v12832_v40 = vpop.f32.mrb[148].mxu0 }
0x3da4   :  { %v12833_v39 = vadd.f32 %v16760_v46, %v12832_v40  ;;  %v15800_v27 = vpop.f32.mrb[149].mxu0 }
0x3da6   :  { %v13073_v36 = vsel %vm8846_vm4, %v12833_v39, -inf }
0x3da7   :  { %13074 = vmax.xlane.f32.xlu1 %v13073_v36 }
0x3dcc   :  { %v12716_v12 = vpop.f32.mrb[148].mxu1 }
0x3dcd   :  { %v15793_v23 = vpop.f32.mrb[149].mxu1 }
0x3dce   :  { %v12990_v32 = vpop.f32.mrb[150].mxu0 }
0x3dcf   :  { %v15814_v1 = vpop.f32.mrb[151].mxu0  ;;  %v12991_v3 = vadd.f32 %v16760_v46, %v12990_v32 }
0x3dd1   :  { %v13079_v18 = vsel %vm8846_vm4, %v12991_v3, -inf }
0x3dd4   :  { %v12911_v2 = vpop.f32.mrb[150].mxu1 }
0x3dd5   :  { %v12912_v20 = vadd.f32 %v16760_v46, %v12911_v2  ;;  %v15807_v63 = vpop.f32.mrb[151].mxu1 }
0x3dd7   :  { %v13076_v21 = vsel %vm8846_vm4, %v12912_v20, -inf }
0x3dd8   :  { %13077 = vmax.xlane.f32.xlu0 %v13076_v21  ;;  %v14392_v21 = vld [vmem:[%s19404_s20 + $0x20] sm:$0xff] }
0x3ddc   :  { %v13069_v62 = vpop.f32.mrb[152].mxu1  ;;  %13080 = vmax.xlane.f32.xlu0 %v13079_v18  ;;  %v14393_v18 = vld [vmem:[%s19404_s20 + $0x28] sm:$0xff] }
0x3ddd   :  { %v13070_v15 = vadd.f32 %v16760_v46, %v13069_v62  ;;  %v15821_v37 = vpop.f32.mrb[153].mxu1  ;;  %v16190_v62 = vpack.c.bf16 %v14393_v18, %v14392_v21 }
0x3dde   :  { %v14395_v37 = vld [vmem:[%s19404_s20 + $0x38] sm:$0xff] }
0x3ddf   :  { %v13082_v54 = vsel %vm8846_vm4, %v13070_v15, -inf }
0x3de0   :  { %13083 = vmax.xlane.f32.xlu1 %v13082_v54 }
0x3df1   :  { %16377 = vrot.lane.b32.xlu1 %v19153_v29, %s19470_s9 }
0x3df2   :  { %16372 = vrot.lane.b32.xlu0 %v19037_v26, %s19470_s9 }
0x3e34   :  { %v13075_v58 = vpop.xlane.xlu1 %13074 }
0x3e35   :  { %v13085_v57 = vsub.f32 %v12833_v39, %v13075_v58 }
0x3e37   :  { %v13089_v14 = vmul.f32 1.442695, %v13085_v57 }
0x3e39   :  { %16713 = vpow2.f32 %v13089_v14 }
0x3e43   :  { %v16714_v5 = vpop.eup %16713 }
0x3e44   :  { %v13097_v56 = vsel %vm8846_vm4, %v16714_v5, 0.0 }
0x3e45   :  { %13098 = vadd.xlane.f32.xlu0 %v13097_v56 }
0x3e65   :  { %v13078_v4 = vpop.xlane.xlu0 %13077 }
0x3e66   :  { %v13086_v35 = vsub.f32 %v12912_v20, %v13078_v4 }
0x3e68   :  { %v13091_v53 = vmul.f32 1.442695, %v13086_v35 }
0x3e69   :  { %v13081_v19 = vpop.xlane.xlu0 %13080 }
0x3e6a   :  { %16715 = vpow2.f32 %v13091_v53  ;;  %v13087_v9 = vsub.f32 %v12991_v3, %v13081_v19 }
0x3e6c   :  { %v13093_v11 = vmul.f32 1.442695, %v13087_v9 }
0x3e6d   :  { %v13084_v43 = vpop.xlane.xlu1 %13083  ;;  %v16373_v29 = vpop.permute.xlu0 %16372 }
0x3e6e   :  { %16717 = vpow2.f32 %v13093_v11  ;;  %v13088_v28 = vsub.f32 %v13070_v15, %v13084_v43  ;;  %v16375_v26 = vunpack.i.h.bf16 %v16373_v29  ;;  %v16374_v31 = vunpack.i.l.bf16 %v16373_v29  ;;  %v14394_v15 = vld [vmem:[%s19404_s20 + $0x30] sm:$0xff] }
0x3e6f   :  { %v16194_v54 = vpack.c.bf16 %v14395_v37, %v14394_v15 }
0x3e70   :  { %v13095_v24 = vmul.f32 1.442695, %v13088_v28  ;;  %v16179_v16 = vpack.c.bf16 %v16375_v26, %v16374_v31 }
0x3e71   :  { %v16378_v55 = vpop.permute.xlu1 %16377 }
0x3e72   :  { %16719 = vpow2.f32 %v13095_v24  ;;  %v16380_v30 = vunpack.i.h.bf16 %v16378_v55  ;;  %v16379_v50 = vunpack.i.l.bf16 %v16378_v55  ;;  %16180 = vmatpush3.bf16.msra.mxu0 %v16179_v16  ;;  %v14402_v16 = vld [vmem:[%s19406_s22 + $0x30] sm:$0xff] }
0x3e73   :  { %16184 = vmatprep.subr.bf16.mxu0 %v16783_v17 }
0x3e74   :  { %v16716_v41 = vpop.eup %16715  ;;  %v16182_v61 = vpack.c.bf16 %v16380_v30, %v16379_v50  ;;  %v14403_v30 = vld [vmem:[%s19406_s22 + $0x38] sm:$0xff] }
0x3e75   :  { %v13100_v45 = vsel %vm8846_vm4, %v16716_v41, 0.0  ;;  %v16202_v50 = vpack.c.bf16 %v14403_v30, %v14402_v16  ;;  %v13796_v16 = vld [vmem:[%s19409_s25] sm:$0xff]  ;;  %v13799_v30 = vld [vmem:[%s19409_s25 + $0x18] sm:$0xff] }
0x3e76   :  { %13101 = vadd.xlane.f32.xlu1 %v13100_v45  ;;  %16183 = vmatpush3.bf16.msra.mxu1 %v16182_v61 }
0x3e77   :  { %16187 = vmatprep.subr.bf16.mxu1 %v16783_v17 }
0x3e78   :  { %v16718_v6 = vpop.eup %16717 }
0x3e79   :  { %v13103_v59 = vsel %vm8846_vm4, %v16718_v6, 0.0 }
0x3e7a   :  { %13104 = vadd.xlane.f32.xlu0 %v13103_v59 }
0x3e7c   :  { %v16720_v48 = vpop.eup %16719 }
0x3e7d   :  { %v13106_v60 = vsel %vm8846_vm4, %v16720_v48, 0.0 }
0x3e7e   :  { %13107 = vadd.xlane.f32.xlu1 %v13106_v60 }
0x3e8f   :  { %16382 = vrot.lane.b32.xlu1 %v19178_v7, %s19470_s9 }
0x3e90   :  { %16387 = vrot.lane.b32.xlu0 %v19157_v22, %s19470_s9 }
0x3e93   :  { %12722 = vrot.lane.b32.xlu1 %v19210_v49, %s19471_s5 }
0x3e97   :  { %12727 = vrot.lane.b32.xlu1 %v19212_v13, %s19464_s2 }
0x3e9b   :  { %12732 = vrot.lane.b32.xlu1 %v12716_v12, %s19472_s28 }
0x3ed2   :  { %v13099_v17 = vpop.xlane.xlu0 %13098 }
0x3ed3   :  { %16721 = vrcp.f32 %v13099_v17 }
0x3edd   :  { %v16722_v51 = vpop.eup %16721 }
0x3ede   :  { %v13110_v8 = vmul.f32 %v16722_v51, %v16714_v5  ;;  %v14399_v51 = vld [vmem:[%s19405_s21 + $0x1] ss:$0 sm:$0xff] }
0x3ee0   :  { %15827 = vmatmul.mubr.msk.f32.vlgmr.msra.gmra.mrb[152].mxu0 %vm8897_vm5, %v13110_v8 }
0x3ee1   :  { %15840 = vmatprep.mubr.msk.f32.mxu0 %vm16774_vm1, %v16773_v25 }
0x3f03   :  { %v13102_v7 = vpop.xlane.xlu1 %13101 }
0x3f04   :  { %16723 = vrcp.f32 %v13102_v7 }
0x3f07   :  { %v13105_v22 = vpop.xlane.xlu0 %13104 }
0x3f08   :  { %16725 = vrcp.f32 %v13105_v22 }
0x3f0b   :  { %v13108_v47 = vpop.xlane.xlu1 %13107  ;;  %v16388_v52 = vpop.permute.xlu0 %16387 }
0x3f0c   :  { %16727 = vrcp.f32 %v13108_v47  ;;  %v16390_v42 = vunpack.i.h.bf16 %v16388_v52  ;;  %v16389_v10 = vunpack.i.l.bf16 %v16388_v52  ;;  %v14406_v52 = vld [vmem:[%s19407_s23 + $0x40] sm:$0xff] }
0x3f0e   :  { %v16724_v38 = vpop.eup %16723  ;;  %v16188_v49 = vpack.c.bf16 %v16390_v42, %v16389_v10  ;;  %v14407_v42 = vld [vmem:[%s19407_s23 + $0x48] sm:$0xff]  ;;  %v14408_v10 = vld [vmem:[%s19407_s23 + $0x50] sm:$0xff] }
0x3f0f   :  { %v13112_v0 = vmul.f32 %v16724_v38, %v16716_v41  ;;  %v16383_v13 = vpop.permute.xlu1 %16382  ;;  %v16206_v38 = vpack.c.bf16 %v14407_v42, %v14406_v52  ;;  %v16784_v52 = vmov 0   ;;  %v16785_v42 = vmov 1983009808  }
0x3f10   :  { %v16385_v33 = vunpack.i.h.bf16 %v16383_v13  ;;  %v16384_v40 = vunpack.i.l.bf16 %v16383_v13  ;;  %v14410_v13 = vld [vmem:[%s19407_s23 + $0x60] sm:$0xff]  ;;  %16392 = vset.pattern.permute.xlu1 %v16784_v52  ;;  %16391 = vset.pattern.permute.xlu0 %v16784_v52 }
0x3f11   :  { %15834 = vmatmul.mubr.msk.f32.vlgmr.msra.gmra.mrb[154].mxu1 %vm8897_vm5, %v13112_v0 }
0x3f12   :  { %v16726_v46 = vpop.eup %16725  ;;  %v16185_v39 = vpack.c.bf16 %v16385_v33, %v16384_v40  ;;  %16189 = vmatpush3.bf16.msra.mxu1 %v16188_v49  ;;  %15847 = vmatprep.mubr.msk.f32.mxu1 %vm16774_vm1, %v16773_v25  ;;  %v14409_v49 = vld [vmem:[%s19407_s23 + $0x58] sm:$0xff]  ;;  %v14411_v33 = vld [vmem:[%s19407_s23 + $0x68] sm:$0xff]  ;;  %vm13972_vm1 = vcmask 519168  }
0x3f13   :  { %v12723_v27 = vpop.permute.xlu1 %12722  ;;  %v13114_v36 = vmul.f32 %v16726_v46, %v16718_v6  ;;  %v16210_v0 = vpack.c.bf16 %v14409_v49, %v14408_v10  ;;  %v16214_v40 = vpack.c.bf16 %v14411_v33, %v14410_v13  ;;  %v14412_v46 = vld [vmem:[%s19407_s23 + $0x70] sm:$0xff]  ;;  %v13885_v10 = vunpack.c.l.s4 %v16785_v42 }
0x3f14   :  { %12725 = vst.msk [vmem:[#allocation3] sm:$0x3f] %vm7509_vm13, %v12723_v27  ;;  %16186 = vmatpush3.bf16.msra.mxu0 %v16185_v39  ;;  %v14413_v39 = vld [vmem:[%s19407_s23 + $0x78] sm:$0xff] }
0x3f15   :  { %16191 = vmatprep.subr.bf16.mxu0 %v16190_v62  ;;  %v16218_v27 = vpack.c.bf16 %v14413_v39, %v14412_v46  ;;  %v13886_v49 = vunpack.c.0.s8 %v13885_v10 }
0x3f16   :  { %v16728_v12 = vpop.eup %16727 }
0x3f17   :  { %v13116_v23 = vmul.f32 %v16728_v12, %v16720_v48  ;;  %v12728_v32 = vpop.permute.xlu1 %12727  ;;  %15841 = vmatmul.mubr.msk.f32.vlgmr.msra.gmra.mrb[154].mxu0 %vm8897_vm5, %v13114_v36 }
0x3f18   :  { %12730 = vst.msk [vmem:[#allocation3] sm:$0x3f] %vm7515_vm14, %v12728_v32  ;;  %16193 = vmatpush3.bf16.msra.mxu0 %v16190_v62 }
0x3f19   :  { %15848 = vmatmul.mubr.msk.f32.vlgmr.msra.gmra.mrb[156].mxu1 %vm8897_vm5, %v13116_v23  ;;  %16195 = vmatprep.subr.bf16.mxu0 %v16194_v54 }
0x3f1b   :  { %v12733_v1 = vpop.permute.xlu1 %12732 }
0x3f1c   :  { %12735 = vst.msk [vmem:[#allocation3] sm:$0x3f] %vm7521_vm15, %v12733_v1  ;;  %16197 = vmatpush3.bf16.msra.mxu0 %v16194_v54 }
0x3f1d   :  { %16207 = vmatprep.subr.bf16.mxu0 %v16206_v38 }
0x3fb3   :  { %v13192_v2 = vpop.f32.mrb[152].mxu0 }
0x3fb4   :  { %13433 = vst.msk [vmem:[#allocation3 + $0x6] sm:$0x3f] %vm7503_vm12, %v13192_v2  ;;  %v15828_v20 = vpop.f32.mrb[153].mxu0  ;;  %vm14004_vm12 = vcmask 7168  }
0x3fe4   :  { %v13271_v63 = vpop.f32.mrb[154].mxu1 }
0x3fe5   :  { %v15835_v3 = vpop.f32.mrb[155].mxu1 }
0x3fea   :  { %v13350_v58 = vpop.f32.mrb[154].mxu0 }
0x3feb   :  { %13440 = vrot.lane.b32.xlu0 %v13350_v58, %s19464_s2  ;;  %v15842_v57 = vpop.f32.mrb[155].mxu0 }
0x3fec   :  { %v13429_v14 = vpop.f32.mrb[156].mxu1 }
0x3fed   :  { %v15849_v5 = vpop.f32.mrb[157].mxu1 }
0x3fef   :  { %13435 = vrot.lane.b32.xlu0 %v13271_v63, %s19471_s5 }
0x3ff3   :  { %13445 = vrot.lane.b32.xlu0 %v13429_v14, %s19472_s28 }
0x405d   :  { %v13441_v56 = vpop.permute.xlu0 %13440 }
0x4061   :  { %v13436_v4 = vpop.permute.xlu0 %13435 }
0x4062   :  { %13438 = vst.msk [vmem:[#allocation3 + $0x6] sm:$0x3f] %vm7509_vm13, %v13436_v4 }
0x4063   :  { %13443 = vst.msk [vmem:[#allocation3 + $0x6] sm:$0x3f] %vm7515_vm14, %v13441_v56 }
0x4065   :  { %v13446_v35 = vpop.permute.xlu0 %13445 }
0x4066   :  { %13448 = vst.msk [vmem:[#allocation3 + $0x6] sm:$0x3f] %vm7521_vm15, %v13446_v35 }
0x406d   :  { %v13449_v53 = vld [vmem:[#allocation3] sm:$0xff]  ;;  %v13450_v19 = vld [vmem:[#allocation3 + $0x8] sm:$0xf] }
0x406e   :  { %15858 = vmatprep.mubr.msk.f32.mxu0 %vm143_vm0, %v13449_v53 }
0x406f   :  { %15859 = vmatmul.mubr.msk.f32.vlgmr.msra.gmra.mrb[156].mxu0 %vm143_vm0, %v13450_v19 }
0x4070   :  { %16209 = vmatpush3.bf16.msra.mxu0 %v16206_v38  ;;  %v13887_v38 = vlaneseq }
0x4071   :  { %16211 = vmatprep.subr.bf16.mxu0 %v16210_v0 }
0x4074   :  { %16213 = vmatpush3.bf16.msra.mxu0 %v16210_v0  ;;  %v13888_v0 = vshrl.u32 %v13887_v38, 7 }
0x4075   :  { %16215 = vmatprep.subr.bf16.mxu0 %v16214_v40 }
0x4076   :  { %v13889_v13 = vsub.s32 %v13886_v49, %v13888_v0 }
0x4078   :  { %16217 = vmatpush3.bf16.msra.mxu0 %v16214_v40 }
0x4079   :  { %16219 = vmatprep.subr.bf16.mxu0 %v16218_v27 }
0x407c   :  { %16221 = vmatpush3.bf16.msra.mxu0 %v16218_v27 }
0x4142   :  { %v15860_v9 = vpop.f32.mrb[156].mxu0 }
0x4143   :  { %v19273_v11 = vadd.f32 %v15860_v9, %v19016_v44  ;;  %v13528_v43 = vpop.f32.mrb[157].mxu0  ;;  %v14400_v44 = vld [vmem:[%s19406_s22 + $0x20] sm:$0xff] }
0x4144   :  { %v19276_v29 = vadd.f32 %v13528_v43, %v19019_v34  ;;  %v14401_v34 = vld [vmem:[%s19406_s22 + $0x28] sm:$0xff] }
0x4145   :  { %v13542_v28 = vmul.f32 %v19273_v11, %v19273_v11  ;;  %v16198_v55 = vpack.c.bf16 %v14401_v34, %v14400_v44 }
0x4146   :  { %v13541_v26 = vmul.f32 %v19276_v29, %v19276_v29 }
0x4147   :  { %v13546_v31 = vsel %vm6732_vm7, %v13542_v28, 0.0  ;;  %16199 = vmatprep.subr.bf16.mxu1 %v16198_v55 }
0x4148   :  { %13547 = vadd.xlane.f32.xlu0 %v13546_v31  ;;  %v13543_v24 = vsel %vm143_vm0, %v13541_v26, 0.0  ;;  %16201 = vmatpush3.bf16.msra.mxu1 %v16198_v55  ;;  %v13797_v55 = vld [vmem:[%s19409_s25 + $0x8] sm:$0xff] }
0x4149   :  { %13544 = vadd.xlane.f32.xlu1 %v13543_v24  ;;  %16203 = vmatprep.subr.bf16.mxu1 %v16202_v50 }
0x414c   :  { %16205 = vmatpush3.bf16.msra.mxu1 %v16202_v50 }
0x41d5   :  { %v13548_v41 = vpop.xlane.xlu0 %13547 }
0x41d6   :  { %v13550_v61 = vmul.f32 0.03125, %v13548_v41  ;;  %v13545_v45 = vpop.xlane.xlu1 %13544 }
0x41d7   :  { %v13549_v6 = vmul.f32 0.03125, %v13545_v45 }
0x41d8   :  { %v13552_v59 = vadd.f32 1e-06, %v13550_v61 }
0x41d9   :  { %v13551_v48 = vadd.f32 1e-06, %v13549_v6 }
0x41da   :  { %16729 = vrsqrt.f32 %v13552_v59 }
0x41db   :  { %16731 = vrsqrt.f32 %v13551_v48 }
0x41e4   :  { %v16730_v60 = vpop.eup %16729 }
0x41e5   :  { %v16732_v17 = vpop.eup %16731  ;;  %v13556_v8 = vmul.f32 %v16730_v60, %v19273_v11 }
0x41e6   :  { %v13555_v7 = vmul.f32 %v16732_v17, %v19276_v29 }
0x41e7   :  { %v13564_v47 = vmul.f32 %v14399_v51, %v13556_v8 }
0x41e8   :  { %v13563_v22 = vmul.f32 %v14399_v51, %v13555_v7  ;;  %v14416_v51 = vld [vmem:[%s19478_s27] ss:$0 sm:$0xff] }
0x41ea   :  { %15869 = vmatprep.mubr.msk.f32.mxu1 %vm143_vm0, %v13563_v22 }
0x41eb   :  { %15870 = vmatmul.mubr.msk.f32.vlgmr.msra.gmra.mrb[158].mxu1 %vm143_vm0, %v13564_v47 }
0x42be   :  { %v15871_v36 = vpop.f32.mrb[158].mxu1 }
0x42bf   :  { %13673 = vrot.lane.b32.xlu1 %v15871_v36, %s19466_s26  ;;  %v13642_v12 = vpop.f32.mrb[159].mxu1  ;;  %v13654_v32 = vmul.f32 0.044715, %v15871_v36  ;;  %v13652_v14 = vmul.f32 0.5, %v15871_v36 }
0x42c0   :  { %13671 = vrot.lane.b32.xlu0 %v13642_v12, %s19466_s26  ;;  %v13653_v23 = vmul.f32 0.044715, %v13642_v12  ;;  %v13651_v57 = vmul.f32 0.5, %v13642_v12 }
0x42c1   :  { %v13656_v2 = vmul.f32 %v15871_v36, %v13654_v32 }
0x42c2   :  { %v13655_v1 = vmul.f32 %v13653_v23, %v13642_v12 }
0x42c3   :  { %v13658_v63 = vmul.f32 %v15871_v36, %v13656_v2 }
0x42c4   :  { %v13657_v20 = vmul.f32 %v13655_v1, %v13642_v12 }
0x42c5   :  { %v13660_v21 = vadd.f32 %v15871_v36, %v13658_v63 }
0x42c6   :  { %v13659_v3 = vadd.f32 %v13657_v20, %v13642_v12 }
0x42c7   :  { %v13662_v62 = vmul.f32 0.7978846, %v13660_v21 }
0x42c8   :  { %v13661_v18 = vmul.f32 0.7978846, %v13659_v3 }
0x42ca   :  { %16733 = vtanh.f32 %v13661_v18  ;;  %v13946_v18 = vld [vmem:[%s19479_s14 + $0x8] sm:$0xf] }
0x42cb   :  { %16735 = vtanh.f32 %v13662_v62  ;;  %vm13954_vm2 = vcmp.lt.s32.totalorder %v13946_v18, 0  ;;  %vm13948_vm10 = vcmp.ne.s32.totalorder %v13946_v18, 4294967196 }
0x42d4   :  { %v16734_v15 = vpop.eup %16733 }
0x42d5   :  { %v16736_v37 = vpop.eup %16735  ;;  %v13665_v54 = vadd.f32 1.0, %v16734_v15 }
0x42d6   :  { %v13666_v58 = vadd.f32 1.0, %v16736_v37 }
0x42d7   :  { %v13667_v56 = vmul.f32 %v13665_v54, %v13651_v57  ;;  %v13945_v57 = vld [vmem:[%s19479_s14] sm:$0xff] }
0x42d8   :  { %v13668_v4 = vmul.f32 %v13666_v58, %v13652_v14  ;;  %v13956_v58 = vsel %vm13954_vm2, 0, %v13946_v18  ;;  %vm13947_vm11 = vcmp.ne.s32.totalorder %v13945_v57, 4294967196 }
0x4331   :  { %v13674_v5 = vpop.permute.xlu1 %13673 }
0x4332   :  { %v13672_v35 = vpop.permute.xlu0 %13671  ;;  %v13678_v19 = vmul.f32 %v13674_v5, %v13668_v4 }
0x4333   :  { %v13677_v53 = vmul.f32 %v13672_v35, %v13667_v56 }
0x4335   :  { %15888 = vmatprep.mubr.msk.f32.mxu0 %vm3305_vm6, %v13677_v53 }
0x4336   :  { %15889 = vmatmul.mubr.msk.f32.vlgmr.msra.gmra.mrb[158].mxu0 %vm3305_vm6, %v13678_v19 }
0x4409   :  { %v15890_v9 = vpop.f32.mrb[158].mxu0 }
0x440a   :  { %v13770_v43 = vadd.f32 %v15890_v9, %v19273_v11  ;;  %v13760_v28 = vpop.f32.mrb[159].mxu0  ;;  %v13798_v11 = vld [vmem:[%s19409_s25 + $0x10] sm:$0xff] }
0x440b   :  { %v13769_v26 = vadd.f32 %v13760_v28, %v19276_v29  ;;  %v16222_v29 = vpack.c.bf16 %v13797_v55, %v13796_v16  ;;  %v16226_v50 = vpack.c.bf16 %v13799_v30, %v13798_v11 }
0x440c   :  { %v13773_v31 = vmul.f32 %v13770_v43, %v13770_v43 }
0x440d   :  { %v13772_v24 = vmul.f32 %v13769_v26, %v13769_v26  ;;  %16223 = vmatprep.subr.bf16.mxu1 %v16222_v29 }
0x440e   :  { %v13777_v44 = vsel %vm6732_vm7, %v13773_v31, 0.0  ;;  %16225 = vmatpush3.bf16.msra.mxu1 %v16222_v29  ;;  %vm13953_vm7 = vcmp.lt.s32.totalorder %v13945_v57, 0 }
0x440f   :  { %13778 = vadd.xlane.f32.xlu0 %v13777_v44  ;;  %v13774_v34 = vsel %vm143_vm0, %v13772_v24, 0.0  ;;  %16227 = vmatprep.subr.bf16.mxu1 %v16226_v50  ;;  %v13955_v14 = vsel %vm13953_vm7, 0, %v13945_v57 }
0x4410   :  { %13775 = vadd.xlane.f32.xlu1 %v13774_v34 }
0x4412   :  { %16229 = vmatpush3.bf16.msra.mxu1 %v16226_v50 }
0x449c   :  { %v13779_v41 = vpop.xlane.xlu0 %13778 }
0x449d   :  { %v13781_v61 = vmul.f32 0.03125, %v13779_v41  ;;  %v13776_v45 = vpop.xlane.xlu1 %13775 }
0x449e   :  { %v13780_v6 = vmul.f32 0.03125, %v13776_v45 }
0x449f   :  { %v13783_v59 = vadd.f32 1e-06, %v13781_v61 }
0x44a0   :  { %v13782_v48 = vadd.f32 1e-06, %v13780_v6 }
0x44a1   :  { %16737 = vrsqrt.f32 %v13783_v59 }
0x44a2   :  { %16739 = vrsqrt.f32 %v13782_v48 }
0x44ab   :  { %v16738_v60 = vpop.eup %16737 }
0x44ac   :  { %v16740_v17 = vpop.eup %16739  ;;  %v13787_v8 = vmul.f32 %v16738_v60, %v13770_v43  ;;  %v13958_v43 = vand.u32 127, %v13887_v38  ;;  %v14420_v60 = vsel %vm13948_vm10, 1.0, %v16773_v25 }
0x44ad   :  { %v13786_v7 = vmul.f32 %v16740_v17, %v13769_v26 }
0x44ae   :  { %v13795_v47 = vmul.f32 %v14416_v51, %v13787_v8 }
0x44af   :  { %v13794_v22 = vmul.f32 %v14416_v51, %v13786_v7  ;;  %v14419_v51 = vsel %vm13947_vm11, 1.0, %v16773_v25 }
0x44b0   :  { %v14018_v42 = vsel %vm14004_vm12, %v14419_v51, 0.0 }
0x44b1   :  { %15899 = vmatprep.mubr.msk.f32.mxu1 %vm143_vm0, %v13794_v22 }
0x44b2   :  { %15900 = vmatmul.mubr.msk.f32.vlgmr.msra.gmra.mrb[160].mxu1 %vm143_vm0, %v13795_v47  ;;  %vm13942_vm0 = vcmask 521216  }
0x4585   :  { %v15901_v33 = vpop.f32.mrb[160].mxu1 }
0x4586   :  { %v13872_v40 = vpop.f32.mrb[161].mxu1  ;;  %v13979_v46 = vsel %vm13972_vm1, %v15901_v33, -inf  ;;  %v13906_v12 = vrot.slane %v15901_v33, %v13889_v13 }
0x4587   :  { %v13883_v39 = vcombine.high %v13872_v40, %v13872_v40  ;;  %13980 = vmax.xlane.f32.xlu1 %v13979_v46  ;;  %v13976_v27 = vsel %vm3305_vm6, %v13872_v40, -inf  ;;  %v13890_v36 = vrot.slane %v13872_v40, %v13889_v13 }
0x4588   :  { %13977 = vmax.xlane.f32.xlu0 %v13976_v27  ;;  %v13907_v2 = vcombine.high %v13906_v12, %v13906_v12 }
0x4589   :  { %v13897_v23 = vrot.slane %v13883_v39, %v13889_v13  ;;  %v13898_v32 = vcombine.high %v13890_v36, %v13890_v36 }
0x458a   :  { %v13938_v37 = vrot.slane %v13907_v2, %v13889_v13 }
0x458b   :  { %v13899_v1 = vcombine.high %v13897_v23, %v13897_v23  ;;  %v13908_v20 = vcombine.low %v13890_v36, %v13898_v32  ;;  %v13922_v3 = vrot.slane %v13897_v23, %v13889_v13 }
0x458d   :  { %v13915_v63 = vrot.slane %v13908_v20, %v13889_v13  ;;  %v13924_v21 = vcombine.low %v13899_v1, %v13906_v12 }
0x458f   :  { %v13923_v62 = vcombine.low %v13915_v63, %v13922_v3  ;;  %v13931_v15 = vrot.slane %v13924_v21, %v13889_v13 }
0x4591   :  { %v13939_v54 = vcombine.low %v13931_v15, %v13938_v37  ;;  %13943 = vst.msk [vmem:[%s19480_s6] sm:$0x3f] %vm13942_vm0, %v13923_v62 }
0x4593   :  { %13944 = vst.msk [vmem:[%s19480_s6 + $0x8] sm:$0x3f] %vm13942_vm0, %v13939_v54 }
0x4598   :  { %13963 = vperm.xlu1 %16392, %v13956_v58  }
0x459e   :  { %13960 = vperm.xlu0 %16391, %v13955_v14  }
0x4614   :  { %v13981_v5 = vpop.xlane.xlu1 %13980 }
0x4615   :  { %v13983_v56 = vsub.f32 %v15901_v33, %v13981_v5  ;;  %v13978_v4 = vpop.xlane.xlu0 %13977 }
0x4616   :  { %v13982_v35 = vsub.f32 %v13872_v40, %v13978_v4 }
0x4617   :  { %v13986_v53 = vmul.f32 1.442695, %v13983_v56 }
0x4618   :  { %v13984_v19 = vmul.f32 1.442695, %v13982_v35  ;;  %v13964_v31 = vpop.permute.xlu1 %13963 }
0x4619   :  { %16741 = vpow2.f32 %v13986_v53  ;;  %vm13966_vm9 = vcmp.eq.s32.totalorder %v13958_v43, %v13964_v31 }
0x461a   :  { %16743 = vpow2.f32 %v13984_v19  ;;  %v13968_v55 = vsel %vm13966_vm9, %v15901_v33, 0.0 }
0x461b   :  { %v13973_v11 = vsel %vm13972_vm1, %v13968_v55, 0.0 }
0x461d   :  { %v13961_v9 = vpop.permute.xlu0 %13960 }
0x461e   :  { %vm13965_vm8 = vcmp.eq.s32.totalorder %v13958_v43, %v13961_v9 }
0x461f   :  { %v13967_v34 = vsel %vm13965_vm8, %v13872_v40, 0.0 }
0x4620   :  { %v13969_v16 = vsel %vm3305_vm6, %v13967_v34, 0.0 }
0x4623   :  { %v16742_v28 = vpop.eup %16741 }
0x4624   :  { %v16744_v26 = vpop.eup %16743  ;;  %v13991_v24 = vsel %vm13972_vm1, %v16742_v28, 0.0 }
0x4625   :  { %13992 = vadd.xlane.f32.xlu0 %v13991_v24  ;;  %v13988_v44 = vsel %vm3305_vm6, %v16744_v26, 0.0  ;;  %vm14006_vm6 = vcmask 3072  }
0x4626   :  { %13989 = vadd.xlane.f32.xlu1 %v13988_v44  ;;  %v14019_v38 = vsel %vm14006_vm6, %v14420_v60, 0.0 }
0x4627   :  { %v14020_v0 = vadd.f32 %v14019_v38, %v14018_v42 }
0x462a   :  { %13970 = vadd.xlane.f32.xlu1 %v13969_v16 }
0x462e   :  { %13974 = vadd.xlane.f32.xlu1 %v13973_v11 }
0x46b2   :  { %v13993_v29 = vpop.xlane.xlu0 %13992 }
0x46b3   :  { %16745 = vlog2.f32 %v13993_v29  ;;  %v13990_v30 = vpop.xlane.xlu1 %13989 }
0x46b4   :  { %16747 = vlog2.f32 %v13990_v30 }
0x46b7   :  { %v13971_v50 = vpop.xlane.xlu1 %13970 }
0x46bb   :  { %v13975_v17 = vpop.xlane.xlu1 %13974 }
0x46bd   :  { %v16746_v41 = vpop.eup %16745 }
0x46be   :  { %v16748_v61 = vpop.eup %16747  ;;  %v13997_v45 = vmul.f32 0.6931472, %v16746_v41 }
0x46bf   :  { %v13995_v6 = vmul.f32 0.6931472, %v16748_v61 }
0x46c0   :  { %v13999_v59 = vadd.f32 %v13997_v45, %v13981_v5 }
0x46c1   :  { %v13998_v48 = vadd.f32 %v13995_v6, %v13978_v4 }
0x46c2   :  { %v14001_v8 = vsub.f32 %v13999_v59, %v13975_v17 }
0x46c3   :  { %v14000_v7 = vsub.f32 %v13998_v48, %v13971_v50 }
0x46c4   :  { %v14003_v22 = vmul.f32 %v14420_v60, %v14001_v8 }
0x46c5   :  { %v14002_v47 = vmul.f32 %v14419_v51, %v14000_v7 }
0x46c6   :  { %v14007_v52 = vsel %vm14006_vm6, %v14003_v22, 0.0 }
0x46c7   :  { %v14005_v10 = vsel %vm14004_vm12, %v14002_v47, 0.0 }
0x46c8   :  { %v14008_v49 = vadd.f32 %v14007_v52, %v14005_v10 }
0x46ca   :  { %14009 = vadd.xlane.f32.xlu1 %v14008_v49 }
0x46ce   :  { %14021 = vadd.xlane.f32.xlu1 %v14020_v0 }
0x4757   :  { %v14010_v13 = vpop.xlane.xlu1 %14009 }
0x4758   :  { %v14011_v33 = vrot.slane %v14010_v13, 4 }
0x475a   :  { %v14012_v40 = vadd.f32 %v14011_v33, %v14010_v13 }
0x475b   :  { %v14022_v46 = vpop.xlane.xlu1 %14021 }
0x475c   :  { %v14013_v39 = vrot.slane %v14012_v40, 2  ;;  %v14023_v25 = vrot.slane %v14022_v46, 4 }
0x475e   :  { %v14024_v27 = vadd.f32 %v14023_v25, %v14022_v46  ;;  %v14014_v36 = vadd.f32 %v14013_v39, %v14012_v40 }
0x4760   :  { %v14025_v12 = vrot.slane %v14024_v27, 2  ;;  %v14015_v23 = vrot.slane %v14014_v36, 1 }
0x4762   :  { %v14026_v32 = vadd.f32 %v14025_v12, %v14024_v27  ;;  %v14016_v1 = vadd.f32 %v14015_v23, %v14014_v36 }
0x4764   :  { %16230 = vpush %v14016_v1  ;;  %v14027_v2 = vrot.slane %v14026_v32, 1 }
0x4766   :  { %v14028_v20 = vadd.f32 %v14027_v2, %v14026_v32 }
0x4768   :  { %16232 = vpush %v14028_v20 }
0x4795   :  { %s16231_s17 = spop %16230 }
0x4799   :  { %s16233_s13 = spop %16232 }
0x479a   :  { %s14030_s30 = smax.f32 %s16786_s4, %s16233_s13 }
0x479b   :  { %v14031_v63 = vstv %s14030_s30 }
0x479c   :  { %16749 = vrcp.f32 %v14031_v63 }
0x47a6   :  { %v16750_v3 = vpop.eup %16749 }
0x47a7   :  { %16234 = vpush %v16750_v3 }
0x47d8   :  { %s16235_s8 = spop %16234 }
0x47d9   :  { %s14034_s9 = smul.f32 %s16235_s8, %s16231_s17 }
0x47db   :  { %14036 = sst [smem:[#allocation4]] %s14034_s9 }
0x47dc   :  { %16770 = shalt.err (!%p16767_p2)
}
0x47dd   :  { %s16787_s20 = smov [#allocation4]  }
0x47de   :  { %14046 = dma.smem_to_hbm %s16787_s20, 16, %s19481_s16, [#allocation5]  }
0x47df   :  { %16771 = dma.done.wait [#allocation5], 16  }
0x47e0   :  { %16772 = vsyncadd [#allocation5], 4294967280 }
0x47e1   :  { %14052 = sfence }
0x47e2   :  { %14053 = vsyncpa [#allocation5], 1 }

</bundles_post_ra>
